<compile_context>
chip_gen: v6e
topology: v6e:2x2x1
jax: 0.10.0
libtpu: 0.0.40
codegen_flags: <defaults>
</compile_context>

<pallas_src>
import jax
import jax.numpy as jnp
from jax.experimental import pallas as pl
from jax.experimental.pallas import tpu as pltpu


# ----------------------------------------------------------------------------------
# Host-side (batch-invariant) GP kernel matrix, iota%4 masks instead of kron buffers.
# ----------------------------------------------------------------------------------
def _time_grids(t_hist, t_pred, dt, num_goals):
    t_obs = jnp.linspace(0.0, dt * (t_hist - 1), t_hist, dtype=jnp.float32)
    t_goal = jnp.asarray(
        [(t_hist - 1) * dt + (i + 1) * (t_pred // num_goals) * dt for i in range(num_goals)],
        dtype=jnp.float32,
    )
    t_train = jnp.concatenate([t_obs, t_goal], axis=-1)
    # torch.arange(t_hist*dt, (t_hist+t_pred)*dt, dt) -> exactly t_pred points
    t = (jnp.arange(t_hist, t_hist + t_pred, dtype=jnp.float32) * dt).astype(jnp.float32)
    return t_train, t


def _gp_kernel_matrix(t1, t2, theta, theta_dot, tau, cross_terms=True):
    """Batch-invariant 4N1 x 4N2 GP kernel matrix (matches GaussianProcessBase.kernel)."""
    n1, n2 = t1.shape[-1], t2.shape[-1]
    t1c = jnp.repeat(t1, 4)[:, None].astype(jnp.float32)   # (4N1, 1)
    t2r = jnp.repeat(t2, 4)[None, :].astype(jnp.float32)   # (1, 4N2)
    t1til = t1c + tau
    t2til = t2r + tau

    mn_til = jnp.minimum(t1til, t2til)
    mn = jnp.minimum(t1c, t2r)
    prod = t1c * t2r                                         # == t1.mm(t2) outer product

    kpos = mn_til ** 3 / 3.0 + jnp.abs(t1c - t2r) * mn_til ** 2 / 2.0
    kfu = jnp.where(t1c < t2r, t1c ** 2 / 2.0, prod - t2r ** 2 / 2.0)   # k{x,y}{u,v}
    kuf = jnp.where(t2r < t1c, t2r ** 2 / 2.0, prod - t1c ** 2 / 2.0)   # k{u,v}{x,y}

    th_x, th_y = theta[0], theta[1]
    thd_x, thd_y = theta_dot[0], theta_dot[1]

    kxx, kyy = th_x ** 2 * kpos, th_y ** 2 * kpos
    kxu, kux = th_x * thd_x * kfu, th_x * thd_x * kuf
    kyv, kvy = th_y * thd_y * kfu, th_y * thd_y * kuf
    kuu, kvv = thd_x ** 2 * mn, thd_y ** 2 * mn

    ri = jnp.arange(4 * n1)[:, None] % 4
    ci = jnp.arange(4 * n2)[None, :] % 4

    def sel(a, b):
        return ((ri == a) & (ci == b)).astype(jnp.float32)

    if cross_terms:
        K = (sel(0, 0) * kxx + sel(0, 2) * kxu + sel(2, 0) * kux + sel(2, 2) * kuu
             + sel(1, 1) * kyy + sel(1, 3) * kyv + sel(3, 1) * kvy + sel(3, 3) * kvv)
    else:
        K = sel(0, 0) * kxx + sel(2, 2) * kxx + sel(1, 1) * kyy + sel(3, 3) * kyy
    return K


# ----------------------------------------------------------------------------------
# Pallas kernel: per-batch block-diag, SPD inverse (Gauss-Jordan), posterior mu/cov.
# ----------------------------------------------------------------------------------
def _gp_forward_kernel(y_ref, co_ref, cg_ref, ktt_ref, ktT_ref, kTt_ref, kTT_ref,
                       mu_ref, cov_ref):
    f32 = jnp.float32
    y = y_ref[...].astype(f32)        # (TB, 1, NT4)   flattened y_train
    co = co_ref[...].astype(f32)      # (TB, To4, To4) cov_obs
    cg = cg_ref[...].astype(f32)      # (TB, Tg4, Tg4) cov_goal
    K_tt = ktt_ref[...]               # (NP4, NP4)
    K_tT = ktT_ref[...]               # (NP4, NT4)
    K_Tt = kTt_ref[...]               # (NT4, NP4)  (pre-transposed on host)
    K_TT = kTT_ref[...]               # (NT4, NT4)

    TB, To4, _ = co.shape
    Tg4 = cg.shape[-1]
    NT4 = To4 + Tg4
    NP4 = K_tt.shape[-1]

    # var_train = block_diag(cov_obs, cov_goal) per batch row
    top = jnp.concatenate([co, jnp.zeros((TB, To4, Tg4), f32)], axis=-1)
    bot = jnp.concatenate([jnp.zeros((TB, Tg4, To4), f32), cg], axis=-1)
    var_train = jnp.concatenate([top, bot], axis=-2)                      # (TB, NT4, NT4)

    A = jnp.broadcast_to(K_TT, (TB, NT4, NT4)) + var_train                # SPD

    # Batched unpivoted Gauss-Jordan: [A | I] -> [I | A^-1]
    eye = jnp.broadcast_to(jnp.eye(NT4, dtype=f32), (TB, NT4, NT4))
    aug = jnp.concatenate([A, eye], axis=-1)                              # (TB, NT4, 2*NT4)
    rows = jax.lax.broadcasted_iota(jnp.int32, (TB, NT4, 2 * NT4), 1)
    cols = jax.lax.broadcasted_iota(jnp.int32, (TB, NT4, 2 * NT4), 2)
    cols_row = jax.lax.broadcasted_iota(jnp.int32, (TB, 1, 2 * NT4), 2)

    def gj_step(k, aug):
        is_pivot_row = rows == k
        pivot_row = jnp.sum(jnp.where(is_pivot_row, aug, 0.0), axis=1, keepdims=True)  # (TB,1,2N)
        pivot = jnp.sum(jnp.where(cols_row == k, pivot_row, 0.0), axis=2, keepdims=True)
        pivot_row = pivot_row * (1.0 / pivot)                                          # scaled row k
        col_k = jnp.sum(jnp.where(cols == k, aug, 0.0), axis=2, keepdims=True)         # (TB,N,1)
        eliminated = aug - col_k * pivot_row
        return jnp.where(is_pivot_row, pivot_row, eliminated)

    aug = jax.lax.fori_loop(0, NT4, gj_step, aug, unroll=True)
    A_inv = aug[:, :, NT4:]                                               # (TB, NT4, NT4)

    # M = K_tT @ A_inv  (shared lhs, batched rhs)
    K_tT_b = jnp.broadcast_to(K_tT, (TB, NP4, NT4))
    M = jnp.einsum('bpn,bnm->bpm', K_tT_b, A_inv, preferred_element_type=f32)   # (TB,NP4,NT4)

    # mu: lane-dense (TB, 1, NP4)
    mu = jnp.einsum('bqn,bpn->bqp', y, M, preferred_element_type=f32)           # (TB,1,NP4)

    # cov = K_tt - M @ K_tT^T
    K_Tt_b = jnp.broadcast_to(K_Tt, (TB, NT4, NP4))
    cov = jnp.broadcast_to(K_tt, (TB, NP4, NP4)) - jnp.einsum(
        'bpn,bnq->bpq', M, K_Tt_b, preferred_element_type=f32)

    mu_ref[...] = mu.astype(mu_ref.dtype)
    cov_ref[...] = cov.astype(cov_ref.dtype)


def gaussian_process_forward(y_obs, cov_obs, y_goal, cov_goal, params, *,
                             t_hist, t_pred, dt=0.1, num_goals=1,
                             cross_terms=True, block_b=8):
    theta = params["theta"].astype(jnp.float32)
    theta_dot = params["theta_dot"].astype(jnp.float32)
    tau = params["tau"].astype(jnp.float32)[0]

    B = y_obs.shape[0]
    To4, Tg4 = 4 * t_hist, 4 * num_goals
    NT4, NP4 = To4 + Tg4, 4 * t_pred

    # Batch-invariant kernel matrices (host precompute, K_tT also pre-transposed).
    t_train, t = _time_grids(t_hist, t_pred, dt, num_goals)
    K_tt = _gp_kernel_matrix(t, t, theta, theta_dot, tau, cross_terms)        # (NP4,NP4)
    K_tT = _gp_kernel_matrix(t, t_train, theta, theta_dot, tau, cross_terms)  # (NP4,NT4)
    K_TT = _gp_kernel_matrix(t_train, t_train, theta, theta_dot, tau, cross_terms)
    K_Tt = K_tT.T

    # Free reshapes + one tiny concat: y_train flattened, batch kept off the sublane axis.
    y_train = jnp.concatenate(
        [y_obs.reshape(B, -1), y_goal.reshape(B, -1)], axis=-1).astype(jnp.float32)
    y_train = y_train[:, None, :]                                             # (B, 1, NT4)
    cov_obs = cov_obs.astype(jnp.float32)
    cov_goal = cov_goal.astype(jnp.float32)

    # Batch several rows per grid step; pad batch (padded rows use identity covariances
    # so the SPD inverse stays well defined; their outputs are dropped).
    TB = max(1, min(block_b, B))
    Bp = ((B + TB - 1) // TB) * TB
    if Bp != B:
        pad = Bp - B
        y_train = jnp.concatenate([y_train, jnp.zeros((pad, 1, NT4), jnp.float32)], 0)
        cov_obs = jnp.concatenate(
            [cov_obs, jnp.broadcast_to(jnp.eye(To4, dtype=jnp.float32), (pad, To4, To4))], 0)
        cov_goal = jnp.concatenate(
            [cov_goal, jnp.broadcast_to(jnp.eye(Tg4, dtype=jnp.float32), (pad, Tg4, Tg4))], 0)

    mu_flat, cov = pl.pallas_call(
        _gp_forward_kernel,
        out_shape=(
            jax.ShapeDtypeStruct((Bp, 1, NP4), jnp.float32),
            jax.ShapeDtypeStruct((Bp, NP4, NP4), jnp.float32),
        ),
        grid_spec=pltpu.PrefetchScalarGridSpec(
            num_scalar_prefetch=0,
            grid=(Bp // TB,),
            in_specs=[
                pl.BlockSpec((TB, 1, NT4), lambda i: (i, 0, 0)),     # y_train
                pl.BlockSpec((TB, To4, To4), lambda i: (i, 0, 0)),   # cov_obs
                pl.BlockSpec((TB, Tg4, Tg4), lambda i: (i, 0, 0)),   # cov_goal
                pl.BlockSpec((NP4, NP4), lambda i: (0, 0)),          # K_tt (shared)
                pl.BlockSpec((NP4, NT4), lambda i: (0, 0)),          # K_tT (shared)
                pl.BlockSpec((NT4, NP4), lambda i: (0, 0)),          # K_tT^T (shared)
                pl.BlockSpec((NT4, NT4), lambda i: (0, 0)),          # K_TT (shared)
            ],
            out_specs=[
                pl.BlockSpec((TB, 1, NP4), lambda i: (i, 0, 0)),
                pl.BlockSpec((TB, NP4, NP4), lambda i: (i, 0, 0)),
            ],
        ),
        compiler_params=pltpu.CompilerParams(
            dimension_semantics=("parallel",),          # independent batch blocks (v7x 2-TC)
            vmem_limit_bytes=32 * 1024 * 1024,          # explicit; fits v5e/v6e/v7x scoped VMEM
        ),
    )(y_train, cov_obs, cov_goal, K_tt, K_tT, K_Tt, K_TT)

    mu = mu_flat[:B, 0, :].reshape(B, t_pred, 4)
    return mu, cov[:B]


# ----------------------------------------------------------------------------------
# Plain-JAX reference (mirrors the PyTorch module, incl. the kron selector buffers).
# ----------------------------------------------------------------------------------
def _kernel_matrix_reference(t1, t2, theta, theta_dot, tau, cross_terms=True):
    n1, n2 = t1.shape[-1], t2.shape[-1]
    t1 = jnp.repeat(t1, 4).reshape(-1, 1).astype(jnp.float32)
    t2 = jnp.repeat(t2, 4).reshape(1, -1).astype(jnp.float32)
    t1til, t2til = t1 + tau, t2 + tau

    def sel(a, b):
        e = jnp.zeros((4, 4), jnp.float32).at[a, b].set(1.0)
        return jnp.kron(jnp.ones((n1, n2), jnp.float32), e)

    Ixx, Ixu, Iux, Iuu = sel(0, 0), sel(0, 2), sel(2, 0), sel(2, 2)
    Iyy, Iyv, Ivy, Ivv = sel(1, 1), sel(1, 3), sel(3, 1), sel(3, 3)
    th_x, th_y = theta[0], theta[1]
    thd_x, thd_y = theta_dot[0], theta_dot[1]
    mm = t1 @ t2
    kxx = th_x ** 2 * (jnp.minimum(t1til, t2til) ** 3 / 3.0
                       + jnp.abs(t1 - t2) * jnp.minimum(t1til, t2til) ** 2 / 2.0)
    kxu = th_x * thd_x * ((t1 < t2) * t1 ** 2 / 2.0 + (t1 >= t2) * (mm - t2 ** 2 / 2.0))
    kux = th_x * thd_x * ((t2 < t1) * t2 ** 2 / 2.0 + (t2 >= t1) * (mm - t1 ** 2 / 2.0))
    kuu = thd_x ** 2 * jnp.minimum(t1, t2)
    kyy = th_y ** 2 * (jnp.minimum(t1til, t2til) ** 3 / 3.0
                       + jnp.abs(t1 - t2) * jnp.minimum(t1til, t2til) ** 2 / 2.0)
    kyv = th_y * thd_y * ((t1 < t2) * t1 ** 2 / 2.0 + (t1 >= t2) * (mm - t2 ** 2 / 2.0))
    kvy = th_y * thd_y * ((t2 < t1) * t2 ** 2 / 2.0 + (t2 >= t1) * (mm - t1 ** 2 / 2.0))
    kvv = thd_y ** 2 * jnp.minimum(t1, t2)
    if cross_terms:
        return (Ixx * kxx + Ixu * kxu + Iux * kux + Iuu * kuu
                + Iyy * kyy + Iyv * kyv + Ivy * kvy + Ivv * kvv)
    return Ixx * kxx + Iuu * kxx + Iyy * kyy + Ivv * kyy


def _reference_forward(y_obs, cov_obs, y_goal, cov_goal, params, *,
                       t_hist, t_pred, dt, num_goals, cross_terms=True):
    theta, theta_dot = params["theta"], params["theta_dot"]
    tau = params["tau"][0]
    B = y_obs.shape[0]
    t_train, t = _time_grids(t_hist, t_pred, dt, num_goals)
    y_train = jnp.concatenate([y_obs, y_goal], axis=-2).reshape(B, -1)
    no, ng = cov_obs.shape[-1], cov_goal.shape[-1]
    var_train = jnp.zeros((B, no + ng, no + ng), jnp.float32)
    var_train = var_train.at[:, :no, :no].set(cov_obs).at[:, no:, no:].set(cov_goal)
    K_tt = _kernel_matrix_reference(t, t, theta, theta_dot, tau, cross_terms)
    K_tT = _kernel_matrix_reference(t, t_train, theta, theta_dot, tau, cross_terms)
    K_TT = _kernel_matrix_reference(t_train, t_train, theta, theta_dot, tau, cross_terms)
    K_TT_inv = jnp.linalg.inv(K_TT[None] + var_train)
    KM = jnp.einsum('pn,bnm->bpm', K_tT, K_TT_inv)
    mu = jnp.einsum('bpm,bm->bp', KM, y_train).reshape(B, -1, 4)
    cov = K_tt[None] - jnp.einsum('bpm,qm->bpq', KM, K_tT)
    return mu, cov


if __name__ == "__main__":
    t_hist, t_pred, num_goals, dt = 8, 8, 1, 0.1
    B = 2
    To4, Tg4 = 4 * t_hist, 4 * num_goals

    key = jax.random.PRNGKey(0)
    k = jax.random.split(key, 4)

    y_obs = jax.random.normal(k[0], (B, t_hist, 4), jnp.float32)
    y_goal = jax.random.normal(k[1], (B, num_goals, 4), jnp.float32)

    def rand_spd(kk, n):  # well-conditioned PD covariances (valid inputs for this module)
        w = jax.random.normal(kk, (B, n, n), jnp.float32) * 0.05
        return jnp.einsum('bij,bkj->bik', w, w) + 0.5 * jnp.eye(n, dtype=jnp.float32)

    cov_obs = rand_spd(k[2], To4)
    cov_goal = rand_spd(k[3], Tg4)

    params = {
        "theta": jnp.array([1.0, 1.0], jnp.float32),
        "theta_dot": jnp.array([1.0, 1.0], jnp.float32),
        "tau": jnp.array([1.5], jnp.float32),
    }

    mu, cov = gaussian_process_forward(
        y_obs, cov_obs, y_goal, cov_goal, params,
        t_hist=t_hist, t_pred=t_pred, dt=dt, num_goals=num_goals, cross_terms=True)
    mu = jax.block_until_ready(mu)
    cov = jax.block_until_ready(cov)

    mu_ref, cov_ref = _reference_forward(
        y_obs, cov_obs, y_goal, cov_goal, params,
        t_hist=t_hist, t_pred=t_pred, dt=dt, num_goals=num_goals, cross_terms=True)
    mu_ref = jax.block_until_ready(mu_ref)
    cov_ref = jax.block_until_ready(cov_ref)

    assert mu.shape == (B, t_pred, 4)
    assert cov.shape == (B, 4 * t_pred, 4 * t_pred)
    assert bool(jnp.all(jnp.isfinite(mu))) and bool(jnp.all(jnp.isfinite(cov)))
    assert bool(jnp.allclose(mu, mu_ref, atol=2e-2, rtol=2e-2)), "mu mismatch vs reference"
    assert bool(jnp.allclose(cov, cov_ref, atol=2e-2, rtol=2e-2)), "cov mismatch vs reference"

    print("KERNEL_OK")
</pallas_src>

<mosaic_0001>
module attributes {stable_mosaic.version = 11 : i64} {
  func.func @_gp_forward_kernel(%arg0: i32, %arg1: memref<2x1x36xf32, #tpu.memory_space<vmem>>, %arg2: memref<2x32x32xf32, #tpu.memory_space<vmem>>, %arg3: memref<2x4x4xf32, #tpu.memory_space<vmem>>, %arg4: memref<32x32xf32, #tpu.memory_space<vmem>>, %arg5: memref<32x36xf32, #tpu.memory_space<vmem>>, %arg6: memref<36x32xf32, #tpu.memory_space<vmem>>, %arg7: memref<36x36xf32, #tpu.memory_space<vmem>>, %arg8: memref<2x1x32xf32, #tpu.memory_space<vmem>>, %arg9: memref<2x32x32xf32, #tpu.memory_space<vmem>>) attributes {dimension_semantics = [#tpu.dimension_semantics<parallel>], iteration_bounds = array<i64: 1>, scalar_prefetch = 0 : i64, scratch_operands = 0 : i64, tpu.core_type = #tpu.core_type<tc>, window_params = [{transform_indices = @transform_0, window_bounds = array<i64: 2, 1, 36>}, {transform_indices = @transform_1, window_bounds = array<i64: 2, 32, 32>}, {transform_indices = @transform_2, window_bounds = array<i64: 2, 4, 4>}, {pipeline_mode = #tpu.pipeline_mode<synchronous>, transform_indices = @transform_3, window_bounds = array<i64: 32, 32>}, {pipeline_mode = #tpu.pipeline_mode<synchronous>, transform_indices = @transform_4, window_bounds = array<i64: 32, 36>}, {pipeline_mode = #tpu.pipeline_mode<synchronous>, transform_indices = @transform_5, window_bounds = array<i64: 36, 32>}, {pipeline_mode = #tpu.pipeline_mode<synchronous>, transform_indices = @transform_6, window_bounds = array<i64: 36, 36>}, {transform_indices = @transform_7, window_bounds = array<i64: 2, 1, 32>}, {transform_indices = @transform_8, window_bounds = array<i64: 2, 32, 32>}]} {
    %c0 = arith.constant 0 : index
    %c0_0 = arith.constant 0 : index
    %c0_1 = arith.constant 0 : index
    %0 = vector.load %arg1[%c0, %c0_0, %c0_1] : memref<2x1x36xf32, #tpu.memory_space<vmem>>, vector<2x1x36xf32>
    %c0_2 = arith.constant 0 : index
    %c0_3 = arith.constant 0 : index
    %c0_4 = arith.constant 0 : index
    %1 = vector.load %arg2[%c0_2, %c0_3, %c0_4] : memref<2x32x32xf32, #tpu.memory_space<vmem>>, vector<2x32x32xf32>
    %c0_5 = arith.constant 0 : index
    %c0_6 = arith.constant 0 : index
    %c0_7 = arith.constant 0 : index
    %2 = vector.load %arg3[%c0_5, %c0_6, %c0_7] : memref<2x4x4xf32, #tpu.memory_space<vmem>>, vector<2x4x4xf32>
    %c0_8 = arith.constant 0 : index
    %c0_9 = arith.constant 0 : index
    %3 = vector.load %arg4[%c0_8, %c0_9] : memref<32x32xf32, #tpu.memory_space<vmem>>, vector<32x32xf32>
    %c0_10 = arith.constant 0 : index
    %c0_11 = arith.constant 0 : index
    %4 = vector.load %arg5[%c0_10, %c0_11] : memref<32x36xf32, #tpu.memory_space<vmem>>, vector<32x36xf32>
    %c0_12 = arith.constant 0 : index
    %c0_13 = arith.constant 0 : index
    %5 = vector.load %arg6[%c0_12, %c0_13] : memref<36x32xf32, #tpu.memory_space<vmem>>, vector<36x32xf32>
    %c0_14 = arith.constant 0 : index
    %c0_15 = arith.constant 0 : index
    %6 = vector.load %arg7[%c0_14, %c0_15] : memref<36x36xf32, #tpu.memory_space<vmem>>, vector<36x36xf32>
    %cst = arith.constant 0.000000e+00 : f32
    %7 = vector.broadcast %cst : f32 to vector<2x32x4xf32>
    %8 = tpu.concatenate %1, %7 in 2 : vector<2x32x32xf32>, vector<2x32x4xf32> -> vector<2x32x36xf32>
    %cst_16 = arith.constant 0.000000e+00 : f32
    %9 = vector.broadcast %cst_16 : f32 to vector<2x4x32xf32>
    %10 = tpu.concatenate %9, %2 in 2 : vector<2x4x32xf32>, vector<2x4x4xf32> -> vector<2x4x36xf32>
    %11 = tpu.concatenate %8, %10 in 1 : vector<2x32x36xf32>, vector<2x4x36xf32> -> vector<2x36x36xf32>
    %12 = vector.shape_cast %6 : vector<36x36xf32> to vector<1x36x36xf32>
    %13 = vector.broadcast %12 : vector<1x36x36xf32> to vector<2x36x36xf32>
    %14 = arith.addf %13, %11 : vector<2x36x36xf32>
    %15 = tpu.iota {dimensions = array<i32: 0>} : vector<36x36xi32>
    %16 = tpu.iota {dimensions = array<i32: 1>} : vector<36x36xi32>
    %c0_i32 = arith.constant 0 : i32
    %17 = vector.broadcast %c0_i32 : i32 to vector<36x36xi32>
    %18 = arith.addi %15, %17 : vector<36x36xi32>
    %19 = arith.cmpi eq, %18, %16 : vector<36x36xi32>
    %20 = arith.extui %19 : vector<36x36xi1> to vector<36x36xi32>
    %21 = arith.sitofp %20 : vector<36x36xi32> to vector<36x36xf32>
    %22 = vector.shape_cast %21 : vector<36x36xf32> to vector<1x36x36xf32>
    %23 = vector.broadcast %22 : vector<1x36x36xf32> to vector<2x36x36xf32>
    %24 = tpu.concatenate %14, %23 in 2 : vector<2x36x36xf32>, vector<2x36x36xf32> -> vector<2x36x72xf32>
    %25 = tpu.iota {dimensions = array<i32: 1>} : vector<2x36x72xi32>
    %26 = tpu.iota {dimensions = array<i32: 2>} : vector<2x36x72xi32>
    %27 = tpu.iota {dimensions = array<i32: 2>} : vector<2x1x72xi32>
    %c0_i32_17 = arith.constant 0 : i32
    %28 = vector.broadcast %c0_i32_17 : i32 to vector<2x36x72xi32>
    %29 = arith.cmpi eq, %25, %28 : vector<2x36x72xi32>
    %cst_18 = arith.constant 0.000000e+00 : f32
    %30 = vector.broadcast %cst_18 : f32 to vector<2x36x72xf32>
    %31 = arith.select %29, %24, %30 : vector<2x36x72xi1>, vector<2x36x72xf32>
    %cst_19 = arith.constant dense<0.000000e+00> : vector<2x72xf32>
    %32 = vector.multi_reduction <add>, %31, %cst_19 [1] : vector<2x36x72xf32> to vector<2x72xf32>
    %33 = vector.shape_cast %32 : vector<2x72xf32> to vector<2x1x72xf32>
    %34 = vector.broadcast %c0_i32_17 : i32 to vector<2x1x72xi32>
    %35 = arith.cmpi eq, %27, %34 : vector<2x1x72xi32>
    %cst_20 = arith.constant 0.000000e+00 : f32
    %36 = vector.broadcast %cst_20 : f32 to vector<2x1x72xf32>
    %37 = arith.select %35, %33, %36 : vector<2x1x72xi1>, vector<2x1x72xf32>
    %cst_21 = arith.constant dense<0.000000e+00> : vector<2x1xf32>
    %38 = vector.multi_reduction <add>, %37, %cst_21 [2] : vector<2x1x72xf32> to vector<2x1xf32>
    %39 = vector.shape_cast %38 : vector<2x1xf32> to vector<2x1x1xf32>
    %cst_22 = arith.constant 1.000000e+00 : f32
    %40 = vector.broadcast %cst_22 : f32 to vector<2x1x1xf32>
    %41 = arith.divf %40, %39 : vector<2x1x1xf32>
    %42 = vector.broadcast %41 : vector<2x1x1xf32> to vector<2x1x72xf32>
    %43 = arith.mulf %33, %42 : vector<2x1x72xf32>
    %44 = vector.broadcast %c0_i32_17 : i32 to vector<2x36x72xi32>
    %45 = arith.cmpi eq, %26, %44 : vector<2x36x72xi32>
    %cst_23 = arith.constant 0.000000e+00 : f32
    %46 = vector.broadcast %cst_23 : f32 to vector<2x36x72xf32>
    %47 = arith.select %45, %24, %46 : vector<2x36x72xi1>, vector<2x36x72xf32>
    %cst_24 = arith.constant dense<0.000000e+00> : vector<2x36xf32>
    %48 = vector.multi_reduction <add>, %47, %cst_24 [2] : vector<2x36x72xf32> to vector<2x36xf32>
    %49 = vector.shape_cast %48 : vector<2x36xf32> to vector<2x36x1xf32>
    %50 = vector.broadcast %49 : vector<2x36x1xf32> to vector<2x36x72xf32>
    %51 = vector.broadcast %43 : vector<2x1x72xf32> to vector<2x36x72xf32>
    %52 = arith.mulf %50, %51 : vector<2x36x72xf32>
    %53 = arith.subf %24, %52 : vector<2x36x72xf32>
    %54 = vector.shape_cast %43 : vector<2x1x72xf32> to vector<2x1x72xf32>
    %55 = vector.broadcast %54 : vector<2x1x72xf32> to vector<2x36x72xf32>
    %56 = arith.select %29, %55, %53 : vector<2x36x72xi1>, vector<2x36x72xf32>
    %c1_i32 = arith.constant 1 : i32
    %57 = vector.broadcast %c1_i32 : i32 to vector<2x36x72xi32>
    %58 = arith.cmpi eq, %25, %57 : vector<2x36x72xi32>
    %cst_25 = arith.constant 0.000000e+00 : f32
    %59 = vector.broadcast %cst_25 : f32 to vector<2x36x72xf32>
    %60 = arith.select %58, %56, %59 : vector<2x36x72xi1>, vector<2x36x72xf32>
    %cst_26 = arith.constant dense<0.000000e+00> : vector<2x72xf32>
    %61 = vector.multi_reduction <add>, %60, %cst_26 [1] : vector<2x36x72xf32> to vector<2x72xf32>
    %62 = vector.shape_cast %61 : vector<2x72xf32> to vector<2x1x72xf32>
    %63 = vector.broadcast %c1_i32 : i32 to vector<2x1x72xi32>
    %64 = arith.cmpi eq, %27, %63 : vector<2x1x72xi32>
    %cst_27 = arith.constant 0.000000e+00 : f32
    %65 = vector.broadcast %cst_27 : f32 to vector<2x1x72xf32>
    %66 = arith.select %64, %62, %65 : vector<2x1x72xi1>, vector<2x1x72xf32>
    %cst_28 = arith.constant dense<0.000000e+00> : vector<2x1xf32>
    %67 = vector.multi_reduction <add>, %66, %cst_28 [2] : vector<2x1x72xf32> to vector<2x1xf32>
    %68 = vector.shape_cast %67 : vector<2x1xf32> to vector<2x1x1xf32>
    %cst_29 = arith.constant 1.000000e+00 : f32
    %69 = vector.broadcast %cst_29 : f32 to vector<2x1x1xf32>
    %70 = arith.divf %69, %68 : vector<2x1x1xf32>
    %71 = vector.broadcast %70 : vector<2x1x1xf32> to vector<2x1x72xf32>
    %72 = arith.mulf %62, %71 : vector<2x1x72xf32>
    %73 = vector.broadcast %c1_i32 : i32 to vector<2x36x72xi32>
    %74 = arith.cmpi eq, %26, %73 : vector<2x36x72xi32>
    %cst_30 = arith.constant 0.000000e+00 : f32
    %75 = vector.broadcast %cst_30 : f32 to vector<2x36x72xf32>
    %76 = arith.select %74, %56, %75 : vector<2x36x72xi1>, vector<2x36x72xf32>
    %cst_31 = arith.constant dense<0.000000e+00> : vector<2x36xf32>
    %77 = vector.multi_reduction <add>, %76, %cst_31 [2] : vector<2x36x72xf32> to vector<2x36xf32>
    %78 = vector.shape_cast %77 : vector<2x36xf32> to vector<2x36x1xf32>
    %79 = vector.broadcast %78 : vector<2x36x1xf32> to vector<2x36x72xf32>
    %80 = vector.broadcast %72 : vector<2x1x72xf32> to vector<2x36x72xf32>
    %81 = arith.mulf %79, %80 : vector<2x36x72xf32>
    %82 = arith.subf %56, %81 : vector<2x36x72xf32>
    %83 = vector.shape_cast %72 : vector<2x1x72xf32> to vector<2x1x72xf32>
    %84 = vector.broadcast %83 : vector<2x1x72xf32> to vector<2x36x72xf32>
    %85 = arith.select %58, %84, %82 : vector<2x36x72xi1>, vector<2x36x72xf32>
    %c2_i32 = arith.constant 2 : i32
    %86 = vector.broadcast %c2_i32 : i32 to vector<2x36x72xi32>
    %87 = arith.cmpi eq, %25, %86 : vector<2x36x72xi32>
    %cst_32 = arith.constant 0.000000e+00 : f32
    %88 = vector.broadcast %cst_32 : f32 to vector<2x36x72xf32>
    %89 = arith.select %87, %85, %88 : vector<2x36x72xi1>, vector<2x36x72xf32>
    %cst_33 = arith.constant dense<0.000000e+00> : vector<2x72xf32>
    %90 = vector.multi_reduction <add>, %89, %cst_33 [1] : vector<2x36x72xf32> to vector<2x72xf32>
    %91 = vector.shape_cast %90 : vector<2x72xf32> to vector<2x1x72xf32>
    %92 = vector.broadcast %c2_i32 : i32 to vector<2x1x72xi32>
    %93 = arith.cmpi eq, %27, %92 : vector<2x1x72xi32>
    %cst_34 = arith.constant 0.000000e+00 : f32
    %94 = vector.broadcast %cst_34 : f32 to vector<2x1x72xf32>
    %95 = arith.select %93, %91, %94 : vector<2x1x72xi1>, vector<2x1x72xf32>
    %cst_35 = arith.constant dense<0.000000e+00> : vector<2x1xf32>
    %96 = vector.multi_reduction <add>, %95, %cst_35 [2] : vector<2x1x72xf32> to vector<2x1xf32>
    %97 = vector.shape_cast %96 : vector<2x1xf32> to vector<2x1x1xf32>
    %cst_36 = arith.constant 1.000000e+00 : f32
    %98 = vector.broadcast %cst_36 : f32 to vector<2x1x1xf32>
    %99 = arith.divf %98, %97 : vector<2x1x1xf32>
    %100 = vector.broadcast %99 : vector<2x1x1xf32> to vector<2x1x72xf32>
    %101 = arith.mulf %91, %100 : vector<2x1x72xf32>
    %102 = vector.broadcast %c2_i32 : i32 to vector<2x36x72xi32>
    %103 = arith.cmpi eq, %26, %102 : vector<2x36x72xi32>
    %cst_37 = arith.constant 0.000000e+00 : f32
    %104 = vector.broadcast %cst_37 : f32 to vector<2x36x72xf32>
    %105 = arith.select %103, %85, %104 : vector<2x36x72xi1>, vector<2x36x72xf32>
    %cst_38 = arith.constant dense<0.000000e+00> : vector<2x36xf32>
    %106 = vector.multi_reduction <add>, %105, %cst_38 [2] : vector<2x36x72xf32> to vector<2x36xf32>
    %107 = vector.shape_cast %106 : vector<2x36xf32> to vector<2x36x1xf32>
    %108 = vector.broadcast %107 : vector<2x36x1xf32> to vector<2x36x72xf32>
    %109 = vector.broadcast %101 : vector<2x1x72xf32> to vector<2x36x72xf32>
    %110 = arith.mulf %108, %109 : vector<2x36x72xf32>
    %111 = arith.subf %85, %110 : vector<2x36x72xf32>
    %112 = vector.shape_cast %101 : vector<2x1x72xf32> to vector<2x1x72xf32>
    %113 = vector.broadcast %112 : vector<2x1x72xf32> to vector<2x36x72xf32>
    %114 = arith.select %87, %113, %111 : vector<2x36x72xi1>, vector<2x36x72xf32>
    %c3_i32 = arith.constant 3 : i32
    %115 = vector.broadcast %c3_i32 : i32 to vector<2x36x72xi32>
    %116 = arith.cmpi eq, %25, %115 : vector<2x36x72xi32>
    %cst_39 = arith.constant 0.000000e+00 : f32
    %117 = vector.broadcast %cst_39 : f32 to vector<2x36x72xf32>
    %118 = arith.select %116, %114, %117 : vector<2x36x72xi1>, vector<2x36x72xf32>
    %cst_40 = arith.constant dense<0.000000e+00> : vector<2x72xf32>
    %119 = vector.multi_reduction <add>, %118, %cst_40 [1] : vector<2x36x72xf32> to vector<2x72xf32>
    %120 = vector.shape_cast %119 : vector<2x72xf32> to vector<2x1x72xf32>
    %121 = vector.broadcast %c3_i32 : i32 to vector<2x1x72xi32>
    %122 = arith.cmpi eq, %27, %121 : vector<2x1x72xi32>
    %cst_41 = arith.constant 0.000000e+00 : f32
    %123 = vector.broadcast %cst_41 : f32 to vector<2x1x72xf32>
    %124 = arith.select %122, %120, %123 : vector<2x1x72xi1>, vector<2x1x72xf32>
    %cst_42 = arith.constant dense<0.000000e+00> : vector<2x1xf32>
    %125 = vector.multi_reduction <add>, %124, %cst_42 [2] : vector<2x1x72xf32> to vector<2x1xf32>
    %126 = vector.shape_cast %125 : vector<2x1xf32> to vector<2x1x1xf32>
    %cst_43 = arith.constant 1.000000e+00 : f32
    %127 = vector.broadcast %cst_43 : f32 to vector<2x1x1xf32>
    %128 = arith.divf %127, %126 : vector<2x1x1xf32>
    %129 = vector.broadcast %128 : vector<2x1x1xf32> to vector<2x1x72xf32>
    %130 = arith.mulf %120, %129 : vector<2x1x72xf32>
    %131 = vector.broadcast %c3_i32 : i32 to vector<2x36x72xi32>
    %132 = arith.cmpi eq, %26, %131 : vector<2x36x72xi32>
    %cst_44 = arith.constant 0.000000e+00 : f32
    %133 = vector.broadcast %cst_44 : f32 to vector<2x36x72xf32>
    %134 = arith.select %132, %114, %133 : vector<2x36x72xi1>, vector<2x36x72xf32>
    %cst_45 = arith.constant dense<0.000000e+00> : vector<2x36xf32>
    %135 = vector.multi_reduction <add>, %134, %cst_45 [2] : vector<2x36x72xf32> to vector<2x36xf32>
    %136 = vector.shape_cast %135 : vector<2x36xf32> to vector<2x36x1xf32>
    %137 = vector.broadcast %136 : vector<2x36x1xf32> to vector<2x36x72xf32>
    %138 = vector.broadcast %130 : vector<2x1x72xf32> to vector<2x36x72xf32>
    %139 = arith.mulf %137, %138 : vector<2x36x72xf32>
    %140 = arith.subf %114, %139 : vector<2x36x72xf32>
    %141 = vector.shape_cast %130 : vector<2x1x72xf32> to vector<2x1x72xf32>
    %142 = vector.broadcast %141 : vector<2x1x72xf32> to vector<2x36x72xf32>
    %143 = arith.select %116, %142, %140 : vector<2x36x72xi1>, vector<2x36x72xf32>
    %c4_i32 = arith.constant 4 : i32
    %144 = vector.broadcast %c4_i32 : i32 to vector<2x36x72xi32>
    %145 = arith.cmpi eq, %25, %144 : vector<2x36x72xi32>
    %cst_46 = arith.constant 0.000000e+00 : f32
    %146 = vector.broadcast %cst_46 : f32 to vector<2x36x72xf32>
    %147 = arith.select %145, %143, %146 : vector<2x36x72xi1>, vector<2x36x72xf32>
    %cst_47 = arith.constant dense<0.000000e+00> : vector<2x72xf32>
    %148 = vector.multi_reduction <add>, %147, %cst_47 [1] : vector<2x36x72xf32> to vector<2x72xf32>
    %149 = vector.shape_cast %148 : vector<2x72xf32> to vector<2x1x72xf32>
    %150 = vector.broadcast %c4_i32 : i32 to vector<2x1x72xi32>
    %151 = arith.cmpi eq, %27, %150 : vector<2x1x72xi32>
    %cst_48 = arith.constant 0.000000e+00 : f32
    %152 = vector.broadcast %cst_48 : f32 to vector<2x1x72xf32>
    %153 = arith.select %151, %149, %152 : vector<2x1x72xi1>, vector<2x1x72xf32>
    %cst_49 = arith.constant dense<0.000000e+00> : vector<2x1xf32>
    %154 = vector.multi_reduction <add>, %153, %cst_49 [2] : vector<2x1x72xf32> to vector<2x1xf32>
    %155 = vector.shape_cast %154 : vector<2x1xf32> to vector<2x1x1xf32>
    %cst_50 = arith.constant 1.000000e+00 : f32
    %156 = vector.broadcast %cst_50 : f32 to vector<2x1x1xf32>
    %157 = arith.divf %156, %155 : vector<2x1x1xf32>
    %158 = vector.broadcast %157 : vector<2x1x1xf32> to vector<2x1x72xf32>
    %159 = arith.mulf %149, %158 : vector<2x1x72xf32>
    %160 = vector.broadcast %c4_i32 : i32 to vector<2x36x72xi32>
    %161 = arith.cmpi eq, %26, %160 : vector<2x36x72xi32>
    %cst_51 = arith.constant 0.000000e+00 : f32
    %162 = vector.broadcast %cst_51 : f32 to vector<2x36x72xf32>
    %163 = arith.select %161, %143, %162 : vector<2x36x72xi1>, vector<2x36x72xf32>
    %cst_52 = arith.constant dense<0.000000e+00> : vector<2x36xf32>
    %164 = vector.multi_reduction <add>, %163, %cst_52 [2] : vector<2x36x72xf32> to vector<2x36xf32>
    %165 = vector.shape_cast %164 : vector<2x36xf32> to vector<2x36x1xf32>
    %166 = vector.broadcast %165 : vector<2x36x1xf32> to vector<2x36x72xf32>
    %167 = vector.broadcast %159 : vector<2x1x72xf32> to vector<2x36x72xf32>
    %168 = arith.mulf %166, %167 : vector<2x36x72xf32>
    %169 = arith.subf %143, %168 : vector<2x36x72xf32>
    %170 = vector.shape_cast %159 : vector<2x1x72xf32> to vector<2x1x72xf32>
    %171 = vector.broadcast %170 : vector<2x1x72xf32> to vector<2x36x72xf32>
    %172 = arith.select %145, %171, %169 : vector<2x36x72xi1>, vector<2x36x72xf32>
    %c5_i32 = arith.constant 5 : i32
    %173 = vector.broadcast %c5_i32 : i32 to vector<2x36x72xi32>
    %174 = arith.cmpi eq, %25, %173 : vector<2x36x72xi32>
    %cst_53 = arith.constant 0.000000e+00 : f32
    %175 = vector.broadcast %cst_53 : f32 to vector<2x36x72xf32>
    %176 = arith.select %174, %172, %175 : vector<2x36x72xi1>, vector<2x36x72xf32>
    %cst_54 = arith.constant dense<0.000000e+00> : vector<2x72xf32>
    %177 = vector.multi_reduction <add>, %176, %cst_54 [1] : vector<2x36x72xf32> to vector<2x72xf32>
    %178 = vector.shape_cast %177 : vector<2x72xf32> to vector<2x1x72xf32>
    %179 = vector.broadcast %c5_i32 : i32 to vector<2x1x72xi32>
    %180 = arith.cmpi eq, %27, %179 : vector<2x1x72xi32>
    %cst_55 = arith.constant 0.000000e+00 : f32
    %181 = vector.broadcast %cst_55 : f32 to vector<2x1x72xf32>
    %182 = arith.select %180, %178, %181 : vector<2x1x72xi1>, vector<2x1x72xf32>
    %cst_56 = arith.constant dense<0.000000e+00> : vector<2x1xf32>
    %183 = vector.multi_reduction <add>, %182, %cst_56 [2] : vector<2x1x72xf32> to vector<2x1xf32>
    %184 = vector.shape_cast %183 : vector<2x1xf32> to vector<2x1x1xf32>
    %cst_57 = arith.constant 1.000000e+00 : f32
    %185 = vector.broadcast %cst_57 : f32 to vector<2x1x1xf32>
    %186 = arith.divf %185, %184 : vector<2x1x1xf32>
    %187 = vector.broadcast %186 : vector<2x1x1xf32> to vector<2x1x72xf32>
    %188 = arith.mulf %178, %187 : vector<2x1x72xf32>
    %189 = vector.broadcast %c5_i32 : i32 to vector<2x36x72xi32>
    %190 = arith.cmpi eq, %26, %189 : vector<2x36x72xi32>
    %cst_58 = arith.constant 0.000000e+00 : f32
    %191 = vector.broadcast %cst_58 : f32 to vector<2x36x72xf32>
    %192 = arith.select %190, %172, %191 : vector<2x36x72xi1>, vector<2x36x72xf32>
    %cst_59 = arith.constant dense<0.000000e+00> : vector<2x36xf32>
    %193 = vector.multi_reduction <add>, %192, %cst_59 [2] : vector<2x36x72xf32> to vector<2x36xf32>
    %194 = vector.shape_cast %193 : vector<2x36xf32> to vector<2x36x1xf32>
    %195 = vector.broadcast %194 : vector<2x36x1xf32> to vector<2x36x72xf32>
    %196 = vector.broadcast %188 : vector<2x1x72xf32> to vector<2x36x72xf32>
    %197 = arith.mulf %195, %196 : vector<2x36x72xf32>
    %198 = arith.subf %172, %197 : vector<2x36x72xf32>
    %199 = vector.shape_cast %188 : vector<2x1x72xf32> to vector<2x1x72xf32>
    %200 = vector.broadcast %199 : vector<2x1x72xf32> to vector<2x36x72xf32>
    %201 = arith.select %174, %200, %198 : vector<2x36x72xi1>, vector<2x36x72xf32>
    %c6_i32 = arith.constant 6 : i32
    %202 = vector.broadcast %c6_i32 : i32 to vector<2x36x72xi32>
    %203 = arith.cmpi eq, %25, %202 : vector<2x36x72xi32>
    %cst_60 = arith.constant 0.000000e+00 : f32
    %204 = vector.broadcast %cst_60 : f32 to vector<2x36x72xf32>
    %205 = arith.select %203, %201, %204 : vector<2x36x72xi1>, vector<2x36x72xf32>
    %cst_61 = arith.constant dense<0.000000e+00> : vector<2x72xf32>
    %206 = vector.multi_reduction <add>, %205, %cst_61 [1] : vector<2x36x72xf32> to vector<2x72xf32>
    %207 = vector.shape_cast %206 : vector<2x72xf32> to vector<2x1x72xf32>
    %208 = vector.broadcast %c6_i32 : i32 to vector<2x1x72xi32>
    %209 = arith.cmpi eq, %27, %208 : vector<2x1x72xi32>
    %cst_62 = arith.constant 0.000000e+00 : f32
    %210 = vector.broadcast %cst_62 : f32 to vector<2x1x72xf32>
    %211 = arith.select %209, %207, %210 : vector<2x1x72xi1>, vector<2x1x72xf32>
    %cst_63 = arith.constant dense<0.000000e+00> : vector<2x1xf32>
    %212 = vector.multi_reduction <add>, %211, %cst_63 [2] : vector<2x1x72xf32> to vector<2x1xf32>
    %213 = vector.shape_cast %212 : vector<2x1xf32> to vector<2x1x1xf32>
    %cst_64 = arith.constant 1.000000e+00 : f32
    %214 = vector.broadcast %cst_64 : f32 to vector<2x1x1xf32>
    %215 = arith.divf %214, %213 : vector<2x1x1xf32>
    %216 = vector.broadcast %215 : vector<2x1x1xf32> to vector<2x1x72xf32>
    %217 = arith.mulf %207, %216 : vector<2x1x72xf32>
    %218 = vector.broadcast %c6_i32 : i32 to vector<2x36x72xi32>
    %219 = arith.cmpi eq, %26, %218 : vector<2x36x72xi32>
    %cst_65 = arith.constant 0.000000e+00 : f32
    %220 = vector.broadcast %cst_65 : f32 to vector<2x36x72xf32>
    %221 = arith.select %219, %201, %220 : vector<2x36x72xi1>, vector<2x36x72xf32>
    %cst_66 = arith.constant dense<0.000000e+00> : vector<2x36xf32>
    %222 = vector.multi_reduction <add>, %221, %cst_66 [2] : vector<2x36x72xf32> to vector<2x36xf32>
    %223 = vector.shape_cast %222 : vector<2x36xf32> to vector<2x36x1xf32>
    %224 = vector.broadcast %223 : vector<2x36x1xf32> to vector<2x36x72xf32>
    %225 = vector.broadcast %217 : vector<2x1x72xf32> to vector<2x36x72xf32>
    %226 = arith.mulf %224, %225 : vector<2x36x72xf32>
    %227 = arith.subf %201, %226 : vector<2x36x72xf32>
    %228 = vector.shape_cast %217 : vector<2x1x72xf32> to vector<2x1x72xf32>
    %229 = vector.broadcast %228 : vector<2x1x72xf32> to vector<2x36x72xf32>
    %230 = arith.select %203, %229, %227 : vector<2x36x72xi1>, vector<2x36x72xf32>
    %c7_i32 = arith.constant 7 : i32
    %231 = vector.broadcast %c7_i32 : i32 to vector<2x36x72xi32>
    %232 = arith.cmpi eq, %25, %231 : vector<2x36x72xi32>
    %cst_67 = arith.constant 0.000000e+00 : f32
    %233 = vector.broadcast %cst_67 : f32 to vector<2x36x72xf32>
    %234 = arith.select %232, %230, %233 : vector<2x36x72xi1>, vector<2x36x72xf32>
    %cst_68 = arith.constant dense<0.000000e+00> : vector<2x72xf32>
    %235 = vector.multi_reduction <add>, %234, %cst_68 [1] : vector<2x36x72xf32> to vector<2x72xf32>
    %236 = vector.shape_cast %235 : vector<2x72xf32> to vector<2x1x72xf32>
    %237 = vector.broadcast %c7_i32 : i32 to vector<2x1x72xi32>
    %238 = arith.cmpi eq, %27, %237 : vector<2x1x72xi32>
    %cst_69 = arith.constant 0.000000e+00 : f32
    %239 = vector.broadcast %cst_69 : f32 to vector<2x1x72xf32>
    %240 = arith.select %238, %236, %239 : vector<2x1x72xi1>, vector<2x1x72xf32>
    %cst_70 = arith.constant dense<0.000000e+00> : vector<2x1xf32>
    %241 = vector.multi_reduction <add>, %240, %cst_70 [2] : vector<2x1x72xf32> to vector<2x1xf32>
    %242 = vector.shape_cast %241 : vector<2x1xf32> to vector<2x1x1xf32>
    %cst_71 = arith.constant 1.000000e+00 : f32
    %243 = vector.broadcast %cst_71 : f32 to vector<2x1x1xf32>
    %244 = arith.divf %243, %242 : vector<2x1x1xf32>
    %245 = vector.broadcast %244 : vector<2x1x1xf32> to vector<2x1x72xf32>
    %246 = arith.mulf %236, %245 : vector<2x1x72xf32>
    %247 = vector.broadcast %c7_i32 : i32 to vector<2x36x72xi32>
    %248 = arith.cmpi eq, %26, %247 : vector<2x36x72xi32>
    %cst_72 = arith.constant 0.000000e+00 : f32
    %249 = vector.broadcast %cst_72 : f32 to vector<2x36x72xf32>
    %250 = arith.select %248, %230, %249 : vector<2x36x72xi1>, vector<2x36x72xf32>
    %cst_73 = arith.constant dense<0.000000e+00> : vector<2x36xf32>
    %251 = vector.multi_reduction <add>, %250, %cst_73 [2] : vector<2x36x72xf32> to vector<2x36xf32>
    %252 = vector.shape_cast %251 : vector<2x36xf32> to vector<2x36x1xf32>
    %253 = vector.broadcast %252 : vector<2x36x1xf32> to vector<2x36x72xf32>
    %254 = vector.broadcast %246 : vector<2x1x72xf32> to vector<2x36x72xf32>
    %255 = arith.mulf %253, %254 : vector<2x36x72xf32>
    %256 = arith.subf %230, %255 : vector<2x36x72xf32>
    %257 = vector.shape_cast %246 : vector<2x1x72xf32> to vector<2x1x72xf32>
    %258 = vector.broadcast %257 : vector<2x1x72xf32> to vector<2x36x72xf32>
    %259 = arith.select %232, %258, %256 : vector<2x36x72xi1>, vector<2x36x72xf32>
    %c8_i32 = arith.constant 8 : i32
    %260 = vector.broadcast %c8_i32 : i32 to vector<2x36x72xi32>
    %261 = arith.cmpi eq, %25, %260 : vector<2x36x72xi32>
    %cst_74 = arith.constant 0.000000e+00 : f32
    %262 = vector.broadcast %cst_74 : f32 to vector<2x36x72xf32>
    %263 = arith.select %261, %259, %262 : vector<2x36x72xi1>, vector<2x36x72xf32>
    %cst_75 = arith.constant dense<0.000000e+00> : vector<2x72xf32>
    %264 = vector.multi_reduction <add>, %263, %cst_75 [1] : vector<2x36x72xf32> to vector<2x72xf32>
    %265 = vector.shape_cast %264 : vector<2x72xf32> to vector<2x1x72xf32>
    %266 = vector.broadcast %c8_i32 : i32 to vector<2x1x72xi32>
    %267 = arith.cmpi eq, %27, %266 : vector<2x1x72xi32>
    %cst_76 = arith.constant 0.000000e+00 : f32
    %268 = vector.broadcast %cst_76 : f32 to vector<2x1x72xf32>
    %269 = arith.select %267, %265, %268 : vector<2x1x72xi1>, vector<2x1x72xf32>
    %cst_77 = arith.constant dense<0.000000e+00> : vector<2x1xf32>
    %270 = vector.multi_reduction <add>, %269, %cst_77 [2] : vector<2x1x72xf32> to vector<2x1xf32>
    %271 = vector.shape_cast %270 : vector<2x1xf32> to vector<2x1x1xf32>
    %cst_78 = arith.constant 1.000000e+00 : f32
    %272 = vector.broadcast %cst_78 : f32 to vector<2x1x1xf32>
    %273 = arith.divf %272, %271 : vector<2x1x1xf32>
    %274 = vector.broadcast %273 : vector<2x1x1xf32> to vector<2x1x72xf32>
    %275 = arith.mulf %265, %274 : vector<2x1x72xf32>
    %276 = vector.broadcast %c8_i32 : i32 to vector<2x36x72xi32>
    %277 = arith.cmpi eq, %26, %276 : vector<2x36x72xi32>
    %cst_79 = arith.constant 0.000000e+00 : f32
    %278 = vector.broadcast %cst_79 : f32 to vector<2x36x72xf32>
    %279 = arith.select %277, %259, %278 : vector<2x36x72xi1>, vector<2x36x72xf32>
    %cst_80 = arith.constant dense<0.000000e+00> : vector<2x36xf32>
    %280 = vector.multi_reduction <add>, %279, %cst_80 [2] : vector<2x36x72xf32> to vector<2x36xf32>
    %281 = vector.shape_cast %280 : vector<2x36xf32> to vector<2x36x1xf32>
    %282 = vector.broadcast %281 : vector<2x36x1xf32> to vector<2x36x72xf32>
    %283 = vector.broadcast %275 : vector<2x1x72xf32> to vector<2x36x72xf32>
    %284 = arith.mulf %282, %283 : vector<2x36x72xf32>
    %285 = arith.subf %259, %284 : vector<2x36x72xf32>
    %286 = vector.shape_cast %275 : vector<2x1x72xf32> to vector<2x1x72xf32>
    %287 = vector.broadcast %286 : vector<2x1x72xf32> to vector<2x36x72xf32>
    %288 = arith.select %261, %287, %285 : vector<2x36x72xi1>, vector<2x36x72xf32>
    %c9_i32 = arith.constant 9 : i32
    %289 = vector.broadcast %c9_i32 : i32 to vector<2x36x72xi32>
    %290 = arith.cmpi eq, %25, %289 : vector<2x36x72xi32>
    %cst_81 = arith.constant 0.000000e+00 : f32
    %291 = vector.broadcast %cst_81 : f32 to vector<2x36x72xf32>
    %292 = arith.select %290, %288, %291 : vector<2x36x72xi1>, vector<2x36x72xf32>
    %cst_82 = arith.constant dense<0.000000e+00> : vector<2x72xf32>
    %293 = vector.multi_reduction <add>, %292, %cst_82 [1] : vector<2x36x72xf32> to vector<2x72xf32>
    %294 = vector.shape_cast %293 : vector<2x72xf32> to vector<2x1x72xf32>
    %295 = vector.broadcast %c9_i32 : i32 to vector<2x1x72xi32>
    %296 = arith.cmpi eq, %27, %295 : vector<2x1x72xi32>
    %cst_83 = arith.constant 0.000000e+00 : f32
    %297 = vector.broadcast %cst_83 : f32 to vector<2x1x72xf32>
    %298 = arith.select %296, %294, %297 : vector<2x1x72xi1>, vector<2x1x72xf32>
    %cst_84 = arith.constant dense<0.000000e+00> : vector<2x1xf32>
    %299 = vector.multi_reduction <add>, %298, %cst_84 [2] : vector<2x1x72xf32> to vector<2x1xf32>
    %300 = vector.shape_cast %299 : vector<2x1xf32> to vector<2x1x1xf32>
    %cst_85 = arith.constant 1.000000e+00 : f32
    %301 = vector.broadcast %cst_85 : f32 to vector<2x1x1xf32>
    %302 = arith.divf %301, %300 : vector<2x1x1xf32>
    %303 = vector.broadcast %302 : vector<2x1x1xf32> to vector<2x1x72xf32>
    %304 = arith.mulf %294, %303 : vector<2x1x72xf32>
    %305 = vector.broadcast %c9_i32 : i32 to vector<2x36x72xi32>
    %306 = arith.cmpi eq, %26, %305 : vector<2x36x72xi32>
    %cst_86 = arith.constant 0.000000e+00 : f32
    %307 = vector.broadcast %cst_86 : f32 to vector<2x36x72xf32>
    %308 = arith.select %306, %288, %307 : vector<2x36x72xi1>, vector<2x36x72xf32>
    %cst_87 = arith.constant dense<0.000000e+00> : vector<2x36xf32>
    %309 = vector.multi_reduction <add>, %308, %cst_87 [2] : vector<2x36x72xf32> to vector<2x36xf32>
    %310 = vector.shape_cast %309 : vector<2x36xf32> to vector<2x36x1xf32>
    %311 = vector.broadcast %310 : vector<2x36x1xf32> to vector<2x36x72xf32>
    %312 = vector.broadcast %304 : vector<2x1x72xf32> to vector<2x36x72xf32>
    %313 = arith.mulf %311, %312 : vector<2x36x72xf32>
    %314 = arith.subf %288, %313 : vector<2x36x72xf32>
    %315 = vector.shape_cast %304 : vector<2x1x72xf32> to vector<2x1x72xf32>
    %316 = vector.broadcast %315 : vector<2x1x72xf32> to vector<2x36x72xf32>
    %317 = arith.select %290, %316, %314 : vector<2x36x72xi1>, vector<2x36x72xf32>
    %c10_i32 = arith.constant 10 : i32
    %318 = vector.broadcast %c10_i32 : i32 to vector<2x36x72xi32>
    %319 = arith.cmpi eq, %25, %318 : vector<2x36x72xi32>
    %cst_88 = arith.constant 0.000000e+00 : f32
    %320 = vector.broadcast %cst_88 : f32 to vector<2x36x72xf32>
    %321 = arith.select %319, %317, %320 : vector<2x36x72xi1>, vector<2x36x72xf32>
    %cst_89 = arith.constant dense<0.000000e+00> : vector<2x72xf32>
    %322 = vector.multi_reduction <add>, %321, %cst_89 [1] : vector<2x36x72xf32> to vector<2x72xf32>
    %323 = vector.shape_cast %322 : vector<2x72xf32> to vector<2x1x72xf32>
    %324 = vector.broadcast %c10_i32 : i32 to vector<2x1x72xi32>
    %325 = arith.cmpi eq, %27, %324 : vector<2x1x72xi32>
    %cst_90 = arith.constant 0.000000e+00 : f32
    %326 = vector.broadcast %cst_90 : f32 to vector<2x1x72xf32>
    %327 = arith.select %325, %323, %326 : vector<2x1x72xi1>, vector<2x1x72xf32>
    %cst_91 = arith.constant dense<0.000000e+00> : vector<2x1xf32>
    %328 = vector.multi_reduction <add>, %327, %cst_91 [2] : vector<2x1x72xf32> to vector<2x1xf32>
    %329 = vector.shape_cast %328 : vector<2x1xf32> to vector<2x1x1xf32>
    %cst_92 = arith.constant 1.000000e+00 : f32
    %330 = vector.broadcast %cst_92 : f32 to vector<2x1x1xf32>
    %331 = arith.divf %330, %329 : vector<2x1x1xf32>
    %332 = vector.broadcast %331 : vector<2x1x1xf32> to vector<2x1x72xf32>
    %333 = arith.mulf %323, %332 : vector<2x1x72xf32>
    %334 = vector.broadcast %c10_i32 : i32 to vector<2x36x72xi32>
    %335 = arith.cmpi eq, %26, %334 : vector<2x36x72xi32>
    %cst_93 = arith.constant 0.000000e+00 : f32
    %336 = vector.broadcast %cst_93 : f32 to vector<2x36x72xf32>
    %337 = arith.select %335, %317, %336 : vector<2x36x72xi1>, vector<2x36x72xf32>
    %cst_94 = arith.constant dense<0.000000e+00> : vector<2x36xf32>
    %338 = vector.multi_reduction <add>, %337, %cst_94 [2] : vector<2x36x72xf32> to vector<2x36xf32>
    %339 = vector.shape_cast %338 : vector<2x36xf32> to vector<2x36x1xf32>
    %340 = vector.broadcast %339 : vector<2x36x1xf32> to vector<2x36x72xf32>
    %341 = vector.broadcast %333 : vector<2x1x72xf32> to vector<2x36x72xf32>
    %342 = arith.mulf %340, %341 : vector<2x36x72xf32>
    %343 = arith.subf %317, %342 : vector<2x36x72xf32>
    %344 = vector.shape_cast %333 : vector<2x1x72xf32> to vector<2x1x72xf32>
    %345 = vector.broadcast %344 : vector<2x1x72xf32> to vector<2x36x72xf32>
    %346 = arith.select %319, %345, %343 : vector<2x36x72xi1>, vector<2x36x72xf32>
    %c11_i32 = arith.constant 11 : i32
    %347 = vector.broadcast %c11_i32 : i32 to vector<2x36x72xi32>
    %348 = arith.cmpi eq, %25, %347 : vector<2x36x72xi32>
    %cst_95 = arith.constant 0.000000e+00 : f32
    %349 = vector.broadcast %cst_95 : f32 to vector<2x36x72xf32>
    %350 = arith.select %348, %346, %349 : vector<2x36x72xi1>, vector<2x36x72xf32>
    %cst_96 = arith.constant dense<0.000000e+00> : vector<2x72xf32>
    %351 = vector.multi_reduction <add>, %350, %cst_96 [1] : vector<2x36x72xf32> to vector<2x72xf32>
    %352 = vector.shape_cast %351 : vector<2x72xf32> to vector<2x1x72xf32>
    %353 = vector.broadcast %c11_i32 : i32 to vector<2x1x72xi32>
    %354 = arith.cmpi eq, %27, %353 : vector<2x1x72xi32>
    %cst_97 = arith.constant 0.000000e+00 : f32
    %355 = vector.broadcast %cst_97 : f32 to vector<2x1x72xf32>
    %356 = arith.select %354, %352, %355 : vector<2x1x72xi1>, vector<2x1x72xf32>
    %cst_98 = arith.constant dense<0.000000e+00> : vector<2x1xf32>
    %357 = vector.multi_reduction <add>, %356, %cst_98 [2] : vector<2x1x72xf32> to vector<2x1xf32>
    %358 = vector.shape_cast %357 : vector<2x1xf32> to vector<2x1x1xf32>
    %cst_99 = arith.constant 1.000000e+00 : f32
    %359 = vector.broadcast %cst_99 : f32 to vector<2x1x1xf32>
    %360 = arith.divf %359, %358 : vector<2x1x1xf32>
    %361 = vector.broadcast %360 : vector<2x1x1xf32> to vector<2x1x72xf32>
    %362 = arith.mulf %352, %361 : vector<2x1x72xf32>
    %363 = vector.broadcast %c11_i32 : i32 to vector<2x36x72xi32>
    %364 = arith.cmpi eq, %26, %363 : vector<2x36x72xi32>
    %cst_100 = arith.constant 0.000000e+00 : f32
    %365 = vector.broadcast %cst_100 : f32 to vector<2x36x72xf32>
    %366 = arith.select %364, %346, %365 : vector<2x36x72xi1>, vector<2x36x72xf32>
    %cst_101 = arith.constant dense<0.000000e+00> : vector<2x36xf32>
    %367 = vector.multi_reduction <add>, %366, %cst_101 [2] : vector<2x36x72xf32> to vector<2x36xf32>
    %368 = vector.shape_cast %367 : vector<2x36xf32> to vector<2x36x1xf32>
    %369 = vector.broadcast %368 : vector<2x36x1xf32> to vector<2x36x72xf32>
    %370 = vector.broadcast %362 : vector<2x1x72xf32> to vector<2x36x72xf32>
    %371 = arith.mulf %369, %370 : vector<2x36x72xf32>
    %372 = arith.subf %346, %371 : vector<2x36x72xf32>
    %373 = vector.shape_cast %362 : vector<2x1x72xf32> to vector<2x1x72xf32>
    %374 = vector.broadcast %373 : vector<2x1x72xf32> to vector<2x36x72xf32>
    %375 = arith.select %348, %374, %372 : vector<2x36x72xi1>, vector<2x36x72xf32>
    %c12_i32 = arith.constant 12 : i32
    %376 = vector.broadcast %c12_i32 : i32 to vector<2x36x72xi32>
    %377 = arith.cmpi eq, %25, %376 : vector<2x36x72xi32>
    %cst_102 = arith.constant 0.000000e+00 : f32
    %378 = vector.broadcast %cst_102 : f32 to vector<2x36x72xf32>
    %379 = arith.select %377, %375, %378 : vector<2x36x72xi1>, vector<2x36x72xf32>
    %cst_103 = arith.constant dense<0.000000e+00> : vector<2x72xf32>
    %380 = vector.multi_reduction <add>, %379, %cst_103 [1] : vector<2x36x72xf32> to vector<2x72xf32>
    %381 = vector.shape_cast %380 : vector<2x72xf32> to vector<2x1x72xf32>
    %382 = vector.broadcast %c12_i32 : i32 to vector<2x1x72xi32>
    %383 = arith.cmpi eq, %27, %382 : vector<2x1x72xi32>
    %cst_104 = arith.constant 0.000000e+00 : f32
    %384 = vector.broadcast %cst_104 : f32 to vector<2x1x72xf32>
    %385 = arith.select %383, %381, %384 : vector<2x1x72xi1>, vector<2x1x72xf32>
    %cst_105 = arith.constant dense<0.000000e+00> : vector<2x1xf32>
    %386 = vector.multi_reduction <add>, %385, %cst_105 [2] : vector<2x1x72xf32> to vector<2x1xf32>
    %387 = vector.shape_cast %386 : vector<2x1xf32> to vector<2x1x1xf32>
    %cst_106 = arith.constant 1.000000e+00 : f32
    %388 = vector.broadcast %cst_106 : f32 to vector<2x1x1xf32>
    %389 = arith.divf %388, %387 : vector<2x1x1xf32>
    %390 = vector.broadcast %389 : vector<2x1x1xf32> to vector<2x1x72xf32>
    %391 = arith.mulf %381, %390 : vector<2x1x72xf32>
    %392 = vector.broadcast %c12_i32 : i32 to vector<2x36x72xi32>
    %393 = arith.cmpi eq, %26, %392 : vector<2x36x72xi32>
    %cst_107 = arith.constant 0.000000e+00 : f32
    %394 = vector.broadcast %cst_107 : f32 to vector<2x36x72xf32>
    %395 = arith.select %393, %375, %394 : vector<2x36x72xi1>, vector<2x36x72xf32>
    %cst_108 = arith.constant dense<0.000000e+00> : vector<2x36xf32>
    %396 = vector.multi_reduction <add>, %395, %cst_108 [2] : vector<2x36x72xf32> to vector<2x36xf32>
    %397 = vector.shape_cast %396 : vector<2x36xf32> to vector<2x36x1xf32>
    %398 = vector.broadcast %397 : vector<2x36x1xf32> to vector<2x36x72xf32>
    %399 = vector.broadcast %391 : vector<2x1x72xf32> to vector<2x36x72xf32>
    %400 = arith.mulf %398, %399 : vector<2x36x72xf32>
    %401 = arith.subf %375, %400 : vector<2x36x72xf32>
    %402 = vector.shape_cast %391 : vector<2x1x72xf32> to vector<2x1x72xf32>
    %403 = vector.broadcast %402 : vector<2x1x72xf32> to vector<2x36x72xf32>
    %404 = arith.select %377, %403, %401 : vector<2x36x72xi1>, vector<2x36x72xf32>
    %c13_i32 = arith.constant 13 : i32
    %405 = vector.broadcast %c13_i32 : i32 to vector<2x36x72xi32>
    %406 = arith.cmpi eq, %25, %405 : vector<2x36x72xi32>
    %cst_109 = arith.constant 0.000000e+00 : f32
    %407 = vector.broadcast %cst_109 : f32 to vector<2x36x72xf32>
    %408 = arith.select %406, %404, %407 : vector<2x36x72xi1>, vector<2x36x72xf32>
    %cst_110 = arith.constant dense<0.000000e+00> : vector<2x72xf32>
    %409 = vector.multi_reduction <add>, %408, %cst_110 [1] : vector<2x36x72xf32> to vector<2x72xf32>
    %410 = vector.shape_cast %409 : vector<2x72xf32> to vector<2x1x72xf32>
    %411 = vector.broadcast %c13_i32 : i32 to vector<2x1x72xi32>
    %412 = arith.cmpi eq, %27, %411 : vector<2x1x72xi32>
    %cst_111 = arith.constant 0.000000e+00 : f32
    %413 = vector.broadcast %cst_111 : f32 to vector<2x1x72xf32>
    %414 = arith.select %412, %410, %413 : vector<2x1x72xi1>, vector<2x1x72xf32>
    %cst_112 = arith.constant dense<0.000000e+00> : vector<2x1xf32>
    %415 = vector.multi_reduction <add>, %414, %cst_112 [2] : vector<2x1x72xf32> to vector<2x1xf32>
    %416 = vector.shape_cast %415 : vector<2x1xf32> to vector<2x1x1xf32>
    %cst_113 = arith.constant 1.000000e+00 : f32
    %417 = vector.broadcast %cst_113 : f32 to vector<2x1x1xf32>
    %418 = arith.divf %417, %416 : vector<2x1x1xf32>
    %419 = vector.broadcast %418 : vector<2x1x1xf32> to vector<2x1x72xf32>
    %420 = arith.mulf %410, %419 : vector<2x1x72xf32>
    %421 = vector.broadcast %c13_i32 : i32 to vector<2x36x72xi32>
    %422 = arith.cmpi eq, %26, %421 : vector<2x36x72xi32>
    %cst_114 = arith.constant 0.000000e+00 : f32
    %423 = vector.broadcast %cst_114 : f32 to vector<2x36x72xf32>
    %424 = arith.select %422, %404, %423 : vector<2x36x72xi1>, vector<2x36x72xf32>
    %cst_115 = arith.constant dense<0.000000e+00> : vector<2x36xf32>
    %425 = vector.multi_reduction <add>, %424, %cst_115 [2] : vector<2x36x72xf32> to vector<2x36xf32>
    %426 = vector.shape_cast %425 : vector<2x36xf32> to vector<2x36x1xf32>
    %427 = vector.broadcast %426 : vector<2x36x1xf32> to vector<2x36x72xf32>
    %428 = vector.broadcast %420 : vector<2x1x72xf32> to vector<2x36x72xf32>
    %429 = arith.mulf %427, %428 : vector<2x36x72xf32>
    %430 = arith.subf %404, %429 : vector<2x36x72xf32>
    %431 = vector.shape_cast %420 : vector<2x1x72xf32> to vector<2x1x72xf32>
    %432 = vector.broadcast %431 : vector<2x1x72xf32> to vector<2x36x72xf32>
    %433 = arith.select %406, %432, %430 : vector<2x36x72xi1>, vector<2x36x72xf32>
    %c14_i32 = arith.constant 14 : i32
    %434 = vector.broadcast %c14_i32 : i32 to vector<2x36x72xi32>
    %435 = arith.cmpi eq, %25, %434 : vector<2x36x72xi32>
    %cst_116 = arith.constant 0.000000e+00 : f32
    %436 = vector.broadcast %cst_116 : f32 to vector<2x36x72xf32>
    %437 = arith.select %435, %433, %436 : vector<2x36x72xi1>, vector<2x36x72xf32>
    %cst_117 = arith.constant dense<0.000000e+00> : vector<2x72xf32>
    %438 = vector.multi_reduction <add>, %437, %cst_117 [1] : vector<2x36x72xf32> to vector<2x72xf32>
    %439 = vector.shape_cast %438 : vector<2x72xf32> to vector<2x1x72xf32>
    %440 = vector.broadcast %c14_i32 : i32 to vector<2x1x72xi32>
    %441 = arith.cmpi eq, %27, %440 : vector<2x1x72xi32>
    %cst_118 = arith.constant 0.000000e+00 : f32
    %442 = vector.broadcast %cst_118 : f32 to vector<2x1x72xf32>
    %443 = arith.select %441, %439, %442 : vector<2x1x72xi1>, vector<2x1x72xf32>
    %cst_119 = arith.constant dense<0.000000e+00> : vector<2x1xf32>
    %444 = vector.multi_reduction <add>, %443, %cst_119 [2] : vector<2x1x72xf32> to vector<2x1xf32>
    %445 = vector.shape_cast %444 : vector<2x1xf32> to vector<2x1x1xf32>
    %cst_120 = arith.constant 1.000000e+00 : f32
    %446 = vector.broadcast %cst_120 : f32 to vector<2x1x1xf32>
    %447 = arith.divf %446, %445 : vector<2x1x1xf32>
    %448 = vector.broadcast %447 : vector<2x1x1xf32> to vector<2x1x72xf32>
    %449 = arith.mulf %439, %448 : vector<2x1x72xf32>
    %450 = vector.broadcast %c14_i32 : i32 to vector<2x36x72xi32>
    %451 = arith.cmpi eq, %26, %450 : vector<2x36x72xi32>
    %cst_121 = arith.constant 0.000000e+00 : f32
    %452 = vector.broadcast %cst_121 : f32 to vector<2x36x72xf32>
    %453 = arith.select %451, %433, %452 : vector<2x36x72xi1>, vector<2x36x72xf32>
    %cst_122 = arith.constant dense<0.000000e+00> : vector<2x36xf32>
    %454 = vector.multi_reduction <add>, %453, %cst_122 [2] : vector<2x36x72xf32> to vector<2x36xf32>
    %455 = vector.shape_cast %454 : vector<2x36xf32> to vector<2x36x1xf32>
    %456 = vector.broadcast %455 : vector<2x36x1xf32> to vector<2x36x72xf32>
    %457 = vector.broadcast %449 : vector<2x1x72xf32> to vector<2x36x72xf32>
    %458 = arith.mulf %456, %457 : vector<2x36x72xf32>
    %459 = arith.subf %433, %458 : vector<2x36x72xf32>
    %460 = vector.shape_cast %449 : vector<2x1x72xf32> to vector<2x1x72xf32>
    %461 = vector.broadcast %460 : vector<2x1x72xf32> to vector<2x36x72xf32>
    %462 = arith.select %435, %461, %459 : vector<2x36x72xi1>, vector<2x36x72xf32>
    %c15_i32 = arith.constant 15 : i32
    %463 = vector.broadcast %c15_i32 : i32 to vector<2x36x72xi32>
    %464 = arith.cmpi eq, %25, %463 : vector<2x36x72xi32>
    %cst_123 = arith.constant 0.000000e+00 : f32
    %465 = vector.broadcast %cst_123 : f32 to vector<2x36x72xf32>
    %466 = arith.select %464, %462, %465 : vector<2x36x72xi1>, vector<2x36x72xf32>
    %cst_124 = arith.constant dense<0.000000e+00> : vector<2x72xf32>
    %467 = vector.multi_reduction <add>, %466, %cst_124 [1] : vector<2x36x72xf32> to vector<2x72xf32>
    %468 = vector.shape_cast %467 : vector<2x72xf32> to vector<2x1x72xf32>
    %469 = vector.broadcast %c15_i32 : i32 to vector<2x1x72xi32>
    %470 = arith.cmpi eq, %27, %469 : vector<2x1x72xi32>
    %cst_125 = arith.constant 0.000000e+00 : f32
    %471 = vector.broadcast %cst_125 : f32 to vector<2x1x72xf32>
    %472 = arith.select %470, %468, %471 : vector<2x1x72xi1>, vector<2x1x72xf32>
    %cst_126 = arith.constant dense<0.000000e+00> : vector<2x1xf32>
    %473 = vector.multi_reduction <add>, %472, %cst_126 [2] : vector<2x1x72xf32> to vector<2x1xf32>
    %474 = vector.shape_cast %473 : vector<2x1xf32> to vector<2x1x1xf32>
    %cst_127 = arith.constant 1.000000e+00 : f32
    %475 = vector.broadcast %cst_127 : f32 to vector<2x1x1xf32>
    %476 = arith.divf %475, %474 : vector<2x1x1xf32>
    %477 = vector.broadcast %476 : vector<2x1x1xf32> to vector<2x1x72xf32>
    %478 = arith.mulf %468, %477 : vector<2x1x72xf32>
    %479 = vector.broadcast %c15_i32 : i32 to vector<2x36x72xi32>
    %480 = arith.cmpi eq, %26, %479 : vector<2x36x72xi32>
    %cst_128 = arith.constant 0.000000e+00 : f32
    %481 = vector.broadcast %cst_128 : f32 to vector<2x36x72xf32>
    %482 = arith.select %480, %462, %481 : vector<2x36x72xi1>, vector<2x36x72xf32>
    %cst_129 = arith.constant dense<0.000000e+00> : vector<2x36xf32>
    %483 = vector.multi_reduction <add>, %482, %cst_129 [2] : vector<2x36x72xf32> to vector<2x36xf32>
    %484 = vector.shape_cast %483 : vector<2x36xf32> to vector<2x36x1xf32>
    %485 = vector.broadcast %484 : vector<2x36x1xf32> to vector<2x36x72xf32>
    %486 = vector.broadcast %478 : vector<2x1x72xf32> to vector<2x36x72xf32>
    %487 = arith.mulf %485, %486 : vector<2x36x72xf32>
    %488 = arith.subf %462, %487 : vector<2x36x72xf32>
    %489 = vector.shape_cast %478 : vector<2x1x72xf32> to vector<2x1x72xf32>
    %490 = vector.broadcast %489 : vector<2x1x72xf32> to vector<2x36x72xf32>
    %491 = arith.select %464, %490, %488 : vector<2x36x72xi1>, vector<2x36x72xf32>
    %c16_i32 = arith.constant 16 : i32
    %492 = vector.broadcast %c16_i32 : i32 to vector<2x36x72xi32>
    %493 = arith.cmpi eq, %25, %492 : vector<2x36x72xi32>
    %cst_130 = arith.constant 0.000000e+00 : f32
    %494 = vector.broadcast %cst_130 : f32 to vector<2x36x72xf32>
    %495 = arith.select %493, %491, %494 : vector<2x36x72xi1>, vector<2x36x72xf32>
    %cst_131 = arith.constant dense<0.000000e+00> : vector<2x72xf32>
    %496 = vector.multi_reduction <add>, %495, %cst_131 [1] : vector<2x36x72xf32> to vector<2x72xf32>
    %497 = vector.shape_cast %496 : vector<2x72xf32> to vector<2x1x72xf32>
    %498 = vector.broadcast %c16_i32 : i32 to vector<2x1x72xi32>
    %499 = arith.cmpi eq, %27, %498 : vector<2x1x72xi32>
    %cst_132 = arith.constant 0.000000e+00 : f32
    %500 = vector.broadcast %cst_132 : f32 to vector<2x1x72xf32>
    %501 = arith.select %499, %497, %500 : vector<2x1x72xi1>, vector<2x1x72xf32>
    %cst_133 = arith.constant dense<0.000000e+00> : vector<2x1xf32>
    %502 = vector.multi_reduction <add>, %501, %cst_133 [2] : vector<2x1x72xf32> to vector<2x1xf32>
    %503 = vector.shape_cast %502 : vector<2x1xf32> to vector<2x1x1xf32>
    %cst_134 = arith.constant 1.000000e+00 : f32
    %504 = vector.broadcast %cst_134 : f32 to vector<2x1x1xf32>
    %505 = arith.divf %504, %503 : vector<2x1x1xf32>
    %506 = vector.broadcast %505 : vector<2x1x1xf32> to vector<2x1x72xf32>
    %507 = arith.mulf %497, %506 : vector<2x1x72xf32>
    %508 = vector.broadcast %c16_i32 : i32 to vector<2x36x72xi32>
    %509 = arith.cmpi eq, %26, %508 : vector<2x36x72xi32>
    %cst_135 = arith.constant 0.000000e+00 : f32
    %510 = vector.broadcast %cst_135 : f32 to vector<2x36x72xf32>
    %511 = arith.select %509, %491, %510 : vector<2x36x72xi1>, vector<2x36x72xf32>
    %cst_136 = arith.constant dense<0.000000e+00> : vector<2x36xf32>
    %512 = vector.multi_reduction <add>, %511, %cst_136 [2] : vector<2x36x72xf32> to vector<2x36xf32>
    %513 = vector.shape_cast %512 : vector<2x36xf32> to vector<2x36x1xf32>
    %514 = vector.broadcast %513 : vector<2x36x1xf32> to vector<2x36x72xf32>
    %515 = vector.broadcast %507 : vector<2x1x72xf32> to vector<2x36x72xf32>
    %516 = arith.mulf %514, %515 : vector<2x36x72xf32>
    %517 = arith.subf %491, %516 : vector<2x36x72xf32>
    %518 = vector.shape_cast %507 : vector<2x1x72xf32> to vector<2x1x72xf32>
    %519 = vector.broadcast %518 : vector<2x1x72xf32> to vector<2x36x72xf32>
    %520 = arith.select %493, %519, %517 : vector<2x36x72xi1>, vector<2x36x72xf32>
    %c17_i32 = arith.constant 17 : i32
    %521 = vector.broadcast %c17_i32 : i32 to vector<2x36x72xi32>
    %522 = arith.cmpi eq, %25, %521 : vector<2x36x72xi32>
    %cst_137 = arith.constant 0.000000e+00 : f32
    %523 = vector.broadcast %cst_137 : f32 to vector<2x36x72xf32>
    %524 = arith.select %522, %520, %523 : vector<2x36x72xi1>, vector<2x36x72xf32>
    %cst_138 = arith.constant dense<0.000000e+00> : vector<2x72xf32>
    %525 = vector.multi_reduction <add>, %524, %cst_138 [1] : vector<2x36x72xf32> to vector<2x72xf32>
    %526 = vector.shape_cast %525 : vector<2x72xf32> to vector<2x1x72xf32>
    %527 = vector.broadcast %c17_i32 : i32 to vector<2x1x72xi32>
    %528 = arith.cmpi eq, %27, %527 : vector<2x1x72xi32>
    %cst_139 = arith.constant 0.000000e+00 : f32
    %529 = vector.broadcast %cst_139 : f32 to vector<2x1x72xf32>
    %530 = arith.select %528, %526, %529 : vector<2x1x72xi1>, vector<2x1x72xf32>
    %cst_140 = arith.constant dense<0.000000e+00> : vector<2x1xf32>
    %531 = vector.multi_reduction <add>, %530, %cst_140 [2] : vector<2x1x72xf32> to vector<2x1xf32>
    %532 = vector.shape_cast %531 : vector<2x1xf32> to vector<2x1x1xf32>
    %cst_141 = arith.constant 1.000000e+00 : f32
    %533 = vector.broadcast %cst_141 : f32 to vector<2x1x1xf32>
    %534 = arith.divf %533, %532 : vector<2x1x1xf32>
    %535 = vector.broadcast %534 : vector<2x1x1xf32> to vector<2x1x72xf32>
    %536 = arith.mulf %526, %535 : vector<2x1x72xf32>
    %537 = vector.broadcast %c17_i32 : i32 to vector<2x36x72xi32>
    %538 = arith.cmpi eq, %26, %537 : vector<2x36x72xi32>
    %cst_142 = arith.constant 0.000000e+00 : f32
    %539 = vector.broadcast %cst_142 : f32 to vector<2x36x72xf32>
    %540 = arith.select %538, %520, %539 : vector<2x36x72xi1>, vector<2x36x72xf32>
    %cst_143 = arith.constant dense<0.000000e+00> : vector<2x36xf32>
    %541 = vector.multi_reduction <add>, %540, %cst_143 [2] : vector<2x36x72xf32> to vector<2x36xf32>
    %542 = vector.shape_cast %541 : vector<2x36xf32> to vector<2x36x1xf32>
    %543 = vector.broadcast %542 : vector<2x36x1xf32> to vector<2x36x72xf32>
    %544 = vector.broadcast %536 : vector<2x1x72xf32> to vector<2x36x72xf32>
    %545 = arith.mulf %543, %544 : vector<2x36x72xf32>
    %546 = arith.subf %520, %545 : vector<2x36x72xf32>
    %547 = vector.shape_cast %536 : vector<2x1x72xf32> to vector<2x1x72xf32>
    %548 = vector.broadcast %547 : vector<2x1x72xf32> to vector<2x36x72xf32>
    %549 = arith.select %522, %548, %546 : vector<2x36x72xi1>, vector<2x36x72xf32>
    %c18_i32 = arith.constant 18 : i32
    %550 = vector.broadcast %c18_i32 : i32 to vector<2x36x72xi32>
    %551 = arith.cmpi eq, %25, %550 : vector<2x36x72xi32>
    %cst_144 = arith.constant 0.000000e+00 : f32
    %552 = vector.broadcast %cst_144 : f32 to vector<2x36x72xf32>
    %553 = arith.select %551, %549, %552 : vector<2x36x72xi1>, vector<2x36x72xf32>
    %cst_145 = arith.constant dense<0.000000e+00> : vector<2x72xf32>
    %554 = vector.multi_reduction <add>, %553, %cst_145 [1] : vector<2x36x72xf32> to vector<2x72xf32>
    %555 = vector.shape_cast %554 : vector<2x72xf32> to vector<2x1x72xf32>
    %556 = vector.broadcast %c18_i32 : i32 to vector<2x1x72xi32>
    %557 = arith.cmpi eq, %27, %556 : vector<2x1x72xi32>
    %cst_146 = arith.constant 0.000000e+00 : f32
    %558 = vector.broadcast %cst_146 : f32 to vector<2x1x72xf32>
    %559 = arith.select %557, %555, %558 : vector<2x1x72xi1>, vector<2x1x72xf32>
    %cst_147 = arith.constant dense<0.000000e+00> : vector<2x1xf32>
    %560 = vector.multi_reduction <add>, %559, %cst_147 [2] : vector<2x1x72xf32> to vector<2x1xf32>
    %561 = vector.shape_cast %560 : vector<2x1xf32> to vector<2x1x1xf32>
    %cst_148 = arith.constant 1.000000e+00 : f32
    %562 = vector.broadcast %cst_148 : f32 to vector<2x1x1xf32>
    %563 = arith.divf %562, %561 : vector<2x1x1xf32>
    %564 = vector.broadcast %563 : vector<2x1x1xf32> to vector<2x1x72xf32>
    %565 = arith.mulf %555, %564 : vector<2x1x72xf32>
    %566 = vector.broadcast %c18_i32 : i32 to vector<2x36x72xi32>
    %567 = arith.cmpi eq, %26, %566 : vector<2x36x72xi32>
    %cst_149 = arith.constant 0.000000e+00 : f32
    %568 = vector.broadcast %cst_149 : f32 to vector<2x36x72xf32>
    %569 = arith.select %567, %549, %568 : vector<2x36x72xi1>, vector<2x36x72xf32>
    %cst_150 = arith.constant dense<0.000000e+00> : vector<2x36xf32>
    %570 = vector.multi_reduction <add>, %569, %cst_150 [2] : vector<2x36x72xf32> to vector<2x36xf32>
    %571 = vector.shape_cast %570 : vector<2x36xf32> to vector<2x36x1xf32>
    %572 = vector.broadcast %571 : vector<2x36x1xf32> to vector<2x36x72xf32>
    %573 = vector.broadcast %565 : vector<2x1x72xf32> to vector<2x36x72xf32>
    %574 = arith.mulf %572, %573 : vector<2x36x72xf32>
    %575 = arith.subf %549, %574 : vector<2x36x72xf32>
    %576 = vector.shape_cast %565 : vector<2x1x72xf32> to vector<2x1x72xf32>
    %577 = vector.broadcast %576 : vector<2x1x72xf32> to vector<2x36x72xf32>
    %578 = arith.select %551, %577, %575 : vector<2x36x72xi1>, vector<2x36x72xf32>
    %c19_i32 = arith.constant 19 : i32
    %579 = vector.broadcast %c19_i32 : i32 to vector<2x36x72xi32>
    %580 = arith.cmpi eq, %25, %579 : vector<2x36x72xi32>
    %cst_151 = arith.constant 0.000000e+00 : f32
    %581 = vector.broadcast %cst_151 : f32 to vector<2x36x72xf32>
    %582 = arith.select %580, %578, %581 : vector<2x36x72xi1>, vector<2x36x72xf32>
    %cst_152 = arith.constant dense<0.000000e+00> : vector<2x72xf32>
    %583 = vector.multi_reduction <add>, %582, %cst_152 [1] : vector<2x36x72xf32> to vector<2x72xf32>
    %584 = vector.shape_cast %583 : vector<2x72xf32> to vector<2x1x72xf32>
    %585 = vector.broadcast %c19_i32 : i32 to vector<2x1x72xi32>
    %586 = arith.cmpi eq, %27, %585 : vector<2x1x72xi32>
    %cst_153 = arith.constant 0.000000e+00 : f32
    %587 = vector.broadcast %cst_153 : f32 to vector<2x1x72xf32>
    %588 = arith.select %586, %584, %587 : vector<2x1x72xi1>, vector<2x1x72xf32>
    %cst_154 = arith.constant dense<0.000000e+00> : vector<2x1xf32>
    %589 = vector.multi_reduction <add>, %588, %cst_154 [2] : vector<2x1x72xf32> to vector<2x1xf32>
    %590 = vector.shape_cast %589 : vector<2x1xf32> to vector<2x1x1xf32>
    %cst_155 = arith.constant 1.000000e+00 : f32
    %591 = vector.broadcast %cst_155 : f32 to vector<2x1x1xf32>
    %592 = arith.divf %591, %590 : vector<2x1x1xf32>
    %593 = vector.broadcast %592 : vector<2x1x1xf32> to vector<2x1x72xf32>
    %594 = arith.mulf %584, %593 : vector<2x1x72xf32>
    %595 = vector.broadcast %c19_i32 : i32 to vector<2x36x72xi32>
    %596 = arith.cmpi eq, %26, %595 : vector<2x36x72xi32>
    %cst_156 = arith.constant 0.000000e+00 : f32
    %597 = vector.broadcast %cst_156 : f32 to vector<2x36x72xf32>
    %598 = arith.select %596, %578, %597 : vector<2x36x72xi1>, vector<2x36x72xf32>
    %cst_157 = arith.constant dense<0.000000e+00> : vector<2x36xf32>
    %599 = vector.multi_reduction <add>, %598, %cst_157 [2] : vector<2x36x72xf32> to vector<2x36xf32>
    %600 = vector.shape_cast %599 : vector<2x36xf32> to vector<2x36x1xf32>
    %601 = vector.broadcast %600 : vector<2x36x1xf32> to vector<2x36x72xf32>
    %602 = vector.broadcast %594 : vector<2x1x72xf32> to vector<2x36x72xf32>
    %603 = arith.mulf %601, %602 : vector<2x36x72xf32>
    %604 = arith.subf %578, %603 : vector<2x36x72xf32>
    %605 = vector.shape_cast %594 : vector<2x1x72xf32> to vector<2x1x72xf32>
    %606 = vector.broadcast %605 : vector<2x1x72xf32> to vector<2x36x72xf32>
    %607 = arith.select %580, %606, %604 : vector<2x36x72xi1>, vector<2x36x72xf32>
    %c20_i32 = arith.constant 20 : i32
    %608 = vector.broadcast %c20_i32 : i32 to vector<2x36x72xi32>
    %609 = arith.cmpi eq, %25, %608 : vector<2x36x72xi32>
    %cst_158 = arith.constant 0.000000e+00 : f32
    %610 = vector.broadcast %cst_158 : f32 to vector<2x36x72xf32>
    %611 = arith.select %609, %607, %610 : vector<2x36x72xi1>, vector<2x36x72xf32>
    %cst_159 = arith.constant dense<0.000000e+00> : vector<2x72xf32>
    %612 = vector.multi_reduction <add>, %611, %cst_159 [1] : vector<2x36x72xf32> to vector<2x72xf32>
    %613 = vector.shape_cast %612 : vector<2x72xf32> to vector<2x1x72xf32>
    %614 = vector.broadcast %c20_i32 : i32 to vector<2x1x72xi32>
    %615 = arith.cmpi eq, %27, %614 : vector<2x1x72xi32>
    %cst_160 = arith.constant 0.000000e+00 : f32
    %616 = vector.broadcast %cst_160 : f32 to vector<2x1x72xf32>
    %617 = arith.select %615, %613, %616 : vector<2x1x72xi1>, vector<2x1x72xf32>
    %cst_161 = arith.constant dense<0.000000e+00> : vector<2x1xf32>
    %618 = vector.multi_reduction <add>, %617, %cst_161 [2] : vector<2x1x72xf32> to vector<2x1xf32>
    %619 = vector.shape_cast %618 : vector<2x1xf32> to vector<2x1x1xf32>
    %cst_162 = arith.constant 1.000000e+00 : f32
    %620 = vector.broadcast %cst_162 : f32 to vector<2x1x1xf32>
    %621 = arith.divf %620, %619 : vector<2x1x1xf32>
    %622 = vector.broadcast %621 : vector<2x1x1xf32> to vector<2x1x72xf32>
    %623 = arith.mulf %613, %622 : vector<2x1x72xf32>
    %624 = vector.broadcast %c20_i32 : i32 to vector<2x36x72xi32>
    %625 = arith.cmpi eq, %26, %624 : vector<2x36x72xi32>
    %cst_163 = arith.constant 0.000000e+00 : f32
    %626 = vector.broadcast %cst_163 : f32 to vector<2x36x72xf32>
    %627 = arith.select %625, %607, %626 : vector<2x36x72xi1>, vector<2x36x72xf32>
    %cst_164 = arith.constant dense<0.000000e+00> : vector<2x36xf32>
    %628 = vector.multi_reduction <add>, %627, %cst_164 [2] : vector<2x36x72xf32> to vector<2x36xf32>
    %629 = vector.shape_cast %628 : vector<2x36xf32> to vector<2x36x1xf32>
    %630 = vector.broadcast %629 : vector<2x36x1xf32> to vector<2x36x72xf32>
    %631 = vector.broadcast %623 : vector<2x1x72xf32> to vector<2x36x72xf32>
    %632 = arith.mulf %630, %631 : vector<2x36x72xf32>
    %633 = arith.subf %607, %632 : vector<2x36x72xf32>
    %634 = vector.shape_cast %623 : vector<2x1x72xf32> to vector<2x1x72xf32>
    %635 = vector.broadcast %634 : vector<2x1x72xf32> to vector<2x36x72xf32>
    %636 = arith.select %609, %635, %633 : vector<2x36x72xi1>, vector<2x36x72xf32>
    %c21_i32 = arith.constant 21 : i32
    %637 = vector.broadcast %c21_i32 : i32 to vector<2x36x72xi32>
    %638 = arith.cmpi eq, %25, %637 : vector<2x36x72xi32>
    %cst_165 = arith.constant 0.000000e+00 : f32
    %639 = vector.broadcast %cst_165 : f32 to vector<2x36x72xf32>
    %640 = arith.select %638, %636, %639 : vector<2x36x72xi1>, vector<2x36x72xf32>
    %cst_166 = arith.constant dense<0.000000e+00> : vector<2x72xf32>
    %641 = vector.multi_reduction <add>, %640, %cst_166 [1] : vector<2x36x72xf32> to vector<2x72xf32>
    %642 = vector.shape_cast %641 : vector<2x72xf32> to vector<2x1x72xf32>
    %643 = vector.broadcast %c21_i32 : i32 to vector<2x1x72xi32>
    %644 = arith.cmpi eq, %27, %643 : vector<2x1x72xi32>
    %cst_167 = arith.constant 0.000000e+00 : f32
    %645 = vector.broadcast %cst_167 : f32 to vector<2x1x72xf32>
    %646 = arith.select %644, %642, %645 : vector<2x1x72xi1>, vector<2x1x72xf32>
    %cst_168 = arith.constant dense<0.000000e+00> : vector<2x1xf32>
    %647 = vector.multi_reduction <add>, %646, %cst_168 [2] : vector<2x1x72xf32> to vector<2x1xf32>
    %648 = vector.shape_cast %647 : vector<2x1xf32> to vector<2x1x1xf32>
    %cst_169 = arith.constant 1.000000e+00 : f32
    %649 = vector.broadcast %cst_169 : f32 to vector<2x1x1xf32>
    %650 = arith.divf %649, %648 : vector<2x1x1xf32>
    %651 = vector.broadcast %650 : vector<2x1x1xf32> to vector<2x1x72xf32>
    %652 = arith.mulf %642, %651 : vector<2x1x72xf32>
    %653 = vector.broadcast %c21_i32 : i32 to vector<2x36x72xi32>
    %654 = arith.cmpi eq, %26, %653 : vector<2x36x72xi32>
    %cst_170 = arith.constant 0.000000e+00 : f32
    %655 = vector.broadcast %cst_170 : f32 to vector<2x36x72xf32>
    %656 = arith.select %654, %636, %655 : vector<2x36x72xi1>, vector<2x36x72xf32>
    %cst_171 = arith.constant dense<0.000000e+00> : vector<2x36xf32>
    %657 = vector.multi_reduction <add>, %656, %cst_171 [2] : vector<2x36x72xf32> to vector<2x36xf32>
    %658 = vector.shape_cast %657 : vector<2x36xf32> to vector<2x36x1xf32>
    %659 = vector.broadcast %658 : vector<2x36x1xf32> to vector<2x36x72xf32>
    %660 = vector.broadcast %652 : vector<2x1x72xf32> to vector<2x36x72xf32>
    %661 = arith.mulf %659, %660 : vector<2x36x72xf32>
    %662 = arith.subf %636, %661 : vector<2x36x72xf32>
    %663 = vector.shape_cast %652 : vector<2x1x72xf32> to vector<2x1x72xf32>
    %664 = vector.broadcast %663 : vector<2x1x72xf32> to vector<2x36x72xf32>
    %665 = arith.select %638, %664, %662 : vector<2x36x72xi1>, vector<2x36x72xf32>
    %c22_i32 = arith.constant 22 : i32
    %666 = vector.broadcast %c22_i32 : i32 to vector<2x36x72xi32>
    %667 = arith.cmpi eq, %25, %666 : vector<2x36x72xi32>
    %cst_172 = arith.constant 0.000000e+00 : f32
    %668 = vector.broadcast %cst_172 : f32 to vector<2x36x72xf32>
    %669 = arith.select %667, %665, %668 : vector<2x36x72xi1>, vector<2x36x72xf32>
    %cst_173 = arith.constant dense<0.000000e+00> : vector<2x72xf32>
    %670 = vector.multi_reduction <add>, %669, %cst_173 [1] : vector<2x36x72xf32> to vector<2x72xf32>
    %671 = vector.shape_cast %670 : vector<2x72xf32> to vector<2x1x72xf32>
    %672 = vector.broadcast %c22_i32 : i32 to vector<2x1x72xi32>
    %673 = arith.cmpi eq, %27, %672 : vector<2x1x72xi32>
    %cst_174 = arith.constant 0.000000e+00 : f32
    %674 = vector.broadcast %cst_174 : f32 to vector<2x1x72xf32>
    %675 = arith.select %673, %671, %674 : vector<2x1x72xi1>, vector<2x1x72xf32>
    %cst_175 = arith.constant dense<0.000000e+00> : vector<2x1xf32>
    %676 = vector.multi_reduction <add>, %675, %cst_175 [2] : vector<2x1x72xf32> to vector<2x1xf32>
    %677 = vector.shape_cast %676 : vector<2x1xf32> to vector<2x1x1xf32>
    %cst_176 = arith.constant 1.000000e+00 : f32
    %678 = vector.broadcast %cst_176 : f32 to vector<2x1x1xf32>
    %679 = arith.divf %678, %677 : vector<2x1x1xf32>
    %680 = vector.broadcast %679 : vector<2x1x1xf32> to vector<2x1x72xf32>
    %681 = arith.mulf %671, %680 : vector<2x1x72xf32>
    %682 = vector.broadcast %c22_i32 : i32 to vector<2x36x72xi32>
    %683 = arith.cmpi eq, %26, %682 : vector<2x36x72xi32>
    %cst_177 = arith.constant 0.000000e+00 : f32
    %684 = vector.broadcast %cst_177 : f32 to vector<2x36x72xf32>
    %685 = arith.select %683, %665, %684 : vector<2x36x72xi1>, vector<2x36x72xf32>
    %cst_178 = arith.constant dense<0.000000e+00> : vector<2x36xf32>
    %686 = vector.multi_reduction <add>, %685, %cst_178 [2] : vector<2x36x72xf32> to vector<2x36xf32>
    %687 = vector.shape_cast %686 : vector<2x36xf32> to vector<2x36x1xf32>
    %688 = vector.broadcast %687 : vector<2x36x1xf32> to vector<2x36x72xf32>
    %689 = vector.broadcast %681 : vector<2x1x72xf32> to vector<2x36x72xf32>
    %690 = arith.mulf %688, %689 : vector<2x36x72xf32>
    %691 = arith.subf %665, %690 : vector<2x36x72xf32>
    %692 = vector.shape_cast %681 : vector<2x1x72xf32> to vector<2x1x72xf32>
    %693 = vector.broadcast %692 : vector<2x1x72xf32> to vector<2x36x72xf32>
    %694 = arith.select %667, %693, %691 : vector<2x36x72xi1>, vector<2x36x72xf32>
    %c23_i32 = arith.constant 23 : i32
    %695 = vector.broadcast %c23_i32 : i32 to vector<2x36x72xi32>
    %696 = arith.cmpi eq, %25, %695 : vector<2x36x72xi32>
    %cst_179 = arith.constant 0.000000e+00 : f32
    %697 = vector.broadcast %cst_179 : f32 to vector<2x36x72xf32>
    %698 = arith.select %696, %694, %697 : vector<2x36x72xi1>, vector<2x36x72xf32>
    %cst_180 = arith.constant dense<0.000000e+00> : vector<2x72xf32>
    %699 = vector.multi_reduction <add>, %698, %cst_180 [1] : vector<2x36x72xf32> to vector<2x72xf32>
    %700 = vector.shape_cast %699 : vector<2x72xf32> to vector<2x1x72xf32>
    %701 = vector.broadcast %c23_i32 : i32 to vector<2x1x72xi32>
    %702 = arith.cmpi eq, %27, %701 : vector<2x1x72xi32>
    %cst_181 = arith.constant 0.000000e+00 : f32
    %703 = vector.broadcast %cst_181 : f32 to vector<2x1x72xf32>
    %704 = arith.select %702, %700, %703 : vector<2x1x72xi1>, vector<2x1x72xf32>
    %cst_182 = arith.constant dense<0.000000e+00> : vector<2x1xf32>
    %705 = vector.multi_reduction <add>, %704, %cst_182 [2] : vector<2x1x72xf32> to vector<2x1xf32>
    %706 = vector.shape_cast %705 : vector<2x1xf32> to vector<2x1x1xf32>
    %cst_183 = arith.constant 1.000000e+00 : f32
    %707 = vector.broadcast %cst_183 : f32 to vector<2x1x1xf32>
    %708 = arith.divf %707, %706 : vector<2x1x1xf32>
    %709 = vector.broadcast %708 : vector<2x1x1xf32> to vector<2x1x72xf32>
    %710 = arith.mulf %700, %709 : vector<2x1x72xf32>
    %711 = vector.broadcast %c23_i32 : i32 to vector<2x36x72xi32>
    %712 = arith.cmpi eq, %26, %711 : vector<2x36x72xi32>
    %cst_184 = arith.constant 0.000000e+00 : f32
    %713 = vector.broadcast %cst_184 : f32 to vector<2x36x72xf32>
    %714 = arith.select %712, %694, %713 : vector<2x36x72xi1>, vector<2x36x72xf32>
    %cst_185 = arith.constant dense<0.000000e+00> : vector<2x36xf32>
    %715 = vector.multi_reduction <add>, %714, %cst_185 [2] : vector<2x36x72xf32> to vector<2x36xf32>
    %716 = vector.shape_cast %715 : vector<2x36xf32> to vector<2x36x1xf32>
    %717 = vector.broadcast %716 : vector<2x36x1xf32> to vector<2x36x72xf32>
    %718 = vector.broadcast %710 : vector<2x1x72xf32> to vector<2x36x72xf32>
    %719 = arith.mulf %717, %718 : vector<2x36x72xf32>
    %720 = arith.subf %694, %719 : vector<2x36x72xf32>
    %721 = vector.shape_cast %710 : vector<2x1x72xf32> to vector<2x1x72xf32>
    %722 = vector.broadcast %721 : vector<2x1x72xf32> to vector<2x36x72xf32>
    %723 = arith.select %696, %722, %720 : vector<2x36x72xi1>, vector<2x36x72xf32>
    %c24_i32 = arith.constant 24 : i32
    %724 = vector.broadcast %c24_i32 : i32 to vector<2x36x72xi32>
    %725 = arith.cmpi eq, %25, %724 : vector<2x36x72xi32>
    %cst_186 = arith.constant 0.000000e+00 : f32
    %726 = vector.broadcast %cst_186 : f32 to vector<2x36x72xf32>
    %727 = arith.select %725, %723, %726 : vector<2x36x72xi1>, vector<2x36x72xf32>
    %cst_187 = arith.constant dense<0.000000e+00> : vector<2x72xf32>
    %728 = vector.multi_reduction <add>, %727, %cst_187 [1] : vector<2x36x72xf32> to vector<2x72xf32>
    %729 = vector.shape_cast %728 : vector<2x72xf32> to vector<2x1x72xf32>
    %730 = vector.broadcast %c24_i32 : i32 to vector<2x1x72xi32>
    %731 = arith.cmpi eq, %27, %730 : vector<2x1x72xi32>
    %cst_188 = arith.constant 0.000000e+00 : f32
    %732 = vector.broadcast %cst_188 : f32 to vector<2x1x72xf32>
    %733 = arith.select %731, %729, %732 : vector<2x1x72xi1>, vector<2x1x72xf32>
    %cst_189 = arith.constant dense<0.000000e+00> : vector<2x1xf32>
    %734 = vector.multi_reduction <add>, %733, %cst_189 [2] : vector<2x1x72xf32> to vector<2x1xf32>
    %735 = vector.shape_cast %734 : vector<2x1xf32> to vector<2x1x1xf32>
    %cst_190 = arith.constant 1.000000e+00 : f32
    %736 = vector.broadcast %cst_190 : f32 to vector<2x1x1xf32>
    %737 = arith.divf %736, %735 : vector<2x1x1xf32>
    %738 = vector.broadcast %737 : vector<2x1x1xf32> to vector<2x1x72xf32>
    %739 = arith.mulf %729, %738 : vector<2x1x72xf32>
    %740 = vector.broadcast %c24_i32 : i32 to vector<2x36x72xi32>
    %741 = arith.cmpi eq, %26, %740 : vector<2x36x72xi32>
    %cst_191 = arith.constant 0.000000e+00 : f32
    %742 = vector.broadcast %cst_191 : f32 to vector<2x36x72xf32>
    %743 = arith.select %741, %723, %742 : vector<2x36x72xi1>, vector<2x36x72xf32>
    %cst_192 = arith.constant dense<0.000000e+00> : vector<2x36xf32>
    %744 = vector.multi_reduction <add>, %743, %cst_192 [2] : vector<2x36x72xf32> to vector<2x36xf32>
    %745 = vector.shape_cast %744 : vector<2x36xf32> to vector<2x36x1xf32>
    %746 = vector.broadcast %745 : vector<2x36x1xf32> to vector<2x36x72xf32>
    %747 = vector.broadcast %739 : vector<2x1x72xf32> to vector<2x36x72xf32>
    %748 = arith.mulf %746, %747 : vector<2x36x72xf32>
    %749 = arith.subf %723, %748 : vector<2x36x72xf32>
    %750 = vector.shape_cast %739 : vector<2x1x72xf32> to vector<2x1x72xf32>
    %751 = vector.broadcast %750 : vector<2x1x72xf32> to vector<2x36x72xf32>
    %752 = arith.select %725, %751, %749 : vector<2x36x72xi1>, vector<2x36x72xf32>
    %c25_i32 = arith.constant 25 : i32
    %753 = vector.broadcast %c25_i32 : i32 to vector<2x36x72xi32>
    %754 = arith.cmpi eq, %25, %753 : vector<2x36x72xi32>
    %cst_193 = arith.constant 0.000000e+00 : f32
    %755 = vector.broadcast %cst_193 : f32 to vector<2x36x72xf32>
    %756 = arith.select %754, %752, %755 : vector<2x36x72xi1>, vector<2x36x72xf32>
    %cst_194 = arith.constant dense<0.000000e+00> : vector<2x72xf32>
    %757 = vector.multi_reduction <add>, %756, %cst_194 [1] : vector<2x36x72xf32> to vector<2x72xf32>
    %758 = vector.shape_cast %757 : vector<2x72xf32> to vector<2x1x72xf32>
    %759 = vector.broadcast %c25_i32 : i32 to vector<2x1x72xi32>
    %760 = arith.cmpi eq, %27, %759 : vector<2x1x72xi32>
    %cst_195 = arith.constant 0.000000e+00 : f32
    %761 = vector.broadcast %cst_195 : f32 to vector<2x1x72xf32>
    %762 = arith.select %760, %758, %761 : vector<2x1x72xi1>, vector<2x1x72xf32>
    %cst_196 = arith.constant dense<0.000000e+00> : vector<2x1xf32>
    %763 = vector.multi_reduction <add>, %762, %cst_196 [2] : vector<2x1x72xf32> to vector<2x1xf32>
    %764 = vector.shape_cast %763 : vector<2x1xf32> to vector<2x1x1xf32>
    %cst_197 = arith.constant 1.000000e+00 : f32
    %765 = vector.broadcast %cst_197 : f32 to vector<2x1x1xf32>
    %766 = arith.divf %765, %764 : vector<2x1x1xf32>
    %767 = vector.broadcast %766 : vector<2x1x1xf32> to vector<2x1x72xf32>
    %768 = arith.mulf %758, %767 : vector<2x1x72xf32>
    %769 = vector.broadcast %c25_i32 : i32 to vector<2x36x72xi32>
    %770 = arith.cmpi eq, %26, %769 : vector<2x36x72xi32>
    %cst_198 = arith.constant 0.000000e+00 : f32
    %771 = vector.broadcast %cst_198 : f32 to vector<2x36x72xf32>
    %772 = arith.select %770, %752, %771 : vector<2x36x72xi1>, vector<2x36x72xf32>
    %cst_199 = arith.constant dense<0.000000e+00> : vector<2x36xf32>
    %773 = vector.multi_reduction <add>, %772, %cst_199 [2] : vector<2x36x72xf32> to vector<2x36xf32>
    %774 = vector.shape_cast %773 : vector<2x36xf32> to vector<2x36x1xf32>
    %775 = vector.broadcast %774 : vector<2x36x1xf32> to vector<2x36x72xf32>
    %776 = vector.broadcast %768 : vector<2x1x72xf32> to vector<2x36x72xf32>
    %777 = arith.mulf %775, %776 : vector<2x36x72xf32>
    %778 = arith.subf %752, %777 : vector<2x36x72xf32>
    %779 = vector.shape_cast %768 : vector<2x1x72xf32> to vector<2x1x72xf32>
    %780 = vector.broadcast %779 : vector<2x1x72xf32> to vector<2x36x72xf32>
    %781 = arith.select %754, %780, %778 : vector<2x36x72xi1>, vector<2x36x72xf32>
    %c26_i32 = arith.constant 26 : i32
    %782 = vector.broadcast %c26_i32 : i32 to vector<2x36x72xi32>
    %783 = arith.cmpi eq, %25, %782 : vector<2x36x72xi32>
    %cst_200 = arith.constant 0.000000e+00 : f32
    %784 = vector.broadcast %cst_200 : f32 to vector<2x36x72xf32>
    %785 = arith.select %783, %781, %784 : vector<2x36x72xi1>, vector<2x36x72xf32>
    %cst_201 = arith.constant dense<0.000000e+00> : vector<2x72xf32>
    %786 = vector.multi_reduction <add>, %785, %cst_201 [1] : vector<2x36x72xf32> to vector<2x72xf32>
    %787 = vector.shape_cast %786 : vector<2x72xf32> to vector<2x1x72xf32>
    %788 = vector.broadcast %c26_i32 : i32 to vector<2x1x72xi32>
    %789 = arith.cmpi eq, %27, %788 : vector<2x1x72xi32>
    %cst_202 = arith.constant 0.000000e+00 : f32
    %790 = vector.broadcast %cst_202 : f32 to vector<2x1x72xf32>
    %791 = arith.select %789, %787, %790 : vector<2x1x72xi1>, vector<2x1x72xf32>
    %cst_203 = arith.constant dense<0.000000e+00> : vector<2x1xf32>
    %792 = vector.multi_reduction <add>, %791, %cst_203 [2] : vector<2x1x72xf32> to vector<2x1xf32>
    %793 = vector.shape_cast %792 : vector<2x1xf32> to vector<2x1x1xf32>
    %cst_204 = arith.constant 1.000000e+00 : f32
    %794 = vector.broadcast %cst_204 : f32 to vector<2x1x1xf32>
    %795 = arith.divf %794, %793 : vector<2x1x1xf32>
    %796 = vector.broadcast %795 : vector<2x1x1xf32> to vector<2x1x72xf32>
    %797 = arith.mulf %787, %796 : vector<2x1x72xf32>
    %798 = vector.broadcast %c26_i32 : i32 to vector<2x36x72xi32>
    %799 = arith.cmpi eq, %26, %798 : vector<2x36x72xi32>
    %cst_205 = arith.constant 0.000000e+00 : f32
    %800 = vector.broadcast %cst_205 : f32 to vector<2x36x72xf32>
    %801 = arith.select %799, %781, %800 : vector<2x36x72xi1>, vector<2x36x72xf32>
    %cst_206 = arith.constant dense<0.000000e+00> : vector<2x36xf32>
    %802 = vector.multi_reduction <add>, %801, %cst_206 [2] : vector<2x36x72xf32> to vector<2x36xf32>
    %803 = vector.shape_cast %802 : vector<2x36xf32> to vector<2x36x1xf32>
    %804 = vector.broadcast %803 : vector<2x36x1xf32> to vector<2x36x72xf32>
    %805 = vector.broadcast %797 : vector<2x1x72xf32> to vector<2x36x72xf32>
    %806 = arith.mulf %804, %805 : vector<2x36x72xf32>
    %807 = arith.subf %781, %806 : vector<2x36x72xf32>
    %808 = vector.shape_cast %797 : vector<2x1x72xf32> to vector<2x1x72xf32>
    %809 = vector.broadcast %808 : vector<2x1x72xf32> to vector<2x36x72xf32>
    %810 = arith.select %783, %809, %807 : vector<2x36x72xi1>, vector<2x36x72xf32>
    %c27_i32 = arith.constant 27 : i32
    %811 = vector.broadcast %c27_i32 : i32 to vector<2x36x72xi32>
    %812 = arith.cmpi eq, %25, %811 : vector<2x36x72xi32>
    %cst_207 = arith.constant 0.000000e+00 : f32
    %813 = vector.broadcast %cst_207 : f32 to vector<2x36x72xf32>
    %814 = arith.select %812, %810, %813 : vector<2x36x72xi1>, vector<2x36x72xf32>
    %cst_208 = arith.constant dense<0.000000e+00> : vector<2x72xf32>
    %815 = vector.multi_reduction <add>, %814, %cst_208 [1] : vector<2x36x72xf32> to vector<2x72xf32>
    %816 = vector.shape_cast %815 : vector<2x72xf32> to vector<2x1x72xf32>
    %817 = vector.broadcast %c27_i32 : i32 to vector<2x1x72xi32>
    %818 = arith.cmpi eq, %27, %817 : vector<2x1x72xi32>
    %cst_209 = arith.constant 0.000000e+00 : f32
    %819 = vector.broadcast %cst_209 : f32 to vector<2x1x72xf32>
    %820 = arith.select %818, %816, %819 : vector<2x1x72xi1>, vector<2x1x72xf32>
    %cst_210 = arith.constant dense<0.000000e+00> : vector<2x1xf32>
    %821 = vector.multi_reduction <add>, %820, %cst_210 [2] : vector<2x1x72xf32> to vector<2x1xf32>
    %822 = vector.shape_cast %821 : vector<2x1xf32> to vector<2x1x1xf32>
    %cst_211 = arith.constant 1.000000e+00 : f32
    %823 = vector.broadcast %cst_211 : f32 to vector<2x1x1xf32>
    %824 = arith.divf %823, %822 : vector<2x1x1xf32>
    %825 = vector.broadcast %824 : vector<2x1x1xf32> to vector<2x1x72xf32>
    %826 = arith.mulf %816, %825 : vector<2x1x72xf32>
    %827 = vector.broadcast %c27_i32 : i32 to vector<2x36x72xi32>
    %828 = arith.cmpi eq, %26, %827 : vector<2x36x72xi32>
    %cst_212 = arith.constant 0.000000e+00 : f32
    %829 = vector.broadcast %cst_212 : f32 to vector<2x36x72xf32>
    %830 = arith.select %828, %810, %829 : vector<2x36x72xi1>, vector<2x36x72xf32>
    %cst_213 = arith.constant dense<0.000000e+00> : vector<2x36xf32>
    %831 = vector.multi_reduction <add>, %830, %cst_213 [2] : vector<2x36x72xf32> to vector<2x36xf32>
    %832 = vector.shape_cast %831 : vector<2x36xf32> to vector<2x36x1xf32>
    %833 = vector.broadcast %832 : vector<2x36x1xf32> to vector<2x36x72xf32>
    %834 = vector.broadcast %826 : vector<2x1x72xf32> to vector<2x36x72xf32>
    %835 = arith.mulf %833, %834 : vector<2x36x72xf32>
    %836 = arith.subf %810, %835 : vector<2x36x72xf32>
    %837 = vector.shape_cast %826 : vector<2x1x72xf32> to vector<2x1x72xf32>
    %838 = vector.broadcast %837 : vector<2x1x72xf32> to vector<2x36x72xf32>
    %839 = arith.select %812, %838, %836 : vector<2x36x72xi1>, vector<2x36x72xf32>
    %c28_i32 = arith.constant 28 : i32
    %840 = vector.broadcast %c28_i32 : i32 to vector<2x36x72xi32>
    %841 = arith.cmpi eq, %25, %840 : vector<2x36x72xi32>
    %cst_214 = arith.constant 0.000000e+00 : f32
    %842 = vector.broadcast %cst_214 : f32 to vector<2x36x72xf32>
    %843 = arith.select %841, %839, %842 : vector<2x36x72xi1>, vector<2x36x72xf32>
    %cst_215 = arith.constant dense<0.000000e+00> : vector<2x72xf32>
    %844 = vector.multi_reduction <add>, %843, %cst_215 [1] : vector<2x36x72xf32> to vector<2x72xf32>
    %845 = vector.shape_cast %844 : vector<2x72xf32> to vector<2x1x72xf32>
    %846 = vector.broadcast %c28_i32 : i32 to vector<2x1x72xi32>
    %847 = arith.cmpi eq, %27, %846 : vector<2x1x72xi32>
    %cst_216 = arith.constant 0.000000e+00 : f32
    %848 = vector.broadcast %cst_216 : f32 to vector<2x1x72xf32>
    %849 = arith.select %847, %845, %848 : vector<2x1x72xi1>, vector<2x1x72xf32>
    %cst_217 = arith.constant dense<0.000000e+00> : vector<2x1xf32>
    %850 = vector.multi_reduction <add>, %849, %cst_217 [2] : vector<2x1x72xf32> to vector<2x1xf32>
    %851 = vector.shape_cast %850 : vector<2x1xf32> to vector<2x1x1xf32>
    %cst_218 = arith.constant 1.000000e+00 : f32
    %852 = vector.broadcast %cst_218 : f32 to vector<2x1x1xf32>
    %853 = arith.divf %852, %851 : vector<2x1x1xf32>
    %854 = vector.broadcast %853 : vector<2x1x1xf32> to vector<2x1x72xf32>
    %855 = arith.mulf %845, %854 : vector<2x1x72xf32>
    %856 = vector.broadcast %c28_i32 : i32 to vector<2x36x72xi32>
    %857 = arith.cmpi eq, %26, %856 : vector<2x36x72xi32>
    %cst_219 = arith.constant 0.000000e+00 : f32
    %858 = vector.broadcast %cst_219 : f32 to vector<2x36x72xf32>
    %859 = arith.select %857, %839, %858 : vector<2x36x72xi1>, vector<2x36x72xf32>
    %cst_220 = arith.constant dense<0.000000e+00> : vector<2x36xf32>
    %860 = vector.multi_reduction <add>, %859, %cst_220 [2] : vector<2x36x72xf32> to vector<2x36xf32>
    %861 = vector.shape_cast %860 : vector<2x36xf32> to vector<2x36x1xf32>
    %862 = vector.broadcast %861 : vector<2x36x1xf32> to vector<2x36x72xf32>
    %863 = vector.broadcast %855 : vector<2x1x72xf32> to vector<2x36x72xf32>
    %864 = arith.mulf %862, %863 : vector<2x36x72xf32>
    %865 = arith.subf %839, %864 : vector<2x36x72xf32>
    %866 = vector.shape_cast %855 : vector<2x1x72xf32> to vector<2x1x72xf32>
    %867 = vector.broadcast %866 : vector<2x1x72xf32> to vector<2x36x72xf32>
    %868 = arith.select %841, %867, %865 : vector<2x36x72xi1>, vector<2x36x72xf32>
    %c29_i32 = arith.constant 29 : i32
    %869 = vector.broadcast %c29_i32 : i32 to vector<2x36x72xi32>
    %870 = arith.cmpi eq, %25, %869 : vector<2x36x72xi32>
    %cst_221 = arith.constant 0.000000e+00 : f32
    %871 = vector.broadcast %cst_221 : f32 to vector<2x36x72xf32>
    %872 = arith.select %870, %868, %871 : vector<2x36x72xi1>, vector<2x36x72xf32>
    %cst_222 = arith.constant dense<0.000000e+00> : vector<2x72xf32>
    %873 = vector.multi_reduction <add>, %872, %cst_222 [1] : vector<2x36x72xf32> to vector<2x72xf32>
    %874 = vector.shape_cast %873 : vector<2x72xf32> to vector<2x1x72xf32>
    %875 = vector.broadcast %c29_i32 : i32 to vector<2x1x72xi32>
    %876 = arith.cmpi eq, %27, %875 : vector<2x1x72xi32>
    %cst_223 = arith.constant 0.000000e+00 : f32
    %877 = vector.broadcast %cst_223 : f32 to vector<2x1x72xf32>
    %878 = arith.select %876, %874, %877 : vector<2x1x72xi1>, vector<2x1x72xf32>
    %cst_224 = arith.constant dense<0.000000e+00> : vector<2x1xf32>
    %879 = vector.multi_reduction <add>, %878, %cst_224 [2] : vector<2x1x72xf32> to vector<2x1xf32>
    %880 = vector.shape_cast %879 : vector<2x1xf32> to vector<2x1x1xf32>
    %cst_225 = arith.constant 1.000000e+00 : f32
    %881 = vector.broadcast %cst_225 : f32 to vector<2x1x1xf32>
    %882 = arith.divf %881, %880 : vector<2x1x1xf32>
    %883 = vector.broadcast %882 : vector<2x1x1xf32> to vector<2x1x72xf32>
    %884 = arith.mulf %874, %883 : vector<2x1x72xf32>
    %885 = vector.broadcast %c29_i32 : i32 to vector<2x36x72xi32>
    %886 = arith.cmpi eq, %26, %885 : vector<2x36x72xi32>
    %cst_226 = arith.constant 0.000000e+00 : f32
    %887 = vector.broadcast %cst_226 : f32 to vector<2x36x72xf32>
    %888 = arith.select %886, %868, %887 : vector<2x36x72xi1>, vector<2x36x72xf32>
    %cst_227 = arith.constant dense<0.000000e+00> : vector<2x36xf32>
    %889 = vector.multi_reduction <add>, %888, %cst_227 [2] : vector<2x36x72xf32> to vector<2x36xf32>
    %890 = vector.shape_cast %889 : vector<2x36xf32> to vector<2x36x1xf32>
    %891 = vector.broadcast %890 : vector<2x36x1xf32> to vector<2x36x72xf32>
    %892 = vector.broadcast %884 : vector<2x1x72xf32> to vector<2x36x72xf32>
    %893 = arith.mulf %891, %892 : vector<2x36x72xf32>
    %894 = arith.subf %868, %893 : vector<2x36x72xf32>
    %895 = vector.shape_cast %884 : vector<2x1x72xf32> to vector<2x1x72xf32>
    %896 = vector.broadcast %895 : vector<2x1x72xf32> to vector<2x36x72xf32>
    %897 = arith.select %870, %896, %894 : vector<2x36x72xi1>, vector<2x36x72xf32>
    %c30_i32 = arith.constant 30 : i32
    %898 = vector.broadcast %c30_i32 : i32 to vector<2x36x72xi32>
    %899 = arith.cmpi eq, %25, %898 : vector<2x36x72xi32>
    %cst_228 = arith.constant 0.000000e+00 : f32
    %900 = vector.broadcast %cst_228 : f32 to vector<2x36x72xf32>
    %901 = arith.select %899, %897, %900 : vector<2x36x72xi1>, vector<2x36x72xf32>
    %cst_229 = arith.constant dense<0.000000e+00> : vector<2x72xf32>
    %902 = vector.multi_reduction <add>, %901, %cst_229 [1] : vector<2x36x72xf32> to vector<2x72xf32>
    %903 = vector.shape_cast %902 : vector<2x72xf32> to vector<2x1x72xf32>
    %904 = vector.broadcast %c30_i32 : i32 to vector<2x1x72xi32>
    %905 = arith.cmpi eq, %27, %904 : vector<2x1x72xi32>
    %cst_230 = arith.constant 0.000000e+00 : f32
    %906 = vector.broadcast %cst_230 : f32 to vector<2x1x72xf32>
    %907 = arith.select %905, %903, %906 : vector<2x1x72xi1>, vector<2x1x72xf32>
    %cst_231 = arith.constant dense<0.000000e+00> : vector<2x1xf32>
    %908 = vector.multi_reduction <add>, %907, %cst_231 [2] : vector<2x1x72xf32> to vector<2x1xf32>
    %909 = vector.shape_cast %908 : vector<2x1xf32> to vector<2x1x1xf32>
    %cst_232 = arith.constant 1.000000e+00 : f32
    %910 = vector.broadcast %cst_232 : f32 to vector<2x1x1xf32>
    %911 = arith.divf %910, %909 : vector<2x1x1xf32>
    %912 = vector.broadcast %911 : vector<2x1x1xf32> to vector<2x1x72xf32>
    %913 = arith.mulf %903, %912 : vector<2x1x72xf32>
    %914 = vector.broadcast %c30_i32 : i32 to vector<2x36x72xi32>
    %915 = arith.cmpi eq, %26, %914 : vector<2x36x72xi32>
    %cst_233 = arith.constant 0.000000e+00 : f32
    %916 = vector.broadcast %cst_233 : f32 to vector<2x36x72xf32>
    %917 = arith.select %915, %897, %916 : vector<2x36x72xi1>, vector<2x36x72xf32>
    %cst_234 = arith.constant dense<0.000000e+00> : vector<2x36xf32>
    %918 = vector.multi_reduction <add>, %917, %cst_234 [2] : vector<2x36x72xf32> to vector<2x36xf32>
    %919 = vector.shape_cast %918 : vector<2x36xf32> to vector<2x36x1xf32>
    %920 = vector.broadcast %919 : vector<2x36x1xf32> to vector<2x36x72xf32>
    %921 = vector.broadcast %913 : vector<2x1x72xf32> to vector<2x36x72xf32>
    %922 = arith.mulf %920, %921 : vector<2x36x72xf32>
    %923 = arith.subf %897, %922 : vector<2x36x72xf32>
    %924 = vector.shape_cast %913 : vector<2x1x72xf32> to vector<2x1x72xf32>
    %925 = vector.broadcast %924 : vector<2x1x72xf32> to vector<2x36x72xf32>
    %926 = arith.select %899, %925, %923 : vector<2x36x72xi1>, vector<2x36x72xf32>
    %c31_i32 = arith.constant 31 : i32
    %927 = vector.broadcast %c31_i32 : i32 to vector<2x36x72xi32>
    %928 = arith.cmpi eq, %25, %927 : vector<2x36x72xi32>
    %cst_235 = arith.constant 0.000000e+00 : f32
    %929 = vector.broadcast %cst_235 : f32 to vector<2x36x72xf32>
    %930 = arith.select %928, %926, %929 : vector<2x36x72xi1>, vector<2x36x72xf32>
    %cst_236 = arith.constant dense<0.000000e+00> : vector<2x72xf32>
    %931 = vector.multi_reduction <add>, %930, %cst_236 [1] : vector<2x36x72xf32> to vector<2x72xf32>
    %932 = vector.shape_cast %931 : vector<2x72xf32> to vector<2x1x72xf32>
    %933 = vector.broadcast %c31_i32 : i32 to vector<2x1x72xi32>
    %934 = arith.cmpi eq, %27, %933 : vector<2x1x72xi32>
    %cst_237 = arith.constant 0.000000e+00 : f32
    %935 = vector.broadcast %cst_237 : f32 to vector<2x1x72xf32>
    %936 = arith.select %934, %932, %935 : vector<2x1x72xi1>, vector<2x1x72xf32>
    %cst_238 = arith.constant dense<0.000000e+00> : vector<2x1xf32>
    %937 = vector.multi_reduction <add>, %936, %cst_238 [2] : vector<2x1x72xf32> to vector<2x1xf32>
    %938 = vector.shape_cast %937 : vector<2x1xf32> to vector<2x1x1xf32>
    %cst_239 = arith.constant 1.000000e+00 : f32
    %939 = vector.broadcast %cst_239 : f32 to vector<2x1x1xf32>
    %940 = arith.divf %939, %938 : vector<2x1x1xf32>
    %941 = vector.broadcast %940 : vector<2x1x1xf32> to vector<2x1x72xf32>
    %942 = arith.mulf %932, %941 : vector<2x1x72xf32>
    %943 = vector.broadcast %c31_i32 : i32 to vector<2x36x72xi32>
    %944 = arith.cmpi eq, %26, %943 : vector<2x36x72xi32>
    %cst_240 = arith.constant 0.000000e+00 : f32
    %945 = vector.broadcast %cst_240 : f32 to vector<2x36x72xf32>
    %946 = arith.select %944, %926, %945 : vector<2x36x72xi1>, vector<2x36x72xf32>
    %cst_241 = arith.constant dense<0.000000e+00> : vector<2x36xf32>
    %947 = vector.multi_reduction <add>, %946, %cst_241 [2] : vector<2x36x72xf32> to vector<2x36xf32>
    %948 = vector.shape_cast %947 : vector<2x36xf32> to vector<2x36x1xf32>
    %949 = vector.broadcast %948 : vector<2x36x1xf32> to vector<2x36x72xf32>
    %950 = vector.broadcast %942 : vector<2x1x72xf32> to vector<2x36x72xf32>
    %951 = arith.mulf %949, %950 : vector<2x36x72xf32>
    %952 = arith.subf %926, %951 : vector<2x36x72xf32>
    %953 = vector.shape_cast %942 : vector<2x1x72xf32> to vector<2x1x72xf32>
    %954 = vector.broadcast %953 : vector<2x1x72xf32> to vector<2x36x72xf32>
    %955 = arith.select %928, %954, %952 : vector<2x36x72xi1>, vector<2x36x72xf32>
    %c32_i32 = arith.constant 32 : i32
    %956 = vector.broadcast %c32_i32 : i32 to vector<2x36x72xi32>
    %957 = arith.cmpi eq, %25, %956 : vector<2x36x72xi32>
    %cst_242 = arith.constant 0.000000e+00 : f32
    %958 = vector.broadcast %cst_242 : f32 to vector<2x36x72xf32>
    %959 = arith.select %957, %955, %958 : vector<2x36x72xi1>, vector<2x36x72xf32>
    %cst_243 = arith.constant dense<0.000000e+00> : vector<2x72xf32>
    %960 = vector.multi_reduction <add>, %959, %cst_243 [1] : vector<2x36x72xf32> to vector<2x72xf32>
    %961 = vector.shape_cast %960 : vector<2x72xf32> to vector<2x1x72xf32>
    %962 = vector.broadcast %c32_i32 : i32 to vector<2x1x72xi32>
    %963 = arith.cmpi eq, %27, %962 : vector<2x1x72xi32>
    %cst_244 = arith.constant 0.000000e+00 : f32
    %964 = vector.broadcast %cst_244 : f32 to vector<2x1x72xf32>
    %965 = arith.select %963, %961, %964 : vector<2x1x72xi1>, vector<2x1x72xf32>
    %cst_245 = arith.constant dense<0.000000e+00> : vector<2x1xf32>
    %966 = vector.multi_reduction <add>, %965, %cst_245 [2] : vector<2x1x72xf32> to vector<2x1xf32>
    %967 = vector.shape_cast %966 : vector<2x1xf32> to vector<2x1x1xf32>
    %cst_246 = arith.constant 1.000000e+00 : f32
    %968 = vector.broadcast %cst_246 : f32 to vector<2x1x1xf32>
    %969 = arith.divf %968, %967 : vector<2x1x1xf32>
    %970 = vector.broadcast %969 : vector<2x1x1xf32> to vector<2x1x72xf32>
    %971 = arith.mulf %961, %970 : vector<2x1x72xf32>
    %972 = vector.broadcast %c32_i32 : i32 to vector<2x36x72xi32>
    %973 = arith.cmpi eq, %26, %972 : vector<2x36x72xi32>
    %cst_247 = arith.constant 0.000000e+00 : f32
    %974 = vector.broadcast %cst_247 : f32 to vector<2x36x72xf32>
    %975 = arith.select %973, %955, %974 : vector<2x36x72xi1>, vector<2x36x72xf32>
    %cst_248 = arith.constant dense<0.000000e+00> : vector<2x36xf32>
    %976 = vector.multi_reduction <add>, %975, %cst_248 [2] : vector<2x36x72xf32> to vector<2x36xf32>
    %977 = vector.shape_cast %976 : vector<2x36xf32> to vector<2x36x1xf32>
    %978 = vector.broadcast %977 : vector<2x36x1xf32> to vector<2x36x72xf32>
    %979 = vector.broadcast %971 : vector<2x1x72xf32> to vector<2x36x72xf32>
    %980 = arith.mulf %978, %979 : vector<2x36x72xf32>
    %981 = arith.subf %955, %980 : vector<2x36x72xf32>
    %982 = vector.shape_cast %971 : vector<2x1x72xf32> to vector<2x1x72xf32>
    %983 = vector.broadcast %982 : vector<2x1x72xf32> to vector<2x36x72xf32>
    %984 = arith.select %957, %983, %981 : vector<2x36x72xi1>, vector<2x36x72xf32>
    %c33_i32 = arith.constant 33 : i32
    %985 = vector.broadcast %c33_i32 : i32 to vector<2x36x72xi32>
    %986 = arith.cmpi eq, %25, %985 : vector<2x36x72xi32>
    %cst_249 = arith.constant 0.000000e+00 : f32
    %987 = vector.broadcast %cst_249 : f32 to vector<2x36x72xf32>
    %988 = arith.select %986, %984, %987 : vector<2x36x72xi1>, vector<2x36x72xf32>
    %cst_250 = arith.constant dense<0.000000e+00> : vector<2x72xf32>
    %989 = vector.multi_reduction <add>, %988, %cst_250 [1] : vector<2x36x72xf32> to vector<2x72xf32>
    %990 = vector.shape_cast %989 : vector<2x72xf32> to vector<2x1x72xf32>
    %991 = vector.broadcast %c33_i32 : i32 to vector<2x1x72xi32>
    %992 = arith.cmpi eq, %27, %991 : vector<2x1x72xi32>
    %cst_251 = arith.constant 0.000000e+00 : f32
    %993 = vector.broadcast %cst_251 : f32 to vector<2x1x72xf32>
    %994 = arith.select %992, %990, %993 : vector<2x1x72xi1>, vector<2x1x72xf32>
    %cst_252 = arith.constant dense<0.000000e+00> : vector<2x1xf32>
    %995 = vector.multi_reduction <add>, %994, %cst_252 [2] : vector<2x1x72xf32> to vector<2x1xf32>
    %996 = vector.shape_cast %995 : vector<2x1xf32> to vector<2x1x1xf32>
    %cst_253 = arith.constant 1.000000e+00 : f32
    %997 = vector.broadcast %cst_253 : f32 to vector<2x1x1xf32>
    %998 = arith.divf %997, %996 : vector<2x1x1xf32>
    %999 = vector.broadcast %998 : vector<2x1x1xf32> to vector<2x1x72xf32>
    %1000 = arith.mulf %990, %999 : vector<2x1x72xf32>
    %1001 = vector.broadcast %c33_i32 : i32 to vector<2x36x72xi32>
    %1002 = arith.cmpi eq, %26, %1001 : vector<2x36x72xi32>
    %cst_254 = arith.constant 0.000000e+00 : f32
    %1003 = vector.broadcast %cst_254 : f32 to vector<2x36x72xf32>
    %1004 = arith.select %1002, %984, %1003 : vector<2x36x72xi1>, vector<2x36x72xf32>
    %cst_255 = arith.constant dense<0.000000e+00> : vector<2x36xf32>
    %1005 = vector.multi_reduction <add>, %1004, %cst_255 [2] : vector<2x36x72xf32> to vector<2x36xf32>
    %1006 = vector.shape_cast %1005 : vector<2x36xf32> to vector<2x36x1xf32>
    %1007 = vector.broadcast %1006 : vector<2x36x1xf32> to vector<2x36x72xf32>
    %1008 = vector.broadcast %1000 : vector<2x1x72xf32> to vector<2x36x72xf32>
    %1009 = arith.mulf %1007, %1008 : vector<2x36x72xf32>
    %1010 = arith.subf %984, %1009 : vector<2x36x72xf32>
    %1011 = vector.shape_cast %1000 : vector<2x1x72xf32> to vector<2x1x72xf32>
    %1012 = vector.broadcast %1011 : vector<2x1x72xf32> to vector<2x36x72xf32>
    %1013 = arith.select %986, %1012, %1010 : vector<2x36x72xi1>, vector<2x36x72xf32>
    %c34_i32 = arith.constant 34 : i32
    %1014 = vector.broadcast %c34_i32 : i32 to vector<2x36x72xi32>
    %1015 = arith.cmpi eq, %25, %1014 : vector<2x36x72xi32>
    %cst_256 = arith.constant 0.000000e+00 : f32
    %1016 = vector.broadcast %cst_256 : f32 to vector<2x36x72xf32>
    %1017 = arith.select %1015, %1013, %1016 : vector<2x36x72xi1>, vector<2x36x72xf32>
    %cst_257 = arith.constant dense<0.000000e+00> : vector<2x72xf32>
    %1018 = vector.multi_reduction <add>, %1017, %cst_257 [1] : vector<2x36x72xf32> to vector<2x72xf32>
    %1019 = vector.shape_cast %1018 : vector<2x72xf32> to vector<2x1x72xf32>
    %1020 = vector.broadcast %c34_i32 : i32 to vector<2x1x72xi32>
    %1021 = arith.cmpi eq, %27, %1020 : vector<2x1x72xi32>
    %cst_258 = arith.constant 0.000000e+00 : f32
    %1022 = vector.broadcast %cst_258 : f32 to vector<2x1x72xf32>
    %1023 = arith.select %1021, %1019, %1022 : vector<2x1x72xi1>, vector<2x1x72xf32>
    %cst_259 = arith.constant dense<0.000000e+00> : vector<2x1xf32>
    %1024 = vector.multi_reduction <add>, %1023, %cst_259 [2] : vector<2x1x72xf32> to vector<2x1xf32>
    %1025 = vector.shape_cast %1024 : vector<2x1xf32> to vector<2x1x1xf32>
    %cst_260 = arith.constant 1.000000e+00 : f32
    %1026 = vector.broadcast %cst_260 : f32 to vector<2x1x1xf32>
    %1027 = arith.divf %1026, %1025 : vector<2x1x1xf32>
    %1028 = vector.broadcast %1027 : vector<2x1x1xf32> to vector<2x1x72xf32>
    %1029 = arith.mulf %1019, %1028 : vector<2x1x72xf32>
    %1030 = vector.broadcast %c34_i32 : i32 to vector<2x36x72xi32>
    %1031 = arith.cmpi eq, %26, %1030 : vector<2x36x72xi32>
    %cst_261 = arith.constant 0.000000e+00 : f32
    %1032 = vector.broadcast %cst_261 : f32 to vector<2x36x72xf32>
    %1033 = arith.select %1031, %1013, %1032 : vector<2x36x72xi1>, vector<2x36x72xf32>
    %cst_262 = arith.constant dense<0.000000e+00> : vector<2x36xf32>
    %1034 = vector.multi_reduction <add>, %1033, %cst_262 [2] : vector<2x36x72xf32> to vector<2x36xf32>
    %1035 = vector.shape_cast %1034 : vector<2x36xf32> to vector<2x36x1xf32>
    %1036 = vector.broadcast %1035 : vector<2x36x1xf32> to vector<2x36x72xf32>
    %1037 = vector.broadcast %1029 : vector<2x1x72xf32> to vector<2x36x72xf32>
    %1038 = arith.mulf %1036, %1037 : vector<2x36x72xf32>
    %1039 = arith.subf %1013, %1038 : vector<2x36x72xf32>
    %1040 = vector.shape_cast %1029 : vector<2x1x72xf32> to vector<2x1x72xf32>
    %1041 = vector.broadcast %1040 : vector<2x1x72xf32> to vector<2x36x72xf32>
    %1042 = arith.select %1015, %1041, %1039 : vector<2x36x72xi1>, vector<2x36x72xf32>
    %c35_i32 = arith.constant 35 : i32
    %1043 = vector.broadcast %c35_i32 : i32 to vector<2x36x72xi32>
    %1044 = arith.cmpi eq, %25, %1043 : vector<2x36x72xi32>
    %cst_263 = arith.constant 0.000000e+00 : f32
    %1045 = vector.broadcast %cst_263 : f32 to vector<2x36x72xf32>
    %1046 = arith.select %1044, %1042, %1045 : vector<2x36x72xi1>, vector<2x36x72xf32>
    %cst_264 = arith.constant dense<0.000000e+00> : vector<2x72xf32>
    %1047 = vector.multi_reduction <add>, %1046, %cst_264 [1] : vector<2x36x72xf32> to vector<2x72xf32>
    %1048 = vector.shape_cast %1047 : vector<2x72xf32> to vector<2x1x72xf32>
    %1049 = vector.broadcast %c35_i32 : i32 to vector<2x1x72xi32>
    %1050 = arith.cmpi eq, %27, %1049 : vector<2x1x72xi32>
    %cst_265 = arith.constant 0.000000e+00 : f32
    %1051 = vector.broadcast %cst_265 : f32 to vector<2x1x72xf32>
    %1052 = arith.select %1050, %1048, %1051 : vector<2x1x72xi1>, vector<2x1x72xf32>
    %cst_266 = arith.constant dense<0.000000e+00> : vector<2x1xf32>
    %1053 = vector.multi_reduction <add>, %1052, %cst_266 [2] : vector<2x1x72xf32> to vector<2x1xf32>
    %1054 = vector.shape_cast %1053 : vector<2x1xf32> to vector<2x1x1xf32>
    %cst_267 = arith.constant 1.000000e+00 : f32
    %1055 = vector.broadcast %cst_267 : f32 to vector<2x1x1xf32>
    %1056 = arith.divf %1055, %1054 : vector<2x1x1xf32>
    %1057 = vector.broadcast %1056 : vector<2x1x1xf32> to vector<2x1x72xf32>
    %1058 = arith.mulf %1048, %1057 : vector<2x1x72xf32>
    %1059 = vector.broadcast %c35_i32 : i32 to vector<2x36x72xi32>
    %1060 = arith.cmpi eq, %26, %1059 : vector<2x36x72xi32>
    %cst_268 = arith.constant 0.000000e+00 : f32
    %1061 = vector.broadcast %cst_268 : f32 to vector<2x36x72xf32>
    %1062 = arith.select %1060, %1042, %1061 : vector<2x36x72xi1>, vector<2x36x72xf32>
    %cst_269 = arith.constant dense<0.000000e+00> : vector<2x36xf32>
    %1063 = vector.multi_reduction <add>, %1062, %cst_269 [2] : vector<2x36x72xf32> to vector<2x36xf32>
    %1064 = vector.shape_cast %1063 : vector<2x36xf32> to vector<2x36x1xf32>
    %1065 = vector.broadcast %1064 : vector<2x36x1xf32> to vector<2x36x72xf32>
    %1066 = vector.broadcast %1058 : vector<2x1x72xf32> to vector<2x36x72xf32>
    %1067 = arith.mulf %1065, %1066 : vector<2x36x72xf32>
    %1068 = arith.subf %1042, %1067 : vector<2x36x72xf32>
    %1069 = vector.shape_cast %1058 : vector<2x1x72xf32> to vector<2x1x72xf32>
    %1070 = vector.broadcast %1069 : vector<2x1x72xf32> to vector<2x36x72xf32>
    %1071 = arith.select %1044, %1070, %1068 : vector<2x36x72xi1>, vector<2x36x72xf32>
    %c36_i32 = arith.constant 36 : i32
    %1072 = vector.extract_strided_slice %1071 {offsets = [0, 0, 36], sizes = [2, 36, 36], strides = [1, 1, 1]} : vector<2x36x72xf32> to vector<2x36x36xf32>
    %1073 = vector.shape_cast %4 : vector<32x36xf32> to vector<1x32x36xf32>
    %1074 = vector.broadcast %1073 : vector<1x32x36xf32> to vector<2x32x36xf32>
    "tpu.trace_start"() <{level = 10 : i32, message = "bpn,bnm->bpm"}> : () -> ()
    %cst_270 = arith.constant dense<0.000000e+00> : vector<2x32x36xf32>
    %1075 = tpu.matmul %1074, %1072, %cst_270 {dimension_numbers = #tpu.dot_dimension_numbers<[2], [1], [1], [2], [0, 0, 0, 1, 1, 2], [0], [0]>} : vector<2x32x36xf32>, vector<2x36x36xf32>, vector<2x32x36xf32> -> vector<2x32x36xf32>
    "tpu.trace_stop"() : () -> ()
    "tpu.trace_start"() <{level = 10 : i32, message = "bqn,bpn->bqp"}> : () -> ()
    %cst_271 = arith.constant dense<0.000000e+00> : vector<2x1x32xf32>
    %1076 = tpu.matmul %0, %1075, %cst_271 {dimension_numbers = #tpu.dot_dimension_numbers<[2], [2], [1], [1], [0, 0, 0, 1, 1, 1], [0], [0]>} : vector<2x1x36xf32>, vector<2x32x36xf32>, vector<2x1x32xf32> -> vector<2x1x32xf32>
    "tpu.trace_stop"() : () -> ()
    %1077 = vector.shape_cast %5 : vector<36x32xf32> to vector<1x36x32xf32>
    %1078 = vector.broadcast %1077 : vector<1x36x32xf32> to vector<2x36x32xf32>
    %1079 = vector.shape_cast %3 : vector<32x32xf32> to vector<1x32x32xf32>
    %1080 = vector.broadcast %1079 : vector<1x32x32xf32> to vector<2x32x32xf32>
    "tpu.trace_start"() <{level = 10 : i32, message = "bpn,bnq->bpq"}> : () -> ()
    %cst_272 = arith.constant dense<0.000000e+00> : vector<2x32x32xf32>
    %1081 = tpu.matmul %1075, %1078, %cst_272 {dimension_numbers = #tpu.dot_dimension_numbers<[2], [1], [1], [2], [0, 0, 0, 1, 1, 2], [0], [0]>} : vector<2x32x36xf32>, vector<2x36x32xf32>, vector<2x32x32xf32> -> vector<2x32x32xf32>
    "tpu.trace_stop"() : () -> ()
    %1082 = arith.subf %1080, %1081 : vector<2x32x32xf32>
    %c0_273 = arith.constant 0 : index
    %c0_274 = arith.constant 0 : index
    %c0_275 = arith.constant 0 : index
    %1083 = vector.load %arg8[%c0_273, %c0_274, %c0_275] : memref<2x1x32xf32, #tpu.memory_space<vmem>>, vector<2x1x32xf32>
    tpu.vector_store %arg8[%c0_273, %c0_274, %c0_275], %1076 {strides = array<i32>} : memref<2x1x32xf32, #tpu.memory_space<vmem>>, vector<2x1x32xf32>,
    %c0_276 = arith.constant 0 : index
    %c0_277 = arith.constant 0 : index
    %c0_278 = arith.constant 0 : index
    %1084 = vector.load %arg9[%c0_276, %c0_277, %c0_278] : memref<2x32x32xf32, #tpu.memory_space<vmem>>, vector<2x32x32xf32>
    tpu.vector_store %arg9[%c0_276, %c0_277, %c0_278], %1082 {strides = array<i32>} : memref<2x32x32xf32, #tpu.memory_space<vmem>>, vector<2x32x32xf32>,
    return
  }
  func.func @transform_0(%arg0: i32) -> (i32, i32, i32) {
    %c0_i32 = arith.constant 0 : i32
    %c0_i32_0 = arith.constant 0 : i32
    %c0_i32_1 = arith.constant 0 : i32
    return %arg0, %c0_i32, %c0_i32_0 : i32, i32, i32
  }
  func.func @transform_1(%arg0: i32) -> (i32, i32, i32) {
    %c0_i32 = arith.constant 0 : i32
    %c0_i32_0 = arith.constant 0 : i32
    %c0_i32_1 = arith.constant 0 : i32
    return %arg0, %c0_i32, %c0_i32_0 : i32, i32, i32
  }
  func.func @transform_2(%arg0: i32) -> (i32, i32, i32) {
    %c0_i32 = arith.constant 0 : i32
    %c0_i32_0 = arith.constant 0 : i32
    %c0_i32_1 = arith.constant 0 : i32
    return %arg0, %c0_i32, %c0_i32_0 : i32, i32, i32
  }
  func.func @transform_3(%arg0: i32) -> (i32, i32) {
    %c0_i32 = arith.constant 0 : i32
    %c0_i32_0 = arith.constant 0 : i32
    %c0_i32_1 = arith.constant 0 : i32
    return %c0_i32, %c0_i32_0 : i32, i32
  }
  func.func @transform_4(%arg0: i32) -> (i32, i32) {
    %c0_i32 = arith.constant 0 : i32
    %c0_i32_0 = arith.constant 0 : i32
    %c0_i32_1 = arith.constant 0 : i32
    return %c0_i32, %c0_i32_0 : i32, i32
  }
  func.func @transform_5(%arg0: i32) -> (i32, i32) {
    %c0_i32 = arith.constant 0 : i32
    %c0_i32_0 = arith.constant 0 : i32
    %c0_i32_1 = arith.constant 0 : i32
    return %c0_i32, %c0_i32_0 : i32, i32
  }
  func.func @transform_6(%arg0: i32) -> (i32, i32) {
    %c0_i32 = arith.constant 0 : i32
    %c0_i32_0 = arith.constant 0 : i32
    %c0_i32_1 = arith.constant 0 : i32
    return %c0_i32, %c0_i32_0 : i32, i32
  }
  func.func @transform_7(%arg0: i32) -> (i32, i32, i32) {
    %c0_i32 = arith.constant 0 : i32
    %c0_i32_0 = arith.constant 0 : i32
    %c0_i32_1 = arith.constant 0 : i32
    return %arg0, %c0_i32, %c0_i32_0 : i32, i32, i32
  }
  func.func @transform_8(%arg0: i32) -> (i32, i32, i32) {
    %c0_i32 = arith.constant 0 : i32
    %c0_i32_0 = arith.constant 0 : i32
    %c0_i32_1 = arith.constant 0 : i32
    return %arg0, %c0_i32, %c0_i32_0 : i32, i32, i32
  }
}

</mosaic_0001>

<bundles_post_ra>
// kernel: tpu_custom_call.1
= control target key start
LH: loop header
LB: loop body
LE: loop exit
PB: predicated region body
PF: predicated region fallthrough
CT: control target
= control target key end

     0   :  { %14 = vsyncpa [#allocation3], 0  ;;  %s9841_s0 = inlined_call_operand.hbm [shape: f32[2,1,36], index: 0, kind: input, shape index: {}]   ;;  %s9842_s1 = inlined_call_operand.vmem [shape: f32[2,32,32], index: 1, kind: input, shape index: {}]   ;;  %s9843_s2 = inlined_call_operand.vmem [shape: f32[2,4,4], index: 2, kind: input, shape index: {}]   ;;  %s9844_s3 = inlined_call_operand.hbm [shape: f32[32,32], index: 3, kind: input, shape index: {}]   ;;  %s9845_s4 = inlined_call_operand.hbm [shape: f32[32,36], index: 4, kind: input, shape index: {}]   ;;  %s9846_s5 = inlined_call_operand.vmem [shape: f32[36,32], index: 5, kind: input, shape index: {}]   ;;  %s9847_s6 = inlined_call_operand.hbm [shape: f32[36,36], index: 6, kind: input, shape index: {}]   ;;  %s9848_s7 = inlined_call_operand.hbm [shape: f32[2,1,32], index: 7, kind: output, shape index: {0}]   ;;  %s9849_s8 = inlined_call_operand.hbm [shape: f32[2,32,32], index: 8, kind: output, shape index: {1}]  }
   0x1   :  { %15 = vsyncpa [#allocation6], 0 }
   0x2   :  { %16 = vsyncpa [#allocation9], 0 }
   0x3   :  { %17 = vsyncpa [#allocation4], 0 }
   0x4   :  { %18 = vsyncpa [#allocation12], 0  ;;  %s5958_s27 = smov [#allocation5]  }
   0x5   :  { %s40_s28 = sshll.u32 %s5958_s27, 4  ;;  %s41_s28 = int_to_ptr.vmem [resolvable:$true] %s40_s28 }
   0x6   :  { %s5836_s29 = scalar_lea.vmem %s41_s28, 512  ;;  %p5841_p1 = scmp.lt.s32.totalorder %s41_s28, %s41_s28 }
   0x7   :  { %p5837_p0 = scmp.ne.s32.totalorder %s41_s28, %s5836_s29  ;;  %p5842_p2 = scmp.lt.s32.totalorder %s5836_s29, %s5836_s29 }
   0x9   :  { %p5843_p3 = por %p5842_p2, %p5841_p1 }
   0xb   :  { %p5844_p4 = pnand %p5843_p3, %p5837_p0 }
   0xd   :  { %5847 = shalt.err (!%p5844_p4)
}
   0xe   :  { %s5959_s30 = smov 128   ;;  %s5960_s9 = smov 8  }
   0xf   :  { %46 = dma.hbm_to_vmem [thread:$0]  %s9844_s3, 512, %s41_s28, [#allocation6], %s5959_s30, %s5959_s30, %s5960_s9  }
  0x10   :  { %s5961_s12 = smov [#allocation2]  }
  0x11   :  { %s24_s13 = sshll.u32 %s5961_s12, 4  ;;  %s25_s13 = int_to_ptr.vmem [resolvable:$true] %s24_s13 }
  0x12   :  { %s5856_s14 = scalar_lea.vmem %s25_s13, 32  ;;  %p5861_p6 = scmp.lt.s32.totalorder %s25_s13, %s25_s13 }
  0x13   :  { %p5857_p5 = scmp.ne.s32.totalorder %s25_s13, %s5856_s14  ;;  %p5862_p7 = scmp.lt.s32.totalorder %s5856_s14, %s5856_s14 }
  0x15   :  { %p5863_p8 = por %p5862_p7, %p5861_p6 }
  0x17   :  { %p5864_p9 = pnand %p5863_p8, %p5857_p5 }
  0x19   :  { %5867 = shalt.err (!%p5864_p9)
}
  0x1a   :  { %s5962_s15 = smov 16   ;;  %s5963_s16 = smov 1  }
  0x1b   :  { %30 = dma.hbm_to_vmem [thread:$0]  %s9841_s0, 32, %s25_s13, [#allocation3], %s5962_s15, %s5962_s15, %s5963_s16  }
  0x1c   :  { %s5964_s3 = smov [#allocation7]   ;;  %s5965_s20 = smov [#allocation8]  }
  0x1d   :  { %s52_s19 = sshll.u32 %s5964_s3, 4  ;;  %s66_s21 = sshll.u32 %s5965_s20, 4  ;;  %s53_s19 = int_to_ptr.vmem [resolvable:$true] %s52_s19  ;;  %s67_s21 = int_to_ptr.vmem [resolvable:$true] %s66_s21 }
  0x1e   :  { %s5876_s22 = scalar_lea.vmem %s53_s19, 512  ;;  %p5881_p11 = scmp.lt.s32.totalorder %s53_s19, %s53_s19 }
  0x1f   :  { %p5877_p10 = scmp.ne.s32.totalorder %s53_s19, %s5876_s22  ;;  %p5882_p12 = scmp.lt.s32.totalorder %s5876_s22, %s5876_s22 }
  0x21   :  { %p5883_p13 = por %p5882_p12, %p5881_p11 }
  0x23   :  { %p5884_p0 = pnand %p5883_p13, %p5877_p10 }
  0x25   :  { %5887 = shalt.err (!%p5884_p0)
}
  0x26   :  { %58 = dma.hbm_to_vmem [thread:$0]  %s9845_s4, 512, %s53_s19, [#allocation6], %s5959_s30, %s5959_s30, %s5960_s9  }
  0x27   :  { %s5896_s0 = scalar_lea.vmem %s67_s21, 640  ;;  %p5901_p2 = scmp.lt.s32.totalorder %s67_s21, %s67_s21 }
  0x28   :  { %p5897_p1 = scmp.ne.s32.totalorder %s67_s21, %s5896_s0  ;;  %p5902_p3 = scmp.lt.s32.totalorder %s5896_s0, %s5896_s0 }
  0x2a   :  { %p5903_p4 = por %p5902_p3, %p5901_p2 }
  0x2c   :  { %p5904_p5 = pnand %p5903_p4, %p5897_p1 }
  0x2e   :  { %5907 = shalt.err (!%p5904_p5)
}
  0x2f   :  { %72 = dma.hbm_to_vmem [thread:$0]  %s9847_s6, 640, %s67_s21, [#allocation9], %s5959_s30, %s5959_s30, %s5960_s9  }
  0x30   :  { %5948 = dma.done.wait [#allocation3], 32  }
  0x31   :  { %5949 = vsyncadd [#allocation3], 4294967264 }
  0x32   :  { %5950 = dma.done.wait [#allocation6], 1024  }
  0x33   :  { %5951 = vsyncadd [#allocation6], 4294966272  ;;  %v144_v0 = vlaneseq }
  0x34   :  { %5952 = dma.done.wait [#allocation9], 640  }
  0x35   :  { %5953 = vsyncadd [#allocation9], 4294966656  ;;  %v6042_v1 = vshrl.u32 %v144_v0, 7  ;;  %v6044_v2 = vand.u32 127, %v144_v0  ;;  %v5966_v3 = vmov 0.0   ;;  %s5967_s4 = smov 36  }
  0x36   :  { %v87_v5 = vld [vmem:[%s9842_s1] sm:$0xff]  ;;  %vm115_vm1 = vcmask 261120   ;;  %vm187_vm2 = vcmask 293888   ;;  %vm213_vm4 = vcmask 588800   ;;  %s5968_s25 = smov 32  }
  0x37   :  { %vm152_vm0 = vcmp.eq.s32.totalorder %v6042_v1, %v6044_v2  ;;  %v91_v6 = vld [vmem:[%s9842_s1 + $0x20] sm:$0xff]  ;;  %v116_v8 = vsel %vm115_vm1, %v87_v5, 0.0  ;;  %vm198_vm3 = vcmp.eq.s32.totalorder %v6042_v1, 0  ;;  %vm245_vm5 = vcmp.eq.s32.totalorder %v6044_v2, 0 }
  0x38   :  { %v5502_v4 = vsel %vm152_vm0, 1.0, %v5966_v3  ;;  %v110_v7 = vld [vmem:[#allocation8] sm:$0xff]  ;;  %v120_v9 = vsel %vm115_vm1, %v91_v6, 0.0  ;;  %vm330_vm6 = vcmp.eq.s32.totalorder %v6042_v1, 1  ;;  %vm375_vm7 = vcmp.eq.s32.totalorder %v6044_v2, 1 }
  0x39   :  { %172 = vrot.lane.b32.xlu0 %v5502_v4, %s5967_s4  ;;  %v134_v10 = vadd.f32 %v116_v8, %v110_v7  ;;  %v139_v11 = vadd.f32 %v120_v9, %v110_v7  ;;  %vm460_vm9 = vcmp.eq.s32.totalorder %v6042_v1, 2  ;;  %vm505_vm10 = vcmp.eq.s32.totalorder %v6044_v2, 2 }
  0x3a   :  { %vm590_vm11 = vcmp.eq.s32.totalorder %v6042_v1, 3  ;;  %vm635_vm12 = vcmp.eq.s32.totalorder %v6044_v2, 3  ;;  %vm720_vm14 = vcmp.eq.s32.totalorder %v6042_v1, 4  ;;  %vm765_vm15 = vcmp.eq.s32.totalorder %v6044_v2, 4 }
  0x3b   :  { %vm850_vm0 = vcmp.eq.s32.totalorder %v6042_v1, 5 }
  0xab   :  { %v173_v12 = vpop.permute.xlu0 %172 }
  0xac   :  { %v188_v13 = vsel %vm187_vm2, %v134_v10, %v173_v12  ;;  %v193_v14 = vsel %vm187_vm2, %v139_v11, %v173_v12 }
  0xad   :  { %v203_v15 = vsel %vm198_vm3, %v188_v13, 0.0  ;;  %v208_v16 = vsel %vm198_vm3, %v193_v14, 0.0  ;;  %v260_v35 = vsel %vm245_vm5, %v188_v13, 0.0  ;;  %v265_v37 = vsel %vm245_vm5, %v193_v14, 0.0 }
  0xae   :  { %v214_v17 = vsel %vm213_vm4, %v203_v15, 0.0  ;;  %v230_v18 = vsel %vm213_vm4, %v208_v16, 0.0  ;;  %v270_v36 = vsel %vm213_vm4, %v260_v35, 0.0  ;;  %v285_v38 = vsel %vm213_vm4, %v265_v37, 0.0 }
  0xaf   :  { %v224_v19 = vrot.slane %v214_v17, 4  ;;  %v239_v20 = vrot.slane %v230_v18, 4  ;;  %v6113_v16 = vadd.s32 8, %v6042_v1 }
  0xb1   :  { %v240_v21 = vadd.f32 %v239_v20, %v230_v18  ;;  %v225_v22 = vadd.f32 %v224_v19, %v214_v17  ;;  %vm153_vm8 = vcmp.eq.s32.totalorder %v6113_v16, %v6044_v2 }
  0xb2   :  { %v5503_v17 = vsel %vm153_vm8, 1.0, %v5966_v3  ;;  %vm1025_vm8 = vcmp.eq.s32.totalorder %v6044_v2, 6 }
  0xb3   :  { %v241_v23 = vrot.slane %v240_v21, 2  ;;  %v226_v24 = vrot.slane %v225_v22, 2 }
  0xb5   :  { %v242_v25 = vadd.f32 %v241_v23, %v240_v21  ;;  %v227_v26 = vadd.f32 %v226_v24, %v225_v22 }
  0xb7   :  { %v243_v27 = vrot.slane %v242_v25, 1  ;;  %v228_v28 = vrot.slane %v227_v26, 1 }
  0xb9   :  { %v244_v29 = vadd.f32 %v243_v27, %v242_v25  ;;  %v229_v30 = vadd.f32 %v228_v28, %v227_v26 }
  0xbb   :  { %v247_v31 = vsel %vm245_vm5, %v244_v29, 0.0  ;;  %v246_v32 = vsel %vm245_vm5, %v229_v30, 0.0 }
  0xbc   :  { %v251_v33 = vsel %vm213_vm4, %v247_v31, 0.0  ;;  %v248_v34 = vsel %vm213_vm4, %v246_v32, 0.0 }
  0xbd   :  { %252 = vadd.xlane.f32.xlu1 %v251_v33  ;;  %249 = vadd.xlane.f32.xlu0 %v248_v34 }
  0xc1   :  { %271 = vadd.xlane.f32.xlu1 %v270_v36 }
  0xc5   :  { %286 = vadd.xlane.f32.xlu1 %v285_v38 }
 0x146   :  { %v253_v39 = vpop.xlane.xlu1 %252  ;;  %v250_v40 = vpop.xlane.xlu0 %249 }
 0x147   :  { %5684 = vrcp.f32 %v253_v39 }
 0x148   :  { %5686 = vrcp.f32 %v250_v40 }
 0x14a   :  { %v272_v41 = vpop.xlane.xlu1 %271 }
 0x14e   :  { %v287_v46 = vpop.xlane.xlu1 %286 }
 0x154   :  { %v5685_v42 = vpop.eup %5684 }
 0x155   :  { %v5687_v43 = vpop.eup %5686  ;;  %v6080_v44 = vmul.f32 %v5685_v42, %v244_v29 }
 0x156   :  { %v6082_v45 = vmul.f32 %v5687_v43, %v229_v30 }
 0x157   :  { %v305_v47 = vmul.f32 %v287_v46, %v6080_v44  ;;  %v88_v46 = vld [vmem:[%s9842_s1 + $0x8] sm:$0xff] }
 0x158   :  { %v300_v48 = vmul.f32 %v272_v41, %v6082_v45 }
 0x159   :  { %v315_v49 = vsub.f32 %v193_v14, %v305_v47 }
 0x15a   :  { %v310_v50 = vsub.f32 %v188_v13, %v300_v48 }
 0x15b   :  { %v325_v51 = vsel %vm198_vm3, %v6080_v44, %v315_v49 }
 0x15c   :  { %v320_v52 = vsel %vm198_vm3, %v6082_v45, %v310_v50  ;;  %v340_v53 = vsel %vm330_vm6, %v325_v51, 0.0  ;;  %v395_v14 = vsel %vm375_vm7, %v325_v51, 0.0  ;;  %vm895_vm3 = vcmp.eq.s32.totalorder %v6044_v2, 5 }
 0x15d   :  { %v335_v54 = vsel %vm330_vm6, %v320_v52, 0.0  ;;  %v360_v55 = vsel %vm213_vm4, %v340_v53, 0.0  ;;  %v390_v12 = vsel %vm375_vm7, %v320_v52, 0.0  ;;  %v415_v15 = vsel %vm213_vm4, %v395_v14, 0.0 }
 0x15e   :  { %v345_v56 = vsel %vm213_vm4, %v335_v54, 0.0  ;;  %v369_v57 = vrot.slane %v360_v55, 4  ;;  %v400_v13 = vsel %vm213_vm4, %v390_v12, 0.0 }
 0x15f   :  { %v354_v58 = vrot.slane %v345_v56, 4 }
 0x160   :  { %v370_v59 = vadd.f32 %v369_v57, %v360_v55  ;;  %v92_v57 = vld [vmem:[%s9842_s1 + $0x28] sm:$0xff] }
 0x161   :  { %v355_v60 = vadd.f32 %v354_v58, %v345_v56 }
 0x162   :  { %v371_v61 = vrot.slane %v370_v59, 2 }
 0x163   :  { %v356_v62 = vrot.slane %v355_v60, 2 }
 0x164   :  { %v372_v63 = vadd.f32 %v371_v61, %v370_v59  ;;  %v121_v61 = vsel %vm115_vm1, %v92_v57, 0.0 }
 0x165   :  { %v357_v0 = vadd.f32 %v356_v62, %v355_v60 }
 0x166   :  { %v373_v4 = vrot.slane %v372_v63, 1 }
 0x167   :  { %v358_v5 = vrot.slane %v357_v0, 1 }
 0x168   :  { %v374_v7 = vadd.f32 %v373_v4, %v372_v63 }
 0x169   :  { %v359_v6 = vadd.f32 %v358_v5, %v357_v0 }
 0x16a   :  { %v377_v10 = vsel %vm375_vm7, %v374_v7, 0.0 }
 0x16b   :  { %v376_v8 = vsel %vm375_vm7, %v359_v6, 0.0  ;;  %v381_v11 = vsel %vm213_vm4, %v377_v10, 0.0 }
 0x16c   :  { %v378_v9 = vsel %vm213_vm4, %v376_v8, 0.0 }
 0x16d   :  { %379 = vadd.xlane.f32.xlu1 %v378_v9 }
 0x171   :  { %382 = vadd.xlane.f32.xlu1 %v381_v11 }
 0x175   :  { %401 = vadd.xlane.f32.xlu1 %v400_v13 }
 0x179   :  { %416 = vadd.xlane.f32.xlu1 %v415_v15 }
 0x18a   :  { %174 = vrot.lane.b32.xlu1 %v5503_v17, %s5967_s4 }
 0x1f6   :  { %v380_v18 = vpop.xlane.xlu1 %379 }
 0x1f7   :  { %5688 = vrcp.f32 %v380_v18 }
 0x1fa   :  { %v383_v19 = vpop.xlane.xlu1 %382 }
 0x1fb   :  { %5690 = vrcp.f32 %v383_v19 }
 0x1fe   :  { %v402_v21 = vpop.xlane.xlu1 %401 }
 0x202   :  { %v417_v27 = vpop.xlane.xlu1 %416 }
 0x204   :  { %v5689_v20 = vpop.eup %5688 }
 0x205   :  { %v6119_v22 = vmul.f32 %v5689_v20, %v359_v6 }
 0x206   :  { %v175_v59 = vpop.permute.xlu1 %174 }
 0x207   :  { %v430_v23 = vmul.f32 %v402_v21, %v6119_v22 }
 0x208   :  { %v5691_v24 = vpop.eup %5690 }
 0x209   :  { %v6122_v25 = vmul.f32 %v5691_v24, %v374_v7  ;;  %v440_v26 = vsub.f32 %v320_v52, %v430_v23  ;;  %v117_v52 = vsel %vm115_vm1, %v88_v46, 0.0 }
 0x20b   :  { %v6128_v28 = vsel %vm330_vm6, %v6119_v22, %v440_v26  ;;  %v435_v29 = vmul.f32 %v417_v27, %v6122_v25 }
 0x20c   :  { %v465_v30 = vsel %vm460_vm9, %v6128_v28, 0.0  ;;  %v520_v0 = vsel %vm505_vm10, %v6128_v28, 0.0 }
 0x20d   :  { %v445_v31 = vsub.f32 %v325_v51, %v435_v29  ;;  %v475_v32 = vsel %vm213_vm4, %v465_v30, 0.0  ;;  %v111_v51 = vld [vmem:[#allocation8 + $0x8] sm:$0xff]  ;;  %v530_v6 = vsel %vm213_vm4, %v520_v0, 0.0 }
 0x20e   :  { %v484_v33 = vrot.slane %v475_v32, 4  ;;  %v135_v56 = vadd.f32 %v117_v52, %v111_v51  ;;  %v140_v4 = vadd.f32 %v121_v61, %v111_v51 }
 0x20f   :  { %v6138_v34 = vsel %vm330_vm6, %v6122_v25, %v445_v31  ;;  %vm980_vm6 = vcmp.eq.s32.totalorder %v6042_v1, 6 }
 0x210   :  { %v525_v35 = vsel %vm505_vm10, %v6138_v34, 0.0  ;;  %v470_v36 = vsel %vm460_vm9, %v6138_v34, 0.0  ;;  %v485_v37 = vadd.f32 %v484_v33, %v475_v32  ;;  %v189_v63 = vsel %vm187_vm2, %v135_v56, %v175_v59 }
 0x211   :  { %v545_v38 = vsel %vm213_vm4, %v525_v35, 0.0  ;;  %v490_v39 = vsel %vm213_vm4, %v470_v36, 0.0  ;;  %v261_v5 = vsel %vm245_vm5, %v189_v63, 0.0  ;;  %v194_v8 = vsel %vm187_vm2, %v140_v4, %v175_v59 }
 0x212   :  { %546 = vadd.xlane.f32.xlu1 %v545_v38  ;;  %v499_v40 = vrot.slane %v490_v39, 4  ;;  %v486_v41 = vrot.slane %v485_v37, 2  ;;  %v273_v7 = vsel %vm213_vm4, %v261_v5, 0.0  ;;  %v266_v9 = vsel %vm245_vm5, %v194_v8, 0.0 }
 0x213   :  { %v288_v10 = vsel %vm213_vm4, %v266_v9, 0.0 }
 0x214   :  { %v487_v42 = vadd.f32 %v486_v41, %v485_v37  ;;  %v500_v43 = vadd.f32 %v499_v40, %v490_v39 }
 0x216   :  { %v488_v47 = vrot.slane %v487_v42, 1  ;;  %v501_v48 = vrot.slane %v500_v43, 2 }
 0x218   :  { %v489_v49 = vadd.f32 %v488_v47, %v487_v42  ;;  %v502_v50 = vadd.f32 %v501_v48, %v500_v43 }
 0x21a   :  { %v506_v53 = vsel %vm505_vm10, %v489_v49, 0.0  ;;  %v503_v54 = vrot.slane %v502_v50, 1 }
 0x21b   :  { %v508_v55 = vsel %vm213_vm4, %v506_v53, 0.0 }
 0x21c   :  { %509 = vadd.xlane.f32.xlu0 %v508_v55  ;;  %v504_v58 = vadd.f32 %v503_v54, %v502_v50 }
 0x21e   :  { %v507_v60 = vsel %vm505_vm10, %v504_v58, 0.0 }
 0x21f   :  { %v511_v62 = vsel %vm213_vm4, %v507_v60, 0.0 }
 0x220   :  { %512 = vadd.xlane.f32.xlu0 %v511_v62 }
 0x224   :  { %531 = vadd.xlane.f32.xlu0 %v530_v6 }
 0x228   :  { %274 = vadd.xlane.f32.xlu0 %v273_v7 }
 0x22c   :  { %289 = vadd.xlane.f32.xlu0 %v288_v10 }
 0x29b   :  { %v547_v32 = vpop.xlane.xlu1 %546 }
 0x2a5   :  { %v510_v11 = vpop.xlane.xlu0 %509 }
 0x2a6   :  { %5692 = vrcp.f32 %v510_v11 }
 0x2a9   :  { %v513_v12 = vpop.xlane.xlu0 %512 }
 0x2aa   :  { %5694 = vrcp.f32 %v513_v12 }
 0x2ad   :  { %v532_v13 = vpop.xlane.xlu0 %531 }
 0x2b1   :  { %v275_v14 = vpop.xlane.xlu0 %274 }
 0x2b2   :  { %v301_v15 = vmul.f32 %v275_v14, %v6082_v45  ;;  %v6240_v14 = vadd.s32 16, %v6042_v1 }
 0x2b3   :  { %v5693_v17 = vpop.eup %5692 }
 0x2b4   :  { %v6176_v18 = vmul.f32 %v5693_v17, %v489_v49  ;;  %v311_v19 = vsub.f32 %v189_v63, %v301_v15  ;;  %vm154_vm13 = vcmp.eq.s32.totalorder %v6240_v14, %v6044_v2 }
 0x2b5   :  { %v290_v20 = vpop.xlane.xlu0 %289  ;;  %v5504_v17 = vsel %vm154_vm13, 1.0, %v5966_v3  ;;  %vm1155_vm13 = vcmp.eq.s32.totalorder %v6044_v2, 7 }
 0x2b6   :  { %v560_v21 = vmul.f32 %v532_v13, %v6176_v18  ;;  %v306_v23 = vmul.f32 %v290_v20, %v6080_v44  ;;  %v391_v24 = vsel %vm375_vm7, %v311_v19, 0.0 }
 0x2b7   :  { %v5695_v26 = vpop.eup %5694  ;;  %v403_v27 = vsel %vm213_vm4, %v391_v24, 0.0 }
 0x2b8   :  { %v6183_v29 = vmul.f32 %v5695_v26, %v504_v58  ;;  %v570_v30 = vsub.f32 %v6128_v28, %v560_v21  ;;  %404 = vadd.xlane.f32.xlu0 %v403_v27  ;;  %v316_v31 = vsub.f32 %v194_v8, %v306_v23 }
 0x2ba   :  { %v6190_v33 = vsel %vm460_vm9, %v6176_v18, %v570_v30  ;;  %v396_v35 = vsel %vm375_vm7, %v316_v31, 0.0  ;;  %v565_v36 = vmul.f32 %v547_v32, %v6183_v29 }
 0x2bb   :  { %v418_v37 = vsel %vm213_vm4, %v396_v35, 0.0  ;;  %v595_v28 = vsel %vm590_vm11, %v6190_v33, 0.0  ;;  %v650_v60 = vsel %vm635_vm12, %v6190_v33, 0.0 }
 0x2bc   :  { %419 = vadd.xlane.f32.xlu0 %v418_v37  ;;  %v605_v38 = vsel %vm213_vm4, %v595_v28, 0.0  ;;  %v575_v39 = vsub.f32 %v6138_v34, %v565_v36  ;;  %v660_v61 = vsel %vm213_vm4, %v650_v60, 0.0  ;;  %v89_v60 = vld [vmem:[%s9842_s1 + $0x10] sm:$0xff] }
 0x2bd   :  { %v614_v40 = vrot.slane %v605_v38, 4 }
 0x2be   :  { %v6204_v41 = vsel %vm460_vm9, %v6183_v29, %v575_v39 }
 0x2bf   :  { %v615_v42 = vadd.f32 %v614_v40, %v605_v38  ;;  %v600_v43 = vsel %vm590_vm11, %v6204_v41, 0.0  ;;  %v655_v62 = vsel %vm635_vm12, %v6204_v41, 0.0 }
 0x2c0   :  { %v620_v46 = vsel %vm213_vm4, %v600_v43, 0.0  ;;  %v675_v63 = vsel %vm213_vm4, %v655_v62, 0.0  ;;  %v112_v62 = vld [vmem:[#allocation8 + $0x10] sm:$0xff] }
 0x2c1   :  { %v616_v47 = vrot.slane %v615_v42, 2  ;;  %v629_v48 = vrot.slane %v620_v46, 4 }
 0x2c3   :  { %v617_v49 = vadd.f32 %v616_v47, %v615_v42  ;;  %v630_v50 = vadd.f32 %v629_v48, %v620_v46 }
 0x2c5   :  { %v618_v51 = vrot.slane %v617_v49, 1  ;;  %v631_v52 = vrot.slane %v630_v50, 2 }
 0x2c7   :  { %v619_v34 = vadd.f32 %v618_v51, %v617_v49  ;;  %v632_v53 = vadd.f32 %v631_v52, %v630_v50 }
 0x2c9   :  { %v636_v54 = vsel %vm635_vm12, %v619_v34, 0.0  ;;  %v633_v55 = vrot.slane %v632_v53, 1 }
 0x2ca   :  { %v638_v56 = vsel %vm213_vm4, %v636_v54, 0.0 }
 0x2cb   :  { %639 = vadd.xlane.f32.xlu0 %v638_v56  ;;  %v634_v57 = vadd.f32 %v633_v55, %v632_v53 }
 0x2cd   :  { %v637_v58 = vsel %vm635_vm12, %v634_v57, 0.0 }
 0x2ce   :  { %v641_v59 = vsel %vm213_vm4, %v637_v58, 0.0 }
 0x2cf   :  { %642 = vadd.xlane.f32.xlu0 %v641_v59 }
 0x2d3   :  { %661 = vadd.xlane.f32.xlu0 %v660_v61  ;;  %v93_v61 = vld [vmem:[%s9842_s1 + $0x30] sm:$0xff] }
 0x2d7   :  { %676 = vadd.xlane.f32.xlu0 %v675_v63  ;;  %v118_v63 = vsel %vm115_vm1, %v89_v60, 0.0 }
 0x341   :  { %v405_v0 = vpop.xlane.xlu0 %404 }
 0x342   :  { %v431_v4 = vmul.f32 %v405_v0, %v6119_v22  ;;  %v122_v0 = vsel %vm115_vm1, %v93_v61, 0.0 }
 0x344   :  { %v6226_v5 = vsub.f32 %v311_v19, %v431_v4 }
 0x345   :  { %v420_v6 = vpop.xlane.xlu0 %419 }
 0x346   :  { %v436_v7 = vmul.f32 %v420_v6, %v6122_v25  ;;  %v521_v8 = vsel %vm505_vm10, %v6226_v5, 0.0 }
 0x347   :  { %v533_v9 = vsel %vm213_vm4, %v521_v8, 0.0  ;;  %v141_v8 = vadd.f32 %v122_v0, %v112_v62 }
 0x348   :  { %534 = vadd.xlane.f32.xlu0 %v533_v9  ;;  %v6233_v10 = vsub.f32 %v316_v31, %v436_v7  ;;  %v136_v7 = vadd.f32 %v118_v63, %v112_v62 }
 0x34a   :  { %v526_v11 = vsel %vm505_vm10, %v6233_v10, 0.0 }
 0x34b   :  { %v548_v12 = vsel %vm213_vm4, %v526_v11, 0.0 }
 0x34c   :  { %549 = vadd.xlane.f32.xlu1 %v548_v12 }
 0x354   :  { %v640_v13 = vpop.xlane.xlu0 %639 }
 0x355   :  { %5696 = vrcp.f32 %v640_v13 }
 0x358   :  { %v643_v15 = vpop.xlane.xlu0 %642 }
 0x359   :  { %5698 = vrcp.f32 %v643_v15 }
 0x35c   :  { %v662_v20 = vpop.xlane.xlu0 %661 }
 0x35e   :  { %176 = vrot.lane.b32.xlu0 %v5504_v17, %s5967_s4 }
 0x360   :  { %v677_v30 = vpop.xlane.xlu0 %676 }
 0x362   :  { %v5697_v19 = vpop.eup %5696 }
 0x363   :  { %v6246_v21 = vmul.f32 %v5697_v19, %v619_v34 }
 0x365   :  { %v690_v23 = vmul.f32 %v662_v20, %v6246_v21 }
 0x366   :  { %v5699_v24 = vpop.eup %5698 }
 0x367   :  { %v6249_v26 = vmul.f32 %v5699_v24, %v634_v57  ;;  %v700_v27 = vsub.f32 %v6190_v33, %v690_v23 }
 0x369   :  { %v6256_v31 = vsel %vm590_vm11, %v6246_v21, %v700_v27  ;;  %v695_v32 = vmul.f32 %v677_v30, %v6249_v26 }
 0x36a   :  { %v725_v35 = vsel %vm720_vm14, %v6256_v31, 0.0  ;;  %v780_v56 = vsel %vm765_vm15, %v6256_v31, 0.0 }
 0x36b   :  { %v705_v36 = vsub.f32 %v6204_v41, %v695_v32  ;;  %v735_v37 = vsel %vm213_vm4, %v725_v35, 0.0  ;;  %v790_v57 = vsel %vm213_vm4, %v780_v56, 0.0 }
 0x36c   :  { %v744_v28 = vrot.slane %v735_v37, 4 }
 0x36d   :  { %v6267_v33 = vsel %vm590_vm11, %v6249_v26, %v705_v36  ;;  %vm1110_vm11 = vcmp.eq.s32.totalorder %v6042_v1, 7 }
 0x36e   :  { %v745_v38 = vadd.f32 %v744_v28, %v735_v37  ;;  %v730_v39 = vsel %vm720_vm14, %v6267_v33, 0.0  ;;  %v785_v58 = vsel %vm765_vm15, %v6267_v33, 0.0 }
 0x36f   :  { %v750_v40 = vsel %vm213_vm4, %v730_v39, 0.0  ;;  %v805_v59 = vsel %vm213_vm4, %v785_v58, 0.0 }
 0x370   :  { %v746_v42 = vrot.slane %v745_v38, 2  ;;  %v759_v43 = vrot.slane %v750_v40, 4 }
 0x372   :  { %v747_v46 = vadd.f32 %v746_v42, %v745_v38  ;;  %v760_v47 = vadd.f32 %v759_v43, %v750_v40 }
 0x374   :  { %v748_v41 = vrot.slane %v747_v46, 1  ;;  %v761_v48 = vrot.slane %v760_v47, 2 }
 0x376   :  { %v749_v49 = vadd.f32 %v748_v41, %v747_v46  ;;  %v762_v50 = vadd.f32 %v761_v48, %v760_v47 }
 0x378   :  { %v766_v51 = vsel %vm765_vm15, %v749_v49, 0.0  ;;  %v763_v52 = vrot.slane %v762_v50, 1 }
 0x379   :  { %v768_v34 = vsel %vm213_vm4, %v766_v51, 0.0 }
 0x37a   :  { %769 = vadd.xlane.f32.xlu1 %v768_v34  ;;  %v764_v53 = vadd.f32 %v763_v52, %v762_v50 }
 0x37c   :  { %v767_v54 = vsel %vm765_vm15, %v764_v53, 0.0 }
 0x37d   :  { %v771_v55 = vsel %vm213_vm4, %v767_v54, 0.0 }
 0x37e   :  { %772 = vadd.xlane.f32.xlu1 %v771_v55 }
 0x382   :  { %791 = vadd.xlane.f32.xlu1 %v790_v57 }
 0x386   :  { %806 = vadd.xlane.f32.xlu1 %v805_v59 }
 0x3d1   :  { %v535_v4 = vpop.xlane.xlu0 %534 }
 0x3d2   :  { %v561_v6 = vmul.f32 %v535_v4, %v6176_v18 }
 0x3d4   :  { %v571_v9 = vsub.f32 %v6226_v5, %v561_v6 }
 0x3d5   :  { %v550_v11 = vpop.xlane.xlu1 %549  ;;  %v177_v12 = vpop.permute.xlu0 %176 }
 0x3d6   :  { %v566_v13 = vmul.f32 %v550_v11, %v6183_v29  ;;  %v651_v15 = vsel %vm635_vm12, %v571_v9, 0.0  ;;  %v190_v17 = vsel %vm187_vm2, %v136_v7, %v177_v12  ;;  %v6306_v23 = vsel %vm187_vm2, %v141_v8, %v177_v12 }
 0x3d7   :  { %v663_v19 = vsel %vm213_vm4, %v651_v15, 0.0  ;;  %v262_v20 = vsel %vm245_vm5, %v190_v17, 0.0  ;;  %v267_v30 = vsel %vm245_vm5, %v6306_v23, 0.0 }
 0x3d8   :  { %664 = vadd.xlane.f32.xlu1 %v663_v19  ;;  %v576_v5 = vsub.f32 %v6233_v10, %v566_v13  ;;  %v276_v24 = vsel %vm213_vm4, %v262_v20, 0.0  ;;  %v291_v35 = vsel %vm213_vm4, %v267_v30, 0.0 }
 0x3da   :  { %v656_v27 = vsel %vm635_vm12, %v576_v5, 0.0 }
 0x3db   :  { %v678_v32 = vsel %vm213_vm4, %v656_v27, 0.0 }
 0x3dc   :  { %277 = vadd.xlane.f32.xlu1 %v276_v24  ;;  %679 = vadd.xlane.f32.xlu0 %v678_v32 }
 0x3e0   :  { %292 = vadd.xlane.f32.xlu1 %v291_v35 }
 0x403   :  { %v770_v36 = vpop.xlane.xlu1 %769 }
 0x404   :  { %5700 = vrcp.f32 %v770_v36 }
 0x407   :  { %v773_v37 = vpop.xlane.xlu1 %772 }
 0x408   :  { %5702 = vrcp.f32 %v773_v37 }
 0x40b   :  { %v792_v39 = vpop.xlane.xlu1 %791 }
 0x40f   :  { %v807_v43 = vpop.xlane.xlu1 %806 }
 0x411   :  { %v5701_v10 = vpop.eup %5700 }
 0x412   :  { %v6317_v28 = vmul.f32 %v5701_v10, %v749_v49 }
 0x414   :  { %v820_v42 = vmul.f32 %v792_v39, %v6317_v28 }
 0x415   :  { %v5703_v38 = vpop.eup %5702 }
 0x416   :  { %v6319_v40 = vmul.f32 %v5703_v38, %v764_v53  ;;  %v830_v46 = vsub.f32 %v6256_v31, %v820_v42 }
 0x418   :  { %v825_v47 = vmul.f32 %v807_v43, %v6319_v40  ;;  %v6327_v41 = vsel %vm720_vm14, %v6317_v28, %v830_v46 }
 0x419   :  { %v855_v49 = vsel %vm850_vm0, %v6327_v41, 0.0  ;;  %v910_v10 = vsel %vm895_vm3, %v6327_v41, 0.0 }
 0x41a   :  { %v835_v48 = vsub.f32 %v6267_v33, %v825_v47  ;;  %v865_v31 = vsel %vm213_vm4, %v855_v49, 0.0  ;;  %v920_v38 = vsel %vm213_vm4, %v910_v10, 0.0 }
 0x41b   :  { %v874_v52 = vrot.slane %v865_v31, 4 }
 0x41c   :  { %v6337_v50 = vsel %vm720_vm14, %v6319_v40, %v835_v48  ;;  %vm1241_vm14 = vcmp.eq.s32.totalorder %v6113_v16, 8 }
 0x41d   :  { %v860_v51 = vsel %vm850_vm0, %v6337_v50, 0.0  ;;  %v875_v34 = vadd.f32 %v874_v52, %v865_v31 }
 0x41e   :  { %v880_v33 = vsel %vm213_vm4, %v860_v51, 0.0 }
 0x41f   :  { %v889_v53 = vrot.slane %v880_v33, 4  ;;  %v876_v54 = vrot.slane %v875_v34, 2 }
 0x421   :  { %v890_v55 = vadd.f32 %v889_v53, %v880_v33  ;;  %v877_v56 = vadd.f32 %v876_v54, %v875_v34 }
 0x423   :  { %v891_v57 = vrot.slane %v890_v55, 2  ;;  %v878_v58 = vrot.slane %v877_v56, 1 }
 0x425   :  { %v892_v59 = vadd.f32 %v891_v57, %v890_v55  ;;  %v879_v63 = vadd.f32 %v878_v58, %v877_v56 }
 0x427   :  { %v893_v0 = vrot.slane %v892_v59, 1  ;;  %v896_v13 = vsel %vm895_vm3, %v879_v63, 0.0 }
 0x428   :  { %v898_v20 = vsel %vm213_vm4, %v896_v13, 0.0 }
 0x429   :  { %v894_v15 = vadd.f32 %v893_v0, %v892_v59 }
 0x42b   :  { %v897_v27 = vsel %vm895_vm3, %v894_v15, 0.0 }
 0x42c   :  { %v901_v32 = vsel %vm213_vm4, %v897_v27, 0.0 }
 0x461   :  { %v665_v60 = vpop.xlane.xlu1 %664 }
 0x462   :  { %v691_v61 = vmul.f32 %v665_v60, %v6246_v21 }
 0x464   :  { %v701_v62 = vsub.f32 %v571_v9, %v691_v61 }
 0x465   :  { %v680_v4 = vpop.xlane.xlu0 %679  ;;  %v278_v6 = vpop.xlane.xlu1 %277 }
 0x466   :  { %v302_v7 = vmul.f32 %v278_v6, %v6082_v45  ;;  %v781_v8 = vsel %vm765_vm15, %v701_v62, 0.0  ;;  %v696_v12 = vmul.f32 %v680_v4, %v6249_v26 }
 0x467   :  { %v793_v11 = vsel %vm213_vm4, %v781_v8, 0.0 }
 0x468   :  { %794 = vadd.xlane.f32.xlu1 %v793_v11  ;;  %v312_v9 = vsub.f32 %v190_v17, %v302_v7  ;;  %v706_v30 = vsub.f32 %v576_v5, %v696_v12  ;;  %v915_v5 = vsel %vm895_vm3, %v6337_v50, 0.0 }
 0x469   :  { %v293_v35 = vpop.xlane.xlu1 %292  ;;  %v935_v42 = vsel %vm213_vm4, %v915_v5, 0.0 }
 0x46a   :  { %v392_v19 = vsel %vm375_vm7, %v312_v9, 0.0  ;;  %v786_v17 = vsel %vm765_vm15, %v706_v30, 0.0  ;;  %v307_v37 = vmul.f32 %v293_v35, %v6080_v44 }
 0x46b   :  { %v406_v24 = vsel %vm213_vm4, %v392_v19, 0.0  ;;  %v808_v36 = vsel %vm213_vm4, %v786_v17, 0.0 }
 0x46c   :  { %899 = vadd.xlane.f32.xlu1 %v898_v20  ;;  %407 = vadd.xlane.f32.xlu0 %v406_v24  ;;  %v317_v39 = vsub.f32 %v6306_v23, %v307_v37 }
 0x46e   :  { %v397_v43 = vsel %vm375_vm7, %v317_v39, 0.0 }
 0x46f   :  { %v421_v46 = vsel %vm213_vm4, %v397_v43, 0.0 }
 0x470   :  { %902 = vadd.xlane.f32.xlu1 %v901_v32 }
 0x474   :  { %809 = vadd.xlane.f32.xlu1 %v808_v36 }
 0x478   :  { %921 = vadd.xlane.f32.xlu1 %v920_v38 }
 0x47c   :  { %936 = vadd.xlane.f32.xlu1 %v935_v42 }
 0x480   :  { %422 = vadd.xlane.f32.xlu1 %v421_v46 }
 0x4f1   :  { %v795_v47 = vpop.xlane.xlu1 %794 }
 0x4f2   :  { %v821_v48 = vmul.f32 %v795_v47, %v6317_v28 }
 0x4f4   :  { %v6377_v49 = vsub.f32 %v701_v62, %v821_v48 }
 0x4f5   :  { %v408_v31 = vpop.xlane.xlu0 %407  ;;  %v900_v51 = vpop.xlane.xlu1 %899 }
 0x4f6   :  { %v432_v52 = vmul.f32 %v408_v31, %v6119_v22  ;;  %5704 = vrcp.f32 %v900_v51  ;;  %v911_v23 = vsel %vm895_vm3, %v6377_v49, 0.0 }
 0x4f7   :  { %v923_v33 = vsel %vm213_vm4, %v911_v23, 0.0 }
 0x4f8   :  { %924 = vadd.xlane.f32.xlu0 %v923_v33  ;;  %v6384_v34 = vsub.f32 %v312_v9, %v432_v52 }
 0x4f9   :  { %v903_v53 = vpop.xlane.xlu1 %902 }
 0x4fa   :  { %5706 = vrcp.f32 %v903_v53  ;;  %v522_v54 = vsel %vm505_vm10, %v6384_v34, 0.0 }
 0x4fb   :  { %v536_v55 = vsel %vm213_vm4, %v522_v54, 0.0 }
 0x4fc   :  { %537 = vadd.xlane.f32.xlu0 %v536_v55  ;;  %v6450_v55 = vadd.s32 24, %v6042_v1 }
 0x4fd   :  { %v810_v56 = vpop.xlane.xlu1 %809 }
 0x4fe   :  { %v826_v57 = vmul.f32 %v810_v56, %v6319_v40  ;;  %vm155_vm9 = vcmp.eq.s32.totalorder %v6450_v55, %v6044_v2 }
 0x4ff   :  { %v5505_v56 = vsel %vm155_vm9, 1.0, %v5966_v3  ;;  %vm1371_vm9 = vcmp.eq.s32.totalorder %v6113_v16, 9 }
 0x500   :  { %v6391_v58 = vsub.f32 %v706_v30, %v826_v57 }
 0x501   :  { %v922_v59 = vpop.xlane.xlu1 %921 }
 0x502   :  { %v916_v60 = vsel %vm895_vm3, %v6391_v58, 0.0 }
 0x503   :  { %v5705_v61 = vpop.eup %5704  ;;  %v938_v62 = vsel %vm213_vm4, %v916_v60, 0.0 }
 0x504   :  { %v6397_v0 = vmul.f32 %v5705_v61, %v879_v63  ;;  %939 = vadd.xlane.f32.xlu1 %v938_v62 }
 0x505   :  { %v937_v4 = vpop.xlane.xlu1 %936 }
 0x506   :  { %v950_v6 = vmul.f32 %v922_v59, %v6397_v0 }
 0x507   :  { %v5707_v7 = vpop.eup %5706 }
 0x508   :  { %v6400_v8 = vmul.f32 %v5707_v7, %v894_v15  ;;  %v960_v11 = vsub.f32 %v6327_v41, %v950_v6 }
 0x509   :  { %v423_v12 = vpop.xlane.xlu1 %422 }
 0x50a   :  { %v6407_v13 = vsel %vm850_vm0, %v6397_v0, %v960_v11  ;;  %v955_v63 = vmul.f32 %v937_v4, %v6400_v8  ;;  %v437_v9 = vmul.f32 %v423_v12, %v6122_v25 }
 0x50b   :  { %v985_v19 = vsel %vm980_vm6, %v6407_v13, 0.0  ;;  %v1040_v31 = vsel %vm1025_vm8, %v6407_v13, 0.0 }
 0x50c   :  { %v965_v15 = vsub.f32 %v6337_v50, %v955_v63  ;;  %v447_v20 = vsub.f32 %v317_v39, %v437_v9  ;;  %v995_v41 = vsel %vm213_vm4, %v985_v19, 0.0  ;;  %v1050_v23 = vsel %vm213_vm4, %v1040_v31, 0.0 }
 0x50d   :  { %v1004_v24 = vrot.slane %v995_v41, 4 }
 0x50e   :  { %v6419_v27 = vsel %vm850_vm0, %v6400_v8, %v965_v15  ;;  %v527_v30 = vsel %vm505_vm10, %v447_v20, 0.0  ;;  %vm1285_vm0 = vcmp.eq.s32.totalorder %v6044_v2, 8 }
 0x50f   :  { %v551_v32 = vsel %vm213_vm4, %v527_v30, 0.0  ;;  %v1005_v17 = vadd.f32 %v1004_v24, %v995_v41  ;;  %v990_v35 = vsel %vm980_vm6, %v6419_v27, 0.0  ;;  %v1045_v53 = vsel %vm1025_vm8, %v6419_v27, 0.0 }
 0x510   :  { %552 = vadd.xlane.f32.xlu1 %v551_v32  ;;  %v1010_v50 = vsel %vm213_vm4, %v990_v35, 0.0  ;;  %v1065_v54 = vsel %vm213_vm4, %v1045_v53, 0.0  ;;  %v90_v32 = vld [vmem:[%s9842_s1 + $0x18] sm:$0xff] }
 0x511   :  { %v1006_v36 = vrot.slane %v1005_v17, 2  ;;  %v1019_v37 = vrot.slane %v1010_v50, 4 }
 0x513   :  { %v1007_v10 = vadd.f32 %v1006_v36, %v1005_v17  ;;  %v1020_v38 = vadd.f32 %v1019_v37, %v1010_v50  ;;  %v94_v17 = vld [vmem:[%s9842_s1 + $0x38] sm:$0xff] }
 0x514   :  { %v113_v50 = vld [vmem:[#allocation8 + $0x18] sm:$0xff]  ;;  %v123_v36 = vsel %vm115_vm1, %v94_v17, 0.0 }
 0x515   :  { %v1008_v5 = vrot.slane %v1007_v10, 1  ;;  %v1021_v39 = vrot.slane %v1020_v38, 2 }
 0x517   :  { %v6428_v42 = vadd.f32 %v1008_v5, %v1007_v10  ;;  %v1022_v43 = vadd.f32 %v1021_v39, %v1020_v38  ;;  %v142_v5 = vadd.f32 %v123_v36, %v113_v50 }
 0x519   :  { %v1026_v46 = vsel %vm1025_vm8, %v6428_v42, 0.0  ;;  %v1023_v47 = vrot.slane %v1022_v43, 1 }
 0x51a   :  { %v1028_v48 = vsel %vm213_vm4, %v1026_v46, 0.0 }
 0x51b   :  { %1029 = vadd.xlane.f32.xlu0 %v1028_v48  ;;  %v6438_v51 = vadd.f32 %v1023_v47, %v1022_v43 }
 0x51d   :  { %v1027_v52 = vsel %vm1025_vm8, %v6438_v51, 0.0 }
 0x51e   :  { %v1031_v33 = vsel %vm213_vm4, %v1027_v52, 0.0 }
 0x51f   :  { %1051 = vadd.xlane.f32.xlu0 %v1050_v23  ;;  %1032 = vadd.xlane.f32.xlu1 %v1031_v33 }
 0x523   :  { %1066 = vadd.xlane.f32.xlu1 %v1065_v54 }
 0x535   :  { %178 = vrot.lane.b32.xlu0 %v5505_v56, %s5967_s4 }
 0x581   :  { %v925_v57 = vpop.xlane.xlu0 %924 }
 0x582   :  { %v951_v59 = vmul.f32 %v925_v57, %v6397_v0 }
 0x584   :  { %v6458_v60 = vsub.f32 %v6377_v49, %v951_v59 }
 0x585   :  { %v538_v4 = vpop.xlane.xlu0 %537 }
 0x586   :  { %v1041_v61 = vsel %vm1025_vm8, %v6458_v60, 0.0  ;;  %v562_v6 = vmul.f32 %v538_v4, %v6176_v18 }
 0x587   :  { %v1053_v62 = vsel %vm213_vm4, %v1041_v61, 0.0 }
 0x588   :  { %1054 = vadd.xlane.f32.xlu1 %v1053_v62  ;;  %v6470_v63 = vsub.f32 %v6384_v34, %v562_v6 }
 0x58a   :  { %v652_v19 = vsel %vm635_vm12, %v6470_v63, 0.0 }
 0x58b   :  { %v666_v15 = vsel %vm213_vm4, %v652_v19, 0.0 }
 0x58d   :  { %v940_v7 = vpop.xlane.xlu1 %939 }
 0x58e   :  { %v956_v11 = vmul.f32 %v940_v7, %v6400_v8 }
 0x590   :  { %v6467_v12 = vsub.f32 %v6391_v58, %v956_v11 }
 0x592   :  { %v1046_v49 = vsel %vm1025_vm8, %v6467_v12, 0.0 }
 0x593   :  { %v1068_v9 = vsel %vm213_vm4, %v1046_v49, 0.0 }
 0x594   :  { %1069 = vadd.xlane.f32.xlu1 %v1068_v9 }
 0x598   :  { %667 = vadd.xlane.f32.xlu1 %v666_v15 }
 0x599   :  { %v553_v41 = vpop.xlane.xlu1 %552 }
 0x59a   :  { %v567_v58 = vmul.f32 %v553_v41, %v6183_v29 }
 0x59c   :  { %v6481_v24 = vsub.f32 %v447_v20, %v567_v58  ;;  %v119_v20 = vsel %vm115_vm1, %v90_v32, 0.0 }
 0x59d   :  { %v137_v38 = vadd.f32 %v119_v20, %v113_v50 }
 0x59e   :  { %v657_v34 = vsel %vm635_vm12, %v6481_v24, 0.0 }
 0x59f   :  { %v681_v30 = vsel %vm213_vm4, %v657_v34, 0.0 }
 0x5a0   :  { %682 = vadd.xlane.f32.xlu1 %v681_v30 }
 0x5a4   :  { %v1030_v35 = vpop.xlane.xlu0 %1029 }
 0x5a5   :  { %5708 = vrcp.f32 %v1030_v35 }
 0x5a8   :  { %v1052_v37 = vpop.xlane.xlu0 %1051  ;;  %v1033_v10 = vpop.xlane.xlu1 %1032 }
 0x5a9   :  { %5710 = vrcp.f32 %v1033_v10 }
 0x5ac   :  { %v179_v39 = vpop.permute.xlu0 %178  ;;  %v1067_v59 = vpop.xlane.xlu1 %1066 }
 0x5ad   :  { %v6496_v43 = vsel %vm187_vm2, %v137_v38, %v179_v39  ;;  %v6499_v46 = vsel %vm187_vm2, %v142_v5, %v179_v39 }
 0x5ae   :  { %v263_v47 = vsel %vm245_vm5, %v6496_v43, 0.0  ;;  %v268_v48 = vsel %vm245_vm5, %v6499_v46, 0.0 }
 0x5af   :  { %v279_v31 = vsel %vm213_vm4, %v263_v47, 0.0  ;;  %v294_v52 = vsel %vm213_vm4, %v268_v48, 0.0 }
 0x5b0   :  { %280 = vadd.xlane.f32.xlu1 %v279_v31 }
 0x5b2   :  { %v5709_v23 = vpop.eup %5708 }
 0x5b3   :  { %v6510_v33 = vmul.f32 %v5709_v23, %v6428_v42 }
 0x5b4   :  { %295 = vadd.xlane.f32.xlu1 %v294_v52 }
 0x5b5   :  { %v1080_v53 = vmul.f32 %v1052_v37, %v6510_v33 }
 0x5b6   :  { %v5711_v54 = vpop.eup %5710 }
 0x5b7   :  { %v1090_v56 = vsub.f32 %v6407_v13, %v1080_v53  ;;  %v6515_v57 = vmul.f32 %v5711_v54, %v6438_v51 }
 0x5b9   :  { %v6521_v61 = vsel %vm980_vm6, %v6510_v33, %v1090_v56  ;;  %v1085_v42 = vmul.f32 %v1067_v59, %v6515_v57 }
 0x5ba   :  { %v1115_v62 = vsel %vm1110_vm11, %v6521_v61, 0.0 }
 0x5bb   :  { %v1095_v4 = vsub.f32 %v6419_v27, %v1085_v42  ;;  %v1125_v13 = vsel %vm213_vm4, %v1115_v62, 0.0 }
 0x5bc   :  { %v1134_v51 = vrot.slane %v1125_v13, 4 }
 0x5bd   :  { %v6532_v6 = vsel %vm980_vm6, %v6515_v57, %v1095_v4 }
 0x5be   :  { %v1135_v7 = vadd.f32 %v1134_v51, %v1125_v13  ;;  %v1120_v11 = vsel %vm1110_vm11, %v6532_v6, 0.0 }
 0x5bf   :  { %v1140_v49 = vsel %vm213_vm4, %v1120_v11, 0.0 }
 0x5c0   :  { %v1136_v9 = vrot.slane %v1135_v7, 2  ;;  %v1149_v19 = vrot.slane %v1140_v49, 4 }
 0x5c2   :  { %v1137_v15 = vadd.f32 %v1136_v9, %v1135_v7  ;;  %v1150_v41 = vadd.f32 %v1149_v19, %v1140_v49 }
 0x5c4   :  { %v1138_v27 = vrot.slane %v1137_v15, 1  ;;  %v1151_v58 = vrot.slane %v1150_v41, 2 }
 0x5c6   :  { %v1139_v34 = vadd.f32 %v1138_v27, %v1137_v15  ;;  %v1152_v30 = vadd.f32 %v1151_v58, %v1150_v41 }
 0x5c8   :  { %v1156_v32 = vsel %vm1155_vm13, %v1139_v34, 0.0  ;;  %v1153_v17 = vrot.slane %v1152_v30, 1 }
 0x5c9   :  { %v1158_v35 = vsel %vm213_vm4, %v1156_v32, 0.0 }
 0x5ca   :  { %1159 = vadd.xlane.f32.xlu0 %v1158_v35  ;;  %v1154_v50 = vadd.f32 %v1153_v17, %v1152_v30 }
 0x5cc   :  { %v1157_v20 = vsel %vm1155_vm13, %v1154_v50, 0.0 }
 0x5cd   :  { %v1161_v36 = vsel %vm213_vm4, %v1157_v20, 0.0 }
 0x5ce   :  { %1162 = vadd.xlane.f32.xlu1 %v1161_v36 }
 0x611   :  { %v1055_v37 = vpop.xlane.xlu1 %1054 }
 0x612   :  { %v1081_v10 = vmul.f32 %v1055_v37, %v6510_v33 }
 0x614   :  { %v1091_v38 = vsub.f32 %v6458_v60, %v1081_v10 }
 0x616   :  { %v1171_v5 = vsel %vm1155_vm13, %v1091_v38, 0.0 }
 0x617   :  { %v1183_v39 = vsel %vm213_vm4, %v1171_v5, 0.0 }
 0x618   :  { %1184 = vadd.xlane.f32.xlu1 %v1183_v39 }
 0x61d   :  { %v1070_v47 = vpop.xlane.xlu1 %1069 }
 0x61e   :  { %v1086_v48 = vmul.f32 %v1070_v47, %v6515_v57 }
 0x620   :  { %v1096_v31 = vsub.f32 %v6467_v12, %v1086_v48 }
 0x621   :  { %v668_v52 = vpop.xlane.xlu1 %667 }
 0x622   :  { %v692_v23 = vmul.f32 %v668_v52, %v6246_v21  ;;  %v1176_v53 = vsel %vm1155_vm13, %v1096_v31, 0.0 }
 0x623   :  { %v1198_v54 = vsel %vm213_vm4, %v1176_v53, 0.0 }
 0x624   :  { %1199 = vadd.xlane.f32.xlu1 %v1198_v54  ;;  %v702_v60 = vsub.f32 %v6470_v63, %v692_v23 }
 0x626   :  { %v782_v56 = vsel %vm765_vm15, %v702_v60, 0.0 }
 0x627   :  { %v796_v59 = vsel %vm213_vm4, %v782_v56, 0.0 }
 0x628   :  { %797 = vadd.xlane.f32.xlu1 %v796_v59 }
 0x629   :  { %v683_v42 = vpop.xlane.xlu1 %682 }
 0x62a   :  { %v697_v12 = vmul.f32 %v683_v42, %v6249_v26 }
 0x62c   :  { %v707_v62 = vsub.f32 %v6481_v24, %v697_v12 }
 0x62e   :  { %v787_v4 = vsel %vm765_vm15, %v707_v62, 0.0 }
 0x62f   :  { %v811_v13 = vsel %vm213_vm4, %v787_v4, 0.0 }
 0x630   :  { %812 = vadd.xlane.f32.xlu1 %v811_v13 }
 0x639   :  { %v281_v51 = vpop.xlane.xlu1 %280 }
 0x63a   :  { %v303_v63 = vmul.f32 %v281_v51, %v6082_v45 }
 0x63c   :  { %v6567_v7 = vsub.f32 %v6496_v43, %v303_v63 }
 0x63d   :  { %v296_v11 = vpop.xlane.xlu1 %295 }
 0x63e   :  { %v308_v49 = vmul.f32 %v296_v11, %v6080_v44  ;;  %v393_v9 = vsel %vm375_vm7, %v6567_v7, 0.0 }
 0x63f   :  { %v409_v24 = vsel %vm213_vm4, %v393_v9, 0.0 }
 0x640   :  { %410 = vadd.xlane.f32.xlu1 %v409_v24  ;;  %v6575_v19 = vsub.f32 %v6499_v46, %v308_v49 }
 0x642   :  { %v398_v15 = vsel %vm375_vm7, %v6575_v19, 0.0 }
 0x643   :  { %v424_v43 = vsel %vm213_vm4, %v398_v15, 0.0 }
 0x644   :  { %425 = vadd.xlane.f32.xlu1 %v424_v43 }
 0x653   :  { %v1160_v41 = vpop.xlane.xlu0 %1159 }
 0x654   :  { %5712 = vrcp.f32 %v1160_v41 }
 0x657   :  { %v1163_v27 = vpop.xlane.xlu1 %1162 }
 0x658   :  { %5714 = vrcp.f32 %v1163_v27 }
 0x661   :  { %v5713_v58 = vpop.eup %5712 }
 0x662   :  { %v6581_v30 = vmul.f32 %v5713_v58, %v1139_v34 }
 0x665   :  { %v5715_v37 = vpop.eup %5714 }
 0x666   :  { %v6591_v5 = vmul.f32 %v5715_v37, %v1154_v50 }
 0x6a1   :  { %v1185_v32 = vpop.xlane.xlu1 %1184 }
 0x6a2   :  { %v1211_v17 = vmul.f32 %v1185_v32, %v6581_v30 }
 0x6a4   :  { %v6585_v46 = vsub.f32 %v1091_v38, %v1211_v17 }
 0x6a6   :  { %v1246_v35 = vsel %vm1241_vm14, %v6585_v46, 0.0  ;;  %v1301_v9 = vsel %vm1285_vm0, %v6585_v46, 0.0 }
 0x6a7   :  { %v1256_v20 = vsel %vm213_vm4, %v1246_v35, 0.0  ;;  %v1313_v15 = vsel %vm213_vm4, %v1301_v9, 0.0 }
 0x6a8   :  { %v1264_v36 = vrot.slane %v1256_v20, 4 }
 0x6aa   :  { %v1265_v10 = vadd.f32 %v1264_v36, %v1256_v20 }
 0x6ac   :  { %v1266_v34 = vrot.slane %v1265_v10, 2 }
 0x6ad   :  { %v1200_v39 = vpop.xlane.xlu1 %1199 }
 0x6ae   :  { %v1216_v47 = vmul.f32 %v1200_v39, %v6591_v5  ;;  %v1267_v48 = vadd.f32 %v1266_v34, %v1265_v10 }
 0x6b0   :  { %v6594_v52 = vsub.f32 %v1096_v31, %v1216_v47  ;;  %v1268_v38 = vrot.slane %v1267_v48, 1 }
 0x6b1   :  { %v798_v23 = vpop.xlane.xlu1 %797 }
 0x6b2   :  { %v1251_v53 = vsel %vm1241_vm14, %v6594_v52, 0.0  ;;  %v822_v54 = vmul.f32 %v798_v23, %v6317_v28  ;;  %v6600_v56 = vadd.f32 %v1268_v38, %v1267_v48  ;;  %v1306_v35 = vsel %vm1285_vm0, %v6594_v52, 0.0 }
 0x6b3   :  { %v1271_v50 = vsel %vm213_vm4, %v1251_v53, 0.0  ;;  %v1328_v36 = vsel %vm213_vm4, %v1306_v35, 0.0  ;;  %v6637_v53 = vadd.s32 32, %v6042_v1 }
 0x6b4   :  { %v1286_v59 = vsel %vm1285_vm0, %v6600_v56, 0.0  ;;  %v832_v31 = vsub.f32 %v702_v60, %v822_v54  ;;  %v1279_v42 = vrot.slane %v1271_v50, 4  ;;  %v95_v54 = vld [vmem:[%s9843_s2] sm:$0xf] }
 0x6b5   :  { %v1288_v12 = vsel %vm213_vm4, %v1286_v59, 0.0  ;;  %vm156_vm6 = vcmp.eq.s32.totalorder %v6637_v53, %v6044_v2 }
 0x6b6   :  { %1289 = vadd.xlane.f32.xlu0 %v1288_v12  ;;  %v912_v4 = vsel %vm895_vm3, %v832_v31, 0.0  ;;  %v1280_v13 = vadd.f32 %v1279_v42, %v1271_v50 }
 0x6b7   :  { %v926_v11 = vsel %vm213_vm4, %v912_v4, 0.0 }
 0x6b8   :  { %v1281_v51 = vrot.slane %v1280_v13, 2 }
 0x6b9   :  { %v813_v63 = vpop.xlane.xlu1 %812 }
 0x6ba   :  { %v827_v49 = vmul.f32 %v813_v63, %v6319_v40  ;;  %927 = vadd.xlane.f32.xlu0 %v926_v11  ;;  %v1282_v60 = vadd.f32 %v1281_v51, %v1280_v13 }
 0x6bc   :  { %v1283_v24 = vrot.slane %v1282_v60, 1  ;;  %v837_v41 = vsub.f32 %v707_v62, %v827_v49 }
 0x6be   :  { %1314 = vadd.xlane.f32.xlu0 %v1313_v15  ;;  %v1284_v43 = vadd.f32 %v1283_v24, %v1282_v60  ;;  %v917_v32 = vsel %vm895_vm3, %v837_v41, 0.0 }
 0x6bf   :  { %v941_v17 = vsel %vm213_vm4, %v917_v32, 0.0 }
 0x6c0   :  { %v1287_v27 = vsel %vm1285_vm0, %v1284_v43, 0.0 }
 0x6c1   :  { %v1291_v58 = vsel %vm213_vm4, %v1287_v27, 0.0 }
 0x6c2   :  { %1292 = vadd.xlane.f32.xlu1 %v1291_v58 }
 0x6c6   :  { %942 = vadd.xlane.f32.xlu1 %v941_v17 }
 0x6c9   :  { %v411_v20 = vpop.xlane.xlu1 %410 }
 0x6ca   :  { %v433_v62 = vmul.f32 %v411_v20, %v6119_v22  ;;  %1329 = vadd.xlane.f32.xlu1 %v1328_v36 }
 0x6cc   :  { %v443_v37 = vsub.f32 %v6567_v7, %v433_v62  ;;  %v96_v7 = vld [vmem:[%s9843_s2 + $0x4] sm:$0xf]  ;;  %s5969_s2 = smov 92  }
 0x6cd   :  { %v426_v10 = vpop.xlane.xlu1 %425 }
 0x6ce   :  { %v438_v34 = vmul.f32 %v426_v10, %v6122_v25  ;;  %v523_v39 = vsel %vm505_vm10, %v443_v37, 0.0 }
 0x6cf   :  { %v539_v47 = vsel %vm213_vm4, %v523_v39, 0.0 }
 0x6d0   :  { %540 = vadd.xlane.f32.xlu0 %v539_v47  ;;  %v448_v48 = vsub.f32 %v6575_v19, %v438_v34  ;;  %v5506_v19 = vsel %vm156_vm6, 1.0, %v5966_v3  ;;  %vm1415_vm6 = vcmp.eq.s32.totalorder %v6044_v2, 9 }
 0x6d2   :  { %v528_v38 = vsel %vm505_vm10, %v448_v48, 0.0 }
 0x6d3   :  { %v554_v23 = vsel %vm213_vm4, %v528_v38, 0.0 }
 0x6d4   :  { %555 = vadd.xlane.f32.xlu1 %v554_v23 }
 0x6e5   :  { %128 = vrot.lane.b32.xlu1 %v96_v7, %s5968_s25 }
 0x6e6   :  { %126 = vrot.lane.b32.xlu0 %v95_v54, %s5968_s25 }
 0x6e9   :  { %180 = vrot.lane.b32.xlu1 %v5506_v19, %s5967_s4 }
 0x73f   :  { %v1290_v50 = vpop.xlane.xlu0 %1289 }
 0x740   :  { %5716 = vrcp.f32 %v1290_v50 }
 0x743   :  { %v928_v59 = vpop.xlane.xlu0 %927 }
 0x744   :  { %v952_v42 = vmul.f32 %v928_v59, %v6397_v0  ;;  %v114_v59 = vld [vmem:[#allocation8 + $0x20] sm:$0xf] }
 0x746   :  { %v6650_v12 = vsub.f32 %v832_v31, %v952_v42 }
 0x747   :  { %v1315_v49 = vpop.xlane.xlu0 %1314 }
 0x748   :  { %v1042_v4 = vsel %vm1025_vm8, %v6650_v12, 0.0 }
 0x749   :  { %v1056_v13 = vsel %vm213_vm4, %v1042_v4, 0.0 }
 0x74a   :  { %1057 = vadd.xlane.f32.xlu1 %v1056_v13 }
 0x74b   :  { %v1293_v51 = vpop.xlane.xlu1 %1292 }
 0x74c   :  { %5718 = vrcp.f32 %v1293_v51 }
 0x74d   :  { %v5717_v63 = vpop.eup %5716 }
 0x74e   :  { %v6657_v11 = vmul.f32 %v5717_v63, %v6600_v56 }
 0x74f   :  { %v943_v9 = vpop.xlane.xlu1 %942 }
 0x750   :  { %v1341_v60 = vmul.f32 %v1315_v49, %v6657_v11  ;;  %v957_v31 = vmul.f32 %v943_v9, %v6400_v8 }
 0x752   :  { %v1351_v24 = vsub.f32 %v6585_v46, %v1341_v60  ;;  %v6662_v15 = vsub.f32 %v837_v41, %v957_v31 }
 0x753   :  { %v1330_v35 = vpop.xlane.xlu1 %1329 }
 0x754   :  { %v6668_v27 = vsel %vm1241_vm14, %v6657_v11, %v1351_v24  ;;  %v1047_v56 = vsel %vm1025_vm8, %v6662_v15, 0.0 }
 0x755   :  { %v1071_v58 = vsel %vm213_vm4, %v1047_v56, 0.0  ;;  %v1376_v32 = vsel %vm1371_vm9, %v6668_v27, 0.0 }
 0x756   :  { %1072 = vadd.xlane.f32.xlu0 %v1071_v58  ;;  %v1386_v46 = vsel %vm213_vm4, %v1376_v32, 0.0 }
 0x757   :  { %v1394_v41 = vrot.slane %v1386_v46, 4 }
 0x759   :  { %v5719_v17 = vpop.eup %5718  ;;  %v541_v20 = vpop.xlane.xlu0 %540  ;;  %v1395_v36 = vadd.f32 %v1394_v41, %v1386_v46 }
 0x75a   :  { %v6678_v62 = vmul.f32 %v5719_v17, %v1284_v43  ;;  %v563_v10 = vmul.f32 %v541_v20, %v6176_v18 }
 0x75b   :  { %v1396_v34 = vrot.slane %v1395_v36, 2 }
 0x75c   :  { %v1346_v39 = vmul.f32 %v1330_v35, %v6678_v62  ;;  %v6682_v47 = vsub.f32 %v443_v37, %v563_v10  ;;  %v1431_v10 = vsel %vm1415_vm6, %v6668_v27, 0.0 }
 0x75d   :  { %v556_v38 = vpop.xlane.xlu1 %555  ;;  %v127_v23 = vpop.permute.xlu0 %126  ;;  %v1397_v7 = vadd.f32 %v1396_v34, %v1395_v36 }
 0x75e   :  { %v1356_v54 = vsub.f32 %v6594_v52, %v1346_v39  ;;  %v568_v19 = vmul.f32 %v556_v38, %v6183_v29  ;;  %v653_v50 = vsel %vm635_vm12, %v6682_v47, 0.0  ;;  %v132_v42 = vsel %vm115_vm1, 0.0, %v127_v23 }
 0x75f   :  { %v669_v43 = vsel %vm213_vm4, %v653_v50, 0.0  ;;  %v1398_v4 = vrot.slane %v1397_v7, 1  ;;  %v138_v49 = vadd.f32 %v132_v42, %v114_v59  ;;  %v1443_v38 = vsel %vm213_vm4, %v1431_v10, 0.0 }
 0x760   :  { %v6694_v37 = vsel %vm1241_vm14, %v6678_v62, %v1356_v54  ;;  %670 = vadd.xlane.f32.xlu0 %v669_v43  ;;  %v578_v13 = vsub.f32 %v448_v48, %v568_v19  ;;  %vm221_vm14 = vcmask 584704  }
 0x761   :  { %v129_v52 = vpop.permute.xlu1 %128  ;;  %v6696_v51 = vadd.f32 %v1398_v4, %v1397_v7  ;;  %v1381_v63 = vsel %vm1371_vm9, %v6694_v37, 0.0 }
 0x762   :  { %v658_v9 = vsel %vm635_vm12, %v578_v13, 0.0  ;;  %v1401_v60 = vsel %vm213_vm4, %v1381_v63, 0.0  ;;  %v133_v58 = vsel %vm115_vm1, 0.0, %v129_v52 }
 0x763   :  { %v684_v31 = vsel %vm213_vm4, %v658_v9, 0.0  ;;  %v1416_v48 = vsel %vm1415_vm6, %v6696_v51, 0.0  ;;  %v1409_v24 = vrot.slane %v1401_v60, 4  ;;  %v143_v20 = vadd.f32 %v133_v58, %v114_v59 }
 0x764   :  { %685 = vadd.xlane.f32.xlu0 %v684_v31  ;;  %v1418_v56 = vsel %vm213_vm4, %v1416_v48, 0.0  ;;  %v1436_v59 = vsel %vm1415_vm6, %v6694_v37, 0.0 }
 0x765   :  { %1419 = vadd.xlane.f32.xlu1 %v1418_v56  ;;  %v181_v32 = vpop.permute.xlu1 %180  ;;  %v1410_v46 = vadd.f32 %v1409_v24, %v1401_v60  ;;  %v1458_v42 = vsel %vm213_vm4, %v1436_v59, 0.0 }
 0x766   :  { %v192_v41 = vsel %vm187_vm2, %v138_v49, %v181_v32  ;;  %v197_v23 = vsel %vm187_vm2, %v143_v20, %v181_v32 }
 0x767   :  { %v264_v17 = vsel %vm245_vm5, %v192_v41, 0.0  ;;  %v1411_v35 = vrot.slane %v1410_v46, 2  ;;  %v269_v19 = vsel %vm245_vm5, %v197_v23, 0.0  ;;  %vm1501_vm5 = vcmp.eq.s32.totalorder %v6113_v16, 10 }
 0x768   :  { %v282_v36 = vsel %vm221_vm14, %v264_v17, 0.0  ;;  %v297_v43 = vsel %vm221_vm14, %v269_v19, 0.0 }
 0x769   :  { %283 = vadd.xlane.f32.xlu1 %v282_v36  ;;  %v1412_v34 = vadd.f32 %v1411_v35, %v1410_v46 }
 0x76b   :  { %v1413_v39 = vrot.slane %v1412_v34, 1 }
 0x76d   :  { %1444 = vadd.xlane.f32.xlu1 %v1443_v38  ;;  %v1414_v7 = vadd.f32 %v1413_v39, %v1412_v34 }
 0x76f   :  { %v1417_v54 = vsel %vm1415_vm6, %v1414_v7, 0.0 }
 0x770   :  { %v1421_v50 = vsel %vm213_vm4, %v1417_v54, 0.0 }
 0x771   :  { %1422 = vadd.xlane.f32.xlu0 %v1421_v50 }
 0x775   :  { %298 = vadd.xlane.f32.xlu0 %v297_v43 }
 0x779   :  { %1459 = vadd.xlane.f32.xlu0 %v1458_v42 }
 0x7d3   :  { %v1058_v4 = vpop.xlane.xlu1 %1057 }
 0x7d4   :  { %v1082_v52 = vmul.f32 %v1058_v4, %v6510_v33 }
 0x7d6   :  { %v6732_v63 = vsub.f32 %v6650_v12, %v1082_v52 }
 0x7d8   :  { %v1172_v49 = vsel %vm1155_vm13, %v6732_v63, 0.0 }
 0x7d9   :  { %v1186_v9 = vsel %vm213_vm4, %v1172_v49, 0.0 }
 0x7da   :  { %1187 = vadd.xlane.f32.xlu1 %v1186_v9 }
 0x7df   :  { %v1073_v60 = vpop.xlane.xlu0 %1072 }
 0x7e0   :  { %v1087_v31 = vmul.f32 %v1073_v60, %v6515_v57 }
 0x7e2   :  { %v6740_v48 = vsub.f32 %v6662_v15, %v1087_v31 }
 0x7e4   :  { %v1177_v24 = vsel %vm1155_vm13, %v6740_v48, 0.0 }
 0x7e5   :  { %v1201_v12 = vsel %vm213_vm4, %v1177_v24, 0.0 }
 0x7e6   :  { %1202 = vadd.xlane.f32.xlu0 %v1201_v12 }
 0x7e9   :  { %v671_v56 = vpop.xlane.xlu0 %670 }
 0x7ea   :  { %v693_v58 = vmul.f32 %v671_v56, %v6246_v21 }
 0x7ec   :  { %v6748_v32 = vsub.f32 %v6682_v47, %v693_v58 }
 0x7ed   :  { %v686_v46 = vpop.xlane.xlu0 %685 }
 0x7ee   :  { %v698_v17 = vmul.f32 %v686_v46, %v6249_v26  ;;  %v1420_v35 = vpop.xlane.xlu1 %1419  ;;  %v783_v15 = vsel %vm765_vm15, %v6748_v32, 0.0 }
 0x7ef   :  { %5720 = vrcp.f32 %v1420_v35  ;;  %v799_v20 = vsel %vm213_vm4, %v783_v15, 0.0 }
 0x7f0   :  { %800 = vadd.xlane.f32.xlu1 %v799_v20  ;;  %v6755_v36 = vsub.f32 %v578_v13, %v698_v17 }
 0x7f2   :  { %v284_v10 = vpop.xlane.xlu1 %283  ;;  %v788_v47 = vsel %vm765_vm15, %v6755_v36, 0.0 }
 0x7f3   :  { %v304_v34 = vmul.f32 %v284_v10, %v6082_v45  ;;  %v814_v39 = vsel %vm213_vm4, %v788_v47, 0.0 }
 0x7f4   :  { %815 = vadd.xlane.f32.xlu0 %v814_v39 }
 0x7f5   :  { %v6762_v38 = vsub.f32 %v192_v41, %v304_v34 }
 0x7f6   :  { %v1445_v59 = vpop.xlane.xlu1 %1444 }
 0x7f7   :  { %v394_v54 = vsel %vm375_vm7, %v6762_v38, 0.0 }
 0x7f8   :  { %v412_v19 = vsel %vm221_vm14, %v394_v54, 0.0 }
 0x7f9   :  { %413 = vadd.xlane.f32.xlu1 %v412_v19 }
 0x7fa   :  { %v1423_v13 = vpop.xlane.xlu0 %1422 }
 0x7fb   :  { %5722 = vrcp.f32 %v1423_v13 }
 0x7fc   :  { %v5721_v50 = vpop.eup %5720 }
 0x7fd   :  { %v6769_v43 = vmul.f32 %v5721_v50, %v6696_v51 }
 0x7fe   :  { %v299_v45 = vpop.xlane.xlu0 %298 }
 0x7ff   :  { %v1471_v42 = vmul.f32 %v1445_v59, %v6769_v43  ;;  %v309_v41 = vmul.f32 %v299_v45, %v6080_v44 }
 0x801   :  { %v1481_v4 = vsub.f32 %v6668_v27, %v1471_v42  ;;  %v6775_v52 = vsub.f32 %v197_v23, %v309_v41 }
 0x802   :  { %v1460_v12 = vpop.xlane.xlu0 %1459 }
 0x803   :  { %v6780_v49 = vsel %vm1371_vm9, %v6769_v43, %v1481_v4  ;;  %v399_v51 = vsel %vm375_vm7, %v6775_v52, 0.0  ;;  %vm1545_vm7 = vcmp.eq.s32.totalorder %v6044_v2, 10 }
 0x804   :  { %v1506_v9 = vsel %vm1501_vm5, %v6780_v49, 0.0  ;;  %v427_v44 = vsel %vm221_vm14, %v399_v51, 0.0  ;;  %v1561_v39 = vsel %vm1545_vm7, %v6780_v49, 0.0 }
 0x805   :  { %428 = vadd.xlane.f32.xlu0 %v427_v44  ;;  %v1516_v27 = vsel %vm213_vm4, %v1506_v9, 0.0  ;;  %v1573_v13 = vsel %vm213_vm4, %v1561_v39, 0.0 }
 0x806   :  { %v1524_v23 = vrot.slane %v1516_v27, 4 }
 0x808   :  { %v5723_v60 = vpop.eup %5722  ;;  %v1525_v31 = vadd.f32 %v1524_v23, %v1516_v27 }
 0x809   :  { %v6790_v24 = vmul.f32 %v5723_v60, %v1414_v7 }
 0x80a   :  { %v1526_v56 = vrot.slane %v1525_v31, 2 }
 0x80b   :  { %v1476_v58 = vmul.f32 %v1460_v12, %v6790_v24 }
 0x80c   :  { %v1527_v46 = vadd.f32 %v1526_v56, %v1525_v31 }
 0x80d   :  { %v1486_v17 = vsub.f32 %v6694_v37, %v1476_v58 }
 0x80e   :  { %v1528_v35 = vrot.slane %v1527_v46, 1 }
 0x80f   :  { %v6797_v15 = vsel %vm1371_vm9, %v6790_v24, %v1486_v17  ;;  %vm1631_vm9 = vcmp.eq.s32.totalorder %v6113_v16, 11 }
 0x810   :  { %v6799_v20 = vadd.f32 %v1528_v35, %v1527_v46  ;;  %v1511_v7 = vsel %vm1501_vm5, %v6797_v15, 0.0  ;;  %v1566_v4 = vsel %vm1545_vm7, %v6797_v15, 0.0 }
 0x811   :  { %v1531_v10 = vsel %vm213_vm4, %v1511_v7, 0.0  ;;  %v1588_v51 = vsel %vm213_vm4, %v1566_v4, 0.0 }
 0x812   :  { %v1546_v37 = vsel %vm1545_vm7, %v6799_v20, 0.0  ;;  %v1539_v47 = vrot.slane %v1531_v10, 4 }
 0x813   :  { %v1548_v34 = vsel %vm213_vm4, %v1546_v37, 0.0 }
 0x814   :  { %1549 = vadd.xlane.f32.xlu1 %v1548_v34  ;;  %v1540_v54 = vadd.f32 %v1539_v47, %v1531_v10 }
 0x816   :  { %v1541_v19 = vrot.slane %v1540_v54, 2 }
 0x818   :  { %1574 = vadd.xlane.f32.xlu1 %v1573_v13  ;;  %v1542_v50 = vadd.f32 %v1541_v19, %v1540_v54 }
 0x81a   :  { %v1543_v59 = vrot.slane %v1542_v50, 1 }
 0x81c   :  { %v1544_v45 = vadd.f32 %v1543_v59, %v1542_v50 }
 0x81e   :  { %v1547_v42 = vsel %vm1545_vm7, %v1544_v45, 0.0 }
 0x81f   :  { %v1551_v41 = vsel %vm213_vm4, %v1547_v42, 0.0 }
 0x820   :  { %1552 = vadd.xlane.f32.xlu0 %v1551_v41 }
 0x824   :  { %1589 = vadd.xlane.f32.xlu0 %v1588_v51 }
 0x863   :  { %v1188_v9 = vpop.xlane.xlu1 %1187 }
 0x864   :  { %v1212_v44 = vmul.f32 %v1188_v9, %v6581_v30 }
 0x866   :  { %v6823_v27 = vsub.f32 %v6732_v63, %v1212_v44 }
 0x868   :  { %v1302_v23 = vsel %vm1285_vm0, %v6823_v27, 0.0 }
 0x869   :  { %v1316_v60 = vsel %vm213_vm4, %v1302_v23, 0.0 }
 0x86a   :  { %1317 = vadd.xlane.f32.xlu1 %v1316_v60 }
 0x86f   :  { %v1203_v31 = vpop.xlane.xlu0 %1202 }
 0x870   :  { %v1217_v12 = vmul.f32 %v1203_v31, %v6591_v5 }
 0x872   :  { %v6831_v56 = vsub.f32 %v6740_v48, %v1217_v12 }
 0x874   :  { %v1307_v58 = vsel %vm1285_vm0, %v6831_v56, 0.0 }
 0x875   :  { %v1331_v63 = vsel %vm213_vm4, %v1307_v58, 0.0 }
 0x876   :  { %1332 = vadd.xlane.f32.xlu0 %v1331_v63 }
 0x879   :  { %v801_v46 = vpop.xlane.xlu1 %800 }
 0x87a   :  { %v823_v17 = vmul.f32 %v801_v46, %v6317_v28 }
 0x87c   :  { %v6839_v35 = vsub.f32 %v6748_v32, %v823_v17 }
 0x87d   :  { %v816_v7 = vpop.xlane.xlu0 %815 }
 0x87e   :  { %v828_v10 = vmul.f32 %v816_v7, %v6319_v40  ;;  %v913_v48 = vsel %vm895_vm3, %v6839_v35, 0.0 }
 0x87f   :  { %v929_v37 = vsel %vm213_vm4, %v913_v48, 0.0 }
 0x880   :  { %930 = vadd.xlane.f32.xlu1 %v929_v37  ;;  %v6847_v47 = vsub.f32 %v6755_v36, %v828_v10 }
 0x882   :  { %v414_v34 = vpop.xlane.xlu1 %413  ;;  %v918_v39 = vsel %vm895_vm3, %v6847_v47, 0.0 }
 0x883   :  { %v434_v32 = vmul.f32 %v414_v34, %v6119_v22  ;;  %v944_v54 = vsel %vm213_vm4, %v918_v39, 0.0 }
 0x884   :  { %945 = vadd.xlane.f32.xlu0 %v944_v54 }
 0x885   :  { %v6855_v19 = vsub.f32 %v6762_v38, %v434_v32 }
 0x887   :  { %v524_v13 = vsel %vm505_vm10, %v6855_v19, 0.0 }
 0x888   :  { %v542_v36 = vsel %vm221_vm14, %v524_v13, 0.0 }
 0x889   :  { %543 = vadd.xlane.f32.xlu1 %v542_v36 }
 0x88e   :  { %v429_v50 = vpop.xlane.xlu0 %428 }
 0x88f   :  { %v439_v59 = vmul.f32 %v429_v50, %v6122_v25 }
 0x891   :  { %v6863_v42 = vsub.f32 %v6775_v52, %v439_v59 }
 0x893   :  { %v529_v22 = vsel %vm505_vm10, %v6863_v42, 0.0  ;;  %vm1675_vm10 = vcmp.eq.s32.totalorder %v6044_v2, 11 }
 0x894   :  { %v557_v38 = vsel %vm221_vm14, %v529_v22, 0.0 }
 0x895   :  { %558 = vadd.xlane.f32.xlu0 %v557_v38 }
 0x89d   :  { %v1550_v41 = vpop.xlane.xlu1 %1549 }
 0x89e   :  { %5724 = vrcp.f32 %v1550_v41 }
 0x8a1   :  { %v1575_v44 = vpop.xlane.xlu1 %1574 }
 0x8a9   :  { %v1553_v4 = vpop.xlane.xlu0 %1552 }
 0x8aa   :  { %5726 = vrcp.f32 %v1553_v4 }
 0x8ab   :  { %v5725_v51 = vpop.eup %5724 }
 0x8ac   :  { %v6870_v9 = vmul.f32 %v5725_v51, %v6799_v20 }
 0x8ad   :  { %v1590_v12 = vpop.xlane.xlu0 %1589 }
 0x8ae   :  { %v1601_v25 = vmul.f32 %v1575_v44, %v6870_v9 }
 0x8b0   :  { %v1611_v52 = vsub.f32 %v6780_v49, %v1601_v25 }
 0x8b2   :  { %v6878_v60 = vsel %vm1501_vm5, %v6870_v9, %v1611_v52 }
 0x8b3   :  { %v1636_v20 = vsel %vm1631_vm9, %v6878_v60, 0.0 }
 0x8b4   :  { %v1646_v63 = vsel %vm213_vm4, %v1636_v20, 0.0 }
 0x8b5   :  { %v1654_v46 = vrot.slane %v1646_v63, 4 }
 0x8b7   :  { %v5727_v23 = vpop.eup %5726  ;;  %v1655_v7 = vadd.f32 %v1654_v46, %v1646_v63 }
 0x8b8   :  { %v6880_v31 = vmul.f32 %v5727_v23, %v1544_v45 }
 0x8b9   :  { %v1656_v10 = vrot.slane %v1655_v7, 2 }
 0x8ba   :  { %v1606_v58 = vmul.f32 %v1590_v12, %v6880_v31 }
 0x8bb   :  { %v1657_v37 = vadd.f32 %v1656_v10, %v1655_v7 }
 0x8bc   :  { %v1616_v49 = vsub.f32 %v6797_v15, %v1606_v58 }
 0x8bd   :  { %v1658_v39 = vrot.slane %v1657_v37, 1 }
 0x8be   :  { %v6891_v17 = vsel %vm1501_vm5, %v6880_v31, %v1616_v49  ;;  %vm1805_vm5 = vcmp.eq.s32.totalorder %v6044_v2, 12 }
 0x8bf   :  { %v1641_v45 = vsel %vm1631_vm9, %v6891_v17, 0.0  ;;  %v6899_v36 = vadd.f32 %v1658_v39, %v1657_v37  ;;  %v1691_v37 = vsel %vm1675_vm10, %v6878_v60, 0.0 }
 0x8c0   :  { %v1661_v48 = vsel %vm213_vm4, %v1641_v45, 0.0 }
 0x8c1   :  { %v1669_v34 = vrot.slane %v1661_v48, 4  ;;  %v1676_v38 = vsel %vm1675_vm10, %v6899_v36, 0.0 }
 0x8c2   :  { %v1678_v4 = vsel %vm213_vm4, %v1676_v38, 0.0 }
 0x8c3   :  { %v1670_v32 = vadd.f32 %v1669_v34, %v1661_v48 }
 0x8c5   :  { %v1671_v50 = vrot.slane %v1670_v32, 2 }
 0x8c7   :  { %v1672_v41 = vadd.f32 %v1671_v50, %v1670_v32 }
 0x8f3   :  { %v1318_v54 = vpop.xlane.xlu1 %1317 }
 0x8f4   :  { %v1342_v15 = vmul.f32 %v1318_v54, %v6657_v11  ;;  %v1703_v54 = vsel %vm213_vm4, %v1691_v37, 0.0 }
 0x8f6   :  { %v1352_v13 = vsub.f32 %v6823_v27, %v1342_v15  ;;  %v1673_v27 = vrot.slane %v1672_v41, 1 }
 0x8f8   :  { %v1432_v59 = vsel %vm1415_vm6, %v1352_v13, 0.0  ;;  %v6911_v52 = vadd.f32 %v1673_v27, %v1672_v41 }
 0x8f9   :  { %v1446_v22 = vsel %vm213_vm4, %v1432_v59, 0.0 }
 0x8fa   :  { %1447 = vadd.xlane.f32.xlu1 %v1446_v22  ;;  %v1677_v12 = vsel %vm1675_vm10, %v6911_v52, 0.0 }
 0x8fb   :  { %v1681_v63 = vsel %vm213_vm4, %v1677_v12, 0.0 }
 0x8fe   :  { %1679 = vadd.xlane.f32.xlu1 %v1678_v4 }
 0x8ff   :  { %v1333_v51 = vpop.xlane.xlu0 %1332 }
 0x900   :  { %v1347_v44 = vmul.f32 %v1333_v51, %v6678_v62 }
 0x902   :  { %v1357_v25 = vsub.f32 %v6831_v56, %v1347_v44 }
 0x904   :  { %v1437_v23 = vsel %vm1415_vm6, %v1357_v25, 0.0 }
 0x905   :  { %v1461_v20 = vsel %vm213_vm4, %v1437_v23, 0.0 }
 0x906   :  { %1462 = vadd.xlane.f32.xlu0 %v1461_v20 }
 0x909   :  { %v931_v58 = vpop.xlane.xlu1 %930 }
 0x90a   :  { %v953_v49 = vmul.f32 %v931_v58, %v6397_v0  ;;  %1682 = vadd.xlane.f32.xlu0 %v1681_v63 }
 0x90c   :  { %v963_v56 = vsub.f32 %v6839_v35, %v953_v49 }
 0x90d   :  { %v946_v46 = vpop.xlane.xlu0 %945 }
 0x90e   :  { %v958_v7 = vmul.f32 %v946_v46, %v6400_v8  ;;  %v1043_v45 = vsel %vm1025_vm8, %v963_v56, 0.0 }
 0x90f   :  { %v1059_v10 = vsel %vm213_vm4, %v1043_v45, 0.0 }
 0x910   :  { %1060 = vadd.xlane.f32.xlu1 %v1059_v10  ;;  %v968_v48 = vsub.f32 %v6847_v47, %v958_v7  ;;  %v1696_v47 = vsel %vm1675_vm10, %v6891_v17, 0.0 }
 0x911   :  { %v1718_v50 = vsel %vm213_vm4, %v1696_v47, 0.0 }
 0x912   :  { %v544_v34 = vpop.xlane.xlu1 %543  ;;  %v1048_v39 = vsel %vm1025_vm8, %v968_v48, 0.0 }
 0x913   :  { %v564_v35 = vmul.f32 %v544_v34, %v6176_v18  ;;  %v1074_v32 = vsel %vm213_vm4, %v1048_v39, 0.0 }
 0x914   :  { %1075 = vadd.xlane.f32.xlu0 %v1074_v32  ;;  %1704 = vadd.xlane.f32.xlu1 %v1703_v54 }
 0x915   :  { %v574_v15 = vsub.f32 %v6855_v19, %v564_v35 }
 0x917   :  { %v654_v59 = vsel %vm635_vm12, %v574_v15, 0.0 }
 0x918   :  { %1719 = vadd.xlane.f32.xlu0 %v1718_v50  ;;  %v672_v18 = vsel %vm221_vm14, %v654_v59, 0.0 }
 0x919   :  { %673 = vadd.xlane.f32.xlu1 %v672_v18 }
 0x91e   :  { %v559_v22 = vpop.xlane.xlu0 %558 }
 0x91f   :  { %v569_v38 = vmul.f32 %v559_v22, %v6183_v29 }
 0x921   :  { %v6945_v41 = vsub.f32 %v6863_v42, %v569_v38 }
 0x923   :  { %v659_v4 = vsel %vm635_vm12, %v6945_v41, 0.0  ;;  %vm1761_vm12 = vcmp.eq.s32.totalorder %v6113_v16, 12 }
 0x924   :  { %v687_v19 = vsel %vm221_vm14, %v659_v4, 0.0 }
 0x925   :  { %688 = vadd.xlane.f32.xlu0 %v687_v19 }
 0x983   :  { %v1448_v27 = vpop.xlane.xlu1 %1447 }
 0x984   :  { %v1472_v51 = vmul.f32 %v1448_v27, %v6769_v43 }
 0x986   :  { %v6952_v44 = vsub.f32 %v1352_v13, %v1472_v51 }
 0x987   :  { %v1680_v29 = vpop.xlane.xlu1 %1679 }
 0x988   :  { %v1562_v23 = vsel %vm1545_vm7, %v6952_v44, 0.0  ;;  %5728 = vrcp.f32 %v1680_v29 }
 0x989   :  { %v1576_v42 = vsel %vm213_vm4, %v1562_v23, 0.0 }
 0x98a   :  { %1577 = vadd.xlane.f32.xlu1 %v1576_v42 }
 0x98f   :  { %v1463_v20 = vpop.xlane.xlu0 %1462 }
 0x990   :  { %v1477_v12 = vmul.f32 %v1463_v20, %v6790_v24 }
 0x992   :  { %v6959_v58 = vsub.f32 %v1357_v25, %v1477_v12 }
 0x993   :  { %v1683_v63 = vpop.xlane.xlu0 %1682 }
 0x994   :  { %5730 = vrcp.f32 %v1683_v63  ;;  %v1567_v13 = vsel %vm1545_vm7, %v6959_v58, 0.0 }
 0x995   :  { %v1591_v49 = vsel %vm213_vm4, %v1567_v13, 0.0  ;;  %v5729_v46 = vpop.eup %5728 }
 0x996   :  { %1592 = vadd.xlane.f32.xlu0 %v1591_v49  ;;  %v6967_v10 = vmul.f32 %v5729_v46, %v6899_v36 }
 0x999   :  { %v1061_v7 = vpop.xlane.xlu1 %1060 }
 0x99a   :  { %v1083_v45 = vmul.f32 %v1061_v7, %v6510_v33 }
 0x99c   :  { %v6969_v37 = vsub.f32 %v963_v56, %v1083_v45 }
 0x99d   :  { %v1076_v25 = vpop.xlane.xlu0 %1075  ;;  %v1705_v34 = vpop.xlane.xlu1 %1704 }
 0x99e   :  { %v1088_v39 = vmul.f32 %v1076_v25, %v6515_v57  ;;  %v1731_v35 = vmul.f32 %v1705_v34, %v6967_v10  ;;  %v1173_v32 = vsel %vm1155_vm13, %v6969_v37, 0.0 }
 0x99f   :  { %v1189_v54 = vsel %vm213_vm4, %v1173_v32, 0.0 }
 0x9a0   :  { %v1741_v47 = vsub.f32 %v6878_v60, %v1731_v35  ;;  %1190 = vadd.xlane.f32.xlu1 %v1189_v54  ;;  %v6979_v36 = vsub.f32 %v968_v48, %v1088_v39 }
 0x9a1   :  { %v5731_v56 = vpop.eup %5730  ;;  %v1720_v48 = vpop.xlane.xlu0 %1719 }
 0x9a2   :  { %v6982_v50 = vmul.f32 %v5731_v56, %v6911_v52  ;;  %v6987_v59 = vsel %vm1631_vm9, %v6967_v10, %v1741_v47  ;;  %v674_v18 = vpop.xlane.xlu1 %673  ;;  %v1178_v22 = vsel %vm1155_vm13, %v6979_v36, 0.0 }
 0x9a3   :  { %v1766_v60 = vsel %vm1761_vm12, %v6987_v59, 0.0  ;;  %v694_v38 = vmul.f32 %v674_v18, %v6246_v21  ;;  %v1204_v52 = vsel %vm213_vm4, %v1178_v22, 0.0 }
 0x9a4   :  { %v1736_v4 = vmul.f32 %v1720_v48, %v6982_v50  ;;  %1205 = vadd.xlane.f32.xlu0 %v1204_v52  ;;  %v1776_v19 = vsel %vm213_vm4, %v1766_v60, 0.0 }
 0x9a5   :  { %v6999_v27 = vsub.f32 %v574_v15, %v694_v38  ;;  %v1784_v51 = vrot.slane %v1776_v19, 4 }
 0x9a6   :  { %v1746_v23 = vsub.f32 %v6891_v17, %v1736_v4 }
 0x9a7   :  { %v784_v29 = vsel %vm765_vm15, %v6999_v27, 0.0  ;;  %v1785_v42 = vadd.f32 %v1784_v51, %v1776_v19 }
 0x9a8   :  { %v7008_v21 = vsel %vm1631_vm9, %v6982_v50, %v1746_v23  ;;  %v802_v20 = vsel %vm221_vm14, %v784_v29, 0.0  ;;  %vm2065_vm9 = vcmp.eq.s32.totalorder %v6044_v2, 14 }
 0x9a9   :  { %v1771_v15 = vsel %vm1761_vm12, %v7008_v21, 0.0  ;;  %803 = vadd.xlane.f32.xlu1 %v802_v20  ;;  %v1786_v12 = vrot.slane %v1785_v42, 2  ;;  %v1826_v38 = vsel %vm1805_vm5, %v7008_v21, 0.0 }
 0x9aa   :  { %v1791_v17 = vsel %vm213_vm4, %v1771_v15, 0.0  ;;  %v1848_v52 = vsel %vm213_vm4, %v1826_v38, 0.0 }
 0x9ab   :  { %v1787_v63 = vadd.f32 %v1786_v12, %v1785_v42  ;;  %v1799_v13 = vrot.slane %v1791_v17, 4 }
 0x9ad   :  { %v1788_v49 = vrot.slane %v1787_v63, 1  ;;  %v1800_v46 = vadd.f32 %v1799_v13, %v1791_v17 }
 0x9ae   :  { %v689_v7 = vpop.xlane.xlu0 %688 }
 0x9af   :  { %v699_v45 = vmul.f32 %v689_v7, %v6249_v26  ;;  %v7016_v25 = vadd.f32 %v1788_v49, %v1787_v63  ;;  %v1801_v34 = vrot.slane %v1800_v46, 2  ;;  %v1821_v26 = vsel %vm1805_vm5, %v6987_v59, 0.0 }
 0x9b0   :  { %v1833_v22 = vsel %vm213_vm4, %v1821_v26, 0.0 }
 0x9b1   :  { %v709_v39 = vsub.f32 %v6945_v41, %v699_v45  ;;  %v1806_v35 = vsel %vm1805_vm5, %v7016_v25, 0.0  ;;  %v1802_v32 = vadd.f32 %v1801_v34, %v1800_v46 }
 0x9b2   :  { %v1808_v54 = vsel %vm213_vm4, %v1806_v35, 0.0 }
 0x9b3   :  { %1809 = vadd.xlane.f32.xlu1 %v1808_v54  ;;  %v789_v47 = vsel %vm765_vm15, %v709_v39, 0.0  ;;  %v1803_v56 = vrot.slane %v1802_v32, 1  ;;  %vm1891_vm15 = vcmp.eq.s32.totalorder %v6113_v16, 13 }
 0x9b4   :  { %v817_v18 = vsel %vm221_vm14, %v789_v47, 0.0 }
 0x9b5   :  { %818 = vadd.xlane.f32.xlu0 %v817_v18  ;;  %v1804_v41 = vadd.f32 %v1803_v56, %v1802_v32 }
 0x9b7   :  { %1834 = vadd.xlane.f32.xlu1 %v1833_v22  ;;  %v1807_v60 = vsel %vm1805_vm5, %v1804_v41, 0.0 }
 0x9b8   :  { %v1811_v48 = vsel %vm213_vm4, %v1807_v60, 0.0 }
 0x9b9   :  { %1812 = vadd.xlane.f32.xlu0 %v1811_v48 }
 0x9bd   :  { %1849 = vadd.xlane.f32.xlu0 %v1848_v52 }
 0xa13   :  { %v1578_v4 = vpop.xlane.xlu1 %1577 }
 0xa14   :  { %v1602_v19 = vmul.f32 %v1578_v4, %v6870_v9 }
 0xa16   :  { %v7040_v51 = vsub.f32 %v6952_v44, %v1602_v19 }
 0xa18   :  { %v1692_v23 = vsel %vm1675_vm10, %v7040_v51, 0.0 }
 0xa19   :  { %v1706_v29 = vsel %vm213_vm4, %v1692_v23, 0.0 }
 0xa1a   :  { %1707 = vadd.xlane.f32.xlu1 %v1706_v29 }
 0xa1f   :  { %v1593_v42 = vpop.xlane.xlu0 %1592 }
 0xa20   :  { %v1607_v20 = vmul.f32 %v1593_v42, %v6880_v31 }
 0xa22   :  { %v7048_v15 = vsub.f32 %v6959_v58, %v1607_v20 }
 0xa24   :  { %v1697_v12 = vsel %vm1675_vm10, %v7048_v15, 0.0 }
 0xa25   :  { %v1721_v44 = vsel %vm213_vm4, %v1697_v12, 0.0 }
 0xa26   :  { %1722 = vadd.xlane.f32.xlu0 %v1721_v44 }
 0xa29   :  { %v1191_v17 = vpop.xlane.xlu1 %1190 }
 0xa2a   :  { %v1213_v63 = vmul.f32 %v1191_v17, %v6581_v30 }
 0xa2c   :  { %v7056_v13 = vsub.f32 %v6969_v37, %v1213_v63 }
 0xa2d   :  { %v1206_v49 = vpop.xlane.xlu0 %1205 }
 0xa2e   :  { %v1218_v46 = vmul.f32 %v1206_v49, %v6591_v5  ;;  %v1303_v58 = vsel %vm1285_vm0, %v7056_v13, 0.0 }
 0xa2f   :  { %v1319_v7 = vsel %vm213_vm4, %v1303_v58, 0.0 }
 0xa30   :  { %v7064_v45 = vsub.f32 %v6979_v36, %v1218_v46  ;;  %1320 = vadd.xlane.f32.xlu1 %v1319_v7 }
 0xa32   :  { %v804_v34 = vpop.xlane.xlu1 %803  ;;  %v1308_v35 = vsel %vm1285_vm0, %v7064_v45, 0.0 }
 0xa33   :  { %v824_v37 = vmul.f32 %v804_v34, %v6317_v28  ;;  %v1334_v32 = vsel %vm213_vm4, %v1308_v35, 0.0 }
 0xa34   :  { %1335 = vadd.xlane.f32.xlu0 %v1334_v32 }
 0xa35   :  { %v7072_v54 = vsub.f32 %v6999_v27, %v824_v37 }
 0xa37   :  { %v914_v47 = vsel %vm895_vm3, %v7072_v54, 0.0 }
 0xa38   :  { %v932_v36 = vsel %vm221_vm14, %v914_v47, 0.0 }
 0xa39   :  { %933 = vadd.xlane.f32.xlu1 %v932_v36 }
 0xa3c   :  { %v1810_v26 = vpop.xlane.xlu1 %1809 }
 0xa3d   :  { %5732 = vrcp.f32 %v1810_v26 }
 0xa3e   :  { %v819_v56 = vpop.xlane.xlu0 %818 }
 0xa3f   :  { %v829_v18 = vmul.f32 %v819_v56, %v6319_v40 }
 0xa40   :  { %v1835_v52 = vpop.xlane.xlu1 %1834 }
 0xa41   :  { %v7079_v22 = vsub.f32 %v709_v39, %v829_v18 }
 0xa42   :  { %v1813_v28 = vpop.xlane.xlu0 %1812 }
 0xa43   :  { %5734 = vrcp.f32 %v1813_v28  ;;  %v919_v27 = vsel %vm895_vm3, %v7079_v22, 0.0  ;;  %vm1935_vm3 = vcmp.eq.s32.totalorder %v6044_v2, 13 }
 0xa44   :  { %v947_v60 = vsel %vm221_vm14, %v919_v27, 0.0 }
 0xa45   :  { %948 = vadd.xlane.f32.xlu0 %v947_v60 }
 0xa46   :  { %v1850_v29 = vpop.xlane.xlu0 %1849 }
 0xa4a   :  { %v5733_v48 = vpop.eup %5732 }
 0xa4b   :  { %v7086_v38 = vmul.f32 %v5733_v48, %v7016_v25 }
 0xa4d   :  { %v1861_v4 = vmul.f32 %v1835_v52, %v7086_v38 }
 0xa4f   :  { %v1871_v40 = vsub.f32 %v6987_v59, %v1861_v4 }
 0xa50   :  { %v5735_v39 = vpop.eup %5734 }
 0xa51   :  { %v7094_v19 = vsel %vm1761_vm12, %v7086_v38, %v1871_v40  ;;  %v7096_v23 = vmul.f32 %v5735_v39, %v1804_v41 }
 0xa52   :  { %v1896_v25 = vsel %vm1891_vm15, %v7094_v19, 0.0  ;;  %v1951_v4 = vsel %vm1935_vm3, %v7094_v19, 0.0 }
 0xa53   :  { %v1866_v42 = vmul.f32 %v1850_v29, %v7096_v23  ;;  %v1906_v20 = vsel %vm213_vm4, %v1896_v25, 0.0  ;;  %v1963_v40 = vsel %vm213_vm4, %v1951_v4, 0.0 }
 0xa54   :  { %v1914_v12 = vrot.slane %v1906_v20, 4 }
 0xa55   :  { %v1876_v59 = vsub.f32 %v7008_v21, %v1866_v42 }
 0xa56   :  { %v1915_v44 = vadd.f32 %v1914_v12, %v1906_v20 }
 0xa57   :  { %v7107_v17 = vsel %vm1761_vm12, %v7096_v23, %v1876_v59  ;;  %vm2151_vm12 = vcmp.eq.s32.totalorder %v6113_v16, 15 }
 0xa58   :  { %v1901_v41 = vsel %vm1891_vm15, %v7107_v17, 0.0  ;;  %v1916_v63 = vrot.slane %v1915_v44, 2  ;;  %v1956_v20 = vsel %vm1935_vm3, %v7107_v17, 0.0 }
 0xa59   :  { %v1921_v49 = vsel %vm213_vm4, %v1901_v41, 0.0  ;;  %v1978_v59 = vsel %vm213_vm4, %v1956_v20, 0.0 }
 0xa5a   :  { %v1917_v46 = vadd.f32 %v1916_v63, %v1915_v44  ;;  %v1929_v58 = vrot.slane %v1921_v49, 4 }
 0xa5c   :  { %v1918_v7 = vrot.slane %v1917_v46, 1  ;;  %v1930_v34 = vadd.f32 %v1929_v58, %v1921_v49 }
 0xa5e   :  { %v1919_v35 = vadd.f32 %v1918_v7, %v1917_v46  ;;  %v1931_v37 = vrot.slane %v1930_v34, 2 }
 0xa60   :  { %v1936_v21 = vsel %vm1935_vm3, %v1919_v35, 0.0  ;;  %v1932_v32 = vadd.f32 %v1931_v37, %v1930_v34 }
 0xa61   :  { %v1938_v47 = vsel %vm213_vm4, %v1936_v21, 0.0 }
 0xa62   :  { %1939 = vadd.xlane.f32.xlu1 %v1938_v47  ;;  %v1933_v36 = vrot.slane %v1932_v32, 1 }
 0xa64   :  { %v7117_v26 = vadd.f32 %v1933_v36, %v1932_v32 }
 0xa66   :  { %v1937_v56 = vsel %vm1935_vm3, %v7117_v26, 0.0 }
 0xa67   :  { %v1941_v18 = vsel %vm213_vm4, %v1937_v56, 0.0 }
 0xa68   :  { %1942 = vadd.xlane.f32.xlu0 %v1941_v18 }
 0xaa3   :  { %v1708_v28 = vpop.xlane.xlu1 %1707 }
 0xaa4   :  { %v1732_v27 = vmul.f32 %v1708_v28, %v6967_v10 }
 0xaa6   :  { %v1742_v60 = vsub.f32 %v7040_v51, %v1732_v27 }
 0xaa8   :  { %v1822_v48 = vsel %vm1805_vm5, %v1742_v60, 0.0 }
 0xaa9   :  { %v1836_v52 = vsel %vm213_vm4, %v1822_v48, 0.0 }
 0xaaa   :  { %1837 = vadd.xlane.f32.xlu1 %v1836_v52 }
 0xaae   :  { %1964 = vadd.xlane.f32.xlu1 %v1963_v40 }
 0xaaf   :  { %v1723_v39 = vpop.xlane.xlu0 %1722 }
 0xab0   :  { %v1737_v25 = vmul.f32 %v1723_v39, %v6982_v50 }
 0xab2   :  { %v1747_v29 = vsub.f32 %v7048_v15, %v1737_v25 }
 0xab4   :  { %v1827_v51 = vsel %vm1805_vm5, %v1747_v29, 0.0 }
 0xab5   :  { %v1851_v42 = vsel %vm213_vm4, %v1827_v51, 0.0 }
 0xab6   :  { %1852 = vadd.xlane.f32.xlu0 %v1851_v42 }
 0xab9   :  { %v1321_v12 = vpop.xlane.xlu1 %1320 }
 0xaba   :  { %v1343_v44 = vmul.f32 %v1321_v12, %v6657_v11  ;;  %1979 = vadd.xlane.f32.xlu0 %v1978_v59 }
 0xabc   :  { %v7143_v41 = vsub.f32 %v7056_v13, %v1343_v44 }
 0xabd   :  { %v1336_v15 = vpop.xlane.xlu0 %1335 }
 0xabe   :  { %v1348_v63 = vmul.f32 %v1336_v15, %v6678_v62  ;;  %v1433_v49 = vsel %vm1415_vm6, %v7143_v41, 0.0 }
 0xabf   :  { %v1449_v46 = vsel %vm213_vm4, %v1433_v49, 0.0 }
 0xac0   :  { %v7151_v58 = vsub.f32 %v7064_v45, %v1348_v63  ;;  %1450 = vadd.xlane.f32.xlu1 %v1449_v46 }
 0xac2   :  { %v934_v7 = vpop.xlane.xlu1 %933  ;;  %v1438_v34 = vsel %vm1415_vm6, %v7151_v58, 0.0 }
 0xac3   :  { %v954_v13 = vmul.f32 %v934_v7, %v6397_v0  ;;  %v1464_v37 = vsel %vm213_vm4, %v1438_v34, 0.0 }
 0xac4   :  { %1465 = vadd.xlane.f32.xlu0 %v1464_v37 }
 0xac5   :  { %v7159_v21 = vsub.f32 %v7072_v54, %v954_v13 }
 0xac7   :  { %v1044_v32 = vsel %vm1025_vm8, %v7159_v21, 0.0 }
 0xac8   :  { %v1062_v45 = vsel %vm221_vm14, %v1044_v32, 0.0 }
 0xac9   :  { %1063 = vadd.xlane.f32.xlu1 %v1062_v45 }
 0xace   :  { %v949_v47 = vpop.xlane.xlu0 %948 }
 0xacf   :  { %v959_v36 = vmul.f32 %v949_v47, %v6400_v8 }
 0xad1   :  { %v7167_v56 = vsub.f32 %v7079_v22, %v959_v36 }
 0xad3   :  { %v1049_v0 = vsel %vm1025_vm8, %v7167_v56, 0.0  ;;  %vm2021_vm8 = vcmp.eq.s32.totalorder %v6113_v16, 14 }
 0xad4   :  { %v1077_v54 = vsel %vm221_vm14, %v1049_v0, 0.0 }
 0xad5   :  { %1078 = vadd.xlane.f32.xlu0 %v1077_v54 }
 0xaeb   :  { %v1940_v18 = vpop.xlane.xlu1 %1939 }
 0xaec   :  { %5736 = vrcp.f32 %v1940_v18 }
 0xaf1   :  { %v1943_v28 = vpop.xlane.xlu0 %1942 }
 0xaf2   :  { %5738 = vrcp.f32 %v1943_v28 }
 0xaf9   :  { %v5737_v27 = vpop.eup %5736 }
 0xafa   :  { %v7174_v4 = vmul.f32 %v5737_v27, %v1919_v35 }
 0xaff   :  { %v5739_v20 = vpop.eup %5738 }
 0xb33   :  { %v1838_v48 = vpop.xlane.xlu1 %1837 }
 0xb34   :  { %v1862_v52 = vmul.f32 %v1838_v48, %v7086_v38 }
 0xb36   :  { %v7176_v8 = vsub.f32 %v1742_v60, %v1862_v52 }
 0xb37   :  { %v1965_v22 = vpop.xlane.xlu1 %1964 }
 0xb38   :  { %v1991_v40 = vmul.f32 %v1965_v22, %v7174_v4  ;;  %v1952_v39 = vsel %vm1935_vm3, %v7176_v8, 0.0 }
 0xb39   :  { %v1966_v25 = vsel %vm213_vm4, %v1952_v39, 0.0 }
 0xb3a   :  { %v2001_v51 = vsub.f32 %v7094_v19, %v1991_v40  ;;  %1967 = vadd.xlane.f32.xlu1 %v1966_v25  ;;  %v7196_v19 = vmul.f32 %v5739_v20, %v7117_v26 }
 0xb3c   :  { %v7188_v35 = vsel %vm1891_vm15, %v7174_v4, %v2001_v51 }
 0xb3d   :  { %v2026_v60 = vsel %vm2021_vm8, %v7188_v35, 0.0 }
 0xb3e   :  { %v2036_v42 = vsel %vm213_vm4, %v2026_v60, 0.0 }
 0xb3f   :  { %v1853_v12 = vpop.xlane.xlu0 %1852  ;;  %v2044_v59 = vrot.slane %v2036_v42, 4 }
 0xb40   :  { %v1867_v44 = vmul.f32 %v1853_v12, %v7096_v23 }
 0xb41   :  { %v2045_v15 = vadd.f32 %v2044_v59, %v2036_v42 }
 0xb42   :  { %v7198_v63 = vsub.f32 %v1747_v29, %v1867_v44 }
 0xb43   :  { %v1980_v49 = vpop.xlane.xlu0 %1979  ;;  %v2046_v46 = vrot.slane %v2045_v15, 2 }
 0xb44   :  { %v1996_v7 = vmul.f32 %v1980_v49, %v7196_v19  ;;  %v1957_v34 = vsel %vm1935_vm3, %v7198_v63, 0.0 }
 0xb45   :  { %v1981_v13 = vsel %vm213_vm4, %v1957_v34, 0.0  ;;  %v2047_v37 = vadd.f32 %v2046_v46, %v2045_v15 }
 0xb46   :  { %v2006_v32 = vsub.f32 %v7107_v17, %v1996_v7  ;;  %1982 = vadd.xlane.f32.xlu0 %v1981_v13  ;;  %v2081_v7 = vsel %vm2065_vm9, %v7188_v35, 0.0 }
 0xb47   :  { %v2048_v29 = vrot.slane %v2047_v37, 1  ;;  %v2093_v34 = vsel %vm213_vm4, %v2081_v7, 0.0 }
 0xb48   :  { %v7209_v26 = vsel %vm1891_vm15, %v7196_v19, %v2006_v32  ;;  %vm2195_vm15 = vcmp.eq.s32.totalorder %v6044_v2, 15 }
 0xb49   :  { %v2031_v45 = vsel %vm2021_vm8, %v7209_v26, 0.0  ;;  %v1451_v47 = vpop.xlane.xlu1 %1450  ;;  %v7217_v17 = vadd.f32 %v2048_v29, %v2047_v37 }
 0xb4a   :  { %v1473_v36 = vmul.f32 %v1451_v47, %v6769_v43  ;;  %v2051_v0 = vsel %vm213_vm4, %v2031_v45, 0.0  ;;  %v2086_v45 = vsel %vm2065_vm9, %v7209_v26, 0.0 }
 0xb4b   :  { %v2059_v54 = vrot.slane %v2051_v0, 4  ;;  %v2108_v47 = vsel %vm213_vm4, %v2086_v45, 0.0 }
 0xb4c   :  { %v1483_v18 = vsub.f32 %v7143_v41, %v1473_v36  ;;  %v2066_v41 = vsel %vm2065_vm9, %v7217_v17, 0.0 }
 0xb4d   :  { %v1466_v28 = vpop.xlane.xlu0 %1465  ;;  %v2060_v27 = vadd.f32 %v2059_v54, %v2051_v0  ;;  %v2068_v12 = vsel %vm213_vm4, %v2066_v41, 0.0 }
 0xb4e   :  { %v1478_v48 = vmul.f32 %v1466_v28, %v6790_v24  ;;  %v1563_v52 = vsel %vm1545_vm7, %v1483_v18, 0.0 }
 0xb4f   :  { %v1579_v22 = vsel %vm213_vm4, %v1563_v52, 0.0  ;;  %v2061_v40 = vrot.slane %v2060_v27, 2 }
 0xb50   :  { %v1488_v39 = vsub.f32 %v7151_v58, %v1478_v48  ;;  %1580 = vadd.xlane.f32.xlu1 %v1579_v22 }
 0xb51   :  { %v2062_v25 = vadd.f32 %v2061_v40, %v2060_v27 }
 0xb52   :  { %v1064_v51 = vpop.xlane.xlu1 %1063  ;;  %v1568_v60 = vsel %vm1545_vm7, %v1488_v39, 0.0 }
 0xb53   :  { %v1084_v42 = vmul.f32 %v1064_v51, %v6510_v33  ;;  %v1594_v20 = vsel %vm213_vm4, %v1568_v60, 0.0  ;;  %v2063_v59 = vrot.slane %v2062_v25, 1 }
 0xb54   :  { %1595 = vadd.xlane.f32.xlu0 %v1594_v20  ;;  %2069 = vadd.xlane.f32.xlu1 %v2068_v12 }
 0xb55   :  { %v1094_v58 = vsub.f32 %v7159_v21, %v1084_v42  ;;  %v2064_v44 = vadd.f32 %v2063_v59, %v2062_v25 }
 0xb57   :  { %v2067_v15 = vsel %vm2065_vm9, %v2064_v44, 0.0  ;;  %v1174_v49 = vsel %vm1155_vm13, %v1094_v58, 0.0 }
 0xb58   :  { %v2071_v46 = vsel %vm213_vm4, %v2067_v15, 0.0  ;;  %v1192_v33 = vsel %vm221_vm14, %v1174_v49, 0.0 }
 0xb59   :  { %2072 = vadd.xlane.f32.xlu0 %v2071_v46  ;;  %1193 = vadd.xlane.f32.xlu1 %v1192_v33 }
 0xb5d   :  { %2094 = vadd.xlane.f32.xlu1 %v2093_v34 }
 0xb5e   :  { %v1079_v21 = vpop.xlane.xlu0 %1078 }
 0xb5f   :  { %v1089_v13 = vmul.f32 %v1079_v21, %v6515_v57 }
 0xb61   :  { %v1099_v37 = vsub.f32 %v7167_v56, %v1089_v13 }
 0xb63   :  { %v1179_v32 = vsel %vm1155_vm13, %v1099_v37, 0.0 }
 0xb64   :  { %v1207_v29 = vsel %vm221_vm14, %v1179_v32, 0.0 }
 0xb65   :  { %1208 = vadd.xlane.f32.xlu0 %v1207_v29 }
 0xb69   :  { %2109 = vadd.xlane.f32.xlu0 %v2108_v47 }
 0xbc3   :  { %v1968_v36 = vpop.xlane.xlu1 %1967 }
 0xbc4   :  { %v1992_v0 = vmul.f32 %v1968_v36, %v7174_v4 }
 0xbc6   :  { %v7255_v57 = vsub.f32 %v7176_v8, %v1992_v0 }
 0xbc8   :  { %v2082_v56 = vsel %vm2065_vm9, %v7255_v57, 0.0 }
 0xbc9   :  { %v2096_v54 = vsel %vm213_vm4, %v2082_v56, 0.0 }
 0xbca   :  { %2097 = vadd.xlane.f32.xlu1 %v2096_v54 }
 0xbcf   :  { %v1983_v28 = vpop.xlane.xlu0 %1982 }
 0xbd0   :  { %v1997_v27 = vmul.f32 %v1983_v28, %v7196_v19 }
 0xbd2   :  { %v7263_v48 = vsub.f32 %v7198_v63, %v1997_v27 }
 0xbd4   :  { %v2087_v52 = vsel %vm2065_vm9, %v7263_v48, 0.0 }
 0xbd5   :  { %v2111_v8 = vsel %vm213_vm4, %v2087_v52, 0.0 }
 0xbd6   :  { %2112 = vadd.xlane.f32.xlu0 %v2111_v8 }
 0xbd9   :  { %v1581_v22 = vpop.xlane.xlu1 %1580 }
 0xbda   :  { %v1603_v40 = vmul.f32 %v1581_v22, %v6870_v9 }
 0xbdc   :  { %v7270_v41 = vsub.f32 %v1483_v18, %v1603_v40 }
 0xbdd   :  { %v1596_v25 = vpop.xlane.xlu0 %1595  ;;  %v2070_v51 = vpop.xlane.xlu1 %2069 }
 0xbde   :  { %v1608_v60 = vmul.f32 %v1596_v25, %v6880_v31  ;;  %5740 = vrcp.f32 %v2070_v51  ;;  %v1693_v63 = vsel %vm1675_vm10, %v7270_v41, 0.0 }
 0xbdf   :  { %v1709_v42 = vsel %vm213_vm4, %v1693_v63, 0.0 }
 0xbe0   :  { %v7277_v20 = vsub.f32 %v1488_v39, %v1608_v60  ;;  %1710 = vadd.xlane.f32.xlu1 %v1709_v42 }
 0xbe2   :  { %v2073_v12 = vpop.xlane.xlu0 %2072  ;;  %v1194_v59 = vpop.xlane.xlu1 %1193  ;;  %v1698_v18 = vsel %vm1675_vm10, %v7277_v20, 0.0 }
 0xbe3   :  { %5742 = vrcp.f32 %v2073_v12  ;;  %v1214_v15 = vmul.f32 %v1194_v59, %v6581_v30  ;;  %v1724_v49 = vsel %vm213_vm4, %v1698_v18, 0.0 }
 0xbe4   :  { %1725 = vadd.xlane.f32.xlu0 %v1724_v49 }
 0xbe5   :  { %v7284_v46 = vsub.f32 %v1094_v58, %v1214_v15 }
 0xbe6   :  { %v2095_v21 = vpop.xlane.xlu1 %2094 }
 0xbe7   :  { %v1304_v39 = vsel %vm1285_vm0, %v7284_v46, 0.0 }
 0xbe8   :  { %v1322_v33 = vsel %vm221_vm14, %v1304_v39, 0.0 }
 0xbe9   :  { %1323 = vadd.xlane.f32.xlu1 %v1322_v33 }
 0xbeb   :  { %v5741_v7 = vpop.eup %5740 }
 0xbec   :  { %v7291_v34 = vmul.f32 %v5741_v7, %v7217_v17 }
 0xbee   :  { %v2121_v13 = vmul.f32 %v2095_v21, %v7291_v34  ;;  %v1209_v32 = vpop.xlane.xlu0 %1208 }
 0xbef   :  { %v1219_v29 = vmul.f32 %v1209_v32, %v6591_v5 }
 0xbf0   :  { %v5743_v45 = vpop.eup %5742  ;;  %v2131_v58 = vsub.f32 %v7188_v35, %v2121_v13 }
 0xbf1   :  { %v7297_v47 = vmul.f32 %v5743_v45, %v2064_v44  ;;  %v7299_v36 = vsub.f32 %v1099_v37, %v1219_v29 }
 0xbf2   :  { %v7304_v17 = vsel %vm2021_vm8, %v7291_v34, %v2131_v58  ;;  %v2110_v0 = vpop.xlane.xlu0 %2109  ;;  %v1170_v58 = vsel %vm1155_vm13, %v6521_v61, 0.0 }
 0xbf3   :  { %v2156_v56 = vsel %vm2151_vm12, %v7304_v17, 0.0  ;;  %v2126_v54 = vmul.f32 %v2110_v0, %v7297_v47  ;;  %v1309_v35 = vsel %vm1285_vm0, %v7299_v36, 0.0  ;;  %v1180_v0 = vsel %vm213_vm4, %v1170_v58, 0.0 }
 0xbf4   :  { %v1337_v44 = vsel %vm221_vm14, %v1309_v35, 0.0  ;;  %v2166_v37 = vsel %vm213_vm4, %v2156_v56, 0.0 }
 0xbf5   :  { %v2136_v28 = vsub.f32 %v7209_v26, %v2126_v54  ;;  %1338 = vadd.xlane.f32.xlu0 %v1337_v44  ;;  %v2174_v27 = vrot.slane %v2166_v37, 4 }
 0xbf7   :  { %v7319_v52 = vsel %vm2021_vm8, %v7297_v47, %v2136_v28  ;;  %v2175_v8 = vadd.f32 %v2174_v27, %v2166_v37  ;;  %v1175_v37 = vsel %vm1155_vm13, %v6532_v6, 0.0  ;;  %vm2282_vm13 = vcmp.eq.s32.totalorder %v6240_v14, 16 }
 0xbf8   :  { %v2161_v22 = vsel %vm2151_vm12, %v7319_v52, 0.0  ;;  %v1195_v27 = vsel %vm213_vm4, %v1175_v37, 0.0  ;;  %vm2325_vm8 = vcmp.eq.s32.totalorder %v6044_v2, 16 }
 0xbf9   :  { %v2176_v40 = vrot.slane %v2175_v8, 2  ;;  %v2181_v25 = vsel %vm213_vm4, %v2161_v22, 0.0 }
 0xbfa   :  { %v2189_v51 = vrot.slane %v2181_v25, 4 }
 0xbfb   :  { %v2177_v60 = vadd.f32 %v2176_v40, %v2175_v8 }
 0xbfc   :  { %v2190_v63 = vadd.f32 %v2189_v51, %v2181_v25 }
 0xbfd   :  { %v2178_v42 = vrot.slane %v2177_v60, 1 }
 0xbfe   :  { %v2191_v26 = vrot.slane %v2190_v63, 2 }
 0xbff   :  { %v2179_v12 = vadd.f32 %v2178_v42, %v2177_v60 }
 0xc00   :  { %v2192_v59 = vadd.f32 %v2191_v26, %v2190_v63 }
 0xc01   :  { %v2196_v18 = vsel %vm2195_vm15, %v2179_v12, 0.0 }
 0xc02   :  { %v2198_v15 = vsel %vm213_vm4, %v2196_v18, 0.0  ;;  %v2193_v49 = vrot.slane %v2192_v59, 1 }
 0xc03   :  { %2199 = vadd.xlane.f32.xlu1 %v2198_v15 }
 0xc04   :  { %v7329_v39 = vadd.f32 %v2193_v49, %v2192_v59 }
 0xc06   :  { %v2197_v33 = vsel %vm2195_vm15, %v7329_v39, 0.0 }
 0xc07   :  { %v2201_v7 = vsel %vm213_vm4, %v2197_v33, 0.0 }
 0xc08   :  { %2202 = vadd.xlane.f32.xlu0 %v2201_v7 }
 0xc53   :  { %v2098_v21 = vpop.xlane.xlu1 %2097 }
 0xc54   :  { %v2122_v13 = vmul.f32 %v2098_v21, %v7291_v34 }
 0xc56   :  { %v2132_v32 = vsub.f32 %v7255_v57, %v2122_v13 }
 0xc58   :  { %v2212_v29 = vsel %vm2195_vm15, %v2132_v32, 0.0 }
 0xc59   :  { %v2226_v45 = vsel %vm213_vm4, %v2212_v29, 0.0 }
 0xc5a   :  { %2227 = vadd.xlane.f32.xlu1 %v2226_v45 }
 0xc5e   :  { %1181 = vadd.xlane.f32.xlu1 %v1180_v0 }
 0xc5f   :  { %v2113_v56 = vpop.xlane.xlu0 %2112 }
 0xc60   :  { %v2127_v54 = vmul.f32 %v2113_v56, %v7297_v47 }
 0xc62   :  { %v2137_v35 = vsub.f32 %v7263_v48, %v2127_v54 }
 0xc64   :  { %v2217_v57 = vsel %vm2195_vm15, %v2137_v35, 0.0 }
 0xc65   :  { %v2241_v44 = vsel %vm213_vm4, %v2217_v57, 0.0 }
 0xc66   :  { %2242 = vadd.xlane.f32.xlu0 %v2241_v44 }
 0xc69   :  { %v1711_v28 = vpop.xlane.xlu1 %1710 }
 0xc6a   :  { %v1733_v8 = vmul.f32 %v1711_v28, %v6967_v10  ;;  %1196 = vadd.xlane.f32.xlu0 %v1195_v27 }
 0xc6c   :  { %v7355_v22 = vsub.f32 %v7270_v41, %v1733_v8 }
 0xc6d   :  { %v1726_v48 = vpop.xlane.xlu0 %1725 }
 0xc6e   :  { %v1738_v40 = vmul.f32 %v1726_v48, %v6982_v50  ;;  %v1823_v25 = vsel %vm1805_vm5, %v7355_v22, 0.0 }
 0xc6f   :  { %v1839_v51 = vsel %vm213_vm4, %v1823_v25, 0.0 }
 0xc70   :  { %v7363_v60 = vsub.f32 %v7277_v20, %v1738_v40  ;;  %1840 = vadd.xlane.f32.xlu1 %v1839_v51 }
 0xc72   :  { %v1324_v63 = vpop.xlane.xlu1 %1323  ;;  %v1828_v42 = vsel %vm1805_vm5, %v7363_v60, 0.0 }
 0xc73   :  { %v1344_v41 = vmul.f32 %v1324_v63, %v6657_v11  ;;  %v1854_v26 = vsel %vm213_vm4, %v1828_v42, 0.0 }
 0xc74   :  { %1855 = vadd.xlane.f32.xlu0 %v1854_v26 }
 0xc75   :  { %v7371_v59 = vsub.f32 %v7284_v46, %v1344_v41 }
 0xc77   :  { %v1434_v18 = vsel %vm1415_vm6, %v7371_v59, 0.0 }
 0xc78   :  { %v1452_v20 = vsel %vm221_vm14, %v1434_v18, 0.0 }
 0xc79   :  { %1453 = vadd.xlane.f32.xlu1 %v1452_v20 }
 0xc7e   :  { %v1339_v15 = vpop.xlane.xlu0 %1338 }
 0xc7f   :  { %v1349_v49 = vmul.f32 %v1339_v15, %v6678_v62 }
 0xc81   :  { %v7379_v33 = vsub.f32 %v7299_v36, %v1349_v49 }
 0xc83   :  { %v1439_v7 = vsel %vm1415_vm6, %v7379_v33, 0.0 }
 0xc84   :  { %v1467_v46 = vsel %vm221_vm14, %v1439_v7, 0.0 }
 0xc85   :  { %1468 = vadd.xlane.f32.xlu0 %v1467_v46 }
 0xc8c   :  { %v2200_v21 = vpop.xlane.xlu1 %2199 }
 0xc8d   :  { %5744 = vrcp.f32 %v2200_v21 }
 0xc91   :  { %v2203_v13 = vpop.xlane.xlu0 %2202 }
 0xc92   :  { %5746 = vrcp.f32 %v2203_v13 }
 0xc9a   :  { %v5745_v29 = vpop.eup %5744 }
 0xc9b   :  { %v7385_v45 = vmul.f32 %v5745_v29, %v2179_v12 }
 0xc9f   :  { %v5747_v37 = vpop.eup %5746 }
 0xca0   :  { %v7397_v27 = vmul.f32 %v5747_v37, %v7329_v39 }
 0xce3   :  { %v2228_v58 = vpop.xlane.xlu1 %2227 }
 0xce4   :  { %v2252_v0 = vmul.f32 %v2228_v58, %v7385_v45 }
 0xce6   :  { %v7389_v36 = vsub.f32 %v2132_v32, %v2252_v0 }
 0xce7   :  { %v1182_v44 = vpop.xlane.xlu1 %1181 }
 0xce8   :  { %v2287_v56 = vsel %vm2282_vm13, %v7389_v36, 0.0  ;;  %v1210_v12 = vmul.f32 %v1182_v44, %v6581_v30 }
 0xce9   :  { %v2298_v54 = vsel %vm213_vm4, %v2287_v56, 0.0 }
 0xcea   :  { %v2304_v57 = vrot.slane %v2298_v54, 4  ;;  %v1220_v25 = vsub.f32 %v6521_v61, %v1210_v12 }
 0xcec   :  { %v2305_v28 = vadd.f32 %v2304_v57, %v2298_v54  ;;  %v1230_v39 = vsel %vm1110_vm11, %v6581_v30, %v1220_v25 }
 0xced   :  { %v1300_v15 = vsel %vm1285_vm0, %v1230_v39, 0.0 }
 0xcee   :  { %v2306_v8 = vrot.slane %v2305_v28, 2  ;;  %v1310_v30 = vsel %vm213_vm4, %v1300_v15, 0.0 }
 0xcef   :  { %v2243_v48 = vpop.xlane.xlu0 %2242 }
 0xcf0   :  { %v2257_v32 = vmul.f32 %v2243_v48, %v7397_v27  ;;  %v2307_v40 = vadd.f32 %v2306_v8, %v2305_v28 }
 0xcf2   :  { %v7401_v51 = vsub.f32 %v2137_v35, %v2257_v32  ;;  %v2308_v63 = vrot.slane %v2307_v40, 1 }
 0xcf3   :  { %v1197_v20 = vpop.xlane.xlu0 %1196 }
 0xcf4   :  { %v2292_v42 = vsel %vm2282_vm13, %v7401_v51, 0.0  ;;  %v7406_v41 = vadd.f32 %v2308_v63, %v2307_v40  ;;  %v1215_v7 = vmul.f32 %v1197_v20, %v6591_v5  ;;  %v2347_v20 = vsel %vm2325_vm8, %v7401_v51, 0.0 }
 0xcf5   :  { %v2313_v26 = vsel %vm213_vm4, %v2292_v42, 0.0 }
 0xcf6   :  { %v2319_v18 = vrot.slane %v2313_v26, 4  ;;  %v2326_v61 = vsel %vm2325_vm8, %v7406_v41, 0.0  ;;  %v1225_v0 = vsub.f32 %v6532_v6, %v1215_v7 }
 0xcf7   :  { %v2328_v35 = vsel %vm213_vm4, %v2326_v61, 0.0 }
 0xcf8   :  { %2329 = vadd.xlane.f32.xlu1 %v2328_v35  ;;  %v2320_v49 = vadd.f32 %v2319_v18, %v2313_v26  ;;  %v1235_v6 = vsel %vm1110_vm11, %v6591_v5, %v1225_v0  ;;  %v2371_v35 = vsel %vm213_vm4, %v2347_v20, 0.0  ;;  %vm2412_vm11 = vcmp.eq.s32.totalorder %v6240_v14, 17 }
 0xcf9   :  { %v1841_v46 = vpop.xlane.xlu1 %1840  ;;  %v1305_v63 = vsel %vm1285_vm0, %v1235_v6, 0.0  ;;  %vm2455_vm0 = vcmp.eq.s32.totalorder %v6044_v2, 17 }
 0xcfa   :  { %v1863_v21 = vmul.f32 %v1841_v46, %v7086_v38  ;;  %v2321_v13 = vrot.slane %v2320_v49, 2  ;;  %v1325_v5 = vsel %vm213_vm4, %v1305_v63, 0.0 }
 0xcfc   :  { %v1873_v29 = vsub.f32 %v7355_v22, %v1863_v21  ;;  %1311 = vadd.xlane.f32.xlu1 %v1310_v30  ;;  %v2322_v58 = vadd.f32 %v2321_v13, %v2320_v49  ;;  %v2342_v22 = vsel %vm2325_vm8, %v7389_v36, 0.0 }
 0xcfd   :  { %v1856_v56 = vpop.xlane.xlu0 %1855  ;;  %v2356_v40 = vsel %vm213_vm4, %v2342_v22, 0.0 }
 0xcfe   :  { %v1953_v54 = vsel %vm1935_vm3, %v1873_v29, 0.0  ;;  %v2323_v57 = vrot.slane %v2322_v58, 1  ;;  %v1868_v37 = vmul.f32 %v1856_v56, %v7096_v23 }
 0xcff   :  { %v1969_v44 = vsel %vm213_vm4, %v1953_v54, 0.0 }
 0xd00   :  { %1970 = vadd.xlane.f32.xlu1 %v1969_v44  ;;  %v7428_v28 = vadd.f32 %v2323_v57, %v2322_v58  ;;  %v1878_v25 = vsub.f32 %v7363_v60, %v1868_v37 }
 0xd02   :  { %v1454_v12 = vpop.xlane.xlu1 %1453  ;;  %v2327_v8 = vsel %vm2325_vm8, %v7428_v28, 0.0  ;;  %v1958_v18 = vsel %vm1935_vm3, %v1878_v25, 0.0 }
 0xd03   :  { %v1474_v48 = vmul.f32 %v1454_v12, %v6769_v43  ;;  %v2331_v32 = vsel %vm213_vm4, %v2327_v8, 0.0  ;;  %v1984_v60 = vsel %vm213_vm4, %v1958_v18, 0.0 }
 0xd04   :  { %2332 = vadd.xlane.f32.xlu0 %v2331_v32  ;;  %2357 = vadd.xlane.f32.xlu1 %v2356_v40 }
 0xd05   :  { %v1484_v1 = vsub.f32 %v7371_v59, %v1474_v48 }
 0xd07   :  { %v1564_v42 = vsel %vm1545_vm7, %v1484_v1, 0.0 }
 0xd08   :  { %1326 = vadd.xlane.f32.xlu0 %v1325_v5  ;;  %v1582_v26 = vsel %vm221_vm14, %v1564_v42, 0.0 }
 0xd09   :  { %1583 = vadd.xlane.f32.xlu1 %v1582_v26 }
 0xd0c   :  { %1985 = vadd.xlane.f32.xlu0 %v1984_v60 }
 0xd0e   :  { %v1469_v59 = vpop.xlane.xlu0 %1468 }
 0xd0f   :  { %v1479_v61 = vmul.f32 %v1469_v59, %v6790_v24 }
 0xd10   :  { %2372 = vadd.xlane.f32.xlu0 %v2371_v35 }
 0xd11   :  { %v1489_v15 = vsub.f32 %v7379_v33, %v1479_v61 }
 0xd13   :  { %v1569_v49 = vsel %vm1545_vm7, %v1489_v15, 0.0 }
 0xd14   :  { %v1597_v7 = vsel %vm221_vm14, %v1569_v49, 0.0 }
 0xd15   :  { %1598 = vadd.xlane.f32.xlu0 %v1597_v7 }
 0xd81   :  { %v2330_v46 = vpop.xlane.xlu1 %2329 }
 0xd82   :  { %5748 = vrcp.f32 %v2330_v46 }
 0xd85   :  { %v1312_v21 = vpop.xlane.xlu1 %1311 }
 0xd86   :  { %v1340_v13 = vmul.f32 %v1312_v21, %v6657_v11 }
 0xd88   :  { %v7463_v30 = vsub.f32 %v1230_v39, %v1340_v13 }
 0xd89   :  { %v1971_v58 = vpop.xlane.xlu1 %1970 }
 0xd8a   :  { %v1993_v0 = vmul.f32 %v1971_v58, %v7174_v4  ;;  %v1430_v33 = vsel %vm1415_vm6, %v7463_v30, 0.0 }
 0xd8b   :  { %v1440_v56 = vsel %vm213_vm4, %v1430_v33, 0.0 }
 0xd8c   :  { %v7470_v54 = vsub.f32 %v1873_v29, %v1993_v0  ;;  %1441 = vadd.xlane.f32.xlu1 %v1440_v56 }
 0xd8d   :  { %v2333_v57 = vpop.xlane.xlu0 %2332  ;;  %v2358_v44 = vpop.xlane.xlu1 %2357 }
 0xd8e   :  { %5750 = vrcp.f32 %v2333_v57  ;;  %v2083_v11 = vsel %vm2065_vm9, %v7470_v54, 0.0 }
 0xd8f   :  { %v5749_v39 = vpop.eup %5748  ;;  %v2099_v37 = vsel %vm213_vm4, %v2083_v11, 0.0 }
 0xd90   :  { %v7477_v22 = vmul.f32 %v5749_v39, %v7406_v41  ;;  %2100 = vadd.xlane.f32.xlu1 %v2099_v37 }
 0xd91   :  { %v1327_v12 = vpop.xlane.xlu0 %1326 }
 0xd92   :  { %v2382_v8 = vmul.f32 %v2358_v44, %v7477_v22  ;;  %v1345_v29 = vmul.f32 %v1327_v12, %v6678_v62  ;;  %v1584_v48 = vpop.xlane.xlu1 %1583 }
 0xd93   :  { %v1604_v32 = vmul.f32 %v1584_v48, %v6870_v9 }
 0xd94   :  { %v2392_v40 = vsub.f32 %v7389_v36, %v2382_v8  ;;  %v7484_v63 = vsub.f32 %v1235_v6, %v1345_v29 }
 0xd95   :  { %v7486_v5 = vsub.f32 %v1484_v1, %v1604_v32  ;;  %v1986_v42 = vpop.xlane.xlu0 %1985 }
 0xd96   :  { %v7491_v41 = vsel %vm2282_vm13, %v7477_v22, %v2392_v40  ;;  %v1998_v26 = vmul.f32 %v1986_v42, %v7196_v19  ;;  %v1435_v62 = vsel %vm1415_vm6, %v7484_v63, 0.0  ;;  %vm2542_vm6 = vcmp.eq.s32.totalorder %v6240_v14, 18 }
 0xd97   :  { %v2417_v36 = vsel %vm2412_vm11, %v7491_v41, 0.0  ;;  %v1455_v6 = vsel %vm213_vm4, %v1435_v62, 0.0  ;;  %v1694_v1 = vsel %vm1675_vm10, %v7486_v5, 0.0  ;;  %v2472_v48 = vsel %vm2455_vm0, %v7491_v41, 0.0 }
 0xd98   :  { %v7504_v18 = vsub.f32 %v1878_v25, %v1998_v26  ;;  %1456 = vadd.xlane.f32.xlu0 %v1455_v6  ;;  %v1712_v60 = vsel %vm221_vm14, %v1694_v1, 0.0  ;;  %v2428_v20 = vsel %vm213_vm4, %v2417_v36, 0.0  ;;  %v2486_v42 = vsel %vm213_vm4, %v2472_v48, 0.0 }
 0xd99   :  { %v2373_v59 = vpop.xlane.xlu0 %2372  ;;  %1713 = vadd.xlane.f32.xlu1 %v1712_v60  ;;  %v2434_v61 = vrot.slane %v2428_v20, 4 }
 0xd9a   :  { %v2088_v35 = vsel %vm2065_vm9, %v7504_v18, 0.0 }
 0xd9b   :  { %v5751_v49 = vpop.eup %5750  ;;  %v2114_v7 = vsel %vm213_vm4, %v2088_v35, 0.0  ;;  %v2435_v46 = vadd.f32 %v2434_v61, %v2428_v20 }
 0xd9c   :  { %v7513_v21 = vmul.f32 %v5751_v49, %v7428_v28  ;;  %2115 = vadd.xlane.f32.xlu0 %v2114_v7 }
 0xd9d   :  { %v2436_v25 = vrot.slane %v2435_v46, 2 }
 0xd9e   :  { %v2387_v13 = vmul.f32 %v2373_v59, %v7513_v21  ;;  %v1599_v58 = vpop.xlane.xlu0 %1598 }
 0xd9f   :  { %v1609_v0 = vmul.f32 %v1599_v58, %v6880_v31  ;;  %v2437_v33 = vadd.f32 %v2436_v25, %v2435_v46 }
 0xda0   :  { %v2397_v56 = vsub.f32 %v7401_v51, %v2387_v13 }
 0xda1   :  { %v1619_v57 = vsub.f32 %v1489_v15, %v1609_v0  ;;  %v2438_v44 = vrot.slane %v2437_v33, 1 }
 0xda2   :  { %v7521_v11 = vsel %vm2282_vm13, %v7513_v21, %v2397_v56  ;;  %vm2715_vm13 = vcmp.eq.s32.totalorder %v6044_v2, 19 }
 0xda3   :  { %v2422_v28 = vsel %vm2412_vm11, %v7521_v11, 0.0  ;;  %v1699_v39 = vsel %vm1675_vm10, %v1619_v57, 0.0  ;;  %v7528_v37 = vadd.f32 %v2438_v44, %v2437_v33  ;;  %v2477_v60 = vsel %vm2455_vm0, %v7521_v11, 0.0 }
 0xda4   :  { %v1727_v12 = vsel %vm221_vm14, %v1699_v39, 0.0  ;;  %v2443_v51 = vsel %vm213_vm4, %v2422_v28, 0.0  ;;  %v2501_v20 = vsel %vm213_vm4, %v2477_v60, 0.0 }
 0xda5   :  { %1728 = vadd.xlane.f32.xlu0 %v1727_v12  ;;  %v2456_v15 = vsel %vm2455_vm0, %v7528_v37, 0.0  ;;  %v2449_v8 = vrot.slane %v2443_v51, 4 }
 0xda6   :  { %v2458_v29 = vsel %vm213_vm4, %v2456_v15, 0.0 }
 0xda7   :  { %2459 = vadd.xlane.f32.xlu1 %v2458_v29  ;;  %v2450_v32 = vadd.f32 %v2449_v8, %v2443_v51 }
 0xda9   :  { %v2451_v40 = vrot.slane %v2450_v32, 2 }
 0xdab   :  { %2487 = vadd.xlane.f32.xlu1 %v2486_v42  ;;  %v2452_v26 = vadd.f32 %v2451_v40, %v2450_v32 }
 0xdad   :  { %v2453_v62 = vrot.slane %v2452_v26, 1 }
 0xdaf   :  { %v2454_v36 = vadd.f32 %v2453_v62, %v2452_v26 }
 0xdb1   :  { %v2457_v6 = vsel %vm2455_vm0, %v2454_v36, 0.0 }
 0xdb2   :  { %v2461_v1 = vsel %vm213_vm4, %v2457_v6, 0.0 }
 0xdb3   :  { %2462 = vadd.xlane.f32.xlu0 %v2461_v1 }
 0xdb7   :  { %2502 = vadd.xlane.f32.xlu0 %v2501_v20 }
 0xe15   :  { %v1442_v59 = vpop.xlane.xlu1 %1441 }
 0xe16   :  { %v1470_v61 = vmul.f32 %v1442_v59, %v6769_v43 }
 0xe18   :  { %v7550_v35 = vsub.f32 %v7463_v30, %v1470_v61 }
 0xe19   :  { %v2101_v49 = vpop.xlane.xlu1 %2100 }
 0xe1a   :  { %v2123_v7 = vmul.f32 %v2101_v49, %v7291_v34  ;;  %v1560_v46 = vsel %vm1545_vm7, %v7550_v35, 0.0 }
 0xe1b   :  { %v1570_v25 = vsel %vm213_vm4, %v1560_v46, 0.0 }
 0xe1c   :  { %v7558_v13 = vsub.f32 %v7470_v54, %v2123_v7  ;;  %1571 = vadd.xlane.f32.xlu1 %v1570_v25 }
 0xe1e   :  { %v2213_v43 = vsel %vm2195_vm15, %v7558_v13, 0.0 }
 0xe1f   :  { %v2229_v30 = vsel %vm213_vm4, %v2213_v43, 0.0 }
 0xe20   :  { %2230 = vadd.xlane.f32.xlu1 %v2229_v30 }
 0xe21   :  { %v1457_v58 = vpop.xlane.xlu0 %1456 }
 0xe22   :  { %v1475_v0 = vmul.f32 %v1457_v58, %v6790_v24  ;;  %v1714_v33 = vpop.xlane.xlu1 %1713 }
 0xe23   :  { %v1734_v56 = vmul.f32 %v1714_v33, %v6967_v10 }
 0xe24   :  { %v7567_v44 = vsub.f32 %v7484_v63, %v1475_v0 }
 0xe25   :  { %v7570_v54 = vsub.f32 %v7486_v5, %v1734_v56  ;;  %v2116_v28 = vpop.xlane.xlu0 %2115 }
 0xe26   :  { %v2128_v39 = vmul.f32 %v2116_v28, %v7297_v47  ;;  %v1565_v12 = vsel %vm1545_vm7, %v7567_v44, 0.0  ;;  %vm2585_vm7 = vcmp.eq.s32.totalorder %v6044_v2, 18 }
 0xe27   :  { %v1585_v51 = vsel %vm213_vm4, %v1565_v12, 0.0  ;;  %v1824_v24 = vsel %vm1805_vm5, %v7570_v54, 0.0 }
 0xe28   :  { %v7581_v15 = vsub.f32 %v7504_v18, %v2128_v39  ;;  %1586 = vadd.xlane.f32.xlu0 %v1585_v51  ;;  %v1842_v63 = vsel %vm221_vm14, %v1824_v24, 0.0 }
 0xe29   :  { %1843 = vadd.xlane.f32.xlu1 %v1842_v63 }
 0xe2a   :  { %v2218_v5 = vsel %vm2195_vm15, %v7581_v15, 0.0 }
 0xe2b   :  { %v2244_v8 = vsel %vm213_vm4, %v2218_v5, 0.0 }
 0xe2c   :  { %2245 = vadd.xlane.f32.xlu0 %v2244_v8 }
 0xe2e   :  { %v1729_v29 = vpop.xlane.xlu0 %1728 }
 0xe2f   :  { %v1739_v48 = vmul.f32 %v1729_v29, %v6982_v50 }
 0xe30   :  { %v2460_v32 = vpop.xlane.xlu1 %2459 }
 0xe31   :  { %v7589_v40 = vsub.f32 %v1619_v57, %v1739_v48  ;;  %5752 = vrcp.f32 %v2460_v32 }
 0xe33   :  { %v1829_v18 = vsel %vm1805_vm5, %v7589_v40, 0.0 }
 0xe34   :  { %v1857_v42 = vsel %vm221_vm14, %v1829_v18, 0.0  ;;  %v2488_v1 = vpop.xlane.xlu1 %2487 }
 0xe35   :  { %1858 = vadd.xlane.f32.xlu0 %v1857_v42 }
 0xe3c   :  { %v2463_v26 = vpop.xlane.xlu0 %2462 }
 0xe3d   :  { %5754 = vrcp.f32 %v2463_v26 }
 0xe3e   :  { %v5753_v62 = vpop.eup %5752 }
 0xe3f   :  { %v7596_v6 = vmul.f32 %v5753_v62, %v7528_v37 }
 0xe40   :  { %v2503_v25 = vpop.xlane.xlu0 %2502 }
 0xe41   :  { %v2512_v60 = vmul.f32 %v2488_v1, %v7596_v6 }
 0xe43   :  { %v2522_v57 = vsub.f32 %v7491_v41, %v2512_v60 }
 0xe45   :  { %v7604_v20 = vsel %vm2412_vm11, %v7596_v6, %v2522_v57 }
 0xe46   :  { %v2547_v59 = vsel %vm2542_vm6, %v7604_v20, 0.0  ;;  %v2602_v51 = vsel %vm2585_vm7, %v7604_v20, 0.0 }
 0xe47   :  { %v2558_v61 = vsel %vm213_vm4, %v2547_v59, 0.0  ;;  %v2616_v5 = vsel %vm213_vm4, %v2602_v51, 0.0 }
 0xe48   :  { %v2564_v37 = vrot.slane %v2558_v61, 4 }
 0xe4a   :  { %v5755_v49 = vpop.eup %5754  ;;  %v2565_v7 = vadd.f32 %v2564_v37, %v2558_v61 }
 0xe4b   :  { %v7610_v46 = vmul.f32 %v5755_v49, %v2454_v36 }
 0xe4c   :  { %v2566_v43 = vrot.slane %v2565_v7, 2 }
 0xe4d   :  { %v2517_v41 = vmul.f32 %v2503_v25, %v7610_v46 }
 0xe4e   :  { %v2567_v30 = vadd.f32 %v2566_v43, %v2565_v7 }
 0xe4f   :  { %v2527_v58 = vsub.f32 %v7521_v11, %v2517_v41 }
 0xe50   :  { %v2568_v0 = vrot.slane %v2567_v30, 1 }
 0xe51   :  { %v7617_v33 = vsel %vm2412_vm11, %v7610_v46, %v2527_v58  ;;  %vm2975_vm11 = vcmp.eq.s32.totalorder %v6044_v2, 21 }
 0xe52   :  { %v2552_v56 = vsel %vm2542_vm6, %v7617_v33, 0.0  ;;  %v2569_v28 = vadd.f32 %v2568_v0, %v2567_v30  ;;  %v2607_v42 = vsel %vm2585_vm7, %v7617_v33, 0.0 }
 0xe53   :  { %v2573_v36 = vsel %vm213_vm4, %v2552_v56, 0.0  ;;  %v2631_v26 = vsel %vm213_vm4, %v2607_v42, 0.0 }
 0xe54   :  { %v2586_v39 = vsel %vm2585_vm7, %v2569_v28, 0.0  ;;  %v2579_v12 = vrot.slane %v2573_v36, 4 }
 0xe55   :  { %v2588_v11 = vsel %vm213_vm4, %v2586_v39, 0.0 }
 0xe56   :  { %2589 = vadd.xlane.f32.xlu1 %v2588_v11  ;;  %v2580_v24 = vadd.f32 %v2579_v12, %v2573_v36 }
 0xe58   :  { %v2581_v63 = vrot.slane %v2580_v24, 2 }
 0xe5a   :  { %2617 = vadd.xlane.f32.xlu1 %v2616_v5  ;;  %v2582_v8 = vadd.f32 %v2581_v63, %v2580_v24 }
 0xe5c   :  { %v2583_v29 = vrot.slane %v2582_v8, 1 }
 0xe5e   :  { %v2584_v48 = vadd.f32 %v2583_v29, %v2582_v8 }
 0xe60   :  { %v2587_v32 = vsel %vm2585_vm7, %v2584_v48, 0.0 }
 0xe61   :  { %v2591_v18 = vsel %vm213_vm4, %v2587_v32, 0.0 }
 0xe62   :  { %2592 = vadd.xlane.f32.xlu0 %v2591_v18 }
 0xe66   :  { %2632 = vadd.xlane.f32.xlu0 %v2631_v26 }
 0xea5   :  { %v1572_v62 = vpop.xlane.xlu1 %1571 }
 0xea6   :  { %v1600_v1 = vmul.f32 %v1572_v62, %v6870_v9 }
 0xea8   :  { %v1610_v60 = vsub.f32 %v7550_v35, %v1600_v1 }
 0xea9   :  { %v2231_v57 = vpop.xlane.xlu1 %2230 }
 0xeaa   :  { %v2253_v59 = vmul.f32 %v2231_v57, %v7385_v45  ;;  %v1690_v61 = vsel %vm1675_vm10, %v1610_v60, 0.0 }
 0xeab   :  { %v1700_v37 = vsel %vm213_vm4, %v1690_v61, 0.0 }
 0xeac   :  { %v7645_v49 = vsub.f32 %v7558_v13, %v2253_v59  ;;  %1701 = vadd.xlane.f32.xlu1 %v1700_v37 }
 0xeae   :  { %v2343_v7 = vsel %vm2325_vm8, %v7645_v49, 0.0 }
 0xeaf   :  { %v2359_v9 = vsel %vm213_vm4, %v2343_v7, 0.0 }
 0xeb0   :  { %2360 = vadd.xlane.f32.xlu1 %v2359_v9 }
 0xeb1   :  { %v1587_v35 = vpop.xlane.xlu0 %1586 }
 0xeb2   :  { %v1605_v25 = vmul.f32 %v1587_v35, %v6880_v31  ;;  %v1844_v43 = vpop.xlane.xlu1 %1843 }
 0xeb3   :  { %v1864_v41 = vmul.f32 %v1844_v43, %v7086_v38 }
 0xeb4   :  { %v7654_v30 = vsub.f32 %v7567_v44, %v1605_v25 }
 0xeb5   :  { %v7657_v13 = vsub.f32 %v7570_v54, %v1864_v41  ;;  %v2246_v58 = vpop.xlane.xlu0 %2245 }
 0xeb6   :  { %v2258_v0 = vmul.f32 %v2246_v58, %v7397_v27  ;;  %v1695_v56 = vsel %vm1675_vm10, %v7654_v30, 0.0  ;;  %vm2672_vm10 = vcmp.eq.s32.totalorder %v6240_v14, 19 }
 0xeb7   :  { %v1715_v36 = vsel %vm213_vm4, %v1695_v56, 0.0  ;;  %v1954_v31 = vsel %vm1935_vm3, %v7657_v13, 0.0 }
 0xeb8   :  { %v7668_v39 = vsub.f32 %v7581_v15, %v2258_v0  ;;  %1716 = vadd.xlane.f32.xlu0 %v1715_v36  ;;  %v1972_v44 = vsel %vm221_vm14, %v1954_v31, 0.0 }
 0xeb9   :  { %1973 = vadd.xlane.f32.xlu1 %v1972_v44 }
 0xeba   :  { %v2348_v54 = vsel %vm2325_vm8, %v7668_v39, 0.0 }
 0xebb   :  { %v2374_v12 = vsel %vm213_vm4, %v2348_v54, 0.0 }
 0xebc   :  { %2375 = vadd.xlane.f32.xlu0 %v2374_v12 }
 0xebe   :  { %v1859_v11 = vpop.xlane.xlu0 %1858 }
 0xebf   :  { %v1869_v51 = vmul.f32 %v1859_v11, %v7096_v23 }
 0xec1   :  { %v7677_v24 = vsub.f32 %v7589_v40, %v1869_v51 }
 0xec3   :  { %v1959_v15 = vsel %vm1935_vm3, %v7677_v24, 0.0 }
 0xec4   :  { %v1987_v63 = vsel %vm221_vm14, %v1959_v15, 0.0 }
 0xec5   :  { %1988 = vadd.xlane.f32.xlu0 %v1987_v63 }
 0xedf   :  { %v2590_v5 = vpop.xlane.xlu1 %2589 }
 0xee0   :  { %5756 = vrcp.f32 %v2590_v5 }
 0xee3   :  { %v2618_v18 = vpop.xlane.xlu1 %2617 }
 0xeeb   :  { %v2593_v8 = vpop.xlane.xlu0 %2592 }
 0xeec   :  { %5758 = vrcp.f32 %v2593_v8 }
 0xeed   :  { %v5757_v29 = vpop.eup %5756 }
 0xeee   :  { %v7683_v32 = vmul.f32 %v5757_v29, %v2569_v28 }
 0xeef   :  { %v2633_v57 = vpop.xlane.xlu0 %2632 }
 0xef0   :  { %v2642_v42 = vmul.f32 %v2618_v18, %v7683_v32 }
 0xef2   :  { %v2652_v40 = vsub.f32 %v7604_v20, %v2642_v42 }
 0xef4   :  { %v7691_v62 = vsel %vm2542_vm6, %v7683_v32, %v2652_v40 }
 0xef5   :  { %v2677_v28 = vsel %vm2672_vm10, %v7691_v62, 0.0 }
 0xef6   :  { %v2688_v61 = vsel %vm213_vm4, %v2677_v28, 0.0 }
 0xef7   :  { %v2694_v37 = vrot.slane %v2688_v61, 4 }
 0xef9   :  { %v5759_v26 = vpop.eup %5758  ;;  %v2695_v9 = vadd.f32 %v2694_v37, %v2688_v61 }
 0xefa   :  { %v7693_v1 = vmul.f32 %v5759_v26, %v2584_v48 }
 0xefb   :  { %v2696_v35 = vrot.slane %v2695_v9, 2 }
 0xefc   :  { %v2647_v59 = vmul.f32 %v2633_v57, %v7693_v1 }
 0xefd   :  { %v2697_v43 = vadd.f32 %v2696_v35, %v2695_v9 }
 0xefe   :  { %v2657_v20 = vsub.f32 %v7617_v33, %v2647_v59 }
 0xeff   :  { %v2698_v56 = vrot.slane %v2697_v43, 1 }
 0xf00   :  { %v7704_v7 = vsel %vm2542_vm6, %v7693_v1, %v2657_v20  ;;  %vm3323_vm6 = vcmp.eq.s32.totalorder %v6450_v55, 24 }
 0xf01   :  { %v2682_v48 = vsel %vm2672_vm10, %v7704_v7, 0.0  ;;  %v7716_v51 = vadd.f32 %v2698_v56, %v2697_v43 }
 0xf02   :  { %v2703_v25 = vsel %vm213_vm4, %v2682_v48, 0.0 }
 0xf03   :  { %v2709_v41 = vrot.slane %v2703_v25, 4  ;;  %v2716_v63 = vsel %vm2715_vm13, %v7716_v51, 0.0 }
 0xf04   :  { %v2718_v42 = vsel %vm213_vm4, %v2716_v63, 0.0 }
 0xf05   :  { %v2710_v36 = vadd.f32 %v2709_v41, %v2703_v25 }
 0xf07   :  { %v2711_v15 = vrot.slane %v2710_v36, 2 }
 0xf09   :  { %v2712_v5 = vadd.f32 %v2711_v15, %v2710_v36 }
 0xf0b   :  { %v2713_v26 = vrot.slane %v2712_v5, 1 }
 0xf0d   :  { %v7738_v9 = vadd.f32 %v2713_v26, %v2712_v5 }
 0xf35   :  { %v1702_v58 = vpop.xlane.xlu1 %1701 }
 0xf36   :  { %v1730_v0 = vmul.f32 %v1702_v58, %v6967_v10 }
 0xf38   :  { %v1740_v33 = vsub.f32 %v1610_v60, %v1730_v0 }
 0xf39   :  { %v2361_v31 = vpop.xlane.xlu1 %2360 }
 0xf3a   :  { %v2383_v44 = vmul.f32 %v2361_v31, %v7477_v22  ;;  %v1820_v54 = vsel %vm1805_vm5, %v1740_v33, 0.0  ;;  %v2737_v31 = vsel %vm2715_vm13, %v7704_v7, 0.0 }
 0xf3b   :  { %v1830_v12 = vsel %vm213_vm4, %v1820_v54, 0.0 }
 0xf3c   :  { %v2393_v11 = vsub.f32 %v7645_v49, %v2383_v44  ;;  %1831 = vadd.xlane.f32.xlu1 %v1830_v12  ;;  %v2761_v44 = vsel %vm213_vm4, %v2737_v31, 0.0 }
 0xf3e   :  { %v2473_v10 = vsel %vm2455_vm0, %v2393_v11, 0.0 }
 0xf3f   :  { %v2489_v60 = vsel %vm213_vm4, %v2473_v10, 0.0 }
 0xf40   :  { %2490 = vadd.xlane.f32.xlu1 %v2489_v60 }
 0xf41   :  { %v1717_v8 = vpop.xlane.xlu0 %1716 }
 0xf42   :  { %v1735_v49 = vmul.f32 %v1717_v8, %v6982_v50  ;;  %v1974_v29 = vpop.xlane.xlu1 %1973 }
 0xf43   :  { %v1994_v18 = vmul.f32 %v1974_v29, %v7174_v4 }
 0xf44   :  { %v1745_v40 = vsub.f32 %v7654_v30, %v1735_v49  ;;  %2719 = vadd.xlane.f32.xlu1 %v2718_v42 }
 0xf45   :  { %v2004_v28 = vsub.f32 %v7657_v13, %v1994_v18  ;;  %v2376_v57 = vpop.xlane.xlu0 %2375  ;;  %v2732_v13 = vsel %vm2715_vm13, %v7691_v62, 0.0 }
 0xf46   :  { %v2388_v59 = vmul.f32 %v2376_v57, %v7513_v21  ;;  %v1825_v61 = vsel %vm1805_vm5, %v1745_v40, 0.0  ;;  %v2746_v25 = vsel %vm213_vm4, %v2732_v13, 0.0  ;;  %vm2802_vm5 = vcmp.eq.s32.totalorder %v6240_v14, 20 }
 0xf47   :  { %v1845_v20 = vsel %vm213_vm4, %v1825_v61, 0.0  ;;  %v2084_v50 = vsel %vm2065_vm9, %v2004_v28, 0.0 }
 0xf48   :  { %v2398_v37 = vsub.f32 %v7668_v39, %v2388_v59  ;;  %1846 = vadd.xlane.f32.xlu0 %v1845_v20  ;;  %v2102_v30 = vsel %vm221_vm14, %v2084_v50, 0.0  ;;  %v2717_v39 = vsel %vm2715_vm13, %v7738_v9, 0.0 }
 0xf49   :  { %2103 = vadd.xlane.f32.xlu1 %v2102_v30  ;;  %v2721_v58 = vsel %vm213_vm4, %v2717_v39, 0.0 }
 0xf4a   :  { %v2478_v48 = vsel %vm2455_vm0, %v2398_v37, 0.0 }
 0xf4b   :  { %v2504_v35 = vsel %vm213_vm4, %v2478_v48, 0.0 }
 0xf4c   :  { %2505 = vadd.xlane.f32.xlu0 %v2504_v35 }
 0xf4d   :  { %2747 = vadd.xlane.f32.xlu1 %v2746_v25 }
 0xf4e   :  { %v1989_v43 = vpop.xlane.xlu0 %1988 }
 0xf4f   :  { %v1999_v41 = vmul.f32 %v1989_v43, %v7196_v19 }
 0xf50   :  { %2722 = vadd.xlane.f32.xlu0 %v2721_v58 }
 0xf51   :  { %v2009_v0 = vsub.f32 %v7677_v24, %v1999_v41 }
 0xf53   :  { %v2089_v56 = vsel %vm2065_vm9, %v2009_v0, 0.0 }
 0xf54   :  { %v2117_v36 = vsel %vm221_vm14, %v2089_v56, 0.0 }
 0xf55   :  { %2118 = vadd.xlane.f32.xlu0 %v2117_v36 }
 0xf59   :  { %2762 = vadd.xlane.f32.xlu0 %v2761_v44 }
 0xfc5   :  { %v1832_v54 = vpop.xlane.xlu1 %1831 }
 0xfc6   :  { %v1860_v12 = vmul.f32 %v1832_v54, %v7086_v38 }
 0xfc8   :  { %v7761_v15 = vsub.f32 %v1740_v33, %v1860_v12 }
 0xfc9   :  { %v2491_v10 = vpop.xlane.xlu1 %2490 }
 0xfca   :  { %v2513_v24 = vmul.f32 %v2491_v10, %v7596_v6  ;;  %v1950_v60 = vsel %vm1935_vm3, %v7761_v15, 0.0 }
 0xfcb   :  { %v1960_v63 = vsel %vm213_vm4, %v1950_v60, 0.0 }
 0xfcc   :  { %v7768_v5 = vsub.f32 %v2393_v11, %v2513_v24  ;;  %1961 = vadd.xlane.f32.xlu1 %v1960_v63 }
 0xfcd   :  { %v2720_v8 = vpop.xlane.xlu1 %2719 }
 0xfce   :  { %5760 = vrcp.f32 %v2720_v8  ;;  %v2603_v38 = vsel %vm2585_vm7, %v7768_v5, 0.0 }
 0xfcf   :  { %v2619_v33 = vsel %vm213_vm4, %v2603_v38, 0.0 }
 0xfd0   :  { %2620 = vadd.xlane.f32.xlu1 %v2619_v33 }
 0xfd1   :  { %v1847_v49 = vpop.xlane.xlu0 %1846 }
 0xfd2   :  { %v1865_v29 = vmul.f32 %v1847_v49, %v7096_v23  ;;  %v2104_v18 = vpop.xlane.xlu1 %2103 }
 0xfd3   :  { %v2124_v42 = vmul.f32 %v2104_v18, %v7291_v34 }
 0xfd4   :  { %v7776_v26 = vsub.f32 %v1745_v40, %v1865_v29 }
 0xfd5   :  { %v7778_v11 = vsub.f32 %v2004_v28, %v2124_v42  ;;  %v2506_v57 = vpop.xlane.xlu0 %2505 }
 0xfd6   :  { %v2518_v59 = vmul.f32 %v2506_v57, %v7610_v46  ;;  %v1955_v61 = vsel %vm1935_vm3, %v7776_v26, 0.0  ;;  %v2748_v25 = vpop.xlane.xlu1 %2747  ;;  %vm2845_vm3 = vcmp.eq.s32.totalorder %v6044_v2, 20 }
 0xfd7   :  { %v1975_v20 = vsel %vm213_vm4, %v1955_v61, 0.0  ;;  %v2214_v23 = vsel %vm2195_vm15, %v7778_v11, 0.0 }
 0xfd8   :  { %v7788_v50 = vsub.f32 %v2398_v37, %v2518_v59  ;;  %1976 = vadd.xlane.f32.xlu0 %v1975_v20  ;;  %v2232_v40 = vsel %vm221_vm14, %v2214_v23, 0.0 }
 0xfd9   :  { %v2723_v28 = vpop.xlane.xlu0 %2722  ;;  %2233 = vadd.xlane.f32.xlu1 %v2232_v40 }
 0xfda   :  { %5762 = vrcp.f32 %v2723_v28  ;;  %v2608_v30 = vsel %vm2585_vm7, %v7788_v50, 0.0 }
 0xfdb   :  { %v5761_v13 = vpop.eup %5760  ;;  %v2634_v48 = vsel %vm213_vm4, %v2608_v30, 0.0 }
 0xfdc   :  { %v7796_v35 = vmul.f32 %v5761_v13, %v7716_v51  ;;  %2635 = vadd.xlane.f32.xlu0 %v2634_v48 }
 0xfde   :  { %v2772_v37 = vmul.f32 %v2748_v25, %v7796_v35  ;;  %v2119_v39 = vpop.xlane.xlu0 %2118 }
 0xfdf   :  { %v2129_v43 = vmul.f32 %v2119_v39, %v7297_v47 }
 0xfe0   :  { %v2782_v41 = vsub.f32 %v7691_v62, %v2772_v37 }
 0xfe1   :  { %v7802_v58 = vsub.f32 %v2009_v0, %v2129_v43 }
 0xfe2   :  { %v7807_v56 = vsel %vm2672_vm10, %v7796_v35, %v2782_v41  ;;  %v2763_v10 = vpop.xlane.xlu0 %2762 }
 0xfe3   :  { %v2807_v51 = vsel %vm2802_vm5, %v7807_v56, 0.0  ;;  %v2219_v36 = vsel %vm2195_vm15, %v7802_v58, 0.0  ;;  %v2862_v57 = vsel %vm2845_vm3, %v7807_v56, 0.0 }
 0xfe4   :  { %v2247_v31 = vsel %vm221_vm14, %v2219_v36, 0.0  ;;  %v2818_v44 = vsel %vm213_vm4, %v2807_v51, 0.0  ;;  %v2876_v20 = vsel %vm213_vm4, %v2862_v57, 0.0 }
 0xfe5   :  { %2248 = vadd.xlane.f32.xlu0 %v2247_v31  ;;  %v2824_v62 = vrot.slane %v2818_v44, 4 }
 0xfe7   :  { %v5763_v0 = vpop.eup %5762  ;;  %v2825_v54 = vadd.f32 %v2824_v62, %v2818_v44 }
 0xfe8   :  { %v7818_v12 = vmul.f32 %v5763_v0, %v7738_v9 }
 0xfe9   :  { %v2826_v24 = vrot.slane %v2825_v54, 2 }
 0xfea   :  { %v2777_v60 = vmul.f32 %v2763_v10, %v7818_v12 }
 0xfeb   :  { %v2827_v63 = vadd.f32 %v2826_v24, %v2825_v54 }
 0xfec   :  { %v2787_v8 = vsub.f32 %v7704_v7, %v2777_v60 }
 0xfed   :  { %v2828_v38 = vrot.slane %v2827_v63, 1 }
 0xfee   :  { %v7825_v33 = vsel %vm2672_vm10, %v7818_v12, %v2787_v8  ;;  %vm3453_vm10 = vcmp.eq.s32.totalorder %v6450_v55, 25 }
 0xfef   :  { %v2812_v49 = vsel %vm2802_vm5, %v7825_v33, 0.0  ;;  %v7830_v29 = vadd.f32 %v2828_v38, %v2827_v63  ;;  %v2867_v48 = vsel %vm2845_vm3, %v7825_v33, 0.0 }
 0xff0   :  { %v2833_v9 = vsel %vm213_vm4, %v2812_v49, 0.0  ;;  %v2891_v25 = vsel %vm213_vm4, %v2867_v48, 0.0 }
 0xff1   :  { %v2846_v7 = vsel %vm2845_vm3, %v7830_v29, 0.0  ;;  %v2839_v18 = vrot.slane %v2833_v9, 4 }
 0xff2   :  { %v2848_v42 = vsel %vm213_vm4, %v2846_v7, 0.0 }
 0xff3   :  { %2849 = vadd.xlane.f32.xlu1 %v2848_v42  ;;  %v2840_v59 = vadd.f32 %v2839_v18, %v2833_v9 }
 0xff5   :  { %v2841_v61 = vrot.slane %v2840_v59, 2 }
 0xff7   :  { %2877 = vadd.xlane.f32.xlu1 %v2876_v20  ;;  %v2842_v23 = vadd.f32 %v2841_v61, %v2840_v59  ;;  %v2216_v20 = vsel %vm2195_vm15, %v7319_v52, 0.0 }
 0xff9   :  { %v2843_v40 = vrot.slane %v2842_v23, 1 }
 0xffb   :  { %v2844_v28 = vadd.f32 %v2843_v40, %v2842_v23  ;;  %v2238_v23 = vsel %vm213_vm4, %v2216_v20, 0.0 }
 0xffd   :  { %v2847_v30 = vsel %vm2845_vm3, %v2844_v28, 0.0 }
 0xffe   :  { %v2851_v13 = vsel %vm213_vm4, %v2847_v30, 0.0 }
 0xfff   :  { %2852 = vadd.xlane.f32.xlu0 %v2851_v13 }
0x1003   :  { %2892 = vadd.xlane.f32.xlu0 %v2891_v25 }
0x1055   :  { %v1962_v37 = vpop.xlane.xlu1 %1961 }
0x1056   :  { %v1990_v39 = vmul.f32 %v1962_v37, %v7174_v4 }
0x1058   :  { %v7851_v43 = vsub.f32 %v7761_v15, %v1990_v39 }
0x1059   :  { %v2621_v41 = vpop.xlane.xlu1 %2620 }
0x105a   :  { %v2643_v51 = vmul.f32 %v2621_v41, %v7683_v32  ;;  %v2080_v36 = vsel %vm2065_vm9, %v7851_v43, 0.0 }
0x105b   :  { %v2090_v31 = vsel %vm213_vm4, %v2080_v36, 0.0 }
0x105c   :  { %v7859_v44 = vsub.f32 %v7768_v5, %v2643_v51  ;;  %2091 = vadd.xlane.f32.xlu1 %v2090_v31 }
0x105e   :  { %v2733_v4 = vsel %vm2715_vm13, %v7859_v44, 0.0 }
0x105f   :  { %v2749_v15 = vsel %vm213_vm4, %v2733_v4, 0.0 }
0x1060   :  { %2750 = vadd.xlane.f32.xlu1 %v2749_v15 }
0x1061   :  { %v1977_v62 = vpop.xlane.xlu0 %1976 }
0x1062   :  { %v1995_v0 = vmul.f32 %v1977_v62, %v7196_v19  ;;  %v2234_v54 = vpop.xlane.xlu1 %2233 }
0x1063   :  { %v2254_v10 = vmul.f32 %v2234_v54, %v7385_v45 }
0x1064   :  { %v7868_v24 = vsub.f32 %v7776_v26, %v1995_v0 }
0x1065   :  { %v7871_v5 = vsub.f32 %v7778_v11, %v2254_v10  ;;  %v2636_v60 = vpop.xlane.xlu0 %2635  ;;  %v2211_v11 = vsel %vm2195_vm15, %v7304_v17, 0.0 }
0x1066   :  { %v2648_v63 = vmul.f32 %v2636_v60, %v7693_v1  ;;  %v2085_v8 = vsel %vm2065_vm9, %v7868_v24, 0.0  ;;  %v2223_v18 = vsel %vm213_vm4, %v2211_v11, 0.0  ;;  %vm2932_vm9 = vcmp.eq.s32.totalorder %v6240_v14, 21 }
0x1067   :  { %v2105_v38 = vsel %vm213_vm4, %v2085_v8, 0.0  ;;  %v2344_v19 = vsel %vm2325_vm8, %v7871_v5, 0.0 }
0x1068   :  { %v7882_v49 = vsub.f32 %v7788_v50, %v2648_v63  ;;  %2106 = vadd.xlane.f32.xlu0 %v2105_v38  ;;  %v2362_v26 = vsel %vm221_vm14, %v2344_v19, 0.0 }
0x1069   :  { %2363 = vadd.xlane.f32.xlu1 %v2362_v26 }
0x106a   :  { %v2738_v9 = vsel %vm2715_vm13, %v7882_v49, 0.0 }
0x106b   :  { %v2764_v7 = vsel %vm213_vm4, %v2738_v9, 0.0 }
0x106c   :  { %2765 = vadd.xlane.f32.xlu0 %v2764_v7 }
0x106d   :  { %2224 = vadd.xlane.f32.xlu1 %v2223_v18 }
0x106e   :  { %v2249_v50 = vpop.xlane.xlu0 %2248 }
0x106f   :  { %v2259_v42 = vmul.f32 %v2249_v50, %v7397_v27 }
0x1071   :  { %v7895_v57 = vsub.f32 %v7802_v58, %v2259_v42 }
0x1073   :  { %v2349_v59 = vsel %vm2325_vm8, %v7895_v57, 0.0 }
0x1074   :  { %v2377_v61 = vsel %vm221_vm14, %v2349_v59, 0.0 }
0x1075   :  { %2378 = vadd.xlane.f32.xlu0 %v2377_v61 }
0x1079   :  { %2239 = vadd.xlane.f32.xlu0 %v2238_v23 }
0x107c   :  { %v2850_v40 = vpop.xlane.xlu1 %2849 }
0x107d   :  { %5764 = vrcp.f32 %v2850_v40 }
0x1080   :  { %v2878_v48 = vpop.xlane.xlu1 %2877 }
0x1088   :  { %v2853_v30 = vpop.xlane.xlu0 %2852 }
0x1089   :  { %5766 = vrcp.f32 %v2853_v30 }
0x108a   :  { %v5765_v58 = vpop.eup %5764 }
0x108b   :  { %v7906_v13 = vmul.f32 %v5765_v58, %v7830_v29 }
0x108c   :  { %v2893_v36 = vpop.xlane.xlu0 %2892 }
0x108d   :  { %v2902_v25 = vmul.f32 %v2878_v48, %v7906_v13 }
0x108f   :  { %v2912_v37 = vsub.f32 %v7807_v56, %v2902_v25 }
0x1091   :  { %v7914_v41 = vsel %vm2802_vm5, %v7906_v13, %v2912_v37 }
0x1092   :  { %v2937_v29 = vsel %vm2932_vm9, %v7914_v41, 0.0  ;;  %v2992_v37 = vsel %vm2975_vm11, %v7914_v41, 0.0 }
0x1093   :  { %v2948_v4 = vsel %vm213_vm4, %v2937_v29, 0.0 }
0x1094   :  { %v2954_v15 = vrot.slane %v2948_v4, 4 }
0x1096   :  { %v5767_v39 = vpop.eup %5766  ;;  %v2955_v0 = vadd.f32 %v2954_v15, %v2948_v4  ;;  %v3006_v15 = vsel %vm213_vm4, %v2992_v37, 0.0 }
0x1097   :  { %v7916_v51 = vmul.f32 %v5767_v39, %v2844_v28 }
0x1098   :  { %v2956_v54 = vrot.slane %v2955_v0, 2 }
0x1099   :  { %v2907_v31 = vmul.f32 %v2893_v36, %v7916_v51 }
0x109a   :  { %v2957_v60 = vadd.f32 %v2956_v54, %v2955_v0 }
0x109b   :  { %v2917_v56 = vsub.f32 %v7825_v33, %v2907_v31 }
0x109c   :  { %v2958_v8 = vrot.slane %v2957_v60, 1 }
0x109d   :  { %v7927_v62 = vsel %vm2802_vm5, %v7916_v51, %v2917_v56  ;;  %vm3583_vm5 = vcmp.eq.s32.totalorder %v6450_v55, 26 }
0x109e   :  { %v2942_v28 = vsel %vm2932_vm9, %v7927_v62, 0.0  ;;  %v7937_v11 = vadd.f32 %v2958_v8, %v2957_v60 }
0x109f   :  { %v2963_v10 = vsel %vm213_vm4, %v2942_v28, 0.0 }
0x10a0   :  { %v2969_v63 = vrot.slane %v2963_v10, 4 }
0x10a2   :  { %v2970_v38 = vadd.f32 %v2969_v63, %v2963_v10 }
0x10a4   :  { %v2971_v9 = vrot.slane %v2970_v38, 2 }
0x10e5   :  { %v2092_v19 = vpop.xlane.xlu1 %2091 }
0x10e6   :  { %v2120_v33 = vmul.f32 %v2092_v19, %v7291_v34  ;;  %v2976_v34 = vsel %vm2975_vm11, %v7937_v11, 0.0 }
0x10e7   :  { %v2978_v61 = vsel %vm213_vm4, %v2976_v34, 0.0 }
0x10e8   :  { %v7935_v26 = vsub.f32 %v7851_v43, %v2120_v33  ;;  %v2972_v43 = vadd.f32 %v2971_v9, %v2970_v38  ;;  %v2997_v9 = vsel %vm2975_vm11, %v7927_v62, 0.0 }
0x10e9   :  { %v2751_v7 = vpop.xlane.xlu1 %2750 }
0x10ea   :  { %v2773_v18 = vmul.f32 %v2751_v7, %v7796_v35  ;;  %v2210_v50 = vsel %vm2195_vm15, %v7935_v26, 0.0  ;;  %v2973_v23 = vrot.slane %v2972_v43, 1 }
0x10eb   :  { %v2220_v42 = vsel %vm213_vm4, %v2210_v50, 0.0 }
0x10ec   :  { %v7946_v59 = vsub.f32 %v7859_v44, %v2773_v18  ;;  %2221 = vadd.xlane.f32.xlu1 %v2220_v42  ;;  %v7962_v39 = vadd.f32 %v2973_v23, %v2972_v43  ;;  %v3021_v42 = vsel %vm213_vm4, %v2997_v9, 0.0 }
0x10ee   :  { %v2863_v20 = vsel %vm2845_vm3, %v7946_v59, 0.0 }
0x10ef   :  { %v2879_v48 = vsel %vm213_vm4, %v2863_v20, 0.0 }
0x10f0   :  { %2979 = vadd.xlane.f32.xlu1 %v2978_v61 }
0x10f1   :  { %v2107_v40 = vpop.xlane.xlu0 %2106 }
0x10f2   :  { %v2125_v30 = vmul.f32 %v2107_v40, %v7297_v47  ;;  %v2364_v58 = vpop.xlane.xlu1 %2363 }
0x10f3   :  { %v2384_v44 = vmul.f32 %v2364_v58, %v7477_v22 }
0x10f4   :  { %v2135_v25 = vsub.f32 %v7868_v24, %v2125_v30  ;;  %2880 = vadd.xlane.f32.xlu1 %v2879_v48 }
0x10f5   :  { %v7965_v29 = vsub.f32 %v7871_v5, %v2384_v44  ;;  %v2766_v36 = vpop.xlane.xlu0 %2765  ;;  %v2977_v5 = vsel %vm2975_vm11, %v7962_v39, 0.0 }
0x10f6   :  { %v2778_v47 = vmul.f32 %v2766_v36, %v7818_v12  ;;  %v2225_v31 = vpop.xlane.xlu1 %2224  ;;  %v2215_v4 = vsel %vm2195_vm15, %v2135_v25, 0.0  ;;  %v2981_v10 = vsel %vm213_vm4, %v2977_v5, 0.0  ;;  %vm3105_vm15 = vcmp.eq.s32.totalorder %v6044_v2, 22 }
0x10f7   :  { %v2251_v56 = vmul.f32 %v2225_v31, %v7385_v45  ;;  %v2235_v24 = vsel %vm213_vm4, %v2215_v4, 0.0  ;;  %v2474_v28 = vsel %vm2455_vm0, %v7965_v29, 0.0 }
0x10f8   :  { %v7974_v0 = vsub.f32 %v7882_v49, %v2778_v47  ;;  %2236 = vadd.xlane.f32.xlu0 %v2235_v24  ;;  %3007 = vadd.xlane.f32.xlu1 %v3006_v15  ;;  %v2492_v60 = vsel %vm221_vm14, %v2474_v28, 0.0 }
0x10f9   :  { %v2261_v54 = vsub.f32 %v7304_v17, %v2251_v56 }
0x10fa   :  { %v2868_v63 = vsel %vm2845_vm3, %v7974_v0, 0.0 }
0x10fb   :  { %v7988_v49 = vsel %vm2151_vm12, %v7385_v45, %v2261_v54  ;;  %v2894_v19 = vsel %vm213_vm4, %v2868_v63, 0.0 }
0x10fc   :  { %2982 = vadd.xlane.f32.xlu0 %v2981_v10  ;;  %2493 = vadd.xlane.f32.xlu1 %v2492_v60  ;;  %v2341_v8 = vsel %vm2325_vm8, %v7988_v49, 0.0 }
0x10fd   :  { %v2353_v33 = vsel %vm213_vm4, %v2341_v8, 0.0 }
0x10fe   :  { %v2379_v17 = vpop.xlane.xlu0 %2378 }
0x10ff   :  { %v2389_v38 = vmul.f32 %v2379_v17, %v7513_v21 }
0x1100   :  { %2895 = vadd.xlane.f32.xlu0 %v2894_v19  ;;  %2354 = vadd.xlane.f32.xlu1 %v2353_v33 }
0x1101   :  { %v8003_v7 = vsub.f32 %v7895_v57, %v2389_v38 }
0x1102   :  { %v2240_v18 = vpop.xlane.xlu0 %2239 }
0x1103   :  { %v2256_v50 = vmul.f32 %v2240_v18, %v7397_v27  ;;  %v2479_v34 = vsel %vm2455_vm0, %v8003_v7, 0.0 }
0x1104   :  { %3022 = vadd.xlane.f32.xlu0 %v3021_v42  ;;  %v2507_v61 = vsel %vm221_vm14, %v2479_v34, 0.0 }
0x1105   :  { %v2266_v43 = vsub.f32 %v7319_v52, %v2256_v50 }
0x1107   :  { %v8015_v20 = vsel %vm2151_vm12, %v7397_v27, %v2266_v43  ;;  %vm3062_vm12 = vcmp.eq.s32.totalorder %v6240_v14, 22 }
0x1108   :  { %2508 = vadd.xlane.f32.xlu0 %v2507_v61  ;;  %v2346_v57 = vsel %vm2325_vm8, %v8015_v20, 0.0 }
0x1109   :  { %v2368_v23 = vsel %vm213_vm4, %v2346_v57, 0.0 }
0x110c   :  { %2369 = vadd.xlane.f32.xlu0 %v2368_v23 }
0x1175   :  { %v2222_v40 = vpop.xlane.xlu1 %2221 }
0x1176   :  { %v2250_v30 = vmul.f32 %v2222_v40, %v7385_v45 }
0x1178   :  { %v8023_v52 = vsub.f32 %v7935_v26, %v2250_v30 }
0x1179   :  { %v2980_v58 = vpop.xlane.xlu1 %2979 }
0x117a   :  { %5768 = vrcp.f32 %v2980_v58  ;;  %v2340_v16 = vsel %vm2325_vm8, %v8023_v52, 0.0 }
0x117b   :  { %v2350_v44 = vsel %vm213_vm4, %v2340_v16, 0.0 }
0x117c   :  { %2351 = vadd.xlane.f32.xlu1 %v2350_v44 }
0x117d   :  { %v2881_v48 = vpop.xlane.xlu1 %2880 }
0x117e   :  { %v2903_v37 = vmul.f32 %v2881_v48, %v7906_v13 }
0x1180   :  { %v8031_v36 = vsub.f32 %v7946_v59, %v2903_v37 }
0x1181   :  { %v2237_v47 = vpop.xlane.xlu0 %2236  ;;  %v3008_v45 = vpop.xlane.xlu1 %3007 }
0x1182   :  { %v2255_v26 = vmul.f32 %v2237_v47, %v7397_v27  ;;  %v2993_v31 = vsel %vm2975_vm11, %v8031_v36, 0.0 }
0x1183   :  { %v3009_v4 = vsel %vm213_vm4, %v2993_v31, 0.0 }
0x1184   :  { %v8038_v56 = vsub.f32 %v2135_v25, %v2255_v26  ;;  %3010 = vadd.xlane.f32.xlu1 %v3009_v4 }
0x1185   :  { %v2983_v24 = vpop.xlane.xlu0 %2982  ;;  %v2494_v15 = vpop.xlane.xlu1 %2493 }
0x1186   :  { %5770 = vrcp.f32 %v2983_v24  ;;  %v2514_v5 = vmul.f32 %v2494_v15, %v7596_v6  ;;  %v2345_v59 = vsel %vm2325_vm8, %v8038_v56, 0.0  ;;  %vm3192_vm8 = vcmp.eq.s32.totalorder %v6240_v14, 23 }
0x1187   :  { %v5769_v28 = vpop.eup %5768  ;;  %v2365_v27 = vsel %vm213_vm4, %v2345_v59, 0.0 }
0x1188   :  { %v8046_v54 = vmul.f32 %v5769_v28, %v7937_v11  ;;  %v8049_v10 = vsub.f32 %v7965_v29, %v2514_v5  ;;  %2366 = vadd.xlane.f32.xlu0 %v2365_v27 }
0x1189   :  { %v2896_v25 = vpop.xlane.xlu0 %2895  ;;  %v2355_v44 = vpop.xlane.xlu1 %2354 }
0x118a   :  { %v3032_v60 = vmul.f32 %v3008_v45, %v8046_v54  ;;  %v2908_v63 = vmul.f32 %v2896_v25, %v7916_v51  ;;  %v2604_v8 = vsel %vm2585_vm7, %v8049_v10, 0.0 }
0x118b   :  { %v2622_v17 = vsel %vm221_vm14, %v2604_v8, 0.0 }
0x118c   :  { %v3042_v11 = vsub.f32 %v7914_v41, %v3032_v60  ;;  %v8060_v38 = vsub.f32 %v7974_v0, %v2908_v63  ;;  %2623 = vadd.xlane.f32.xlu1 %v2622_v17 }
0x118d   :  { %v3023_v29 = vpop.xlane.xlu0 %3022 }
0x118e   :  { %v8065_v19 = vsel %vm2932_vm9, %v8046_v54, %v3042_v11  ;;  %v2998_v33 = vsel %vm2975_vm11, %v8060_v38, 0.0 }
0x118f   :  { %v3067_v9 = vsel %vm3062_vm12, %v8065_v19, 0.0  ;;  %v3024_v41 = vsel %vm213_vm4, %v2998_v33, 0.0  ;;  %v3122_v15 = vsel %vm3105_vm15, %v8065_v19, 0.0 }
0x1190   :  { %3025 = vadd.xlane.f32.xlu0 %v3024_v41  ;;  %v3078_v0 = vsel %vm213_vm4, %v3067_v9, 0.0  ;;  %v3136_v28 = vsel %vm213_vm4, %v3122_v15, 0.0 }
0x1191   :  { %v2509_v18 = vpop.xlane.xlu0 %2508  ;;  %v3084_v50 = vrot.slane %v3078_v0, 4 }
0x1192   :  { %v2519_v42 = vmul.f32 %v2509_v18, %v7610_v46 }
0x1193   :  { %v5771_v34 = vpop.eup %5770  ;;  %v3085_v43 = vadd.f32 %v3084_v50, %v3078_v0 }
0x1194   :  { %v8077_v61 = vmul.f32 %v5771_v34, %v7962_v39  ;;  %v8080_v57 = vsub.f32 %v8003_v7, %v2519_v42  ;;  %v2381_v7 = vmul.f32 %v2355_v44, %v7477_v22 }
0x1195   :  { %v3086_v23 = vrot.slane %v3085_v43, 2  ;;  %v2370_v60 = vpop.xlane.xlu0 %2369 }
0x1196   :  { %v3037_v40 = vmul.f32 %v3023_v29, %v8077_v61  ;;  %v2609_v30 = vsel %vm2585_vm7, %v8080_v57, 0.0  ;;  %v8106_v24 = vsub.f32 %v7988_v49, %v2381_v7  ;;  %v2386_v8 = vmul.f32 %v2370_v60, %v7513_v21 }
0x1197   :  { %v2637_v58 = vsel %vm221_vm14, %v2609_v30, 0.0  ;;  %v3087_v16 = vadd.f32 %v3086_v23, %v3085_v43 }
0x1198   :  { %v3047_v48 = vsub.f32 %v7927_v62, %v3037_v40  ;;  %2638 = vadd.xlane.f32.xlu0 %v2637_v58  ;;  %v2471_v27 = vsel %vm2455_vm0, %v8106_v24, 0.0  ;;  %v8124_v33 = vsub.f32 %v8015_v20, %v2386_v8 }
0x1199   :  { %v3088_v37 = vrot.slane %v3087_v16, 1  ;;  %v2483_v49 = vsel %vm213_vm4, %v2471_v27, 0.0 }
0x119a   :  { %v8091_v39 = vsel %vm2932_vm9, %v8077_v61, %v3047_v48  ;;  %v2476_v0 = vsel %vm2455_vm0, %v8124_v33, 0.0  ;;  %vm3713_vm9 = vcmp.eq.s32.totalorder %v6450_v55, 27 }
0x119b   :  { %v3072_v47 = vsel %vm3062_vm12, %v8091_v39, 0.0  ;;  %v8097_v45 = vadd.f32 %v3088_v37, %v3087_v16  ;;  %v3127_v9 = vsel %vm3105_vm15, %v8091_v39, 0.0  ;;  %v2498_v18 = vsel %vm213_vm4, %v2476_v0, 0.0 }
0x119c   :  { %v3093_v26 = vsel %vm213_vm4, %v3072_v47, 0.0  ;;  %v3151_v41 = vsel %vm213_vm4, %v3127_v9, 0.0 }
0x119d   :  { %v3106_v62 = vsel %vm3105_vm15, %v8097_v45, 0.0  ;;  %v3099_v31 = vrot.slane %v3093_v26, 4 }
0x119e   :  { %v3108_v4 = vsel %vm213_vm4, %v3106_v62, 0.0 }
0x119f   :  { %3109 = vadd.xlane.f32.xlu1 %v3108_v4  ;;  %v3100_v5 = vadd.f32 %v3099_v31, %v3093_v26 }
0x11a1   :  { %v3101_v59 = vrot.slane %v3100_v5, 2 }
0x11a3   :  { %3137 = vadd.xlane.f32.xlu1 %v3136_v28  ;;  %v3102_v25 = vadd.f32 %v3101_v59, %v3100_v5 }
0x11a5   :  { %v3103_v63 = vrot.slane %v3102_v25, 1 }
0x11a7   :  { %2484 = vadd.xlane.f32.xlu1 %v2483_v49  ;;  %v8117_v17 = vadd.f32 %v3103_v63, %v3102_v25 }
0x11a9   :  { %v3107_v11 = vsel %vm3105_vm15, %v8117_v17, 0.0 }
0x11aa   :  { %v3111_v29 = vsel %vm213_vm4, %v3107_v11, 0.0 }
0x11ab   :  { %3112 = vadd.xlane.f32.xlu0 %v3111_v29 }
0x11af   :  { %3152 = vadd.xlane.f32.xlu0 %v3151_v41 }
0x11b3   :  { %2499 = vadd.xlane.f32.xlu0 %v2498_v18 }
0x1205   :  { %v2352_v50 = vpop.xlane.xlu1 %2351 }
0x1206   :  { %v2380_v42 = vmul.f32 %v2352_v50, %v7477_v22 }
0x1208   :  { %v8136_v20 = vsub.f32 %v8023_v52, %v2380_v42 }
0x120a   :  { %v2470_v34 = vsel %vm2455_vm0, %v8136_v20, 0.0 }
0x120b   :  { %v2480_v43 = vsel %vm213_vm4, %v2470_v34, 0.0 }
0x120c   :  { %2481 = vadd.xlane.f32.xlu1 %v2480_v43 }
0x120d   :  { %v3011_v23 = vpop.xlane.xlu1 %3010 }
0x120e   :  { %v3033_v40 = vmul.f32 %v3011_v23, %v8046_v54 }
0x1210   :  { %v8144_v30 = vsub.f32 %v8031_v36, %v3033_v40 }
0x1211   :  { %v2367_v58 = vpop.xlane.xlu0 %2366 }
0x1212   :  { %v2385_v16 = vmul.f32 %v2367_v58, %v7513_v21  ;;  %v3123_v22 = vsel %vm3105_vm15, %v8144_v30, 0.0 }
0x1213   :  { %v3139_v52 = vsel %vm213_vm4, %v3123_v22, 0.0 }
0x1214   :  { %v8152_v44 = vsub.f32 %v8038_v56, %v2385_v16  ;;  %3140 = vadd.xlane.f32.xlu1 %v3139_v52 }
0x1215   :  { %v2624_v48 = vpop.xlane.xlu1 %2623 }
0x1216   :  { %v2644_v37 = vmul.f32 %v2624_v48, %v7683_v32  ;;  %v2475_v36 = vsel %vm2455_vm0, %v8152_v44, 0.0  ;;  %vm3235_vm0 = vcmp.eq.s32.totalorder %v6044_v2, 23 }
0x1217   :  { %v2495_v7 = vsel %vm213_vm4, %v2475_v36, 0.0 }
0x1218   :  { %v8160_v21 = vsub.f32 %v8049_v10, %v2644_v37  ;;  %2496 = vadd.xlane.f32.xlu0 %v2495_v7 }
0x1219   :  { %v3026_v47 = vpop.xlane.xlu0 %3025 }
0x121a   :  { %v3038_v26 = vmul.f32 %v3026_v47, %v8077_v61  ;;  %v2734_v56 = vsel %vm2715_vm13, %v8160_v21, 0.0 }
0x121b   :  { %v2752_v62 = vsel %vm221_vm14, %v2734_v56, 0.0 }
0x121c   :  { %v8168_v31 = vsub.f32 %v8060_v38, %v3038_v26  ;;  %2753 = vadd.xlane.f32.xlu1 %v2752_v62 }
0x121e   :  { %v3128_v4 = vsel %vm3105_vm15, %v8168_v31, 0.0 }
0x121f   :  { %v3154_v10 = vsel %vm213_vm4, %v3128_v4, 0.0 }
0x1220   :  { %3155 = vadd.xlane.f32.xlu0 %v3154_v10 }
0x1221   :  { %v2639_v15 = vpop.xlane.xlu0 %2638 }
0x1222   :  { %v2649_v5 = vmul.f32 %v2639_v15, %v7693_v1 }
0x1224   :  { %v8176_v59 = vsub.f32 %v8080_v57, %v2649_v5 }
0x1226   :  { %v2739_v28 = vsel %vm2715_vm13, %v8176_v59, 0.0 }
0x1227   :  { %v2767_v38 = vsel %vm221_vm14, %v2739_v28, 0.0 }
0x1228   :  { %2768 = vadd.xlane.f32.xlu0 %v2767_v38  ;;  %v3110_v27 = vpop.xlane.xlu1 %3109 }
0x1229   :  { %5772 = vrcp.f32 %v3110_v27 }
0x122c   :  { %v3138_v49 = vpop.xlane.xlu1 %3137 }
0x1230   :  { %v2485_v18 = vpop.xlane.xlu1 %2484 }
0x1231   :  { %v2511_v43 = vmul.f32 %v2485_v18, %v7596_v6 }
0x1233   :  { %v8209_v22 = vsub.f32 %v8106_v24, %v2511_v43 }
0x1234   :  { %v3113_v25 = vpop.xlane.xlu0 %3112 }
0x1235   :  { %5774 = vrcp.f32 %v3113_v25  ;;  %v2601_v24 = vsel %vm2585_vm7, %v8209_v22, 0.0 }
0x1236   :  { %v5773_v60 = vpop.eup %5772  ;;  %v2613_v56 = vsel %vm213_vm4, %v2601_v24, 0.0 }
0x1237   :  { %v8183_v63 = vmul.f32 %v5773_v60, %v8097_v45 }
0x1238   :  { %v3153_v42 = vpop.xlane.xlu0 %3152 }
0x1239   :  { %v3162_v8 = vmul.f32 %v3138_v49, %v8183_v63 }
0x123b   :  { %v3172_v57 = vsub.f32 %v8065_v19, %v3162_v8 }
0x123c   :  { %v2500_v47 = vpop.xlane.xlu0 %2499 }
0x123d   :  { %v8191_v11 = vsel %vm3062_vm12, %v8183_v63, %v3172_v57  ;;  %v2516_v62 = vmul.f32 %v2500_v47, %v7610_v46 }
0x123e   :  { %v3197_v29 = vsel %vm3192_vm8, %v8191_v11, 0.0 }
0x123f   :  { %v3208_v9 = vsel %vm213_vm4, %v3197_v29, 0.0  ;;  %v2526_v15 = vsub.f32 %v8124_v33, %v2516_v62 }
0x1240   :  { %v3214_v45 = vrot.slane %v3208_v9, 4 }
0x1241   :  { %v2606_v27 = vsel %vm2585_vm7, %v2526_v15, 0.0 }
0x1242   :  { %v5775_v41 = vpop.eup %5774  ;;  %v3215_v0 = vadd.f32 %v3214_v45, %v3208_v9  ;;  %v2628_v25 = vsel %vm213_vm4, %v2606_v27, 0.0 }
0x1243   :  { %v8198_v50 = vmul.f32 %v5775_v41, %v8117_v17 }
0x1244   :  { %v3216_v19 = vrot.slane %v3215_v0, 2 }
0x1245   :  { %v3167_v34 = vmul.f32 %v3153_v42, %v8198_v50 }
0x1246   :  { %v3217_v23 = vadd.f32 %v3216_v19, %v3215_v0 }
0x1247   :  { %v3177_v40 = vsub.f32 %v8091_v39, %v3167_v34 }
0x1248   :  { %v3218_v58 = vrot.slane %v3217_v23, 1 }
0x1249   :  { %v8206_v16 = vsel %vm3062_vm12, %v8198_v50, %v3177_v40  ;;  %vm3843_vm12 = vcmp.eq.s32.totalorder %v6450_v55, 28 }
0x124a   :  { %v3202_v17 = vsel %vm3192_vm8, %v8206_v16, 0.0  ;;  %v8214_v52 = vadd.f32 %v3218_v58, %v3217_v23 }
0x124b   :  { %v3223_v48 = vsel %vm213_vm4, %v3202_v17, 0.0 }
0x124c   :  { %v3236_v39 = vsel %vm3235_vm0, %v8214_v52, 0.0  ;;  %v3229_v37 = vrot.slane %v3223_v48, 4 }
0x124d   :  { %v3238_v36 = vsel %vm213_vm4, %v3236_v39, 0.0 }
0x124e   :  { %3239 = vadd.xlane.f32.xlu1 %v3238_v36  ;;  %v3230_v7 = vadd.f32 %v3229_v37, %v3223_v48 }
0x1250   :  { %v3231_v26 = vrot.slane %v3230_v7, 2 }
0x1252   :  { %2614 = vadd.xlane.f32.xlu1 %v2613_v56  ;;  %v3232_v4 = vadd.f32 %v3231_v26, %v3230_v7 }
0x1254   :  { %v3233_v10 = vrot.slane %v3232_v4, 1 }
0x1256   :  { %v8228_v5 = vadd.f32 %v3233_v10, %v3232_v4 }
0x1258   :  { %v3237_v28 = vsel %vm3235_vm0, %v8228_v5, 0.0 }
0x1259   :  { %v3241_v38 = vsel %vm213_vm4, %v3237_v28, 0.0 }
0x125a   :  { %3242 = vadd.xlane.f32.xlu0 %v3241_v38 }
0x125e   :  { %2629 = vadd.xlane.f32.xlu0 %v2628_v25 }
0x1295   :  { %v2482_v60 = vpop.xlane.xlu1 %2481 }
0x1296   :  { %v2510_v49 = vmul.f32 %v2482_v60, %v7596_v6 }
0x1298   :  { %v2520_v33 = vsub.f32 %v8136_v20, %v2510_v49 }
0x129a   :  { %v2600_v8 = vsel %vm2585_vm7, %v2520_v33, 0.0 }
0x129b   :  { %v2610_v57 = vsel %vm213_vm4, %v2600_v8, 0.0 }
0x129c   :  { %2611 = vadd.xlane.f32.xlu1 %v2610_v57 }
0x129d   :  { %v3141_v29 = vpop.xlane.xlu1 %3140 }
0x129e   :  { %v3163_v9 = vmul.f32 %v3141_v29, %v8183_v63 }
0x12a0   :  { %v3173_v45 = vsub.f32 %v8144_v30, %v3163_v9 }
0x12a1   :  { %v2497_v41 = vpop.xlane.xlu0 %2496 }
0x12a2   :  { %v2515_v0 = vmul.f32 %v2497_v41, %v7610_v46  ;;  %v3253_v18 = vsel %vm3235_vm0, %v3173_v45, 0.0 }
0x12a3   :  { %v3269_v6 = vsel %vm213_vm4, %v3253_v18, 0.0 }
0x12a4   :  { %v2525_v20 = vsub.f32 %v8152_v44, %v2515_v0  ;;  %3270 = vadd.xlane.f32.xlu1 %v3269_v6 }
0x12a5   :  { %v2754_v42 = vpop.xlane.xlu1 %2753 }
0x12a6   :  { %v2774_v19 = vmul.f32 %v2754_v42, %v7796_v35  ;;  %v2605_v34 = vsel %vm2585_vm7, %v2525_v20, 0.0  ;;  %vm3365_vm7 = vcmp.eq.s32.totalorder %v6044_v2, 24 }
0x12a7   :  { %v2625_v43 = vsel %vm213_vm4, %v2605_v34, 0.0 }
0x12a8   :  { %v8254_v30 = vsub.f32 %v8160_v21, %v2774_v19  ;;  %2626 = vadd.xlane.f32.xlu0 %v2625_v43 }
0x12a9   :  { %v3156_v46 = vpop.xlane.xlu0 %3155 }
0x12aa   :  { %v3168_v23 = vmul.f32 %v3156_v46, %v8198_v50  ;;  %v2864_v44 = vsel %vm2845_vm3, %v8254_v30, 0.0 }
0x12ab   :  { %v2882_v40 = vsel %vm221_vm14, %v2864_v44, 0.0 }
0x12ac   :  { %v3178_v58 = vsub.f32 %v8168_v31, %v3168_v23  ;;  %2883 = vadd.xlane.f32.xlu1 %v2882_v40 }
0x12ae   :  { %v3258_v17 = vsel %vm3235_vm0, %v3178_v58, 0.0 }
0x12af   :  { %v3284_v48 = vsel %vm213_vm4, %v3258_v17, 0.0 }
0x12b0   :  { %3285 = vadd.xlane.f32.xlu0 %v3284_v48 }
0x12b1   :  { %v2769_v21 = vpop.xlane.xlu0 %2768 }
0x12b2   :  { %v2779_v39 = vmul.f32 %v2769_v21, %v7818_v12 }
0x12b4   :  { %v8267_v37 = vsub.f32 %v8176_v59, %v2779_v39 }
0x12b6   :  { %v2869_v36 = vsel %vm2845_vm3, %v8267_v37, 0.0 }
0x12b7   :  { %v2897_v24 = vsel %vm221_vm14, %v2869_v36, 0.0 }
0x12b8   :  { %2898 = vadd.xlane.f32.xlu0 %v2897_v24 }
0x12d7   :  { %v3240_v31 = vpop.xlane.xlu1 %3239 }
0x12d8   :  { %5776 = vrcp.f32 %v3240_v31 }
0x12db   :  { %v2615_v7 = vpop.xlane.xlu1 %2614 }
0x12dc   :  { %v2641_v47 = vmul.f32 %v2615_v7, %v7683_v32 }
0x12de   :  { %v8275_v26 = vsub.f32 %v8209_v22, %v2641_v47 }
0x12e0   :  { %v2731_v56 = vsel %vm2715_vm13, %v8275_v26, 0.0 }
0x12e1   :  { %v2743_v59 = vsel %vm213_vm4, %v2731_v56, 0.0 }
0x12e2   :  { %2744 = vadd.xlane.f32.xlu1 %v2743_v59 }
0x12e3   :  { %v3243_v62 = vpop.xlane.xlu0 %3242 }
0x12e4   :  { %5778 = vrcp.f32 %v3243_v62 }
0x12e5   :  { %v5777_v49 = vpop.eup %5776 }
0x12e6   :  { %v8296_v57 = vmul.f32 %v5777_v49, %v8214_v52 }
0x12e7   :  { %v2630_v4 = vpop.xlane.xlu0 %2629 }
0x12e8   :  { %v2646_v10 = vmul.f32 %v2630_v4, %v7693_v1 }
0x12ea   :  { %v8282_v28 = vsub.f32 %v2526_v15, %v2646_v10 }
0x12ec   :  { %v2736_v38 = vsel %vm2715_vm13, %v8282_v28, 0.0 }
0x12ed   :  { %v2758_v22 = vsel %vm213_vm4, %v2736_v38, 0.0 }
0x12ee   :  { %2759 = vadd.xlane.f32.xlu0 %v2758_v22 }
0x12f1   :  { %v5779_v42 = vpop.eup %5778 }
0x12f2   :  { %v8314_v46 = vmul.f32 %v5779_v42, %v8228_v5 }
0x1325   :  { %v2612_v27 = vpop.xlane.xlu1 %2611 }
0x1326   :  { %v2640_v25 = vmul.f32 %v2612_v27, %v7683_v32 }
0x1328   :  { %v8289_v60 = vsub.f32 %v2520_v33, %v2640_v25 }
0x132a   :  { %v2730_v15 = vsel %vm2715_vm13, %v8289_v60, 0.0 }
0x132b   :  { %v2740_v8 = vsel %vm213_vm4, %v2730_v15, 0.0 }
0x132c   :  { %2741 = vadd.xlane.f32.xlu1 %v2740_v8 }
0x132d   :  { %v3271_v29 = vpop.xlane.xlu1 %3270 }
0x132e   :  { %v3293_v9 = vmul.f32 %v3271_v29, %v8296_v57 }
0x1330   :  { %v8300_v32 = vsub.f32 %v3173_v45, %v3293_v9 }
0x1331   :  { %v2627_v33 = vpop.xlane.xlu0 %2626 }
0x1332   :  { %v3328_v41 = vsel %vm3323_vm6, %v8300_v32, 0.0  ;;  %v2645_v0 = vmul.f32 %v2627_v33, %v7693_v1  ;;  %v3383_v4 = vsel %vm3365_vm7, %v8300_v32, 0.0 }
0x1333   :  { %v3340_v18 = vsel %vm213_vm4, %v3328_v41, 0.0  ;;  %v3399_v22 = vsel %vm213_vm4, %v3383_v4, 0.0 }
0x1334   :  { %v3344_v6 = vrot.slane %v3340_v18, 4  ;;  %v8307_v52 = vsub.f32 %v2525_v20, %v2645_v0 }
0x1335   :  { %v2884_v45 = vpop.xlane.xlu1 %2883 }
0x1336   :  { %v2735_v19 = vsel %vm2715_vm13, %v8307_v52, 0.0  ;;  %v3345_v34 = vadd.f32 %v3344_v6, %v3340_v18  ;;  %v2904_v44 = vmul.f32 %v2884_v45, %v7906_v13  ;;  %vm3495_vm13 = vcmp.eq.s32.totalorder %v6044_v2, 25 }
0x1337   :  { %v2755_v43 = vsel %vm213_vm4, %v2735_v19, 0.0 }
0x1338   :  { %2756 = vadd.xlane.f32.xlu0 %v2755_v43  ;;  %v3346_v23 = vrot.slane %v3345_v34, 2  ;;  %v2914_v21 = vsub.f32 %v8254_v30, %v2904_v44 }
0x1339   :  { %v3286_v1 = vpop.xlane.xlu0 %3285 }
0x133a   :  { %v3298_v20 = vmul.f32 %v3286_v1, %v8314_v46  ;;  %v3347_v40 = vadd.f32 %v3346_v23, %v3345_v34  ;;  %v2994_v30 = vsel %vm2975_vm11, %v2914_v21, 0.0 }
0x133b   :  { %v3012_v59 = vsel %vm221_vm14, %v2994_v30, 0.0 }
0x133c   :  { %v8318_v17 = vsub.f32 %v3178_v58, %v3298_v20  ;;  %v3348_v48 = vrot.slane %v3347_v40, 1 }
0x133e   :  { %v3333_v39 = vsel %vm3323_vm6, %v8318_v17, 0.0  ;;  %v8324_v36 = vadd.f32 %v3348_v48, %v3347_v40  ;;  %v3388_v9 = vsel %vm3365_vm7, %v8318_v17, 0.0 }
0x133f   :  { %v3355_v5 = vsel %vm213_vm4, %v3333_v39, 0.0 }
0x1340   :  { %v3359_v24 = vrot.slane %v3355_v5, 4  ;;  %v3366_v31 = vsel %vm3365_vm7, %v8324_v36, 0.0 }
0x1341   :  { %v3368_v58 = vsel %vm213_vm4, %v3366_v31, 0.0  ;;  %v2899_v47 = vpop.xlane.xlu0 %2898 }
0x1342   :  { %3369 = vadd.xlane.f32.xlu1 %v3368_v58  ;;  %v3360_v7 = vadd.f32 %v3359_v24, %v3355_v5  ;;  %v2909_v62 = vmul.f32 %v2899_v47, %v7916_v51 }
0x1344   :  { %v3361_v56 = vrot.slane %v3360_v7, 2  ;;  %v2919_v27 = vsub.f32 %v8267_v37, %v2909_v62  ;;  %v3414_v37 = vsel %vm213_vm4, %v3388_v9, 0.0 }
0x1346   :  { %3013 = vadd.xlane.f32.xlu1 %v3012_v59  ;;  %v3362_v10 = vadd.f32 %v3361_v56, %v3360_v7  ;;  %v2999_v8 = vsel %vm2975_vm11, %v2919_v27, 0.0 }
0x1347   :  { %v3027_v29 = vsel %vm221_vm14, %v2999_v8, 0.0 }
0x1348   :  { %v3363_v38 = vrot.slane %v3362_v10, 1 }
0x134a   :  { %3400 = vadd.xlane.f32.xlu1 %v3399_v22  ;;  %v3364_v25 = vadd.f32 %v3363_v38, %v3362_v10 }
0x134c   :  { %v3367_v49 = vsel %vm3365_vm7, %v3364_v25, 0.0 }
0x134d   :  { %v3371_v15 = vsel %vm213_vm4, %v3367_v49, 0.0 }
0x134e   :  { %3372 = vadd.xlane.f32.xlu0 %v3371_v15 }
0x1352   :  { %3028 = vadd.xlane.f32.xlu0 %v3027_v29 }
0x1356   :  { %3415 = vadd.xlane.f32.xlu0 %v3414_v37 }
0x136b   :  { %v2745_v33 = vpop.xlane.xlu1 %2744 }
0x136c   :  { %v2771_v41 = vmul.f32 %v2745_v33, %v7796_v35 }
0x136e   :  { %v8353_v0 = vsub.f32 %v8275_v26, %v2771_v41 }
0x1370   :  { %v2861_v18 = vsel %vm2845_vm3, %v8353_v0, 0.0 }
0x1371   :  { %v2873_v6 = vsel %vm213_vm4, %v2861_v18, 0.0 }
0x1372   :  { %2874 = vadd.xlane.f32.xlu1 %v2873_v6 }
0x1377   :  { %v2760_v42 = vpop.xlane.xlu0 %2759 }
0x1378   :  { %v2776_v19 = vmul.f32 %v2760_v42, %v7818_v12 }
0x137a   :  { %v8361_v34 = vsub.f32 %v8282_v28, %v2776_v19 }
0x137c   :  { %v2866_v45 = vsel %vm2845_vm3, %v8361_v34, 0.0 }
0x137d   :  { %v2888_v26 = vsel %vm213_vm4, %v2866_v45, 0.0 }
0x137e   :  { %2889 = vadd.xlane.f32.xlu0 %v2888_v26 }
0x13b5   :  { %v2742_v43 = vpop.xlane.xlu1 %2741 }
0x13b6   :  { %v2770_v23 = vmul.f32 %v2742_v43, %v7796_v35 }
0x13b8   :  { %v8369_v1 = vsub.f32 %v8289_v60, %v2770_v23 }
0x13ba   :  { %v2860_v44 = vsel %vm2845_vm3, %v8369_v1, 0.0 }
0x13bb   :  { %v2870_v28 = vsel %vm213_vm4, %v2860_v44, 0.0 }
0x13bc   :  { %2871 = vadd.xlane.f32.xlu1 %v2870_v28 }
0x13c1   :  { %v2757_v20 = vpop.xlane.xlu0 %2756 }
0x13c2   :  { %v2775_v40 = vmul.f32 %v2757_v20, %v7818_v12 }
0x13c4   :  { %v8377_v48 = vsub.f32 %v8307_v52, %v2775_v40 }
0x13c6   :  { %v2865_v35 = vsel %vm2845_vm3, %v8377_v48, 0.0  ;;  %vm3625_vm3 = vcmp.eq.s32.totalorder %v6044_v2, 26 }
0x13c7   :  { %v2885_v60 = vsel %vm213_vm4, %v2865_v35, 0.0 }
0x13c8   :  { %2886 = vadd.xlane.f32.xlu0 %v2885_v60 }
0x13cb   :  { %v3370_v39 = vpop.xlane.xlu1 %3369 }
0x13cc   :  { %5780 = vrcp.f32 %v3370_v39 }
0x13cf   :  { %v3014_v5 = vpop.xlane.xlu1 %3013 }
0x13d0   :  { %v3034_v24 = vmul.f32 %v3014_v5, %v8046_v54 }
0x13d2   :  { %v8384_v31 = vsub.f32 %v2914_v21, %v3034_v24 }
0x13d3   :  { %v3401_v47 = vpop.xlane.xlu1 %3400 }
0x13d4   :  { %v3124_v12 = vsel %vm3105_vm15, %v8384_v31, 0.0 }
0x13d5   :  { %v3142_v52 = vsel %vm221_vm14, %v3124_v12, 0.0 }
0x13d6   :  { %3143 = vadd.xlane.f32.xlu1 %v3142_v52 }
0x13d7   :  { %v3373_v58 = vpop.xlane.xlu0 %3372 }
0x13d8   :  { %5782 = vrcp.f32 %v3373_v58 }
0x13d9   :  { %v5781_v30 = vpop.eup %5780 }
0x13da   :  { %v8391_v7 = vmul.f32 %v5781_v30, %v8324_v36 }
0x13db   :  { %v3029_v56 = vpop.xlane.xlu0 %3028 }
0x13dc   :  { %v3423_v59 = vmul.f32 %v3401_v47, %v8391_v7  ;;  %v3039_v21 = vmul.f32 %v3029_v56, %v8077_v61 }
0x13de   :  { %v3433_v62 = vsub.f32 %v8300_v32, %v3423_v59  ;;  %v8397_v4 = vsub.f32 %v2919_v27, %v3039_v21 }
0x13df   :  { %v3416_v29 = vpop.xlane.xlu0 %3415 }
0x13e0   :  { %v8402_v10 = vsel %vm3323_vm6, %v8391_v7, %v3433_v62  ;;  %v3129_v36 = vsel %vm3105_vm15, %v8397_v4, 0.0 }
0x13e1   :  { %v3458_v38 = vsel %vm3453_vm10, %v8402_v10, 0.0  ;;  %v3157_v22 = vsel %vm221_vm14, %v3129_v36, 0.0  ;;  %v3513_v43 = vsel %vm3495_vm13, %v8402_v10, 0.0 }
0x13e2   :  { %3158 = vadd.xlane.f32.xlu0 %v3157_v22  ;;  %v3470_v32 = vsel %vm213_vm4, %v3458_v38, 0.0  ;;  %v3529_v28 = vsel %vm213_vm4, %v3513_v43, 0.0 }
0x13e3   :  { %v3474_v27 = vrot.slane %v3470_v32, 4 }
0x13e5   :  { %v5783_v49 = vpop.eup %5782  ;;  %v3475_v15 = vadd.f32 %v3474_v27, %v3470_v32 }
0x13e6   :  { %v8412_v8 = vmul.f32 %v5783_v49, %v3364_v25 }
0x13e7   :  { %v3476_v9 = vrot.slane %v3475_v15, 2 }
0x13e8   :  { %v3428_v37 = vmul.f32 %v3416_v29, %v8412_v8 }
0x13e9   :  { %v3477_v33 = vadd.f32 %v3476_v9, %v3475_v15 }
0x13ea   :  { %v3438_v41 = vsub.f32 %v8318_v17, %v3428_v37 }
0x13eb   :  { %v3478_v18 = vrot.slane %v3477_v33, 1 }
0x13ec   :  { %v8419_v6 = vsel %vm3323_vm6, %v8412_v8, %v3438_v41  ;;  %vm4103_vm6 = vcmp.eq.s32.totalorder %v6450_v55, 30 }
0x13ed   :  { %v3463_v42 = vsel %vm3453_vm10, %v8419_v6, 0.0  ;;  %v8424_v19 = vadd.f32 %v3478_v18, %v3477_v33  ;;  %v3518_v12 = vsel %vm3495_vm13, %v8419_v6, 0.0 }
0x13ee   :  { %v3485_v25 = vsel %vm213_vm4, %v3463_v42, 0.0  ;;  %v3544_v58 = vsel %vm213_vm4, %v3518_v12, 0.0 }
0x13ef   :  { %v3496_v17 = vsel %vm3495_vm13, %v8424_v19, 0.0  ;;  %v3489_v45 = vrot.slane %v3485_v25, 4 }
0x13f0   :  { %v3498_v26 = vsel %vm213_vm4, %v3496_v17, 0.0 }
0x13f1   :  { %3499 = vadd.xlane.f32.xlu1 %v3498_v26  ;;  %v3490_v23 = vadd.f32 %v3489_v45, %v3485_v25 }
0x13f3   :  { %v3491_v44 = vrot.slane %v3490_v23, 2 }
0x13f5   :  { %3530 = vadd.xlane.f32.xlu1 %v3529_v28  ;;  %v3492_v20 = vadd.f32 %v3491_v44, %v3490_v23 }
0x13f7   :  { %v3493_v40 = vrot.slane %v3492_v20, 1 }
0x13f9   :  { %v8436_v35 = vadd.f32 %v3493_v40, %v3492_v20 }
0x13fb   :  { %v2875_v60 = vpop.xlane.xlu1 %2874  ;;  %v3497_v39 = vsel %vm3495_vm13, %v8436_v35, 0.0 }
0x13fc   :  { %v2901_v5 = vmul.f32 %v2875_v60, %v7906_v13  ;;  %v3501_v24 = vsel %vm213_vm4, %v3497_v39, 0.0 }
0x13fd   :  { %3502 = vadd.xlane.f32.xlu0 %v3501_v24 }
0x13fe   :  { %v2911_v52 = vsub.f32 %v8353_v0, %v2901_v5 }
0x1400   :  { %v2991_v30 = vsel %vm2975_vm11, %v2911_v52, 0.0 }
0x1401   :  { %3545 = vadd.xlane.f32.xlu0 %v3544_v58  ;;  %v3003_v47 = vsel %vm213_vm4, %v2991_v30, 0.0 }
0x1402   :  { %3004 = vadd.xlane.f32.xlu1 %v3003_v47 }
0x1407   :  { %v2890_v56 = vpop.xlane.xlu0 %2889 }
0x1408   :  { %v2906_v59 = vmul.f32 %v2890_v56, %v7916_v51 }
0x140a   :  { %v2916_v21 = vsub.f32 %v8361_v34, %v2906_v59 }
0x140c   :  { %v2996_v62 = vsel %vm2975_vm11, %v2916_v21, 0.0 }
0x140d   :  { %v3018_v36 = vsel %vm213_vm4, %v2996_v62, 0.0 }
0x140e   :  { %3019 = vadd.xlane.f32.xlu0 %v3018_v36 }
0x1445   :  { %v2872_v0 = vpop.xlane.xlu1 %2871 }
0x1446   :  { %v2900_v38 = vmul.f32 %v2872_v0, %v7906_v13 }
0x1448   :  { %v8458_v22 = vsub.f32 %v8369_v1, %v2900_v38 }
0x144a   :  { %v2990_v32 = vsel %vm2975_vm11, %v8458_v22, 0.0 }
0x144b   :  { %v3000_v27 = vsel %vm213_vm4, %v2990_v32, 0.0 }
0x144c   :  { %3001 = vadd.xlane.f32.xlu1 %v3000_v27 }
0x1451   :  { %v2887_v34 = vpop.xlane.xlu0 %2886 }
0x1452   :  { %v2905_v49 = vmul.f32 %v2887_v34, %v7916_v51 }
0x1454   :  { %v8466_v15 = vsub.f32 %v8377_v48, %v2905_v49 }
0x1456   :  { %v2995_v13 = vsel %vm2975_vm11, %v8466_v15, 0.0  ;;  %vm3755_vm11 = vcmp.eq.s32.totalorder %v6044_v2, 27 }
0x1457   :  { %v3015_v1 = vsel %vm213_vm4, %v2995_v13, 0.0 }
0x1458   :  { %3016 = vadd.xlane.f32.xlu0 %v3015_v1 }
0x145f   :  { %v3144_v29 = vpop.xlane.xlu1 %3143 }
0x1460   :  { %v3164_v9 = vmul.f32 %v3144_v29, %v8183_v63 }
0x1462   :  { %v8474_v37 = vsub.f32 %v8384_v31, %v3164_v9 }
0x1464   :  { %v3254_v51 = vsel %vm3235_vm0, %v8474_v37, 0.0 }
0x1465   :  { %v3272_v48 = vsel %vm221_vm14, %v3254_v51, 0.0 }
0x1466   :  { %3273 = vadd.xlane.f32.xlu1 %v3272_v48 }
0x146b   :  { %v3159_v33 = vpop.xlane.xlu0 %3158 }
0x146c   :  { %v3169_v41 = vmul.f32 %v3159_v33, %v8198_v50 }
0x146e   :  { %v8482_v18 = vsub.f32 %v8397_v4, %v3169_v41 }
0x1470   :  { %v3259_v42 = vsel %vm3235_vm0, %v8482_v18, 0.0 }
0x1471   :  { %v3287_v31 = vsel %vm221_vm14, %v3259_v42, 0.0 }
0x1472   :  { %3288 = vadd.xlane.f32.xlu0 %v3287_v31 }
0x147a   :  { %v3500_v25 = vpop.xlane.xlu1 %3499 }
0x147b   :  { %5784 = vrcp.f32 %v3500_v25 }
0x147e   :  { %v3531_v17 = vpop.xlane.xlu1 %3530 }
0x1486   :  { %v3503_v43 = vpop.xlane.xlu0 %3502 }
0x1487   :  { %5786 = vrcp.f32 %v3503_v43 }
0x1488   :  { %v5785_v24 = vpop.eup %5784 }
0x1489   :  { %v8503_v12 = vmul.f32 %v5785_v24, %v8424_v19 }
0x148a   :  { %v3546_v28 = vpop.xlane.xlu0 %3545 }
0x148b   :  { %v3005_v45 = vpop.xlane.xlu1 %3004 }
0x148c   :  { %v3031_v26 = vmul.f32 %v3005_v45, %v8046_v54 }
0x148e   :  { %v8489_v23 = vsub.f32 %v2911_v52, %v3031_v26  ;;  %v3553_v52 = vmul.f32 %v3531_v17, %v8503_v12 }
0x1490   :  { %v3121_v4 = vsel %vm3105_vm15, %v8489_v23, 0.0  ;;  %v3563_v58 = vsub.f32 %v8402_v10, %v3553_v52 }
0x1491   :  { %v3133_v44 = vsel %vm213_vm4, %v3121_v4, 0.0 }
0x1492   :  { %3134 = vadd.xlane.f32.xlu1 %v3133_v44  ;;  %v8511_v47 = vsel %vm3453_vm10, %v8503_v12, %v3563_v58  ;;  %v3252_v58 = vsel %vm3235_vm0, %v8191_v11, 0.0 }
0x1493   :  { %v3588_v19 = vsel %vm3583_vm5, %v8511_v47, 0.0 }
0x1494   :  { %v5787_v30 = vpop.eup %5786 }
0x1495   :  { %v8514_v56 = vmul.f32 %v5787_v30, %v8436_v35  ;;  %v3266_v30 = vsel %vm213_vm4, %v3252_v58, 0.0 }
0x1497   :  { %v3020_v20 = vpop.xlane.xlu0 %3019  ;;  %v3558_v59 = vmul.f32 %v3546_v28, %v8514_v56 }
0x1498   :  { %v3036_v40 = vmul.f32 %v3020_v20, %v8077_v61 }
0x1499   :  { %v3568_v10 = vsub.f32 %v8419_v6, %v3558_v59 }
0x149a   :  { %v8496_v60 = vsub.f32 %v2916_v21, %v3036_v40  ;;  %v3600_v21 = vsel %vm213_vm4, %v3588_v19, 0.0 }
0x149b   :  { %v3604_v62 = vrot.slane %v3600_v21, 4  ;;  %v8525_v36 = vsel %vm3453_vm10, %v8514_v56, %v3568_v10  ;;  %vm4233_vm10 = vcmp.eq.s32.totalorder %v6450_v55, 31 }
0x149c   :  { %v3126_v39 = vsel %vm3105_vm15, %v8496_v60, 0.0  ;;  %v3593_v35 = vsel %vm3583_vm5, %v8525_v36, 0.0 }
0x149d   :  { %v3148_v5 = vsel %vm213_vm4, %v3126_v39, 0.0  ;;  %v3605_v0 = vadd.f32 %v3604_v62, %v3600_v21  ;;  %v3615_v32 = vsel %vm213_vm4, %v3593_v35, 0.0  ;;  %v3257_v62 = vsel %vm3235_vm0, %v8206_v16, 0.0 }
0x149e   :  { %3149 = vadd.xlane.f32.xlu0 %v3148_v5  ;;  %v3619_v34 = vrot.slane %v3615_v32, 4 }
0x149f   :  { %v3606_v38 = vrot.slane %v3605_v0, 2 }
0x14a0   :  { %v3620_v13 = vadd.f32 %v3619_v34, %v3615_v32 }
0x14a1   :  { %v3607_v27 = vadd.f32 %v3606_v38, %v3605_v0  ;;  %v3281_v0 = vsel %vm213_vm4, %v3257_v62, 0.0 }
0x14a2   :  { %v3621_v51 = vrot.slane %v3620_v13, 2 }
0x14a3   :  { %v3608_v49 = vrot.slane %v3607_v27, 1 }
0x14a4   :  { %v3622_v42 = vadd.f32 %v3621_v51, %v3620_v13 }
0x14a5   :  { %v8533_v9 = vadd.f32 %v3608_v49, %v3607_v27 }
0x14a6   :  { %v3623_v31 = vrot.slane %v3622_v42, 1 }
0x14a7   :  { %v3626_v41 = vsel %vm3625_vm3, %v8533_v9, 0.0 }
0x14a8   :  { %v8549_v43 = vadd.f32 %v3623_v31, %v3622_v42 }
0x14aa   :  { %v3627_v28 = vsel %vm3625_vm3, %v8549_v43, 0.0 }
0x14ab   :  { %v3631_v20 = vsel %vm213_vm4, %v3627_v28, 0.0 }
0x14d5   :  { %v3002_v1 = vpop.xlane.xlu1 %3001 }
0x14d6   :  { %v3030_v6 = vmul.f32 %v3002_v1, %v8046_v54  ;;  %v3628_v54 = vsel %vm213_vm4, %v3626_v41, 0.0 }
0x14d8   :  { %v3040_v29 = vsub.f32 %v8458_v22, %v3030_v6  ;;  %v3643_v22 = vsel %vm3625_vm3, %v8511_v47, 0.0 }
0x14d9   :  { %v3659_v45 = vsel %vm213_vm4, %v3643_v22, 0.0 }
0x14da   :  { %v3120_v48 = vsel %vm3105_vm15, %v3040_v29, 0.0 }
0x14db   :  { %v3130_v33 = vsel %vm213_vm4, %v3120_v48, 0.0 }
0x14dc   :  { %3131 = vadd.xlane.f32.xlu1 %v3130_v33 }
0x14e0   :  { %3629 = vadd.xlane.f32.xlu1 %v3628_v54 }
0x14e1   :  { %v3017_v25 = vpop.xlane.xlu0 %3016 }
0x14e2   :  { %v3035_v17 = vmul.f32 %v3017_v25, %v8077_v61  ;;  %v3648_v61 = vsel %vm3625_vm3, %v8525_v36, 0.0 }
0x14e3   :  { %v3674_v40 = vsel %vm213_vm4, %v3648_v61, 0.0 }
0x14e4   :  { %v3045_v26 = vsub.f32 %v8466_v15, %v3035_v17  ;;  %3660 = vadd.xlane.f32.xlu1 %v3659_v45 }
0x14e6   :  { %v3125_v4 = vsel %vm3105_vm15, %v3045_v26, 0.0  ;;  %vm3885_vm15 = vcmp.eq.s32.totalorder %v6044_v2, 28 }
0x14e7   :  { %v3145_v44 = vsel %vm213_vm4, %v3125_v4, 0.0 }
0x14e8   :  { %3146 = vadd.xlane.f32.xlu0 %v3145_v44 }
0x14ec   :  { %3632 = vadd.xlane.f32.xlu0 %v3631_v20 }
0x14ef   :  { %v3274_v15 = vpop.xlane.xlu1 %3273 }
0x14f0   :  { %v3294_v39 = vmul.f32 %v3274_v15, %v8296_v57  ;;  %3675 = vadd.xlane.f32.xlu0 %v3674_v40 }
0x14f2   :  { %v3304_v5 = vsub.f32 %v8474_v37, %v3294_v39 }
0x14f4   :  { %v3384_v24 = vsel %vm3365_vm7, %v3304_v5, 0.0 }
0x14f5   :  { %v3402_v52 = vsel %vm221_vm14, %v3384_v24, 0.0 }
0x14f6   :  { %3403 = vadd.xlane.f32.xlu1 %v3402_v52 }
0x14fa   :  { %3267 = vadd.xlane.f32.xlu1 %v3266_v30 }
0x14fb   :  { %v3289_v19 = vpop.xlane.xlu0 %3288 }
0x14fc   :  { %v3299_v59 = vmul.f32 %v3289_v19, %v8314_v46 }
0x14fe   :  { %v8573_v21 = vsub.f32 %v8482_v18, %v3299_v59 }
0x1500   :  { %v3389_v37 = vsel %vm3365_vm7, %v8573_v21, 0.0 }
0x1501   :  { %v3417_v10 = vsel %vm221_vm14, %v3389_v37, 0.0 }
0x1502   :  { %3418 = vadd.xlane.f32.xlu0 %v3417_v10 }
0x1506   :  { %3282 = vadd.xlane.f32.xlu0 %v3281_v0 }
0x151b   :  { %v3135_v35 = vpop.xlane.xlu1 %3134 }
0x151c   :  { %v3161_v38 = vmul.f32 %v3135_v35, %v8183_v63 }
0x151e   :  { %v8585_v18 = vsub.f32 %v8489_v23, %v3161_v38 }
0x1520   :  { %v3251_v32 = vsel %vm3235_vm0, %v8585_v18, 0.0 }
0x1521   :  { %v3263_v27 = vsel %vm213_vm4, %v3251_v32, 0.0 }
0x1522   :  { %3264 = vadd.xlane.f32.xlu1 %v3263_v27 }
0x1527   :  { %v3150_v34 = vpop.xlane.xlu0 %3149 }
0x1528   :  { %v3166_v49 = vmul.f32 %v3150_v34, %v8198_v50 }
0x152a   :  { %v8593_v13 = vsub.f32 %v8496_v60, %v3166_v49 }
0x152c   :  { %v3256_v1 = vsel %vm3235_vm0, %v8593_v13, 0.0 }
0x152d   :  { %v3278_v23 = vsel %vm213_vm4, %v3256_v1, 0.0 }
0x152e   :  { %3279 = vadd.xlane.f32.xlu0 %v3278_v23 }
0x1565   :  { %v3132_v6 = vpop.xlane.xlu1 %3131 }
0x1566   :  { %v3160_v51 = vmul.f32 %v3132_v6, %v8183_v63 }
0x1568   :  { %v8600_v48 = vsub.f32 %v3040_v29, %v3160_v51 }
0x1569   :  { %v3630_v33 = vpop.xlane.xlu1 %3629 }
0x156a   :  { %5788 = vrcp.f32 %v3630_v33  ;;  %v3250_v41 = vsel %vm3235_vm0, %v8600_v48, 0.0 }
0x156b   :  { %v3260_v60 = vsel %vm213_vm4, %v3250_v41, 0.0 }
0x156c   :  { %3261 = vadd.xlane.f32.xlu1 %v3260_v60 }
0x156d   :  { %v3661_v45 = vpop.xlane.xlu1 %3660 }
0x1571   :  { %v3147_v42 = vpop.xlane.xlu0 %3146 }
0x1572   :  { %v3165_v54 = vmul.f32 %v3147_v42, %v8198_v50 }
0x1574   :  { %v8607_v22 = vsub.f32 %v3045_v26, %v3165_v54 }
0x1575   :  { %v3633_v31 = vpop.xlane.xlu0 %3632 }
0x1576   :  { %5790 = vrcp.f32 %v3633_v31  ;;  %v3255_v63 = vsel %vm3235_vm0, %v8607_v22, 0.0  ;;  %vm4015_vm0 = vcmp.eq.s32.totalorder %v6044_v2, 29 }
0x1577   :  { %v5789_v29 = vpop.eup %5788  ;;  %v3275_v25 = vsel %vm213_vm4, %v3255_v63, 0.0 }
0x1578   :  { %v8614_v17 = vmul.f32 %v5789_v29, %v8533_v9  ;;  %3276 = vadd.xlane.f32.xlu0 %v3275_v25 }
0x1579   :  { %v3676_v52 = vpop.xlane.xlu0 %3675 }
0x157a   :  { %v3683_v4 = vmul.f32 %v3661_v45, %v8614_v17 }
0x157c   :  { %v3693_v50 = vsub.f32 %v8511_v47, %v3683_v4 }
0x157e   :  { %v8622_v26 = vsel %vm3583_vm5, %v8614_v17, %v3693_v50 }
0x157f   :  { %v3718_v44 = vsel %vm3713_vm9, %v8622_v26, 0.0  ;;  %v3404_v28 = vpop.xlane.xlu1 %3403 }
0x1580   :  { %v3424_v9 = vmul.f32 %v3404_v28, %v8391_v7  ;;  %v3730_v20 = vsel %vm213_vm4, %v3718_v44, 0.0 }
0x1581   :  { %v3734_v61 = vrot.slane %v3730_v20, 4 }
0x1582   :  { %v8629_v15 = vsub.f32 %v3304_v5, %v3424_v9 }
0x1583   :  { %v5791_v40 = vpop.eup %5790  ;;  %v3735_v39 = vadd.f32 %v3734_v61, %v3730_v20  ;;  %v3268_v58 = vpop.xlane.xlu1 %3267 }
0x1584   :  { %v8632_v47 = vmul.f32 %v5791_v40, %v8549_v43  ;;  %v3514_v24 = vsel %vm3495_vm13, %v8629_v15, 0.0  ;;  %v3292_v10 = vmul.f32 %v3268_v58, %v8296_v57 }
0x1585   :  { %v3532_v30 = vsel %vm221_vm14, %v3514_v24, 0.0  ;;  %v3736_v19 = vrot.slane %v3735_v39, 2 }
0x1586   :  { %v3688_v59 = vmul.f32 %v3676_v52, %v8632_v47  ;;  %3533 = vadd.xlane.f32.xlu1 %v3532_v30  ;;  %v3302_v32 = vsub.f32 %v8191_v11, %v3292_v10  ;;  %v3773_v11 = vsel %vm3755_vm11, %v8622_v26, 0.0 }
0x1587   :  { %v3737_v37 = vadd.f32 %v3736_v19, %v3735_v39  ;;  %v3789_v42 = vsel %vm213_vm4, %v3773_v11, 0.0 }
0x1588   :  { %v3698_v5 = vsub.f32 %v8525_v36, %v3688_v59  ;;  %v8671_v33 = vsel %vm3192_vm8, %v8296_v57, %v3302_v32 }
0x1589   :  { %v3738_v62 = vrot.slane %v3737_v37, 1  ;;  %v3382_v54 = vsel %vm3365_vm7, %v8671_v33, 0.0 }
0x158a   :  { %v8644_v43 = vsel %vm3583_vm5, %v8632_v47, %v3698_v5  ;;  %v3396_v25 = vsel %vm213_vm4, %v3382_v54, 0.0  ;;  %vm4364_vm5 = vcmp.eq.s32.totalorder %v6637_v53, 32 }
0x158b   :  { %v3723_v0 = vsel %vm3713_vm9, %v8644_v43, 0.0  ;;  %v3419_v35 = vpop.xlane.xlu0 %3418  ;;  %v8649_v38 = vadd.f32 %v3738_v62, %v3737_v37  ;;  %v3778_v28 = vsel %vm3755_vm11, %v8644_v43, 0.0 }
0x158c   :  { %v3429_v27 = vmul.f32 %v3419_v35, %v8412_v8  ;;  %v3745_v36 = vsel %vm213_vm4, %v3723_v0, 0.0  ;;  %v3804_v20 = vsel %vm213_vm4, %v3778_v28, 0.0 }
0x158d   :  { %v3756_v34 = vsel %vm3755_vm11, %v8649_v38, 0.0  ;;  %v3749_v49 = vrot.slane %v3745_v36, 4 }
0x158e   :  { %v8659_v1 = vsub.f32 %v8573_v21, %v3429_v27  ;;  %v3758_v23 = vsel %vm213_vm4, %v3756_v34, 0.0 }
0x158f   :  { %3759 = vadd.xlane.f32.xlu1 %v3758_v23  ;;  %v3750_v6 = vadd.f32 %v3749_v49, %v3745_v36  ;;  %v3283_v41 = vpop.xlane.xlu0 %3282 }
0x1590   :  { %v3519_v51 = vsel %vm3495_vm13, %v8659_v1, 0.0  ;;  %v3297_v63 = vmul.f32 %v3283_v41, %v8314_v46 }
0x1591   :  { %v3547_v21 = vsel %vm221_vm14, %v3519_v51, 0.0  ;;  %v3751_v60 = vrot.slane %v3750_v6, 2 }
0x1592   :  { %3548 = vadd.xlane.f32.xlu0 %v3547_v21  ;;  %v3307_v4 = vsub.f32 %v8206_v16, %v3297_v63 }
0x1593   :  { %3790 = vadd.xlane.f32.xlu1 %v3789_v42  ;;  %v3752_v31 = vadd.f32 %v3751_v60, %v3750_v6 }
0x1594   :  { %v8693_v9 = vsel %vm3192_vm8, %v8314_v46, %v3307_v4  ;;  %vm3973_vm8 = vcmp.eq.s32.totalorder %v6450_v55, 29 }
0x1595   :  { %v3753_v29 = vrot.slane %v3752_v31, 1  ;;  %v3387_v16 = vsel %vm3365_vm7, %v8693_v9, 0.0 }
0x1596   :  { %v3411_v61 = vsel %vm213_vm4, %v3387_v16, 0.0 }
0x1597   :  { %3397 = vadd.xlane.f32.xlu1 %v3396_v25  ;;  %v8680_v45 = vadd.f32 %v3753_v29, %v3752_v31 }
0x1599   :  { %v3757_v50 = vsel %vm3755_vm11, %v8680_v45, 0.0 }
0x159a   :  { %v3761_v44 = vsel %vm213_vm4, %v3757_v50, 0.0 }
0x159b   :  { %3762 = vadd.xlane.f32.xlu0 %v3761_v44 }
0x159f   :  { %3805 = vadd.xlane.f32.xlu0 %v3804_v20 }
0x15a3   :  { %3412 = vadd.xlane.f32.xlu0 %v3411_v61 }
0x15ab   :  { %v3265_v40 = vpop.xlane.xlu1 %3264 }
0x15ac   :  { %v3291_v39 = vmul.f32 %v3265_v40, %v8296_v57 }
0x15ae   :  { %v8702_v24 = vsub.f32 %v8585_v18, %v3291_v39 }
0x15b0   :  { %v3381_v14 = vsel %vm3365_vm7, %v8702_v24, 0.0 }
0x15b1   :  { %v3393_v52 = vsel %vm213_vm4, %v3381_v14, 0.0 }
0x15b2   :  { %3394 = vadd.xlane.f32.xlu1 %v3393_v52 }
0x15b7   :  { %v3280_v58 = vpop.xlane.xlu0 %3279 }
0x15b8   :  { %v3296_v30 = vmul.f32 %v3280_v58, %v8314_v46 }
0x15ba   :  { %v8710_v19 = vsub.f32 %v8593_v13, %v3296_v30 }
0x15bc   :  { %v3386_v59 = vsel %vm3365_vm7, %v8710_v19, 0.0 }
0x15bd   :  { %v3408_v18 = vsel %vm213_vm4, %v3386_v59, 0.0 }
0x15be   :  { %3409 = vadd.xlane.f32.xlu0 %v3408_v18 }
0x15f5   :  { %v3262_v37 = vpop.xlane.xlu1 %3261 }
0x15f6   :  { %v3290_v5 = vmul.f32 %v3262_v37, %v8296_v57 }
0x15f8   :  { %v8718_v10 = vsub.f32 %v8600_v48, %v3290_v5 }
0x15fa   :  { %v3380_v62 = vsel %vm3365_vm7, %v8718_v10, 0.0 }
0x15fb   :  { %v3390_v13 = vsel %vm213_vm4, %v3380_v62, 0.0 }
0x15fc   :  { %3391 = vadd.xlane.f32.xlu1 %v3390_v13 }
0x1601   :  { %v3277_v0 = vpop.xlane.xlu0 %3276 }
0x1602   :  { %v3295_v35 = vmul.f32 %v3277_v0, %v8314_v46 }
0x1604   :  { %v8726_v32 = vsub.f32 %v8607_v22, %v3295_v35 }
0x1606   :  { %v3385_v57 = vsel %vm3365_vm7, %v8726_v32, 0.0  ;;  %vm4145_vm7 = vcmp.eq.s32.totalorder %v6044_v2, 30 }
0x1607   :  { %v3405_v48 = vsel %vm213_vm4, %v3385_v57, 0.0 }
0x1608   :  { %3406 = vadd.xlane.f32.xlu0 %v3405_v48 }
0x160f   :  { %v3534_v27 = vpop.xlane.xlu1 %3533 }
0x1610   :  { %v3554_v36 = vmul.f32 %v3534_v27, %v8503_v12 }
0x1612   :  { %v8734_v34 = vsub.f32 %v8629_v15, %v3554_v36 }
0x1614   :  { %v3644_v46 = vsel %vm3625_vm3, %v8734_v34, 0.0 }
0x1615   :  { %v3662_v22 = vsel %vm221_vm14, %v3644_v46, 0.0 }
0x1616   :  { %3663 = vadd.xlane.f32.xlu1 %v3662_v22 }
0x1618   :  { %v3760_v49 = vpop.xlane.xlu1 %3759 }
0x1619   :  { %5792 = vrcp.f32 %v3760_v49 }
0x161b   :  { %v3549_v23 = vpop.xlane.xlu0 %3548 }
0x161c   :  { %v3559_v11 = vmul.f32 %v3549_v23, %v8514_v56  ;;  %v3791_v42 = vpop.xlane.xlu1 %3790 }
0x161e   :  { %v8742_v6 = vsub.f32 %v8659_v1, %v3559_v11 }
0x1620   :  { %v3649_v15 = vsel %vm3625_vm3, %v8742_v6, 0.0  ;;  %v3398_v50 = vpop.xlane.xlu1 %3397 }
0x1621   :  { %v3677_v51 = vsel %vm221_vm14, %v3649_v15, 0.0  ;;  %v3422_v16 = vmul.f32 %v3398_v50, %v8391_v7 }
0x1622   :  { %3678 = vadd.xlane.f32.xlu0 %v3677_v51 }
0x1623   :  { %v8775_v52 = vsub.f32 %v8671_v33, %v3422_v16 }
0x1624   :  { %v3763_v41 = vpop.xlane.xlu0 %3762 }
0x1625   :  { %5794 = vrcp.f32 %v3763_v41  ;;  %v3512_v62 = vsel %vm3495_vm13, %v8775_v52, 0.0 }
0x1626   :  { %v5793_v21 = vpop.eup %5792  ;;  %v3526_v57 = vsel %vm213_vm4, %v3512_v62, 0.0 }
0x1627   :  { %v8749_v60 = vmul.f32 %v5793_v21, %v8649_v38 }
0x1628   :  { %v3806_v28 = vpop.xlane.xlu0 %3805 }
0x1629   :  { %v3813_v54 = vmul.f32 %v3791_v42, %v8749_v60 }
0x162b   :  { %v3823_v1 = vsub.f32 %v8622_v26, %v3813_v54 }
0x162c   :  { %v3413_v0 = vpop.xlane.xlu0 %3412 }
0x162d   :  { %v8757_v31 = vsel %vm3713_vm9, %v8749_v60, %v3823_v1  ;;  %v3427_v48 = vmul.f32 %v3413_v0, %v8412_v8 }
0x162e   :  { %v3848_v63 = vsel %vm3843_vm12, %v8757_v31, 0.0 }
0x162f   :  { %v3860_v29 = vsel %vm213_vm4, %v3848_v63, 0.0  ;;  %v3437_v22 = vsub.f32 %v8693_v9, %v3427_v48 }
0x1630   :  { %v3864_v38 = vrot.slane %v3860_v29, 4 }
0x1631   :  { %v3517_v21 = vsel %vm3495_vm13, %v3437_v22, 0.0 }
0x1632   :  { %v5795_v25 = vpop.eup %5794  ;;  %v3865_v4 = vadd.f32 %v3864_v38, %v3860_v29  ;;  %v3541_v9 = vsel %vm213_vm4, %v3517_v21, 0.0 }
0x1633   :  { %v8764_v44 = vmul.f32 %v5795_v25, %v8680_v45  ;;  %v3903_v25 = vsel %vm3885_vm15, %v8757_v31, 0.0 }
0x1634   :  { %v3866_v26 = vrot.slane %v3865_v4, 2 }
0x1635   :  { %v3818_v20 = vmul.f32 %v3806_v28, %v8764_v44 }
0x1636   :  { %v3867_v61 = vadd.f32 %v3866_v26, %v3865_v4  ;;  %v3919_v4 = vsel %vm213_vm4, %v3903_v25, 0.0 }
0x1637   :  { %v3828_v40 = vsub.f32 %v8644_v43, %v3818_v20 }
0x1638   :  { %v3868_v39 = vrot.slane %v3867_v61, 1 }
0x1639   :  { %v8772_v14 = vsel %vm3713_vm9, %v8764_v44, %v3828_v40  ;;  %vm4494_vm9 = vcmp.eq.s32.totalorder %v6637_v53, 33 }
0x163a   :  { %v3853_v45 = vsel %vm3843_vm12, %v8772_v14, 0.0  ;;  %v8780_v58 = vadd.f32 %v3868_v39, %v3867_v61  ;;  %v3908_v20 = vsel %vm3885_vm15, %v8772_v14, 0.0 }
0x163b   :  { %v3395_v30 = vpop.xlane.xlu1 %3394  ;;  %v3875_v43 = vsel %vm213_vm4, %v3853_v45, 0.0  ;;  %v3934_v16 = vsel %vm213_vm4, %v3908_v20, 0.0 }
0x163c   :  { %v3421_v59 = vmul.f32 %v3395_v30, %v8391_v7  ;;  %v3886_v18 = vsel %vm3885_vm15, %v8780_v58, 0.0  ;;  %v3879_v37 = vrot.slane %v3875_v43, 4 }
0x163d   :  { %v3888_v33 = vsel %vm213_vm4, %v3886_v18, 0.0 }
0x163e   :  { %v8790_v5 = vsub.f32 %v8702_v24, %v3421_v59  ;;  %3889 = vadd.xlane.f32.xlu1 %v3888_v33  ;;  %v3880_v13 = vadd.f32 %v3879_v37, %v3875_v43 }
0x1640   :  { %v3881_v35 = vrot.slane %v3880_v13, 2  ;;  %v3511_v27 = vsel %vm3495_vm13, %v8790_v5, 0.0 }
0x1641   :  { %v3523_v46 = vsel %vm213_vm4, %v3511_v27, 0.0 }
0x1642   :  { %3527 = vadd.xlane.f32.xlu1 %v3526_v57  ;;  %v3882_v36 = vadd.f32 %v3881_v35, %v3880_v13 }
0x1644   :  { %v3883_v24 = vrot.slane %v3882_v36, 1 }
0x1646   :  { %3524 = vadd.xlane.f32.xlu1 %v3523_v46  ;;  %v8802_v49 = vadd.f32 %v3883_v24, %v3882_v36 }
0x1647   :  { %v3410_v23 = vpop.xlane.xlu0 %3409 }
0x1648   :  { %v3426_v11 = vmul.f32 %v3410_v23, %v8412_v8  ;;  %v3887_v15 = vsel %vm3885_vm15, %v8802_v49, 0.0 }
0x1649   :  { %v3891_v51 = vsel %vm213_vm4, %v3887_v15, 0.0 }
0x164a   :  { %v3436_v41 = vsub.f32 %v8710_v19, %v3426_v11  ;;  %3892 = vadd.xlane.f32.xlu0 %v3891_v51 }
0x164c   :  { %v3516_v42 = vsel %vm3495_vm13, %v3436_v41, 0.0 }
0x164d   :  { %v3538_v54 = vsel %vm213_vm4, %v3516_v42, 0.0 }
0x164e   :  { %3542 = vadd.xlane.f32.xlu0 %v3541_v9 }
0x1652   :  { %3539 = vadd.xlane.f32.xlu0 %v3538_v54 }
0x1685   :  { %v3392_v1 = vpop.xlane.xlu1 %3391 }
0x1686   :  { %v3420_v63 = vmul.f32 %v3392_v1, %v8391_v7 }
0x1688   :  { %v3430_v29 = vsub.f32 %v8718_v10, %v3420_v63 }
0x168a   :  { %v3510_v19 = vsel %vm3495_vm13, %v3430_v29, 0.0 }
0x168b   :  { %v3520_v38 = vsel %vm213_vm4, %v3510_v19, 0.0 }
0x168c   :  { %3521 = vadd.xlane.f32.xlu1 %v3520_v38 }
0x1690   :  { %3920 = vadd.xlane.f32.xlu1 %v3919_v4 }
0x1691   :  { %v3407_v50 = vpop.xlane.xlu0 %3406 }
0x1692   :  { %v3425_v28 = vmul.f32 %v3407_v50, %v8412_v8 }
0x1694   :  { %v8827_v7 = vsub.f32 %v8726_v32, %v3425_v28 }
0x1696   :  { %v3515_v10 = vsel %vm3495_vm13, %v8827_v7, 0.0  ;;  %vm4275_vm13 = vcmp.eq.s32.totalorder %v6044_v2, 31 }
0x1697   :  { %v3535_v26 = vsel %vm213_vm4, %v3515_v10, 0.0 }
0x1698   :  { %3536 = vadd.xlane.f32.xlu0 %v3535_v26 }
0x169c   :  { %3935 = vadd.xlane.f32.xlu0 %v3934_v16 }
0x169f   :  { %v3664_v61 = vpop.xlane.xlu1 %3663 }
0x16a0   :  { %v3684_v8 = vmul.f32 %v3664_v61, %v8614_v17 }
0x16a2   :  { %v8839_v32 = vsub.f32 %v8734_v34, %v3684_v8 }
0x16a4   :  { %v3774_v40 = vsel %vm3755_vm11, %v8839_v32, 0.0 }
0x16a5   :  { %v3792_v39 = vsel %vm221_vm14, %v3774_v40, 0.0 }
0x16a6   :  { %3793 = vadd.xlane.f32.xlu1 %v3792_v39 }
0x16ab   :  { %v3679_v45 = vpop.xlane.xlu0 %3678 }
0x16ac   :  { %v3689_v30 = vmul.f32 %v3679_v45, %v8632_v47 }
0x16ae   :  { %v8847_v43 = vsub.f32 %v8742_v6, %v3689_v30 }
0x16b0   :  { %v3779_v59 = vsel %vm3755_vm11, %v8847_v43, 0.0 }
0x16b1   :  { %v3807_v34 = vsel %vm221_vm14, %v3779_v59, 0.0 }
0x16b2   :  { %3808 = vadd.xlane.f32.xlu0 %v3807_v34 }
0x16c7   :  { %v3890_v18 = vpop.xlane.xlu1 %3889 }
0x16c8   :  { %5796 = vrcp.f32 %v3890_v18 }
0x16cb   :  { %v3528_v37 = vpop.xlane.xlu1 %3527 }
0x16cc   :  { %v3552_v33 = vmul.f32 %v3528_v37, %v8503_v12 }
0x16ce   :  { %v8855_v62 = vsub.f32 %v8775_v52, %v3552_v33 }
0x16cf   :  { %v3525_v13 = vpop.xlane.xlu1 %3524 }
0x16d0   :  { %v3551_v0 = vmul.f32 %v3525_v13, %v8503_v12  ;;  %v3642_v6 = vsel %vm3625_vm3, %v8855_v62, 0.0 }
0x16d1   :  { %v3656_v35 = vsel %vm213_vm4, %v3642_v6, 0.0 }
0x16d2   :  { %v8863_v57 = vsub.f32 %v8790_v5, %v3551_v0  ;;  %3657 = vadd.xlane.f32.xlu1 %v3656_v35 }
0x16d3   :  { %v3893_v48 = vpop.xlane.xlu0 %3892 }
0x16d4   :  { %v3641_v27 = vsel %vm3625_vm3, %v8863_v57, 0.0  ;;  %5798 = vrcp.f32 %v3893_v48 }
0x16d5   :  { %v3653_v52 = vsel %vm213_vm4, %v3641_v27, 0.0 }
0x16d6   :  { %3654 = vadd.xlane.f32.xlu1 %v3653_v52 }
0x16d7   :  { %v3543_v36 = vpop.xlane.xlu0 %3542 }
0x16d8   :  { %v3557_v24 = vmul.f32 %v3543_v36, %v8514_v56 }
0x16da   :  { %v8870_v46 = vsub.f32 %v3437_v22, %v3557_v24  ;;  %v5797_v22 = vpop.eup %5796 }
0x16db   :  { %v3540_v23 = vpop.xlane.xlu0 %3539  ;;  %v8885_v1 = vmul.f32 %v5797_v22, %v8780_v58 }
0x16dc   :  { %v3556_v11 = vmul.f32 %v3540_v23, %v8514_v56  ;;  %v3647_v5 = vsel %vm3625_vm3, %v8870_v46, 0.0 }
0x16dd   :  { %v3671_v15 = vsel %vm213_vm4, %v3647_v5, 0.0 }
0x16de   :  { %v8877_v51 = vsub.f32 %v3436_v41, %v3556_v11  ;;  %3672 = vadd.xlane.f32.xlu0 %v3671_v15 }
0x16e0   :  { %v3646_v21 = vsel %vm3625_vm3, %v8877_v51, 0.0 }
0x16e1   :  { %v3668_v9 = vsel %vm213_vm4, %v3646_v21, 0.0  ;;  %v5799_v50 = vpop.eup %5798 }
0x16e2   :  { %3669 = vadd.xlane.f32.xlu0 %v3668_v9 }
0x1715   :  { %v3522_v42 = vpop.xlane.xlu1 %3521 }
0x1716   :  { %v3550_v54 = vmul.f32 %v3522_v42, %v8503_v12 }
0x1718   :  { %v8887_v63 = vsub.f32 %v3430_v29, %v3550_v54 }
0x1719   :  { %v3921_v41 = vpop.xlane.xlu1 %3920 }
0x171a   :  { %v3943_v19 = vmul.f32 %v3921_v41, %v8885_v1  ;;  %v3640_v38 = vsel %vm3625_vm3, %v8887_v63, 0.0 }
0x171b   :  { %v3650_v25 = vsel %vm213_vm4, %v3640_v38, 0.0 }
0x171c   :  { %v3953_v4 = vsub.f32 %v8757_v31, %v3943_v19  ;;  %3651 = vadd.xlane.f32.xlu1 %v3650_v25  ;;  %v8907_v31 = vmul.f32 %v5799_v50, %v8802_v49 }
0x171e   :  { %v8899_v12 = vsel %vm3843_vm12, %v8885_v1, %v3953_v4 }
0x171f   :  { %v3978_v58 = vsel %vm3973_vm8, %v8899_v12, 0.0  ;;  %v4033_v23 = vsel %vm4015_vm0, %v8899_v12, 0.0 }
0x1720   :  { %v3990_v29 = vsel %vm213_vm4, %v3978_v58, 0.0  ;;  %v4049_v5 = vsel %vm213_vm4, %v4033_v23, 0.0 }
0x1721   :  { %v3537_v28 = vpop.xlane.xlu0 %3536  ;;  %v3994_v10 = vrot.slane %v3990_v29, 4 }
0x1722   :  { %v3555_v26 = vmul.f32 %v3537_v28, %v8514_v56 }
0x1723   :  { %v3995_v20 = vadd.f32 %v3994_v10, %v3990_v29 }
0x1724   :  { %v8910_v16 = vsub.f32 %v8827_v7, %v3555_v26 }
0x1725   :  { %v3936_v61 = vpop.xlane.xlu0 %3935  ;;  %v3996_v8 = vrot.slane %v3995_v20, 2 }
0x1726   :  { %v3948_v40 = vmul.f32 %v3936_v61, %v8907_v31  ;;  %v3645_v39 = vsel %vm3625_vm3, %v8910_v16, 0.0  ;;  %vm4405_vm3 = vcmp.eq.s32.totalorder %v6044_v2, 32 }
0x1727   :  { %v3665_v45 = vsel %vm213_vm4, %v3645_v39, 0.0  ;;  %v3997_v30 = vadd.f32 %v3996_v8, %v3995_v20 }
0x1728   :  { %v3958_v56 = vsub.f32 %v8772_v14, %v3948_v40  ;;  %3666 = vadd.xlane.f32.xlu0 %v3665_v45 }
0x1729   :  { %v3998_v59 = vrot.slane %v3997_v30, 1 }
0x172a   :  { %v8921_v49 = vsel %vm3843_vm12, %v8907_v31, %v3958_v56  ;;  %vm4624_vm12 = vcmp.eq.s32.totalorder %v6637_v53, 34 }
0x172b   :  { %v3983_v7 = vsel %vm3973_vm8, %v8921_v49, 0.0  ;;  %v8926_v34 = vadd.f32 %v3998_v59, %v3997_v30  ;;  %v4038_v41 = vsel %vm4015_vm0, %v8921_v49, 0.0 }
0x172c   :  { %v4005_v18 = vsel %vm213_vm4, %v3983_v7, 0.0  ;;  %v4064_v19 = vsel %vm213_vm4, %v4038_v41, 0.0 }
0x172d   :  { %v4016_v14 = vsel %vm4015_vm0, %v8926_v34, 0.0  ;;  %v4009_v37 = vrot.slane %v4005_v18, 4 }
0x172e   :  { %v4018_v33 = vsel %vm213_vm4, %v4016_v14, 0.0 }
0x172f   :  { %4019 = vadd.xlane.f32.xlu1 %v4018_v33  ;;  %v3794_v13 = vpop.xlane.xlu1 %3793  ;;  %v4010_v0 = vadd.f32 %v4009_v37, %v4005_v18 }
0x1730   :  { %v3814_v6 = vmul.f32 %v3794_v13, %v8749_v60 }
0x1731   :  { %v4011_v35 = vrot.slane %v4010_v0, 2 }
0x1732   :  { %v3824_v48 = vsub.f32 %v8839_v32, %v3814_v6 }
0x1733   :  { %v4012_v27 = vadd.f32 %v4011_v35, %v4010_v0 }
0x1734   :  { %v3904_v52 = vsel %vm3885_vm15, %v3824_v48, 0.0 }
0x1735   :  { %v3922_v36 = vsel %vm221_vm14, %v3904_v52, 0.0  ;;  %v4013_v24 = vrot.slane %v4012_v27, 1 }
0x1736   :  { %3923 = vadd.xlane.f32.xlu1 %v3922_v36 }
0x1737   :  { %v8942_v11 = vadd.f32 %v4013_v24, %v4012_v27 }
0x1739   :  { %v4017_v32 = vsel %vm4015_vm0, %v8942_v11, 0.0 }
0x173a   :  { %4050 = vadd.xlane.f32.xlu1 %v4049_v5  ;;  %v4021_v15 = vsel %vm213_vm4, %v4017_v32, 0.0 }
0x173b   :  { %4022 = vadd.xlane.f32.xlu0 %v4021_v15  ;;  %v3809_v21 = vpop.xlane.xlu0 %3808 }
0x173c   :  { %v3819_v9 = vmul.f32 %v3809_v21, %v8764_v44 }
0x173e   :  { %v8951_v22 = vsub.f32 %v8847_v43, %v3819_v9 }
0x1740   :  { %v3909_v42 = vsel %vm3885_vm15, %v8951_v22, 0.0 }
0x1741   :  { %v3937_v54 = vsel %vm221_vm14, %v3909_v42, 0.0 }
0x1742   :  { %3938 = vadd.xlane.f32.xlu0 %v3937_v54 }
0x1746   :  { %4065 = vadd.xlane.f32.xlu0 %v4064_v19 }
0x175b   :  { %v3658_v38 = vpop.xlane.xlu1 %3657 }
0x175c   :  { %v3682_v25 = vmul.f32 %v3658_v38, %v8614_v17 }
0x175e   :  { %v8963_v43 = vsub.f32 %v8855_v62, %v3682_v25 }
0x175f   :  { %v3655_v4 = vpop.xlane.xlu1 %3654 }
0x1760   :  { %v3681_v58 = vmul.f32 %v3655_v4, %v8614_v17  ;;  %v3772_v29 = vsel %vm3755_vm11, %v8963_v43, 0.0 }
0x1761   :  { %v3786_v50 = vsel %vm213_vm4, %v3772_v29, 0.0 }
0x1762   :  { %v8971_v28 = vsub.f32 %v8863_v57, %v3681_v58  ;;  %3787 = vadd.xlane.f32.xlu1 %v3786_v50 }
0x1764   :  { %v3771_v10 = vsel %vm3755_vm11, %v8971_v28, 0.0 }
0x1765   :  { %v3783_v62 = vsel %vm213_vm4, %v3771_v10, 0.0 }
0x1766   :  { %3784 = vadd.xlane.f32.xlu1 %v3783_v62 }
0x1767   :  { %v3673_v26 = vpop.xlane.xlu0 %3672 }
0x1768   :  { %v3687_v20 = vmul.f32 %v3673_v26, %v8632_v47 }
0x176a   :  { %v8979_v61 = vsub.f32 %v8870_v46, %v3687_v20 }
0x176b   :  { %v3670_v8 = vpop.xlane.xlu0 %3669 }
0x176c   :  { %v3686_v40 = vmul.f32 %v3670_v8, %v8632_v47  ;;  %v3777_v57 = vsel %vm3755_vm11, %v8979_v61, 0.0 }
0x176d   :  { %v3801_v39 = vsel %vm213_vm4, %v3777_v57, 0.0 }
0x176e   :  { %v8987_v45 = vsub.f32 %v8877_v51, %v3686_v40  ;;  %3802 = vadd.xlane.f32.xlu0 %v3801_v39 }
0x1770   :  { %v3776_v30 = vsel %vm3755_vm11, %v8987_v45, 0.0 }
0x1771   :  { %v3798_v46 = vsel %vm213_vm4, %v3776_v30, 0.0 }
0x1772   :  { %3799 = vadd.xlane.f32.xlu0 %v3798_v46 }
0x17a5   :  { %v3652_v56 = vpop.xlane.xlu1 %3651 }
0x17a6   :  { %v3680_v59 = vmul.f32 %v3652_v56, %v8614_v17 }
0x17a8   :  { %v8995_v7 = vsub.f32 %v8887_v63, %v3680_v59 }
0x17aa   :  { %v3770_v18 = vsel %vm3755_vm11, %v8995_v7, 0.0 }
0x17ab   :  { %v3780_v51 = vsel %vm213_vm4, %v3770_v18, 0.0 }
0x17ac   :  { %3781 = vadd.xlane.f32.xlu1 %v3780_v51 }
0x17b1   :  { %v3667_v14 = vpop.xlane.xlu0 %3666 }
0x17b2   :  { %v3685_v37 = vmul.f32 %v3667_v14, %v8632_v47 }
0x17b4   :  { %v9003_v33 = vsub.f32 %v8910_v16, %v3685_v37 }
0x17b6   :  { %v3775_v17 = vsel %vm3755_vm11, %v9003_v33, 0.0  ;;  %vm4535_vm11 = vcmp.eq.s32.totalorder %v6044_v2, 33 }
0x17b7   :  { %v3795_v63 = vsel %vm213_vm4, %v3775_v17, 0.0 }
0x17b8   :  { %3796 = vadd.xlane.f32.xlu0 %v3795_v63  ;;  %v4020_v13 = vpop.xlane.xlu1 %4019 }
0x17b9   :  { %5800 = vrcp.f32 %v4020_v13 }
0x17bf   :  { %v3924_v0 = vpop.xlane.xlu1 %3923 }
0x17c0   :  { %v3944_v6 = vmul.f32 %v3924_v0, %v8885_v1 }
0x17c2   :  { %v9010_v35 = vsub.f32 %v3824_v48, %v3944_v6 }
0x17c3   :  { %v4051_v24 = vpop.xlane.xlu1 %4050 }
0x17c4   :  { %v4023_v27 = vpop.xlane.xlu0 %4022  ;;  %v4034_v47 = vsel %vm4015_vm0, %v9010_v35, 0.0 }
0x17c5   :  { %5802 = vrcp.f32 %v4023_v27  ;;  %v4052_v16 = vsel %vm221_vm14, %v4034_v47, 0.0 }
0x17c6   :  { %v5801_v52 = vpop.eup %5800  ;;  %4053 = vadd.xlane.f32.xlu1 %v4052_v16 }
0x17c7   :  { %v9017_v36 = vmul.f32 %v5801_v52, %v8926_v34 }
0x17c9   :  { %v4073_v23 = vmul.f32 %v4051_v24, %v9017_v36 }
0x17cb   :  { %v4083_v48 = vsub.f32 %v8899_v12, %v4073_v23  ;;  %v3939_v5 = vpop.xlane.xlu0 %3938 }
0x17cc   :  { %v3949_v32 = vmul.f32 %v3939_v5, %v8907_v31 }
0x17cd   :  { %v9026_v15 = vsel %vm3973_vm8, %v9017_v36, %v4083_v48 }
0x17ce   :  { %v4108_v34 = vsel %vm4103_vm6, %v9026_v15, 0.0  ;;  %v9032_v21 = vsub.f32 %v8951_v22, %v3949_v32  ;;  %v4163_v40 = vsel %vm4145_vm7, %v9026_v15, 0.0 }
0x17cf   :  { %v4120_v9 = vsel %vm213_vm4, %v4108_v34, 0.0  ;;  %v4066_v25 = vpop.xlane.xlu0 %4065  ;;  %v4179_v30 = vsel %vm213_vm4, %v4163_v40, 0.0 }
0x17d0   :  { %v4039_v12 = vsel %vm4015_vm0, %v9032_v21, 0.0  ;;  %v4124_v42 = vrot.slane %v4120_v9, 4 }
0x17d1   :  { %v4067_v54 = vsel %vm221_vm14, %v4039_v12, 0.0 }
0x17d2   :  { %v5803_v41 = vpop.eup %5802  ;;  %4068 = vadd.xlane.f32.xlu0 %v4067_v54  ;;  %v4125_v19 = vadd.f32 %v4124_v42, %v4120_v9 }
0x17d3   :  { %v9040_v38 = vmul.f32 %v5803_v41, %v8942_v11 }
0x17d4   :  { %v4126_v4 = vrot.slane %v4125_v19, 2 }
0x17d5   :  { %v4078_v22 = vmul.f32 %v4066_v25, %v9040_v38 }
0x17d6   :  { %v4127_v58 = vadd.f32 %v4126_v4, %v4125_v19 }
0x17d7   :  { %v4088_v29 = vsub.f32 %v8921_v49, %v4078_v22 }
0x17d8   :  { %v4128_v50 = vrot.slane %v4127_v58, 1 }
0x17d9   :  { %v9047_v10 = vsel %vm3973_vm8, %v9040_v38, %v4088_v29  ;;  %vm4754_vm8 = vcmp.eq.s32.totalorder %v6637_v53, 35 }
0x17da   :  { %v4113_v62 = vsel %vm4103_vm6, %v9047_v10, 0.0  ;;  %v9052_v26 = vadd.f32 %v4128_v50, %v4127_v58  ;;  %v4168_v14 = vsel %vm4145_vm7, %v9047_v10, 0.0 }
0x17db   :  { %v4135_v11 = vsel %vm213_vm4, %v4113_v62, 0.0  ;;  %v4194_v63 = vsel %vm213_vm4, %v4168_v14, 0.0 }
0x17dc   :  { %v4146_v49 = vsel %vm4145_vm7, %v9052_v26, 0.0  ;;  %v4139_v20 = vrot.slane %v4135_v11, 4 }
0x17dd   :  { %v4148_v8 = vsel %vm213_vm4, %v4146_v49, 0.0 }
0x17de   :  { %4149 = vadd.xlane.f32.xlu1 %v4148_v8  ;;  %v4140_v57 = vadd.f32 %v4139_v20, %v4135_v11 }
0x17e0   :  { %v4141_v39 = vrot.slane %v4140_v57, 2 }
0x17e2   :  { %4180 = vadd.xlane.f32.xlu1 %v4179_v30  ;;  %v4142_v46 = vadd.f32 %v4141_v39, %v4140_v57 }
0x17e4   :  { %v4143_v56 = vrot.slane %v4142_v46, 1 }
0x17e6   :  { %v9064_v59 = vadd.f32 %v4143_v56, %v4142_v46 }
0x17e8   :  { %v4147_v18 = vsel %vm4145_vm7, %v9064_v59, 0.0 }
0x17e9   :  { %v4151_v51 = vsel %vm213_vm4, %v4147_v18, 0.0 }
0x17ea   :  { %4152 = vadd.xlane.f32.xlu0 %v4151_v51 }
0x17eb   :  { %v3788_v37 = vpop.xlane.xlu1 %3787 }
0x17ec   :  { %v3812_v17 = vmul.f32 %v3788_v37, %v8749_v60 }
0x17ee   :  { %v3822_v13 = vsub.f32 %v8963_v43, %v3812_v17  ;;  %4195 = vadd.xlane.f32.xlu0 %v4194_v63 }
0x17ef   :  { %v3785_v0 = vpop.xlane.xlu1 %3784 }
0x17f0   :  { %v3811_v6 = vmul.f32 %v3785_v0, %v8749_v60  ;;  %v3902_v27 = vsel %vm3885_vm15, %v3822_v13, 0.0 }
0x17f1   :  { %v3916_v47 = vsel %vm213_vm4, %v3902_v27, 0.0 }
0x17f2   :  { %v3821_v16 = vsub.f32 %v8971_v28, %v3811_v6  ;;  %3917 = vadd.xlane.f32.xlu1 %v3916_v47 }
0x17f4   :  { %v3901_v52 = vsel %vm3885_vm15, %v3821_v16, 0.0 }
0x17f5   :  { %v3913_v24 = vsel %vm213_vm4, %v3901_v52, 0.0 }
0x17f6   :  { %3914 = vadd.xlane.f32.xlu1 %v3913_v24 }
0x17f7   :  { %v3803_v23 = vpop.xlane.xlu0 %3802 }
0x17f8   :  { %v3817_v43 = vmul.f32 %v3803_v23, %v8764_v44 }
0x17fa   :  { %v3827_v48 = vsub.f32 %v8979_v61, %v3817_v43 }
0x17fb   :  { %v3800_v5 = vpop.xlane.xlu0 %3799 }
0x17fc   :  { %v3816_v32 = vmul.f32 %v3800_v5, %v8764_v44  ;;  %v3907_v34 = vsel %vm3885_vm15, %v3827_v48, 0.0 }
0x17fd   :  { %v3931_v28 = vsel %vm213_vm4, %v3907_v34, 0.0 }
0x17fe   :  { %v3826_v9 = vsub.f32 %v8987_v45, %v3816_v32  ;;  %3932 = vadd.xlane.f32.xlu0 %v3931_v28 }
0x1800   :  { %v3906_v12 = vsel %vm3885_vm15, %v3826_v9, 0.0 }
0x1801   :  { %v3928_v42 = vsel %vm213_vm4, %v3906_v12, 0.0 }
0x1802   :  { %3929 = vadd.xlane.f32.xlu0 %v3928_v42 }
0x1835   :  { %v3782_v54 = vpop.xlane.xlu1 %3781 }
0x1836   :  { %v3810_v61 = vmul.f32 %v3782_v54, %v8749_v60 }
0x1838   :  { %v9096_v41 = vsub.f32 %v8995_v7, %v3810_v61 }
0x183a   :  { %v3900_v19 = vsel %vm3885_vm15, %v9096_v41, 0.0 }
0x183b   :  { %v3910_v25 = vsel %vm213_vm4, %v3900_v19, 0.0 }
0x183c   :  { %3911 = vadd.xlane.f32.xlu1 %v3910_v25 }
0x1841   :  { %v3797_v45 = vpop.xlane.xlu0 %3796 }
0x1842   :  { %v3815_v4 = vmul.f32 %v3797_v45, %v8764_v44 }
0x1844   :  { %v9104_v22 = vsub.f32 %v9003_v33, %v3815_v4 }
0x1846   :  { %v3905_v60 = vsel %vm3885_vm15, %v9104_v22, 0.0  ;;  %vm4665_vm15 = vcmp.eq.s32.totalorder %v6044_v2, 34 }
0x1847   :  { %v3925_v7 = vsel %vm213_vm4, %v3905_v60, 0.0 }
0x1848   :  { %3926 = vadd.xlane.f32.xlu0 %v3925_v7 }
0x184f   :  { %v4054_v58 = vpop.xlane.xlu1 %4053 }
0x1850   :  { %v4074_v29 = vmul.f32 %v4054_v58, %v9017_v36 }
0x1852   :  { %v9112_v50 = vsub.f32 %v9010_v35, %v4074_v29 }
0x1854   :  { %v4164_v44 = vsel %vm4145_vm7, %v9112_v50, 0.0 }
0x1855   :  { %v4182_v33 = vsel %vm221_vm14, %v4164_v44, 0.0 }
0x1856   :  { %4183 = vadd.xlane.f32.xlu1 %v4182_v33 }
0x185b   :  { %v4069_v62 = vpop.xlane.xlu0 %4068 }
0x185c   :  { %v4079_v11 = vmul.f32 %v4069_v62, %v9040_v38 }
0x185e   :  { %v9120_v49 = vsub.f32 %v9032_v21, %v4079_v11 }
0x1860   :  { %v4169_v20 = vsel %vm4145_vm7, %v9120_v49, 0.0 }
0x1861   :  { %v4197_v35 = vsel %vm221_vm14, %v4169_v20, 0.0 }
0x1862   :  { %4198 = vadd.xlane.f32.xlu0 %v4197_v35 }
0x1867   :  { %v4150_v8 = vpop.xlane.xlu1 %4149 }
0x1868   :  { %5804 = vrcp.f32 %v4150_v8 }
0x186b   :  { %v4181_v40 = vpop.xlane.xlu1 %4180 }
0x1873   :  { %v4153_v30 = vpop.xlane.xlu0 %4152 }
0x1874   :  { %5806 = vrcp.f32 %v4153_v30 }
0x1877   :  { %v4196_v37 = vpop.xlane.xlu0 %4195 }
0x187b   :  { %v3918_v57 = vpop.xlane.xlu1 %3917 }
0x187c   :  { %v3942_v39 = vmul.f32 %v3918_v57, %v8885_v1 }
0x187e   :  { %v9127_v46 = vsub.f32 %v3822_v13, %v3942_v39 }
0x187f   :  { %v3915_v56 = vpop.xlane.xlu1 %3914 }
0x1880   :  { %v3941_v18 = vmul.f32 %v3915_v56, %v8885_v1  ;;  %v4032_v21 = vsel %vm4015_vm0, %v9127_v46, 0.0 }
0x1881   :  { %v4046_v51 = vsel %vm213_vm4, %v4032_v21, 0.0 }
0x1882   :  { %v9134_v14 = vsub.f32 %v3821_v16, %v3941_v18  ;;  %4047 = vadd.xlane.f32.xlu1 %v4046_v51 }
0x1884   :  { %v4031_v17 = vsel %vm4015_vm0, %v9134_v14, 0.0 }
0x1885   :  { %v4043_v63 = vsel %vm213_vm4, %v4031_v17, 0.0 }
0x1886   :  { %4044 = vadd.xlane.f32.xlu1 %v4043_v63 }
0x1887   :  { %v3933_v13 = vpop.xlane.xlu0 %3932 }
0x1888   :  { %v3947_v0 = vmul.f32 %v3933_v13, %v8907_v31 }
0x188a   :  { %v9141_v6 = vsub.f32 %v3827_v48, %v3947_v0  ;;  %v5805_v48 = vpop.eup %5804 }
0x188b   :  { %v3930_v27 = vpop.xlane.xlu0 %3929  ;;  %v9155_v5 = vmul.f32 %v5805_v48, %v9052_v26  ;;  %v5807_v28 = vpop.eup %5806 }
0x188c   :  { %v3946_v47 = vmul.f32 %v3930_v27, %v8907_v31  ;;  %v4037_v16 = vsel %vm4015_vm0, %v9141_v6, 0.0  ;;  %v9166_v12 = vmul.f32 %v5807_v28, %v9064_v59 }
0x188d   :  { %v4061_v52 = vsel %vm213_vm4, %v4037_v16, 0.0  ;;  %v4203_v32 = vmul.f32 %v4181_v40, %v9155_v5 }
0x188e   :  { %v9148_v24 = vsub.f32 %v3826_v9, %v3946_v47  ;;  %4062 = vadd.xlane.f32.xlu0 %v4061_v52  ;;  %v4208_v42 = vmul.f32 %v4196_v37, %v9166_v12 }
0x188f   :  { %v4213_v34 = vsub.f32 %v9026_v15, %v4203_v32 }
0x1890   :  { %v4036_v23 = vsel %vm4015_vm0, %v9148_v24, 0.0  ;;  %v4218_v15 = vsub.f32 %v9047_v10, %v4208_v42 }
0x1891   :  { %v4058_v43 = vsel %vm213_vm4, %v4036_v23, 0.0  ;;  %v9163_v9 = vsel %vm4103_vm6, %v9155_v5, %v4213_v34 }
0x1892   :  { %4059 = vadd.xlane.f32.xlu0 %v4058_v43  ;;  %v4238_v26 = vsel %vm4233_vm10, %v9163_v9, 0.0  ;;  %v9177_v19 = vsel %vm4103_vm6, %v9166_v12, %v4218_v15  ;;  %vm5456_vm6 = vcmask 253952  }
0x1893   :  { %v4250_v54 = vsel %vm213_vm4, %v4238_v26, 0.0  ;;  %v4243_v59 = vsel %vm4233_vm10, %v9177_v19, 0.0 }
0x1894   :  { %v4254_v61 = vrot.slane %v4250_v54, 4  ;;  %v4265_v4 = vsel %vm213_vm4, %v4243_v59, 0.0 }
0x1895   :  { %v4269_v7 = vrot.slane %v4265_v4, 4 }
0x1896   :  { %v4255_v25 = vadd.f32 %v4254_v61, %v4250_v54 }
0x1897   :  { %v4270_v29 = vadd.f32 %v4269_v7, %v4265_v4 }
0x1898   :  { %v4256_v45 = vrot.slane %v4255_v25, 2 }
0x1899   :  { %v4271_v11 = vrot.slane %v4270_v29, 2 }
0x189a   :  { %v4257_v60 = vadd.f32 %v4256_v45, %v4255_v25 }
0x189b   :  { %v4272_v40 = vadd.f32 %v4271_v11, %v4270_v29 }
0x189c   :  { %v4258_v58 = vrot.slane %v4257_v60, 1 }
0x189e   :  { %v9185_v62 = vadd.f32 %v4258_v58, %v4257_v60 }
0x18a0   :  { %v4276_v8 = vsel %vm4275_vm13, %v9185_v62, 0.0 }
0x18c5   :  { %v3912_v44 = vpop.xlane.xlu1 %3911 }
0x18c6   :  { %v3940_v10 = vmul.f32 %v3912_v44, %v8885_v1  ;;  %v4278_v1 = vsel %vm213_vm4, %v4276_v8, 0.0 }
0x18c8   :  { %v3950_v33 = vsub.f32 %v9096_v41, %v3940_v10  ;;  %v4273_v41 = vrot.slane %v4272_v40, 1 }
0x18ca   :  { %v4030_v20 = vsel %vm4015_vm0, %v3950_v33, 0.0  ;;  %v9197_v56 = vadd.f32 %v4273_v41, %v4272_v40 }
0x18cb   :  { %v4040_v35 = vsel %vm213_vm4, %v4030_v20, 0.0 }
0x18cc   :  { %4041 = vadd.xlane.f32.xlu1 %v4040_v35  ;;  %v4277_v51 = vsel %vm4275_vm13, %v9197_v56, 0.0 }
0x18cd   :  { %v4281_v37 = vsel %vm213_vm4, %v4277_v51, 0.0 }
0x18d0   :  { %4279 = vadd.xlane.f32.xlu1 %v4278_v1 }
0x18d1   :  { %v3927_v57 = vpop.xlane.xlu0 %3926 }
0x18d2   :  { %v3945_v39 = vmul.f32 %v3927_v57, %v8907_v31 }
0x18d4   :  { %v3955_v30 = vsub.f32 %v9104_v22, %v3945_v39 }
0x18d6   :  { %v4035_v18 = vsel %vm4015_vm0, %v3955_v30, 0.0  ;;  %vm4795_vm0 = vcmp.eq.s32.totalorder %v6044_v2, 35 }
0x18d7   :  { %v4055_v21 = vsel %vm213_vm4, %v4035_v18, 0.0 }
0x18d8   :  { %4056 = vadd.xlane.f32.xlu0 %v4055_v21 }
0x18dc   :  { %4282 = vadd.xlane.f32.xlu0 %v4281_v37 }
0x18df   :  { %v4184_v17 = vpop.xlane.xlu1 %4183 }
0x18e0   :  { %v4204_v31 = vmul.f32 %v4184_v17, %v9155_v5 }
0x18e2   :  { %v4214_v22 = vsub.f32 %v9112_v50, %v4204_v31 }
0x18e4   :  { %v4294_v63 = vsel %vm4275_vm13, %v4214_v22, 0.0 }
0x18e5   :  { %v4312_v13 = vsel %vm221_vm14, %v4294_v63, 0.0 }
0x18e6   :  { %4313 = vadd.xlane.f32.xlu1 %v4312_v13 }
0x18eb   :  { %v4199_v0 = vpop.xlane.xlu0 %4198 }
0x18ec   :  { %v4209_v27 = vmul.f32 %v4199_v0, %v9166_v12 }
0x18ee   :  { %v4219_v47 = vsub.f32 %v9120_v49, %v4209_v27 }
0x18f0   :  { %v4299_v16 = vsel %vm4275_vm13, %v4219_v47, 0.0 }
0x18f1   :  { %v4327_v52 = vsel %vm221_vm14, %v4299_v16, 0.0 }
0x18f2   :  { %4328 = vadd.xlane.f32.xlu0 %v4327_v52 }
0x190b   :  { %v4048_v23 = vpop.xlane.xlu1 %4047 }
0x190c   :  { %v4072_v50 = vmul.f32 %v4048_v23, %v9017_v36 }
0x190e   :  { %v9218_v43 = vsub.f32 %v9127_v46, %v4072_v50 }
0x190f   :  { %v4045_v48 = vpop.xlane.xlu1 %4044 }
0x1910   :  { %v4071_v32 = vmul.f32 %v4045_v48, %v9017_v36  ;;  %v4162_v34 = vsel %vm4145_vm7, %v9218_v43, 0.0 }
0x1911   :  { %v4176_v49 = vsel %vm213_vm4, %v4162_v34, 0.0 }
0x1912   :  { %v9226_v28 = vsub.f32 %v9134_v14, %v4071_v32  ;;  %4177 = vadd.xlane.f32.xlu1 %v4176_v49  ;;  %v4293_v32 = vsel %vm4275_vm13, %v9163_v9, 0.0 }
0x1914   :  { %v4161_v26 = vsel %vm4145_vm7, %v9226_v28, 0.0 }
0x1915   :  { %v4173_v46 = vsel %vm213_vm4, %v4161_v26, 0.0  ;;  %v4309_v26 = vsel %vm213_vm4, %v4293_v32, 0.0 }
0x1916   :  { %4174 = vadd.xlane.f32.xlu1 %v4173_v46 }
0x1917   :  { %v4063_v42 = vpop.xlane.xlu0 %4062 }
0x1918   :  { %v4077_v54 = vmul.f32 %v4063_v42, %v9040_v38 }
0x191a   :  { %v9234_v15 = vsub.f32 %v9141_v6, %v4077_v54 }
0x191b   :  { %v4060_v61 = vpop.xlane.xlu0 %4059 }
0x191c   :  { %v4076_v25 = vmul.f32 %v4060_v61, %v9040_v38  ;;  %v4167_v14 = vsel %vm4145_vm7, %v9234_v15, 0.0 }
0x191d   :  { %v4191_v59 = vsel %vm213_vm4, %v4167_v14, 0.0  ;;  %v4298_v14 = vsel %vm4275_vm13, %v9177_v19, 0.0 }
0x191e   :  { %v9242_v45 = vsub.f32 %v9148_v24, %v4076_v25  ;;  %4192 = vadd.xlane.f32.xlu0 %v4191_v59  ;;  %v4324_v59 = vsel %vm213_vm4, %v4298_v14, 0.0 }
0x1920   :  { %v4166_v4 = vsel %vm4145_vm7, %v9242_v45, 0.0 }
0x1921   :  { %v4188_v6 = vsel %vm213_vm4, %v4166_v4, 0.0 }
0x1922   :  { %4189 = vadd.xlane.f32.xlu0 %v4188_v6 }
0x1955   :  { %v4042_v60 = vpop.xlane.xlu1 %4041 }
0x1956   :  { %v4070_v7 = vmul.f32 %v4042_v60, %v9017_v36 }
0x1958   :  { %v9249_v58 = vsub.f32 %v3950_v33, %v4070_v7 }
0x1959   :  { %v4280_v44 = vpop.xlane.xlu1 %4279 }
0x195a   :  { %v4160_v29 = vsel %vm4145_vm7, %v9249_v58, 0.0  ;;  %5808 = vrcp.f32 %v4280_v44 }
0x195b   :  { %v4170_v24 = vsel %vm213_vm4, %v4160_v29, 0.0 }
0x195c   :  { %4171 = vadd.xlane.f32.xlu1 %v4170_v24 }
0x1961   :  { %v4057_v10 = vpop.xlane.xlu0 %4056 }
0x1962   :  { %v4075_v11 = vmul.f32 %v4057_v10, %v9040_v38 }
0x1964   :  { %v9256_v20 = vsub.f32 %v3955_v30, %v4075_v11 }
0x1965   :  { %v4283_v33 = vpop.xlane.xlu0 %4282 }
0x1966   :  { %v4165_v36 = vsel %vm4145_vm7, %v9256_v20, 0.0  ;;  %5810 = vrcp.f32 %v4283_v33 }
0x1967   :  { %v4185_v35 = vsel %vm213_vm4, %v4165_v36, 0.0  ;;  %v5809_v8 = vpop.eup %5808 }
0x1968   :  { %4186 = vadd.xlane.f32.xlu0 %v4185_v35  ;;  %v9263_v40 = vmul.f32 %v5809_v8, %v9185_v62 }
0x196f   :  { %v4314_v1 = vpop.xlane.xlu1 %4313 }
0x1970   :  { %v4334_v41 = vmul.f32 %v4314_v1, %v9263_v40 }
0x1972   :  { %v9267_v38 = vsub.f32 %v4214_v22, %v4334_v41 }
0x1973   :  { %v5811_v18 = vpop.eup %5810 }
0x1974   :  { %v4369_v57 = vsel %vm4364_vm5, %v9267_v38, 0.0  ;;  %v9274_v51 = vmul.f32 %v5811_v18, %v9197_v56 }
0x1975   :  { %v4382_v39 = vsel %vm221_vm14, %v4369_v57, 0.0 }
0x1976   :  { %v4384_v30 = vrot.slane %v4382_v39, 4 }
0x1978   :  { %v4385_v21 = vadd.f32 %v4384_v30, %v4382_v39 }
0x197a   :  { %v4386_v62 = vrot.slane %v4385_v21, 2 }
0x197b   :  { %v4329_v37 = vpop.xlane.xlu0 %4328 }
0x197c   :  { %v4339_v17 = vmul.f32 %v4329_v37, %v9274_v51  ;;  %v4387_v31 = vadd.f32 %v4386_v62, %v4385_v21 }
0x197e   :  { %v9277_v63 = vsub.f32 %v4219_v47, %v4339_v17  ;;  %v4388_v22 = vrot.slane %v4387_v31, 1  ;;  %v4424_v47 = vsel %vm4405_vm3, %v9267_v38, 0.0 }
0x197f   :  { %v4442_v48 = vsel %vm221_vm14, %v4424_v47, 0.0 }
0x1980   :  { %v4374_v13 = vsel %vm4364_vm5, %v9277_v63, 0.0  ;;  %v9282_v0 = vadd.f32 %v4388_v22, %v4387_v31  ;;  %v4429_v61 = vsel %vm4405_vm3, %v9277_v63, 0.0 }
0x1981   :  { %v4397_v27 = vsel %vm221_vm14, %v4374_v13, 0.0  ;;  %v4457_v25 = vsel %vm221_vm14, %v4429_v61, 0.0 }
0x1982   :  { %v4399_v56 = vrot.slane %v4397_v27, 4  ;;  %v4406_v16 = vsel %vm4405_vm3, %v9282_v0, 0.0 }
0x1983   :  { %v4408_v52 = vsel %vm213_vm4, %v4406_v16, 0.0 }
0x1984   :  { %4409 = vadd.xlane.f32.xlu1 %v4408_v52  ;;  %v4400_v23 = vadd.f32 %v4399_v56, %v4397_v27 }
0x1986   :  { %v4401_v50 = vrot.slane %v4400_v23, 2 }
0x1988   :  { %4443 = vadd.xlane.f32.xlu1 %v4442_v48  ;;  %v4402_v34 = vadd.f32 %v4401_v50, %v4400_v23 }
0x198a   :  { %v4403_v49 = vrot.slane %v4402_v34, 1 }
0x198c   :  { %4310 = vadd.xlane.f32.xlu1 %v4309_v26  ;;  %v9298_v46 = vadd.f32 %v4403_v49, %v4402_v34 }
0x198e   :  { %v4407_v42 = vsel %vm4405_vm3, %v9298_v46, 0.0 }
0x198f   :  { %v4411_v54 = vsel %vm213_vm4, %v4407_v42, 0.0 }
0x1990   :  { %4412 = vadd.xlane.f32.xlu0 %v4411_v54 }
0x1994   :  { %4458 = vadd.xlane.f32.xlu0 %v4457_v25 }
0x1998   :  { %4325 = vadd.xlane.f32.xlu0 %v4324_v59 }
0x199b   :  { %v4178_v4 = vpop.xlane.xlu1 %4177 }
0x199c   :  { %v4202_v6 = vmul.f32 %v4178_v4, %v9155_v5 }
0x199e   :  { %v9314_v60 = vsub.f32 %v9218_v43, %v4202_v6 }
0x199f   :  { %v4175_v7 = vpop.xlane.xlu1 %4174 }
0x19a0   :  { %v4201_v29 = vmul.f32 %v4175_v7, %v9155_v5  ;;  %v4292_v44 = vsel %vm4275_vm13, %v9314_v60, 0.0 }
0x19a1   :  { %v4306_v24 = vsel %vm213_vm4, %v4292_v44, 0.0 }
0x19a2   :  { %v9322_v10 = vsub.f32 %v9226_v28, %v4201_v29  ;;  %4307 = vadd.xlane.f32.xlu1 %v4306_v24 }
0x19a4   :  { %v4291_v11 = vsel %vm4275_vm13, %v9322_v10, 0.0 }
0x19a5   :  { %v4303_v43 = vsel %vm213_vm4, %v4291_v11, 0.0 }
0x19a6   :  { %4304 = vadd.xlane.f32.xlu1 %v4303_v43 }
0x19a7   :  { %v4193_v36 = vpop.xlane.xlu0 %4192 }
0x19a8   :  { %v4207_v33 = vmul.f32 %v4193_v36, %v9166_v12 }
0x19aa   :  { %v9330_v35 = vsub.f32 %v9234_v15, %v4207_v33 }
0x19ab   :  { %v4190_v8 = vpop.xlane.xlu0 %4189 }
0x19ac   :  { %v4206_v1 = vmul.f32 %v4190_v8, %v9166_v12  ;;  %v4297_v28 = vsel %vm4275_vm13, %v9330_v35, 0.0 }
0x19ad   :  { %v4321_v41 = vsel %vm213_vm4, %v4297_v28, 0.0 }
0x19ae   :  { %v9338_v57 = vsub.f32 %v9242_v45, %v4206_v1  ;;  %4322 = vadd.xlane.f32.xlu0 %v4321_v41 }
0x19b0   :  { %v4296_v39 = vsel %vm4275_vm13, %v9338_v57, 0.0 }
0x19b1   :  { %v4318_v15 = vsel %vm213_vm4, %v4296_v39, 0.0 }
0x19b2   :  { %4319 = vadd.xlane.f32.xlu0 %v4318_v15 }
0x19e5   :  { %v4172_v30 = vpop.xlane.xlu1 %4171 }
0x19e6   :  { %v4200_v18 = vmul.f32 %v4172_v30, %v9155_v5 }
0x19e8   :  { %v9346_v21 = vsub.f32 %v9249_v58, %v4200_v18 }
0x19ea   :  { %v4290_v62 = vsel %vm4275_vm13, %v9346_v21, 0.0 }
0x19eb   :  { %v4300_v45 = vsel %vm213_vm4, %v4290_v62, 0.0 }
0x19ec   :  { %4301 = vadd.xlane.f32.xlu1 %v4300_v45 }
0x19f1   :  { %v4187_v37 = vpop.xlane.xlu0 %4186 }
0x19f2   :  { %v4205_v17 = vmul.f32 %v4187_v37, %v9166_v12 }
0x19f4   :  { %v9354_v31 = vsub.f32 %v9256_v20, %v4205_v17 }
0x19f6   :  { %v4295_v5 = vsel %vm4275_vm13, %v9354_v31, 0.0 }
0x19f7   :  { %v4315_v58 = vsel %vm213_vm4, %v4295_v5, 0.0 }
0x19f8   :  { %4316 = vadd.xlane.f32.xlu0 %v4315_v58 }
0x1a0d   :  { %v4410_v22 = vpop.xlane.xlu1 %4409 }
0x1a0e   :  { %5812 = vrcp.f32 %v4410_v22 }
0x1a11   :  { %v4444_v13 = vpop.xlane.xlu1 %4443 }
0x1a15   :  { %v4311_v27 = vpop.xlane.xlu1 %4310 }
0x1a16   :  { %v4333_v56 = vmul.f32 %v4311_v27, %v9263_v40 }
0x1a18   :  { %v4343_v16 = vsub.f32 %v9163_v9, %v4333_v56 }
0x1a19   :  { %v4413_v52 = vpop.xlane.xlu0 %4412 }
0x1a1a   :  { %5814 = vrcp.f32 %v4413_v52  ;;  %v9365_v12 = vsel %vm4233_vm10, %v9263_v40, %v4343_v16 }
0x1a1b   :  { %v5813_v20 = vpop.eup %5812  ;;  %v4423_v47 = vsel %vm4405_vm3, %v9365_v12, 0.0 }
0x1a1c   :  { %v9371_v23 = vmul.f32 %v5813_v20, %v9282_v0  ;;  %v4439_v50 = vsel %vm213_vm4, %v4423_v47, 0.0 }
0x1a1d   :  { %v4459_v48 = vpop.xlane.xlu0 %4458  ;;  %4440 = vadd.xlane.f32.xlu1 %v4439_v50 }
0x1a1e   :  { %v4464_v9 = vmul.f32 %v4444_v13, %v9371_v23 }
0x1a20   :  { %v4474_v32 = vsub.f32 %v9267_v38, %v4464_v9 }
0x1a21   :  { %v4326_v34 = vpop.xlane.xlu0 %4325 }
0x1a22   :  { %v9380_v49 = vsel %vm4364_vm5, %v9371_v23, %v4474_v32  ;;  %v4338_v26 = vmul.f32 %v4326_v34, %v9274_v51 }
0x1a23   :  { %v4499_v0 = vsel %vm4494_vm9, %v9380_v49, 0.0 }
0x1a24   :  { %v4348_v42 = vsub.f32 %v9177_v19, %v4338_v26  ;;  %v4512_v54 = vsel %vm221_vm14, %v4499_v0, 0.0  ;;  %v4554_v0 = vsel %vm4535_vm11, %v9380_v49, 0.0 }
0x1a25   :  { %v4514_v61 = vrot.slane %v4512_v54, 4 }
0x1a26   :  { %v9391_v38 = vsel %vm4233_vm10, %v9274_v51, %v4348_v42  ;;  %v4572_v42 = vsel %vm221_vm14, %v4554_v0, 0.0 }
0x1a27   :  { %v5815_v25 = vpop.eup %5814  ;;  %v4428_v14 = vsel %vm4405_vm3, %v9391_v38, 0.0  ;;  %v4515_v59 = vadd.f32 %v4514_v61, %v4512_v54 }
0x1a28   :  { %v9397_v4 = vmul.f32 %v5815_v25, %v9298_v46  ;;  %v4454_v6 = vsel %vm213_vm4, %v4428_v14, 0.0 }
0x1a29   :  { %4455 = vadd.xlane.f32.xlu0 %v4454_v6  ;;  %v4516_v19 = vrot.slane %v4515_v59, 2 }
0x1a2a   :  { %v4469_v7 = vmul.f32 %v4459_v48, %v9397_v4 }
0x1a2b   :  { %v4308_v29 = vpop.xlane.xlu1 %4307  ;;  %v4517_v44 = vadd.f32 %v4516_v19, %v4515_v59 }
0x1a2c   :  { %v4479_v55 = vsub.f32 %v9277_v63, %v4469_v7  ;;  %v4332_v24 = vmul.f32 %v4308_v29, %v9263_v40 }
0x1a2d   :  { %v4518_v11 = vrot.slane %v4517_v44, 1 }
0x1a2e   :  { %v9406_v43 = vsel %vm4364_vm5, %v9397_v4, %v4479_v55  ;;  %v9412_v36 = vsub.f32 %v9314_v60, %v4332_v24 }
0x1a2f   :  { %v4504_v46 = vsel %vm4494_vm9, %v9406_v43, 0.0  ;;  %v4305_v33 = vpop.xlane.xlu1 %4304  ;;  %v9414_v8 = vadd.f32 %v4518_v11, %v4517_v44  ;;  %v4559_v14 = vsel %vm4535_vm11, %v9406_v43, 0.0 }
0x1a30   :  { %v4331_v63 = vmul.f32 %v4305_v33, %v9263_v40  ;;  %v4527_v1 = vsel %vm221_vm14, %v4504_v46, 0.0  ;;  %v4422_v60 = vsel %vm4405_vm3, %v9412_v36, 0.0  ;;  %v4587_v59 = vsel %vm221_vm14, %v4559_v14, 0.0 }
0x1a31   :  { %v4536_v28 = vsel %vm4535_vm11, %v9414_v8, 0.0  ;;  %v4529_v41 = vrot.slane %v4527_v1, 4  ;;  %v4436_v62 = vsel %vm213_vm4, %v4422_v60, 0.0 }
0x1a32   :  { %v4538_v39 = vsel %vm213_vm4, %v4536_v28, 0.0  ;;  %v9424_v15 = vsub.f32 %v9322_v10, %v4331_v63 }
0x1a33   :  { %4539 = vadd.xlane.f32.xlu1 %v4538_v39  ;;  %v4530_v30 = vadd.f32 %v4529_v41, %v4527_v1 }
0x1a34   :  { %v4421_v37 = vsel %vm4405_vm3, %v9424_v15, 0.0 }
0x1a35   :  { %v4531_v18 = vrot.slane %v4530_v30, 2  ;;  %v4433_v58 = vsel %vm213_vm4, %v4421_v37, 0.0 }
0x1a37   :  { %v4323_v45 = vpop.xlane.xlu0 %4322  ;;  %4437 = vadd.xlane.f32.xlu1 %v4436_v62  ;;  %v4532_v17 = vadd.f32 %v4531_v18, %v4530_v30 }
0x1a38   :  { %v4337_v5 = vmul.f32 %v4323_v45, %v9274_v51 }
0x1a39   :  { %v4533_v10 = vrot.slane %v4532_v17, 1 }
0x1a3a   :  { %v4347_v22 = vsub.f32 %v9330_v35, %v4337_v5 }
0x1a3b   :  { %v4320_v13 = vpop.xlane.xlu0 %4319  ;;  %4434 = vadd.xlane.f32.xlu1 %v4433_v58  ;;  %v9436_v27 = vadd.f32 %v4533_v10, %v4532_v17 }
0x1a3c   :  { %v4336_v56 = vmul.f32 %v4320_v13, %v9274_v51  ;;  %v4427_v47 = vsel %vm4405_vm3, %v4347_v22, 0.0 }
0x1a3d   :  { %v4537_v16 = vsel %vm4535_vm11, %v9436_v27, 0.0  ;;  %v4451_v35 = vsel %vm213_vm4, %v4427_v47, 0.0 }
0x1a3e   :  { %v4541_v52 = vsel %vm213_vm4, %v4537_v16, 0.0  ;;  %v4346_v20 = vsub.f32 %v9338_v57, %v4336_v56 }
0x1a3f   :  { %4542 = vadd.xlane.f32.xlu0 %v4541_v52 }
0x1a40   :  { %v4426_v50 = vsel %vm4405_vm3, %v4346_v20, 0.0 }
0x1a41   :  { %v4448_v48 = vsel %vm213_vm4, %v4426_v50, 0.0 }
0x1a43   :  { %4452 = vadd.xlane.f32.xlu0 %v4451_v35 }
0x1a47   :  { %4449 = vadd.xlane.f32.xlu0 %v4448_v48 }
0x1a75   :  { %v4302_v9 = vpop.xlane.xlu1 %4301 }
0x1a76   :  { %v4330_v32 = vmul.f32 %v4302_v9, %v9263_v40 }
0x1a78   :  { %v4340_v34 = vsub.f32 %v9346_v21, %v4330_v32 }
0x1a7a   :  { %v4420_v57 = vsel %vm4405_vm3, %v4340_v34, 0.0 }
0x1a7b   :  { %v4430_v26 = vsel %vm213_vm4, %v4420_v57, 0.0 }
0x1a7c   :  { %4431 = vadd.xlane.f32.xlu1 %v4430_v26 }
0x1a80   :  { %4573 = vadd.xlane.f32.xlu1 %v4572_v42 }
0x1a81   :  { %v4317_v54 = vpop.xlane.xlu0 %4316 }
0x1a82   :  { %v4335_v61 = vmul.f32 %v4317_v54, %v9274_v51 }
0x1a84   :  { %v9461_v40 = vsub.f32 %v9354_v31, %v4335_v61 }
0x1a86   :  { %v4425_v21 = vsel %vm4405_vm3, %v9461_v40, 0.0 }
0x1a87   :  { %v4445_v25 = vsel %vm213_vm4, %v4425_v21, 0.0 }
0x1a88   :  { %4446 = vadd.xlane.f32.xlu0 %v4445_v25 }
0x1a8c   :  { %4588 = vadd.xlane.f32.xlu0 %v4587_v59 }
0x1aa6   :  { %v4441_v6 = vpop.xlane.xlu1 %4440 }
0x1aa7   :  { %v4463_v51 = vmul.f32 %v4441_v6, %v9371_v23 }
0x1aa9   :  { %v9473_v31 = vsub.f32 %v9365_v12, %v4463_v51 }
0x1aab   :  { %v4553_v19 = vsel %vm4535_vm11, %v9473_v31, 0.0 }
0x1aac   :  { %v4569_v7 = vsel %vm213_vm4, %v4553_v19, 0.0 }
0x1aad   :  { %4570 = vadd.xlane.f32.xlu1 %v4569_v7 }
0x1ab2   :  { %v4456_v29 = vpop.xlane.xlu0 %4455 }
0x1ab3   :  { %v4468_v44 = vmul.f32 %v4456_v29, %v9397_v4 }
0x1ab5   :  { %v9481_v55 = vsub.f32 %v9391_v38, %v4468_v44 }
0x1ab7   :  { %v4558_v24 = vsel %vm4535_vm11, %v9481_v55, 0.0 }
0x1ab8   :  { %v4584_v12 = vsel %vm213_vm4, %v4558_v24, 0.0 }
0x1ab9   :  { %4585 = vadd.xlane.f32.xlu0 %v4584_v12 }
0x1abc   :  { %v4540_v11 = vpop.xlane.xlu1 %4539 }
0x1abd   :  { %5816 = vrcp.f32 %v4540_v11 }
0x1ac0   :  { %v4438_v46 = vpop.xlane.xlu1 %4437 }
0x1ac1   :  { %v4462_v33 = vmul.f32 %v4438_v46, %v9371_v23 }
0x1ac3   :  { %v9489_v63 = vsub.f32 %v9412_v36, %v4462_v33 }
0x1ac4   :  { %v4435_v1 = vpop.xlane.xlu1 %4434 }
0x1ac5   :  { %v4461_v28 = vmul.f32 %v4435_v1, %v9371_v23  ;;  %v4552_v38 = vsel %vm4535_vm11, %v9489_v63, 0.0 }
0x1ac6   :  { %v4566_v41 = vsel %vm213_vm4, %v4552_v38, 0.0 }
0x1ac7   :  { %v9497_v39 = vsub.f32 %v9424_v15, %v4461_v28  ;;  %4567 = vadd.xlane.f32.xlu1 %v4566_v41 }
0x1ac8   :  { %v4543_v60 = vpop.xlane.xlu0 %4542 }
0x1ac9   :  { %v4551_v30 = vsel %vm4535_vm11, %v9497_v39, 0.0  ;;  %5818 = vrcp.f32 %v4543_v60 }
0x1aca   :  { %v4563_v36 = vsel %vm213_vm4, %v4551_v30, 0.0 }
0x1acb   :  { %4564 = vadd.xlane.f32.xlu1 %v4563_v36 }
0x1acc   :  { %v4453_v18 = vpop.xlane.xlu0 %4452 }
0x1acd   :  { %v4467_v62 = vmul.f32 %v4453_v18, %v9397_v4 }
0x1acf   :  { %v9504_v45 = vsub.f32 %v4347_v22, %v4467_v62  ;;  %v5817_v22 = vpop.eup %5816 }
0x1ad0   :  { %v4450_v37 = vpop.xlane.xlu0 %4449  ;;  %v9519_v52 = vmul.f32 %v5817_v22, %v9414_v8 }
0x1ad1   :  { %v4466_v17 = vmul.f32 %v4450_v37, %v9397_v4  ;;  %v4557_v15 = vsel %vm4535_vm11, %v9504_v45, 0.0 }
0x1ad2   :  { %v4581_v5 = vsel %vm213_vm4, %v4557_v15, 0.0 }
0x1ad3   :  { %v9511_v10 = vsub.f32 %v4346_v20, %v4466_v17  ;;  %4582 = vadd.xlane.f32.xlu0 %v4581_v5 }
0x1ad5   :  { %v4556_v58 = vsel %vm4535_vm11, %v9511_v10, 0.0 }
0x1ad6   :  { %v4578_v13 = vsel %vm213_vm4, %v4556_v58, 0.0 }
0x1ad7   :  { %4579 = vadd.xlane.f32.xlu0 %v4578_v13 }
0x1b05   :  { %v4432_v56 = vpop.xlane.xlu1 %4431 }
0x1b06   :  { %v4460_v16 = vmul.f32 %v4432_v56, %v9371_v23 }
0x1b08   :  { %v9521_v47 = vsub.f32 %v4340_v34, %v4460_v16  ;;  %v5819_v34 = vpop.eup %5818 }
0x1b09   :  { %v4574_v20 = vpop.xlane.xlu1 %4573 }
0x1b0a   :  { %v4594_v35 = vmul.f32 %v4574_v20, %v9519_v52  ;;  %v4550_v50 = vsel %vm4535_vm11, %v9521_v47, 0.0 }
0x1b0b   :  { %v4560_v48 = vsel %vm213_vm4, %v4550_v50, 0.0 }
0x1b0c   :  { %v4604_v9 = vsub.f32 %v9380_v49, %v4594_v35  ;;  %4561 = vadd.xlane.f32.xlu1 %v4560_v48  ;;  %v9541_v49 = vmul.f32 %v5819_v34, %v9436_v27 }
0x1b0e   :  { %v9533_v23 = vsel %vm4494_vm9, %v9519_v52, %v4604_v9 }
0x1b0f   :  { %v4629_v8 = vsel %vm4624_vm12, %v9533_v23, 0.0  ;;  %v4684_v24 = vsel %vm4665_vm15, %v9533_v23, 0.0 }
0x1b10   :  { %v4642_v32 = vsel %vm221_vm14, %v4629_v8, 0.0  ;;  %v4702_v46 = vsel %vm221_vm14, %v4684_v24, 0.0 }
0x1b11   :  { %v4447_v57 = vpop.xlane.xlu0 %4446  ;;  %v4644_v26 = vrot.slane %v4642_v32, 4 }
0x1b12   :  { %v4465_v0 = vmul.f32 %v4447_v57, %v9397_v4 }
0x1b13   :  { %v4645_v42 = vadd.f32 %v4644_v26, %v4642_v32 }
0x1b14   :  { %v9544_v54 = vsub.f32 %v9461_v40, %v4465_v0 }
0x1b15   :  { %v4589_v61 = vpop.xlane.xlu0 %4588  ;;  %v4646_v21 = vrot.slane %v4645_v42, 2 }
0x1b16   :  { %v4599_v25 = vmul.f32 %v4589_v61, %v9541_v49  ;;  %v4555_v14 = vsel %vm4535_vm11, %v9544_v54, 0.0 }
0x1b17   :  { %v4575_v59 = vsel %vm213_vm4, %v4555_v14, 0.0  ;;  %v4647_v6 = vadd.f32 %v4646_v21, %v4645_v42 }
0x1b18   :  { %v4609_v4 = vsub.f32 %v9406_v43, %v4599_v25  ;;  %4576 = vadd.xlane.f32.xlu0 %v4575_v59 }
0x1b19   :  { %v4648_v51 = vrot.slane %v4647_v6, 1 }
0x1b1a   :  { %v9555_v27 = vsel %vm4494_vm9, %v9541_v49, %v4609_v4 }
0x1b1b   :  { %v4634_v40 = vsel %vm4624_vm12, %v9555_v27, 0.0  ;;  %v9560_v19 = vadd.f32 %v4648_v51, %v4647_v6  ;;  %v4689_v60 = vsel %vm4665_vm15, %v9555_v27, 0.0 }
0x1b1c   :  { %v4657_v7 = vsel %vm221_vm14, %v4634_v40, 0.0  ;;  %v4717_v30 = vsel %vm221_vm14, %v4689_v60, 0.0 }
0x1b1d   :  { %v4666_v43 = vsel %vm4665_vm15, %v9560_v19, 0.0  ;;  %v4659_v29 = vrot.slane %v4657_v7, 4 }
0x1b1e   :  { %v4668_v44 = vsel %vm213_vm4, %v4666_v43, 0.0 }
0x1b1f   :  { %4669 = vadd.xlane.f32.xlu1 %v4668_v44  ;;  %v4660_v12 = vadd.f32 %v4659_v29, %v4657_v7 }
0x1b21   :  { %v4661_v11 = vrot.slane %v4660_v12, 2 }
0x1b23   :  { %4703 = vadd.xlane.f32.xlu1 %v4702_v46  ;;  %v4662_v33 = vadd.f32 %v4661_v11, %v4660_v12 }
0x1b25   :  { %v4663_v1 = vrot.slane %v4662_v33, 1 }
0x1b27   :  { %v9572_v28 = vadd.f32 %v4663_v1, %v4662_v33 }
0x1b29   :  { %v4667_v38 = vsel %vm4665_vm15, %v9572_v28, 0.0 }
0x1b2a   :  { %v4671_v41 = vsel %vm213_vm4, %v4667_v38, 0.0 }
0x1b2b   :  { %4672 = vadd.xlane.f32.xlu0 %v4671_v41 }
0x1b2f   :  { %4718 = vadd.xlane.f32.xlu0 %v4717_v30 }
0x1b36   :  { %v4571_v36 = vpop.xlane.xlu1 %4570 }
0x1b37   :  { %v4593_v18 = vmul.f32 %v4571_v36, %v9519_v52 }
0x1b39   :  { %v9584_v62 = vsub.f32 %v9473_v31, %v4593_v18 }
0x1b3b   :  { %v4683_v37 = vsel %vm4665_vm15, %v9584_v62, 0.0 }
0x1b3c   :  { %v4699_v17 = vsel %vm213_vm4, %v4683_v37, 0.0 }
0x1b3d   :  { %4700 = vadd.xlane.f32.xlu1 %v4699_v17 }
0x1b42   :  { %v4586_v15 = vpop.xlane.xlu0 %4585 }
0x1b43   :  { %v4598_v5 = vmul.f32 %v4586_v15, %v9541_v49 }
0x1b45   :  { %v9592_v58 = vsub.f32 %v9481_v55, %v4598_v5 }
0x1b47   :  { %v4688_v13 = vsel %vm4665_vm15, %v9592_v58, 0.0 }
0x1b48   :  { %v4714_v31 = vsel %vm213_vm4, %v4688_v13, 0.0 }
0x1b49   :  { %4715 = vadd.xlane.f32.xlu0 %v4714_v31 }
0x1b50   :  { %v4568_v22 = vpop.xlane.xlu1 %4567 }
0x1b51   :  { %v4592_v56 = vmul.f32 %v4568_v22, %v9519_v52 }
0x1b53   :  { %v9600_v16 = vsub.f32 %v9489_v63, %v4592_v56 }
0x1b54   :  { %v4565_v20 = vpop.xlane.xlu1 %4564 }
0x1b55   :  { %v4591_v35 = vmul.f32 %v4565_v20, %v9519_v52  ;;  %v4682_v55 = vsel %vm4665_vm15, %v9600_v16, 0.0 }
0x1b56   :  { %v4696_v50 = vsel %vm213_vm4, %v4682_v55, 0.0 }
0x1b57   :  { %v9608_v48 = vsub.f32 %v9497_v39, %v4591_v35  ;;  %4697 = vadd.xlane.f32.xlu1 %v4696_v50 }
0x1b59   :  { %v4681_v9 = vsel %vm4665_vm15, %v9608_v48, 0.0 }
0x1b5a   :  { %v4693_v63 = vsel %vm213_vm4, %v4681_v9, 0.0 }
0x1b5b   :  { %4694 = vadd.xlane.f32.xlu1 %v4693_v63 }
0x1b5c   :  { %v4583_v8 = vpop.xlane.xlu0 %4582 }
0x1b5d   :  { %v4597_v32 = vmul.f32 %v4583_v8, %v9541_v49 }
0x1b5f   :  { %v9616_v34 = vsub.f32 %v9504_v45, %v4597_v32 }
0x1b60   :  { %v4580_v57 = vpop.xlane.xlu0 %4579 }
0x1b61   :  { %v4596_v26 = vmul.f32 %v4580_v57, %v9541_v49  ;;  %v4687_v39 = vsel %vm4665_vm15, %v9616_v34, 0.0 }
0x1b62   :  { %v4711_v0 = vsel %vm213_vm4, %v4687_v39, 0.0 }
0x1b63   :  { %v9624_v42 = vsub.f32 %v9511_v10, %v4596_v26  ;;  %4712 = vadd.xlane.f32.xlu0 %v4711_v0 }
0x1b65   :  { %v4686_v61 = vsel %vm4665_vm15, %v9624_v42, 0.0 }
0x1b66   :  { %v4708_v45 = vsel %vm213_vm4, %v4686_v61, 0.0 }
0x1b67   :  { %4709 = vadd.xlane.f32.xlu0 %v4708_v45 }
0x1b95   :  { %v4562_v21 = vpop.xlane.xlu1 %4561 }
0x1b96   :  { %v4590_v25 = vmul.f32 %v4562_v21, %v9519_v52 }
0x1b98   :  { %v9632_v14 = vsub.f32 %v9521_v47, %v4590_v25 }
0x1b9a   :  { %v4680_v59 = vsel %vm4665_vm15, %v9632_v14, 0.0 }
0x1b9b   :  { %v4690_v10 = vsel %vm213_vm4, %v4680_v59, 0.0 }
0x1b9c   :  { %4691 = vadd.xlane.f32.xlu1 %v4690_v10 }
0x1ba1   :  { %v4577_v6 = vpop.xlane.xlu0 %4576 }
0x1ba2   :  { %v4595_v4 = vmul.f32 %v4577_v6, %v9541_v49 }
0x1ba4   :  { %v9640_v51 = vsub.f32 %v9544_v54, %v4595_v4 }
0x1ba6   :  { %v4685_v52 = vsel %vm4665_vm15, %v9640_v51, 0.0 }
0x1ba7   :  { %v4705_v47 = vsel %vm213_vm4, %v4685_v52, 0.0 }
0x1ba8   :  { %4706 = vadd.xlane.f32.xlu0 %v4705_v47  ;;  %v4670_v40 = vpop.xlane.xlu1 %4669 }
0x1ba9   :  { %5820 = vrcp.f32 %v4670_v40 }
0x1bac   :  { %v4704_v44 = vpop.xlane.xlu1 %4703 }
0x1bb4   :  { %v4673_v7 = vpop.xlane.xlu0 %4672 }
0x1bb5   :  { %5822 = vrcp.f32 %v4673_v7 }
0x1bb6   :  { %v5821_v43 = vpop.eup %5820 }
0x1bb7   :  { %v9647_v29 = vmul.f32 %v5821_v43, %v9560_v19 }
0x1bb8   :  { %v4719_v38 = vpop.xlane.xlu0 %4718 }
0x1bb9   :  { %v4724_v49 = vmul.f32 %v4704_v44, %v9647_v29 }
0x1bbb   :  { %v4734_v54 = vsub.f32 %v9533_v23, %v4724_v49 }
0x1bbd   :  { %v9655_v24 = vsel %vm4624_vm12, %v9647_v29, %v4734_v54 }
0x1bbe   :  { %v4759_v12 = vsel %vm4754_vm8, %v9655_v24, 0.0  ;;  %v4814_v56 = vsel %vm4795_vm0, %v9655_v24, 0.0 }
0x1bbf   :  { %v4772_v11 = vsel %vm221_vm14, %v4759_v12, 0.0  ;;  %v4832_v55 = vsel %vm221_vm14, %v4814_v56, 0.0 }
0x1bc0   :  { %v4774_v19 = vrot.slane %v4772_v11, 4 }
0x1bc2   :  { %v5823_v46 = vpop.eup %5822  ;;  %v4775_v33 = vadd.f32 %v4774_v19, %v4772_v11 }
0x1bc3   :  { %v9662_v1 = vmul.f32 %v5823_v46, %v9572_v28 }
0x1bc4   :  { %v4776_v41 = vrot.slane %v4775_v33, 2 }
0x1bc5   :  { %v4729_v23 = vmul.f32 %v4719_v38, %v9662_v1 }
0x1bc6   :  { %v4777_v60 = vadd.f32 %v4776_v41, %v4775_v33  ;;  %v4701_v36 = vpop.xlane.xlu1 %4700 }
0x1bc7   :  { %v4739_v30 = vsub.f32 %v9555_v27, %v4729_v23  ;;  %v4723_v28 = vmul.f32 %v4701_v36, %v9647_v29 }
0x1bc8   :  { %v4778_v18 = vrot.slane %v4777_v60, 1 }
0x1bc9   :  { %v9669_v37 = vsel %vm4624_vm12, %v9662_v1, %v4739_v30  ;;  %v9684_v22 = vsub.f32 %v9584_v62, %v4723_v28 }
0x1bca   :  { %v4764_v17 = vsel %vm4754_vm8, %v9669_v37, 0.0  ;;  %v9675_v15 = vadd.f32 %v4778_v18, %v4777_v60  ;;  %v4819_v61 = vsel %vm4795_vm0, %v9669_v37, 0.0 }
0x1bcb   :  { %v4787_v5 = vsel %vm221_vm14, %v4764_v17, 0.0  ;;  %v4813_v50 = vsel %vm4795_vm0, %v9684_v22, 0.0  ;;  %v4847_v45 = vsel %vm221_vm14, %v4819_v61, 0.0  ;;  %vm5970_vm14 = vmmov 0  }
0x1bcc   :  { %v4796_v27 = vsel %vm4795_vm0, %v9675_v15, 0.0  ;;  %v4789_v13 = vrot.slane %v4787_v5, 4  ;;  %v4829_v62 = vsel %vm213_vm4, %v4813_v50, 0.0 }
0x1bcd   :  { %v4798_v31 = vsel %vm213_vm4, %v4796_v27, 0.0 }
0x1bce   :  { %4799 = vadd.xlane.f32.xlu1 %v4798_v31  ;;  %v4790_v20 = vadd.f32 %v4789_v13, %v4787_v5 }
0x1bd0   :  { %v4791_v35 = vrot.slane %v4790_v20, 2 }
0x1bd2   :  { %4833 = vadd.xlane.f32.xlu1 %v4832_v55  ;;  %v4792_v9 = vadd.f32 %v4791_v35, %v4790_v20  ;;  %v4716_v63 = vpop.xlane.xlu0 %4715 }
0x1bd3   :  { %v4728_v32 = vmul.f32 %v4716_v63, %v9662_v1 }
0x1bd4   :  { %v4793_v8 = vrot.slane %v4792_v9, 1 }
0x1bd5   :  { %v9699_v0 = vsub.f32 %v9592_v58, %v4728_v32 }
0x1bd6   :  { %4830 = vadd.xlane.f32.xlu1 %v4829_v62  ;;  %v4794_v57 = vadd.f32 %v4793_v8, %v4792_v9 }
0x1bd7   :  { %v4818_v21 = vsel %vm4795_vm0, %v9699_v0, 0.0 }
0x1bd8   :  { %v4797_v26 = vsel %vm4795_vm0, %v4794_v57, 0.0  ;;  %v4844_v10 = vsel %vm213_vm4, %v4818_v21, 0.0 }
0x1bd9   :  { %v4801_v39 = vsel %vm213_vm4, %v4797_v26, 0.0 }
0x1bda   :  { %4802 = vadd.xlane.f32.xlu0 %v4801_v39 }
0x1bde   :  { %4848 = vadd.xlane.f32.xlu0 %v4847_v45 }
0x1be0   :  { %v4698_v25 = vpop.xlane.xlu1 %4697 }
0x1be1   :  { %v4722_v59 = vmul.f32 %v4698_v25, %v9647_v29 }
0x1be2   :  { %4845 = vadd.xlane.f32.xlu0 %v4844_v10  ;;  %v101_v10 = vld [vmem:[#allocation7] sm:$0xff] }
0x1be3   :  { %v4732_v58 = vsub.f32 %v9600_v16, %v4722_v59  ;;  %5593 = vmatprep.mubr.msk.f32.mxu0 %vm187_vm2, %v101_v10  ;;  %5609 = vmatprep.mubr.msk.f32.mxu1 %vm187_vm2, %v101_v10 }
0x1be4   :  { %v4695_v6 = vpop.xlane.xlu1 %4694 }
0x1be5   :  { %v4721_v4 = vmul.f32 %v4695_v6, %v9647_v29  ;;  %v4812_v52 = vsel %vm4795_vm0, %v4732_v58, 0.0 }
0x1be6   :  { %v4826_v47 = vsel %vm213_vm4, %v4812_v52, 0.0 }
0x1be7   :  { %v9716_v40 = vsub.f32 %v9608_v48, %v4721_v4  ;;  %4827 = vadd.xlane.f32.xlu1 %v4826_v47 }
0x1be9   :  { %v4811_v7 = vsel %vm4795_vm0, %v9716_v40, 0.0 }
0x1bea   :  { %v4823_v43 = vsel %vm213_vm4, %v4811_v7, 0.0 }
0x1beb   :  { %4824 = vadd.xlane.f32.xlu1 %v4823_v43 }
0x1bec   :  { %v4713_v16 = vpop.xlane.xlu0 %4712 }
0x1bed   :  { %v4727_v44 = vmul.f32 %v4713_v16, %v9662_v1 }
0x1bef   :  { %v4737_v49 = vsub.f32 %v9616_v34, %v4727_v44 }
0x1bf0   :  { %v4710_v54 = vpop.xlane.xlu0 %4709 }
0x1bf1   :  { %v4726_v12 = vmul.f32 %v4710_v54, %v9662_v1  ;;  %v4817_v48 = vsel %vm4795_vm0, %v4737_v49, 0.0 }
0x1bf2   :  { %v4841_v11 = vsel %vm213_vm4, %v4817_v48, 0.0  ;;  %v102_v48 = vld [vmem:[#allocation7 + $0x8] sm:$0xff] }
0x1bf3   :  { %v4736_v19 = vsub.f32 %v9624_v42, %v4726_v12  ;;  %4842 = vadd.xlane.f32.xlu0 %v4841_v11  ;;  %v103_v11 = vld [vmem:[#allocation7 + $0x10] sm:$0xff] }
0x1bf5   :  { %v4816_v46 = vsel %vm4795_vm0, %v4736_v19, 0.0 }
0x1bf6   :  { %v4838_v33 = vsel %vm213_vm4, %v4816_v46, 0.0 }
0x1bf7   :  { %4839 = vadd.xlane.f32.xlu0 %v4838_v33 }
0x1c25   :  { %v4692_v38 = vpop.xlane.xlu1 %4691 }
0x1c26   :  { %v4720_v34 = vmul.f32 %v4692_v38, %v9647_v29 }
0x1c28   :  { %v4730_v41 = vsub.f32 %v9632_v14, %v4720_v34 }
0x1c2a   :  { %v4810_v23 = vsel %vm4795_vm0, %v4730_v41, 0.0 }
0x1c2b   :  { %v4820_v60 = vsel %vm213_vm4, %v4810_v23, 0.0 }
0x1c2c   :  { %4821 = vadd.xlane.f32.xlu1 %v4820_v60 }
0x1c31   :  { %v4707_v30 = vpop.xlane.xlu0 %4706 }
0x1c32   :  { %v4725_v42 = vmul.f32 %v4707_v30, %v9662_v1  ;;  %v109_v30 = vld [vmem:[%s9846_s5 + $0x20] sm:$0xf] }
0x1c34   :  { %v4735_v36 = vsub.f32 %v9640_v51, %v4725_v42 }
0x1c36   :  { %v4815_v18 = vsel %vm4795_vm0, %v4735_v36, 0.0 }
0x1c37   :  { %v4835_v17 = vsel %vm213_vm4, %v4815_v18, 0.0  ;;  %vm4911_vm4 = vcmask 1043456   ;;  %v108_v18 = vld [vmem:[%s9846_s5 + $0x18] sm:$0xff] }
0x1c38   :  { %4836 = vadd.xlane.f32.xlu0 %v4835_v17 }
0x1c57   :  { %v4800_v29 = vpop.xlane.xlu1 %4799 }
0x1c58   :  { %5824 = vrcp.f32 %v4800_v29  ;;  %v107_v29 = vld [vmem:[%s9846_s5 + $0x10] sm:$0xff] }
0x1c5b   :  { %v4834_v14 = vpop.xlane.xlu1 %4833 }
0x1c5f   :  { %v4831_v13 = vpop.xlane.xlu1 %4830 }
0x1c63   :  { %v4803_v28 = vpop.xlane.xlu0 %4802 }
0x1c64   :  { %5826 = vrcp.f32 %v4803_v28  ;;  %v105_v28 = vld [vmem:[%s9846_s5] sm:$0xff] }
0x1c65   :  { %v5825_v5 = vpop.eup %5824 }
0x1c66   :  { %v4808_v27 = vmul.f32 %v5825_v5, %v9675_v15  ;;  %v86_v5 = vld [vmem:[#allocation2 + $0x1] sm:$0x1] }
0x1c67   :  { %v4849_v2 = vpop.xlane.xlu0 %4848 }
0x1c68   :  { %v4853_v31 = vmul.f32 %v4831_v13, %v4808_v27  ;;  %v4854_v63 = vmul.f32 %v4834_v14, %v4808_v27  ;;  %v106_v14 = vld [vmem:[%s9846_s5 + $0x8] sm:$0xff]  ;;  %s5971_s5 = smov [#allocation10]  }
0x1c69   :  { %v98_v13 = vld [vmem:[#allocation5 + $0x8] sm:$0xff]  ;;  %s5472_s14 = sshll.u32 %s5971_s5, 4  ;;  %s5473_s14 = int_to_ptr.vmem [resolvable:$true] %s5472_s14 }
0x1c6a   :  { %v4863_v1 = vsub.f32 %v9684_v22, %v4853_v31  ;;  %v4864_v8 = vsub.f32 %v9655_v24, %v4854_v63  ;;  %s5908_s17 = scalar_lea.vmem %s5473_s14, 32  ;;  %p5913_p7 = scmp.lt.s32.totalorder %s5473_s14, %s5473_s14 }
0x1c6b   :  { %v4846_v20 = vpop.xlane.xlu0 %4845  ;;  %p5909_p6 = scmp.ne.s32.totalorder %s5473_s14, %s5908_s17  ;;  %p5914_p8 = scmp.lt.s32.totalorder %s5908_s17, %s5908_s17 }
0x1c6c   :  { %4891 = vrot.lane.b32.xlu1 %v4863_v1, %s5969_s2  ;;  %v4874_v61 = vsel %vm4754_vm8, %v4808_v27, %v4864_v8  ;;  %v97_v1 = vld [vmem:[#allocation5] sm:$0xff] }
0x1c6d   :  { %p5915_p9 = por %p5914_p8, %p5913_p7 }
0x1c6f   :  { %p5916_p10 = pnand %p5915_p9, %p5909_p6 }
0x1c70   :  { %v4828_v35 = vpop.xlane.xlu1 %4827 }
0x1c71   :  { %v5827_v51 = vpop.eup %5826  ;;  %v4852_v9 = vmul.f32 %v4828_v35, %v4808_v27 }
0x1c72   :  { %v4809_v56 = vmul.f32 %v5827_v51, %v4794_v57 }
0x1c73   :  { %v4862_v15 = vsub.f32 %v4732_v58, %v4852_v9  ;;  %v99_v9 = vld [vmem:[#allocation5 + $0x10] sm:$0xff] }
0x1c74   :  { %v4858_v55 = vmul.f32 %v4846_v20, %v4809_v56  ;;  %v4825_v62 = vpop.xlane.xlu1 %4824  ;;  %v4859_v22 = vmul.f32 %v4849_v2, %v4809_v56  ;;  %v100_v20 = vld [vmem:[#allocation5 + $0x18] sm:$0xff] }
0x1c75   :  { %v4851_v39 = vmul.f32 %v4825_v62, %v4808_v27 }
0x1c76   :  { %v4868_v50 = vsub.f32 %v9699_v0, %v4858_v55  ;;  %v4869_v0 = vsub.f32 %v9669_v37, %v4859_v22 }
0x1c77   :  { %v4861_v24 = vsub.f32 %v9716_v40, %v4851_v39 }
0x1c78   :  { %5010 = vrot.lane.b32.xlu1 %v4868_v50, %s5969_s2  ;;  %v4879_v25 = vsel %vm4754_vm8, %v4809_v56, %v4869_v0 }
0x1c7c   :  { %v4843_v32 = vpop.xlane.xlu0 %4842  ;;  %4889 = vrot.lane.b32.xlu1 %v4862_v15, %s5969_s2 }
0x1c7d   :  { %v4857_v26 = vmul.f32 %v4843_v32, %v4809_v56 }
0x1c7f   :  { %v4867_v57 = vsub.f32 %v4737_v49, %v4857_v26 }
0x1c80   :  { %v4840_v45 = vpop.xlane.xlu0 %4839  ;;  %4893 = vrot.lane.b32.xlu1 %v4874_v61, %s5969_s2 }
0x1c81   :  { %5008 = vrot.lane.b32.xlu0 %v4867_v57, %s5969_s2  ;;  %v4856_v21 = vmul.f32 %v4840_v45, %v4809_v56 }
0x1c83   :  { %v4866_v59 = vsub.f32 %v4736_v19, %v4856_v21  ;;  %v104_v19 = vld [vmem:[#allocation7 + $0x18] sm:$0xff] }
0x1c84   :  { %4887 = vrot.lane.b32.xlu1 %v4861_v24, %s5969_s2 }
0x1c85   :  { %5012 = vrot.lane.b32.xlu0 %v4879_v25, %s5969_s2 }
0x1c89   :  { %5006 = vrot.lane.b32.xlu0 %v4866_v59, %s5969_s2 }
0x1cb5   :  { %v4822_v37 = vpop.xlane.xlu1 %4821 }
0x1cb6   :  { %v4850_v58 = vmul.f32 %v4822_v37, %v4808_v27 }
0x1cb8   :  { %v4860_v6 = vsub.f32 %v4730_v41, %v4850_v58 }
0x1cba   :  { %4885 = vrot.lane.b32.xlu1 %v4860_v6, %s5969_s2 }
0x1cc1   :  { %v4837_v4 = vpop.xlane.xlu0 %4836 }
0x1cc2   :  { %v4855_v52 = vmul.f32 %v4837_v4, %v4809_v56 }
0x1cc4   :  { %v4865_v47 = vsub.f32 %v4735_v36, %v4855_v52  ;;  %v85_v36 = vld [vmem:[#allocation2] sm:$0x1] }
0x1cc6   :  { %5004 = vrot.lane.b32.xlu0 %v4865_v47, %s5969_s2 }
0x1cde   :  { %v4892_v53 = vpop.permute.xlu1 %4891 }
0x1cea   :  { %v5011_v40 = vpop.permute.xlu1 %5010 }
0x1cee   :  { %v4890_v7 = vpop.permute.xlu1 %4889 }
0x1cf2   :  { %v4894_v43 = vpop.permute.xlu1 %4893 }
0x1cf3   :  { %v5009_v16 = vpop.permute.xlu0 %5008  ;;  %5583 = vmatprep.subr.msk.mxu0 %vm4911_vm4, %v4894_v43 }
0x1cf4   :  { %5584 = vmatpush3.msk.msra.mxu0 %vm4911_vm4, %v4894_v43 }
0x1cf5   :  { %5585 = vmatprep.subr.mxu0 %v4892_v53 }
0x1cf6   :  { %5586 = vmatpush3.msra.mxu0 %v4892_v53  ;;  %v4888_v49 = vpop.permute.xlu1 %4887 }
0x1cf7   :  { %v5013_v44 = vpop.permute.xlu0 %5012  ;;  %5587 = vmatprep.subr.mxu0 %v4890_v7 }
0x1cf8   :  { %5588 = vmatpush3.msra.mxu0 %v4890_v7  ;;  %5599 = vmatprep.subr.msk.mxu1 %vm4911_vm4, %v5013_v44 }
0x1cf9   :  { %5589 = vmatprep.subr.mxu0 %v4888_v49  ;;  %5600 = vmatpush3.msk.msra.mxu1 %vm4911_vm4, %v5013_v44 }
0x1cfa   :  { %5590 = vmatpush3.msra.mxu0 %v4888_v49  ;;  %5601 = vmatprep.subr.mxu1 %v5011_v40 }
0x1cfb   :  { %5602 = vmatpush3.msra.mxu1 %v5011_v40  ;;  %v5007_v54 = vpop.permute.xlu0 %5006 }
0x1cfc   :  { %5603 = vmatprep.subr.mxu1 %v5009_v16 }
0x1cfd   :  { %5604 = vmatpush3.msra.mxu1 %v5009_v16 }
0x1cfe   :  { %5605 = vmatprep.subr.mxu1 %v5007_v54 }
0x1cff   :  { %5606 = vmatpush3.msra.mxu1 %v5007_v54 }
0x1d2c   :  { %v4886_v12 = vpop.permute.xlu1 %4885 }
0x1d2d   :  { %5591 = vmatprep.subr.mxu0 %v4886_v12 }
0x1d2e   :  { %5592 = vmatpush3.msra.mxu0 %v4886_v12 }
0x1d2f   :  { %5594 = vmatmul.mubr.msk.f32.vlgmr.msra.gmra.mxu0 %vm187_vm2, %v102_v48  ;;  %5615 = vmatprep.subr.mxu0 %v5966_v3 }
0x1d30   :  { %5596 = vmatprep.mubr.msk.f32.mxu0 %vm187_vm2, %v103_v11 }
0x1d33   :  { %5597 = vmatmul.mubr.msk.f32.gmra.mxu0 %vm187_vm2, %v104_v19 }
0x1d34   :  { %5623 = vmatprep.mubr.msk.f32.mxu0 %vm5970_vm14, %v5966_v3 }
0x1d38   :  { %v5005_v46 = vpop.permute.xlu0 %5004 }
0x1d39   :  { %5607 = vmatprep.subr.mxu1 %v5005_v46 }
0x1d3a   :  { %5608 = vmatpush3.msra.mxu1 %v5005_v46 }
0x1d3b   :  { %5610 = vmatmul.mubr.msk.f32.vlgmr.msra.gmra.mxu1 %vm187_vm2, %v102_v48  ;;  %5626 = vmatprep.subr.mxu1 %v5966_v3 }
0x1d3c   :  { %5612 = vmatprep.mubr.msk.f32.mxu1 %vm187_vm2, %v103_v11 }
0x1d3f   :  { %5613 = vmatmul.mubr.msk.f32.gmra.mxu1 %vm187_vm2, %v104_v19 }
0x1d40   :  { %5634 = vmatprep.mubr.msk.f32.mxu1 %vm5970_vm14, %v5966_v3 }
0x1def   :  { %v5595_v33 = vpop.f32.mrf.mxu0 }
0x1df1   :  { %v4980_v38 = vpop.f32.mrf.mxu0 }
0x1df3   :  { %v5598_v34 = vpop.f32.mrf.mxu0 }
0x1df4   :  { %5616 = vmatpush3.xpose.msk.msra.mxu0 %vm187_vm2, %v5598_v34 }
0x1df5   :  { %v4990_v41 = vpop.f32.mrf.mxu0  ;;  %5617 = vmatprep.subr.mxu0 %v5966_v3 }
0x1df8   :  { %5618 = vmatpush3.xpose.msk.msra.mxu0 %vm187_vm2, %v4990_v41 }
0x1df9   :  { %5619 = vmatprep.subr.mxu0 %v5966_v3 }
0x1dfb   :  { %v5611_v23 = vpop.f32.mrf.mxu1 }
0x1dfc   :  { %5620 = vmatpush3.xpose.msk.msra.mxu0 %vm187_vm2, %v5595_v33 }
0x1dfd   :  { %v5086_v60 = vpop.f32.mrf.mxu1  ;;  %5621 = vmatprep.subr.mxu0 %v5966_v3 }
0x1dff   :  { %v5614_v42 = vpop.f32.mrf.mxu1 }
0x1e00   :  { %5622 = vmatpush3.xpose.msk.msra.mxu0 %vm187_vm2, %v4980_v38  ;;  %5627 = vmatpush3.xpose.msk.msra.mxu1 %vm187_vm2, %v5614_v42 }
0x1e01   :  { %5628 = vmatprep.subr.mxu1 %v5966_v3  ;;  %5637 = vmatprep.subr.msk.mxu0 %vm4911_vm4, %v109_v30  ;;  %v5096_v17 = vpop.f32.mrf.mxu1 }
0x1e03   :  { %5624 = vmatmul.mubr.msk.f32.vlgmr.msra.gmra.mxu0 %vm187_vm2, %v85_v36 }
0x1e04   :  { %5629 = vmatpush3.xpose.msk.msra.mxu1 %vm187_vm2, %v5096_v17  ;;  %5638 = vmatpush3.msk.msra.mxu0 %vm4911_vm4, %v109_v30 }
0x1e05   :  { %5647 = vmatprep.mubr.msk.f32.mxu0 %vm187_vm2, %v4980_v38  ;;  %5639 = vmatprep.subr.mxu0 %v108_v18 }
0x1e06   :  { %5640 = vmatpush3.msra.mxu0 %v108_v18  ;;  %5630 = vmatprep.subr.mxu1 %v5966_v3 }
0x1e07   :  { %5641 = vmatprep.subr.mxu0 %v107_v29 }
0x1e08   :  { %5631 = vmatpush3.xpose.msk.msra.mxu1 %vm187_vm2, %v5611_v23  ;;  %5642 = vmatpush3.msra.mxu0 %v107_v29 }
0x1e09   :  { %5643 = vmatprep.subr.mxu0 %v106_v14  ;;  %5632 = vmatprep.subr.mxu1 %v5966_v3 }
0x1e0a   :  { %5644 = vmatpush3.msra.mxu0 %v106_v14 }
0x1e0b   :  { %5645 = vmatprep.subr.mxu0 %v105_v28 }
0x1e0c   :  { %5633 = vmatpush3.xpose.msk.msra.mxu1 %vm187_vm2, %v5086_v60  ;;  %5646 = vmatpush3.msra.mxu0 %v105_v28 }
0x1e0d   :  { %5648 = vmatmul.mubr.msk.f32.vlgmr.msra.gmra.mxu0 %vm187_vm2, %v5595_v33  ;;  %5653 = vmatprep.subr.msk.mxu1 %vm4911_vm4, %v109_v30 }
0x1e0e   :  { %5650 = vmatprep.mubr.msk.f32.mxu0 %vm187_vm2, %v4990_v41 }
0x1e0f   :  { %5635 = vmatmul.mubr.msk.f32.vlgmr.msra.gmra.mxu1 %vm187_vm2, %v86_v5 }
0x1e10   :  { %5654 = vmatpush3.msk.msra.mxu1 %vm4911_vm4, %v109_v30  ;;  %5663 = vmatprep.mubr.msk.f32.mxu1 %vm187_vm2, %v5086_v60 }
0x1e11   :  { %5651 = vmatmul.mubr.msk.f32.gmra.mxu0 %vm187_vm2, %v5598_v34  ;;  %5655 = vmatprep.subr.mxu1 %v108_v18 }
0x1e12   :  { %5656 = vmatpush3.msra.mxu1 %v108_v18 }
0x1e13   :  { %5657 = vmatprep.subr.mxu1 %v107_v29 }
0x1e14   :  { %5658 = vmatpush3.msra.mxu1 %v107_v29 }
0x1e15   :  { %5659 = vmatprep.subr.mxu1 %v106_v14 }
0x1e16   :  { %5660 = vmatpush3.msra.mxu1 %v106_v14 }
0x1e17   :  { %5661 = vmatprep.subr.mxu1 %v105_v28 }
0x1e18   :  { %5662 = vmatpush3.msra.mxu1 %v105_v28 }
0x1e19   :  { %5664 = vmatmul.mubr.msk.f32.vlgmr.msra.gmra.mxu1 %vm187_vm2, %v5611_v23 }
0x1e1a   :  { %5666 = vmatprep.mubr.msk.f32.mxu1 %vm187_vm2, %v5096_v17 }
0x1e1d   :  { %5667 = vmatmul.mubr.msk.f32.gmra.mxu1 %vm187_vm2, %v5614_v42 }
0x1ec3   :  { %v5186_v3 = vpop.f32.mrf.mxu0 }
0x1ec4   :  { %5457 = vst.msk [vmem:[#allocation10] sm:$0x1] %vm5456_vm6, %v5186_v3 }
0x1ec5   :  { %v5625_v27 = vpop.f32.mrf.mxu0 }
0x1ecd   :  { %v5649_v31 = vpop.f32.mrf.mxu0 }
0x1ece   :  { %v5449_v2 = vsub.f32 %v98_v13, %v5649_v31 }
0x1ecf   :  { %v5271_v51 = vpop.f32.mrf.mxu1  ;;  %v5344_v56 = vpop.f32.mrf.mxu0 }
0x1ed0   :  { %5460 = vst.msk [vmem:[#allocation11 + $0x8] sm:$0xff] %vm115_vm1, %v5449_v2  ;;  %v5448_v35 = vsub.f32 %v97_v1, %v5344_v56 }
0x1ed1   :  { %5458 = vst.msk [vmem:[#allocation10 + $0x1] sm:$0x1] %vm5456_vm6, %v5271_v51  ;;  %v5636_v55 = vpop.f32.mrf.mxu1  ;;  %v5652_v50 = vpop.f32.mrf.mxu0 }
0x1ed2   :  { %5919 = shalt.err (!%p5916_p10)
}
0x1ed3   :  { %5478 = dma.vmem_to_hbm [thread:$0]  %s5473_s14, 32, %s9848_s7, [#allocation4], %s5962_s15, %s5962_s15, %s5963_s16   ;;  %5459 = vst.msk [vmem:[#allocation11] sm:$0xff] %vm115_vm1, %v5448_v35  ;;  %v5451_v63 = vsub.f32 %v100_v20, %v5652_v50  ;;  %v5354_v15 = vpop.f32.mrf.mxu0 }
0x1ed4   :  { %v5450_v8 = vsub.f32 %v99_v9, %v5354_v15  ;;  %s5972_s19 = smov [#allocation11]  }
0x1ed5   :  { %5462 = vst.msk [vmem:[#allocation11 + $0x18] sm:$0xff] %vm115_vm1, %v5451_v63  ;;  %s5484_s20 = sshll.u32 %s5972_s19, 4  ;;  %s5485_s20 = int_to_ptr.vmem [resolvable:$true] %s5484_s20 }
0x1ed6   :  { %5461 = vst.msk [vmem:[#allocation11 + $0x10] sm:$0xff] %vm115_vm1, %v5450_v8  ;;  %s5928_s7 = scalar_lea.vmem %s5485_s20, 1024  ;;  %p5933_p12 = scmp.lt.s32.totalorder %s5485_s20, %s5485_s20 }
0x1ed7   :  { %p5929_p11 = scmp.ne.s32.totalorder %s5485_s20, %s5928_s7  ;;  %p5934_p13 = scmp.lt.s32.totalorder %s5928_s7, %s5928_s7 }
0x1ed9   :  { %v5665_v62 = vpop.f32.mrf.mxu1  ;;  %p5935_p0 = por %p5934_p13, %p5933_p12 }
0x1eda   :  { %v5453_v22 = vsub.f32 %v98_v13, %v5665_v62 }
0x1edb   :  { %v5429_v32 = vpop.f32.mrf.mxu1  ;;  %p5936_p1 = pnand %p5935_p0, %p5929_p11 }
0x1edc   :  { %5464 = vst.msk [vmem:[#allocation11 + $0x28] sm:$0xff] %vm115_vm1, %v5453_v22  ;;  %v5452_v26 = vsub.f32 %v97_v1, %v5429_v32 }
0x1edd   :  { %v5668_v39 = vpop.f32.mrf.mxu1 }
0x1ede   :  { %5463 = vst.msk [vmem:[#allocation11 + $0x20] sm:$0xff] %vm115_vm1, %v5452_v26  ;;  %v5455_v57 = vsub.f32 %v100_v20, %v5668_v39 }
0x1edf   :  { %v5439_v61 = vpop.f32.mrf.mxu1 }
0x1ee0   :  { %5466 = vst.msk [vmem:[#allocation11 + $0x38] sm:$0xff] %vm115_vm1, %v5455_v57  ;;  %v5454_v0 = vsub.f32 %v99_v9, %v5439_v61 }
0x1ee2   :  { %5465 = vst.msk [vmem:[#allocation11 + $0x30] sm:$0xff] %vm115_vm1, %v5454_v0 }
0x1ee3   :  { %5939 = shalt.err (!%p5936_p1)
}
0x1ee4   :  { %5490 = dma.vmem_to_hbm [thread:$0]  %s5485_s20, 1024, %s9849_s8, [#allocation12], %s5959_s30, %s5959_s30, %s5960_s9  }
0x1ee5   :  { %5954 = dma.done.wait [#allocation4], 32  }
0x1ee6   :  { %5955 = vsyncadd [#allocation4], 4294967264 }
0x1ee7   :  { %5956 = dma.done.wait [#allocation12], 1024  }
0x1ee8   :  { %5957 = vsyncadd [#allocation12], 4294966272 }
0x1ee9   :  { %5497 = vsyncpa [#allocation3], 1 }
0x1eea   :  { %5498 = vsyncpa [#allocation6], 1 }
0x1eeb   :  { %5499 = vsyncpa [#allocation9], 1 }
0x1eec   :  { %5500 = vsyncpa [#allocation4], 1 }
0x1eed   :  { %5501 = vsyncpa [#allocation12], 1 }

</bundles_post_ra>
